<compile_context>
chip_gen: v5e
topology: v5e:2x2
jax: 0.10.0
libtpu: 0.0.40
codegen_flags: <defaults>
</compile_context>

<pallas_src>
import functools

import jax
import jax.numpy as jnp
from jax.experimental import pallas as pl
from jax.experimental.pallas import tpu as pltpu


def _audio_gru_kernel(
    x_ref,                                         # (TT, TB, E)  time-major input chunk (matmul dtype)
    w_ih0_ref, w_hh0_ref, b_ih0_ref, b_hh0_ref,    # (E,3H) (H,3H) (1,3H) (1,3H)
    w_ih1_ref, w_hh1_ref, b_ih1_ref, b_hh1_ref,    # (H,3H) (H,3H) (1,3H) (1,3H)
    fc1_w_ref, fc1_b_ref,                          # (H,H) (1,H)
    fc2_w_ref, fc2_b_ref,                          # (1,H) (1,C)   (C == 1)
    out_ref,                                       # (TB, C)
    gi_ref,                                        # (TT, TB, 3H) f32 scratch (shared by both layers)
    h0_seq_ref,                                    # (TT, TB, H)  matmul-dtype scratch (layer-0 outputs)
    h0_ref, h1_ref, acc_ref,                       # (TB, H) f32 carries across time chunks
    *, seq_len, unroll,
):
    TT, TB, E = x_ref.shape
    H = w_hh0_ref.shape[0]
    md = x_ref.dtype                               # MXU operand dtype (bf16 or f32)

    t_chunk = pl.program_id(1)
    n_chunks = pl.num_programs(1)
    chunk_start = t_chunk * TT
    mask_needed = (seq_len % TT) != 0              # static: only the last chunk can be ragged

    # ---- init carries at the first time chunk of each batch tile ----
    @pl.when(t_chunk == 0)
    def _():
        h0_ref[...] = jnp.zeros_like(h0_ref)
        h1_ref[...] = jnp.zeros_like(h1_ref)
        acc_ref[...] = jnp.zeros_like(acc_ref)

    def gates(gi, gh, h):
        # PyTorch GRU, gate order (r, z, n); gi already includes b_ih, gh includes b_hh.
        r = jax.nn.sigmoid(gi[:, :H] + gh[:, :H])
        z = jax.nn.sigmoid(gi[:, H:2 * H] + gh[:, H:2 * H])
        n = jnp.tanh(gi[:, 2 * H:] + r * gh[:, 2 * H:])
        return n + z * (h - n)                     # == (1 - z) * n + z * h

    # ---- layer 0: hoisted input projection (one big MXU matmul per chunk) ----
    x_flat = x_ref[...].reshape(TT * TB, E)
    gi0 = jnp.dot(x_flat, w_ih0_ref[...], preferred_element_type=jnp.float32)
    gi_ref[...] = (gi0 + b_ih0_ref[...]).reshape(TT, TB, 3 * H)

    b_hh0 = b_hh0_ref[...]                         # hoisted: JAX does not CSE per-iter broadcasts

    def step0(t, h0):
        gi = gi_ref[t]                             # (TB, 3H), contiguous
        gh = jnp.dot(h0.astype(md), w_hh0_ref[...],
                     preferred_element_type=jnp.float32) + b_hh0
        h0_new = gates(gi, gh, h0)
        if mask_needed:
            h0_new = jnp.where(chunk_start + t < seq_len, h0_new, h0)
        h0_seq_ref[t] = h0_new.astype(md)
        return h0_new

    h0 = jax.lax.fori_loop(0, TT, step0, h0_ref[...], unroll=unroll)
    h0_ref[...] = h0

    # ---- layer 1: hoisted input projection from the layer-0 outputs ----
    gi1 = jnp.dot(h0_seq_ref[...].reshape(TT * TB, H), w_ih1_ref[...],
                  preferred_element_type=jnp.float32)
    gi_ref[...] = (gi1 + b_ih1_ref[...]).reshape(TT, TB, 3 * H)

    b_hh1 = b_hh1_ref[...]

    def step1(t, carry):
        h1, acc = carry
        gi = gi_ref[t]
        gh = jnp.dot(h1.astype(md), w_hh1_ref[...],
                     preferred_element_type=jnp.float32) + b_hh1
        h1_new = gates(gi, gh, h1)
        if mask_needed:
            valid = chunk_start + t < seq_len
            h1_new = jnp.where(valid, h1_new, h1)
            acc = jnp.where(valid, acc + h1_new, acc)
        else:
            acc = acc + h1_new
        return h1_new, acc

    h1, acc = jax.lax.fori_loop(0, TT, step1, (h1_ref[...], acc_ref[...]), unroll=unroll)
    h1_ref[...] = h1
    acc_ref[...] = acc

    # ---- epilogue at the last time chunk: fc_audio (Dropout == identity) ----
    @pl.when(t_chunk == n_chunks - 1)
    def _():
        s = acc_ref[...]
        y = jnp.dot(s.astype(md), fc1_w_ref[...], preferred_element_type=jnp.float32)
        y = jnp.maximum(y + fc1_b_ref[...], 0.0)
        # num_classes == 1: VPU broadcast-mul + lane reduce (don't put an N=1 matmul on the MXU).
        logits = jnp.sum(y * fc2_w_ref[...], axis=-1, keepdims=True) + fc2_b_ref[...]
        out_ref[...] = jnp.maximum(logits, 0.0).astype(out_ref.dtype)


def audio_bilstm_forward(x, params, *, batch_tile=None, time_chunk=None,
                         matmul_dtype=jnp.bfloat16):
    """Pallas implementation of AudioBiLSTM.forward (inference).

    x: (B, T, E) float32.  params: PyTorch-layout GRU / Linear weights.
    matmul_dtype: dtype of MXU operands (bf16 default; float32 for exact checks).
    Returns (B, num_classes) float32.
    """
    x = jnp.asarray(x, jnp.float32)
    B, T, E = x.shape
    md = jnp.dtype(matmul_dtype)
    md_size = md.itemsize

    w_ih0 = jnp.asarray(params["gru_w_ih_l0"], jnp.float32)
    H = w_ih0.shape[0] // 3
    C = jnp.asarray(params["fc2_w"]).shape[0]
    assert C == 1, "kernel head is specialised for num_classes == 1 (config['num_classes'])"

    # Pre-transpose weights so kernel matmuls are plain (M,K)@(K,N); MXU operands in matmul dtype.
    w_ih0_t = w_ih0.T.astype(md)                                              # (E, 3H)
    w_hh0_t = jnp.asarray(params["gru_w_hh_l0"], jnp.float32).T.astype(md)    # (H, 3H)
    b_ih0 = jnp.asarray(params["gru_b_ih_l0"], jnp.float32).reshape(1, 3 * H)
    b_hh0 = jnp.asarray(params["gru_b_hh_l0"], jnp.float32).reshape(1, 3 * H)
    w_ih1_t = jnp.asarray(params["gru_w_ih_l1"], jnp.float32).T.astype(md)    # (H, 3H)
    w_hh1_t = jnp.asarray(params["gru_w_hh_l1"], jnp.float32).T.astype(md)    # (H, 3H)
    b_ih1 = jnp.asarray(params["gru_b_ih_l1"], jnp.float32).reshape(1, 3 * H)
    b_hh1 = jnp.asarray(params["gru_b_hh_l1"], jnp.float32).reshape(1, 3 * H)
    fc1_w_t = jnp.asarray(params["fc1_w"], jnp.float32).T.astype(md)          # (H, H)
    fc1_b = jnp.asarray(params["fc1_b"], jnp.float32).reshape(1, H)
    fc2_w = jnp.asarray(params["fc2_w"], jnp.float32).reshape(1, H)           # f32 row vector (VPU head)
    fc2_b = jnp.asarray(params["fc2_b"], jnp.float32).reshape(1, C)

    # ---- batch tile: >=2 tiles when the batch permits (feeds both v7x TensorCores) ----
    if batch_tile is None:
        if B >= 512:
            TB = 256
        elif B >= 16:
            TB = min(256, ((-(-B // 2) + 7) // 8) * 8)
        else:
            TB = ((B + 7) // 8) * 8
    else:
        TB = batch_tile

    # ---- time chunk: bounds VMEM independently of T.  Default sized for v7x's 64 MiB
    # physical VMEM; raise (e.g. 32-64) on v5e/v6e (128 MiB) to amortize step overhead. ----
    TT = min(T, 16) if time_chunk is None else min(T, time_chunk)

    Bp = -(-B // TB) * TB
    Tp = -(-T // TT) * TT

    # Time-major layout: each recurrent step reads a contiguous (TB, E) slab; the one-off
    # wrapper transpose is cheap relative to the compute-bound kernel (low-priority to remove).
    xt = jnp.transpose(x, (1, 0, 2)).astype(md)                # (T, B, E)
    xt = jnp.pad(xt, ((0, Tp - T), (0, Bp - B), (0, 0)))       # zero-pad; tail steps masked in-kernel

    grid = (Bp // TB, Tp // TT)                                # time LAST ("arbitrary")
    unroll = True if TT <= 8 else 4                            # full unroll for short chunks

    # ---- VMEM budget / limit (derived from footprint; stays <= ~48 MiB for default TT) ----
    mxu_weight_elems = E * 3 * H + 3 * (H * 3 * H) + H * H
    f32_weight_elems = 4 * 3 * H + 2 * H + C
    weight_bytes = mxu_weight_elems * md_size + f32_weight_elems * 4
    x_block_bytes = TT * TB * E * md_size
    gi_bytes = TT * TB * 3 * H * 4
    h0_seq_bytes = TT * TB * H * md_size
    carry_bytes = 3 * TB * H * 4
    vmem_need = (2 * x_block_bytes + gi_bytes + h0_seq_bytes + carry_bytes
                 + weight_bytes + gi_bytes)                    # + matmul-output transient
    vmem_limit = max(32 * 1024 * 1024, min(int(vmem_need * 1.25), 112 * 1024 * 1024))

    flops = (2 * Bp * Tp * 3 * H * (E + H)          # layer 0: input proj + recurrent matmuls
             + 2 * Bp * Tp * 3 * H * (2 * H)        # layer 1
             + 2 * Bp * (H * H + H * C))            # fc head
    transcendentals = Bp * Tp * 6 * H
    bytes_accessed = Bp * Tp * E * md_size + weight_bytes + Bp * C * 4

    def const_spec(shape):
        # Constant block index -> fetched once, resident in VMEM; single-buffered
        # (a second pipeline buffer would be pure VMEM waste).
        return pl.BlockSpec(shape, lambda b, t: (0, 0), pipeline_mode=pl.Buffered(1))

    kernel = functools.partial(_audio_gru_kernel, seq_len=T, unroll=unroll)

    out = pl.pallas_call(
        kernel,
        out_shape=jax.ShapeDtypeStruct((Bp, C), jnp.float32),
        grid_spec=pltpu.PrefetchScalarGridSpec(
            num_scalar_prefetch=0,
            grid=grid,
            in_specs=[
                pl.BlockSpec((TT, TB, E), lambda b, t: (t, b, 0)),   # x chunk (double-buffered)
                const_spec((E, 3 * H)),
                const_spec((H, 3 * H)),
                const_spec((1, 3 * H)),
                const_spec((1, 3 * H)),
                const_spec((H, 3 * H)),
                const_spec((H, 3 * H)),
                const_spec((1, 3 * H)),
                const_spec((1, 3 * H)),
                const_spec((H, H)),
                const_spec((1, H)),
                const_spec((1, H)),
                const_spec((1, C)),
            ],
            out_specs=pl.BlockSpec((TB, C), lambda b, t: (b, 0)),
            scratch_shapes=[
                pltpu.VMEM((TT, TB, 3 * H), jnp.float32),   # gi scratch (shared by both layers)
                pltpu.VMEM((TT, TB, H), md),                # layer-0 outputs -> layer-1 gi matmul
                pltpu.VMEM((TB, H), jnp.float32),           # h0 carry
                pltpu.VMEM((TB, H), jnp.float32),           # h1 carry
                pltpu.VMEM((TB, H), jnp.float32),           # sum-over-time carry
            ],
        ),
        compiler_params=pltpu.CompilerParams(
            dimension_semantics=("parallel", "arbitrary"),   # batch parallel, time sequential
            vmem_limit_bytes=vmem_limit,
        ),
        cost_estimate=pl.CostEstimate(
            flops=int(flops),
            transcendentals=int(transcendentals),
            bytes_accessed=int(bytes_accessed),
        ),
    )(xt, w_ih0_t, w_hh0_t, b_ih0, b_hh0, w_ih1_t, w_hh1_t, b_ih1, b_hh1,
      fc1_w_t, fc1_b, fc2_w, fc2_b)

    return out[:B]


def _reference_forward(x, params):
    """Plain-JAX reference matching PyTorch AudioBiLSTM.forward (eval mode)."""
    x = jnp.asarray(x, jnp.float32)
    B, T, E = x.shape
    H = params["gru_w_hh_l0"].shape[1]

    def gru_layer(inp, w_ih, w_hh, b_ih, b_hh):
        def cell(h, x_t):
            gi = x_t @ w_ih.T + b_ih
            gh = h @ w_hh.T + b_hh
            r = jax.nn.sigmoid(gi[:, :H] + gh[:, :H])
            z = jax.nn.sigmoid(gi[:, H:2 * H] + gh[:, H:2 * H])
            n = jnp.tanh(gi[:, 2 * H:] + r * gh[:, 2 * H:])
            h = (1.0 - z) * n + z * h
            return h, h
        h0 = jnp.zeros((B, H), jnp.float32)
        _, outs = jax.lax.scan(cell, h0, jnp.transpose(inp, (1, 0, 2)))
        return jnp.transpose(outs, (1, 0, 2))

    h = gru_layer(x, params["gru_w_ih_l0"], params["gru_w_hh_l0"],
                  params["gru_b_ih_l0"], params["gru_b_hh_l0"])
    h = gru_layer(h, params["gru_w_ih_l1"], params["gru_w_hh_l1"],
                  params["gru_b_ih_l1"], params["gru_b_hh_l1"])
    s = h.sum(axis=1)
    y = jnp.maximum(s @ params["fc1_w"].T + params["fc1_b"], 0.0)
    out = jnp.maximum(y @ params["fc2_w"].T + params["fc2_b"], 0.0)
    return out


if __name__ == "__main__":
    # Shapes from the spec's config: audio_embed_size=256, audio_hidden_dims=256,
    # rnn_layers=2, num_classes=1, batch_size=4.  Short sequence (T=3).
    B, T = 4, 3
    E, H, C = 256, 256, 1

    key = jax.random.PRNGKey(0)
    keys = jax.random.split(key, 13)
    bound = 1.0 / (H ** 0.5)

    def u(k, shape):
        return jax.random.uniform(k, shape, jnp.float32, minval=-bound, maxval=bound)

    params = {
        "gru_w_ih_l0": u(keys[0], (3 * H, E)),
        "gru_w_hh_l0": u(keys[1], (3 * H, H)),
        "gru_b_ih_l0": u(keys[2], (3 * H,)),
        "gru_b_hh_l0": u(keys[3], (3 * H,)),
        "gru_w_ih_l1": u(keys[4], (3 * H, H)),
        "gru_w_hh_l1": u(keys[5], (3 * H, H)),
        "gru_b_ih_l1": u(keys[6], (3 * H,)),
        "gru_b_hh_l1": u(keys[7], (3 * H,)),
        "fc1_w": u(keys[8], (H, H)),
        "fc1_b": u(keys[9], (H,)),
        "fc2_w": u(keys[10], (C, H)),
        "fc2_b": u(keys[11], (C,)),
    }
    x = jax.random.normal(keys[12], (B, T, E), jnp.float32)

    ref = _reference_forward(x, params)

    # Exact-math path (f32 MXU operands): tight tolerance vs. the f32 reference.
    out_f32 = jax.block_until_ready(
        audio_bilstm_forward(x, params, matmul_dtype=jnp.float32))
    assert out_f32.shape == (B, C), out_f32.shape
    assert jnp.allclose(out_f32, ref, rtol=1e-4, atol=1e-4), (out_f32, ref)

    # Production path (bf16 MXU operands, f32 gates/carries): loose tolerance.
    out_bf16 = jax.block_until_ready(audio_bilstm_forward(x, params))
    assert out_bf16.shape == (B, C), out_bf16.shape
    assert jnp.allclose(out_bf16, ref, rtol=5e-2, atol=5e-2), (out_bf16, ref)

    print("KERNEL_OK")
</pallas_src>

<mosaic_0001>
module attributes {stable_mosaic.version = 11 : i64} {
  func.func @_audio_gru_kernel(%arg0: i32, %arg1: i32, %arg2: memref<3x8x256xf32, #tpu.memory_space<vmem>>, %arg3: memref<256x768xf32, #tpu.memory_space<vmem>>, %arg4: memref<256x768xf32, #tpu.memory_space<vmem>>, %arg5: memref<1x768xf32, #tpu.memory_space<vmem>>, %arg6: memref<1x768xf32, #tpu.memory_space<vmem>>, %arg7: memref<256x768xf32, #tpu.memory_space<vmem>>, %arg8: memref<256x768xf32, #tpu.memory_space<vmem>>, %arg9: memref<1x768xf32, #tpu.memory_space<vmem>>, %arg10: memref<1x768xf32, #tpu.memory_space<vmem>>, %arg11: memref<256x256xf32, #tpu.memory_space<vmem>>, %arg12: memref<1x256xf32, #tpu.memory_space<vmem>>, %arg13: memref<1x256xf32, #tpu.memory_space<vmem>>, %arg14: memref<1x1xf32, #tpu.memory_space<vmem>>, %arg15: memref<8x1xf32, #tpu.memory_space<vmem>>, %arg16: memref<3x8x768xf32, #tpu.memory_space<vmem>>, %arg17: memref<3x8x256xf32, #tpu.memory_space<vmem>>, %arg18: memref<8x256xf32, #tpu.memory_space<vmem>>, %arg19: memref<8x256xf32, #tpu.memory_space<vmem>>, %arg20: memref<8x256xf32, #tpu.memory_space<vmem>>) attributes {dimension_semantics = [#tpu.dimension_semantics<parallel>, #tpu.dimension_semantics<arbitrary>], iteration_bounds = array<i64: 1, 1>, scalar_prefetch = 0 : i64, scratch_operands = 5 : i64, tpu.core_type = #tpu.core_type<tc>, window_params = [{transform_indices = @transform_0, window_bounds = array<i64: 3, 8, 256>}, {pipeline_mode = #tpu.pipeline_mode<synchronous>, transform_indices = @transform_1, window_bounds = array<i64: 256, 768>}, {pipeline_mode = #tpu.pipeline_mode<synchronous>, transform_indices = @transform_2, window_bounds = array<i64: 256, 768>}, {pipeline_mode = #tpu.pipeline_mode<synchronous>, transform_indices = @transform_3, window_bounds = array<i64: 1, 768>}, {pipeline_mode = #tpu.pipeline_mode<synchronous>, transform_indices = @transform_4, window_bounds = array<i64: 1, 768>}, {pipeline_mode = #tpu.pipeline_mode<synchronous>, transform_indices = @transform_5, window_bounds = array<i64: 256, 768>}, {pipeline_mode = #tpu.pipeline_mode<synchronous>, transform_indices = @transform_6, window_bounds = array<i64: 256, 768>}, {pipeline_mode = #tpu.pipeline_mode<synchronous>, transform_indices = @transform_7, window_bounds = array<i64: 1, 768>}, {pipeline_mode = #tpu.pipeline_mode<synchronous>, transform_indices = @transform_8, window_bounds = array<i64: 1, 768>}, {pipeline_mode = #tpu.pipeline_mode<synchronous>, transform_indices = @transform_9, window_bounds = array<i64: 256, 256>}, {pipeline_mode = #tpu.pipeline_mode<synchronous>, transform_indices = @transform_10, window_bounds = array<i64: 1, 256>}, {pipeline_mode = #tpu.pipeline_mode<synchronous>, transform_indices = @transform_11, window_bounds = array<i64: 1, 256>}, {pipeline_mode = #tpu.pipeline_mode<synchronous>, transform_indices = @transform_12, window_bounds = array<i64: 1, 1>}, {transform_indices = @transform_13, window_bounds = array<i64: 8, 1>}]} {
    %c0_i32 = arith.constant 0 : i32
    %0 = arith.cmpi eq, %arg1, %c0_i32 : i32
    %1 = arith.extui %0 : i1 to i32
    %c0_i32_0 = arith.constant 0 : i32
    %2 = arith.cmpi ne, %1, %c0_i32_0 : i32
    scf.if %2 {
      %cst_92 = arith.constant 0.000000e+00 : f32
      %233 = vector.broadcast %cst_92 : f32 to vector<8x256xf32>
      %c0_93 = arith.constant 0 : index
      %c0_94 = arith.constant 0 : index
      %234 = vector.load %arg18[%c0_93, %c0_94] : memref<8x256xf32, #tpu.memory_space<vmem>>, vector<8x256xf32>
      tpu.vector_store %arg18[%c0_93, %c0_94], %233 {strides = array<i32>} : memref<8x256xf32, #tpu.memory_space<vmem>>, vector<8x256xf32>,
      %cst_95 = arith.constant 0.000000e+00 : f32
      %235 = vector.broadcast %cst_95 : f32 to vector<8x256xf32>
      %c0_96 = arith.constant 0 : index
      %c0_97 = arith.constant 0 : index
      %236 = vector.load %arg19[%c0_96, %c0_97] : memref<8x256xf32, #tpu.memory_space<vmem>>, vector<8x256xf32>
      tpu.vector_store %arg19[%c0_96, %c0_97], %235 {strides = array<i32>} : memref<8x256xf32, #tpu.memory_space<vmem>>, vector<8x256xf32>,
      %cst_98 = arith.constant 0.000000e+00 : f32
      %237 = vector.broadcast %cst_98 : f32 to vector<8x256xf32>
      %c0_99 = arith.constant 0 : index
      %c0_100 = arith.constant 0 : index
      %238 = vector.load %arg20[%c0_99, %c0_100] : memref<8x256xf32, #tpu.memory_space<vmem>>, vector<8x256xf32>
      tpu.vector_store %arg20[%c0_99, %c0_100], %237 {strides = array<i32>} : memref<8x256xf32, #tpu.memory_space<vmem>>, vector<8x256xf32>,
    } else {
    }
    %c0 = arith.constant 0 : index
    %c0_1 = arith.constant 0 : index
    %c0_2 = arith.constant 0 : index
    %3 = vector.load %arg2[%c0, %c0_1, %c0_2] : memref<3x8x256xf32, #tpu.memory_space<vmem>>, vector<3x8x256xf32>
    %4 = vector.shape_cast %3 : vector<3x8x256xf32> to vector<24x256xf32>
    %c0_3 = arith.constant 0 : index
    %c0_4 = arith.constant 0 : index
    %5 = vector.load %arg3[%c0_3, %c0_4] : memref<256x768xf32, #tpu.memory_space<vmem>>, vector<256x768xf32>
    %cst = arith.constant dense<0.000000e+00> : vector<24x768xf32>
    %6 = tpu.matmul %4, %5, %cst {dimension_numbers = #tpu.dot_dimension_numbers<[1], [0], [0], [1], [0, 0, 1, 1], [], []>} : vector<24x256xf32>, vector<256x768xf32>, vector<24x768xf32> -> vector<24x768xf32>
    %c0_5 = arith.constant 0 : index
    %c0_6 = arith.constant 0 : index
    %7 = vector.load %arg5[%c0_5, %c0_6] : memref<1x768xf32, #tpu.memory_space<vmem>>, vector<1x768xf32>
    %8 = vector.broadcast %7 : vector<1x768xf32> to vector<24x768xf32>
    %9 = arith.addf %6, %8 : vector<24x768xf32>
    %10 = vector.shape_cast %9 : vector<24x768xf32> to vector<3x8x768xf32>
    %c0_7 = arith.constant 0 : index
    %c0_8 = arith.constant 0 : index
    %c0_9 = arith.constant 0 : index
    %11 = vector.load %arg16[%c0_7, %c0_8, %c0_9] : memref<3x8x768xf32, #tpu.memory_space<vmem>>, vector<3x8x768xf32>
    tpu.vector_store %arg16[%c0_7, %c0_8, %c0_9], %10 {strides = array<i32>} : memref<3x8x768xf32, #tpu.memory_space<vmem>>, vector<3x8x768xf32>,
    %c0_10 = arith.constant 0 : index
    %c0_11 = arith.constant 0 : index
    %12 = vector.load %arg6[%c0_10, %c0_11] : memref<1x768xf32, #tpu.memory_space<vmem>>, vector<1x768xf32>
    %c0_12 = arith.constant 0 : index
    %c0_13 = arith.constant 0 : index
    %13 = vector.load %arg18[%c0_12, %c0_13] : memref<8x256xf32, #tpu.memory_space<vmem>>, vector<8x256xf32>
    %c0_i32_14 = arith.constant 0 : i32
    %14 = arith.index_cast %c0_i32_14 : i32 to index
    %c0_15 = arith.constant 0 : index
    %c0_16 = arith.constant 0 : index
    %15 = vector.load %arg16[%14, %c0_15, %c0_16] : memref<3x8x768xf32, #tpu.memory_space<vmem>>, vector<1x8x768xf32>
    %16 = vector.shape_cast %15 : vector<1x8x768xf32> to vector<8x768xf32>
    %c0_17 = arith.constant 0 : index
    %c0_18 = arith.constant 0 : index
    %17 = vector.load %arg4[%c0_17, %c0_18] : memref<256x768xf32, #tpu.memory_space<vmem>>, vector<256x768xf32>
    %cst_19 = arith.constant dense<0.000000e+00> : vector<8x768xf32>
    %18 = tpu.matmul %13, %17, %cst_19 {dimension_numbers = #tpu.dot_dimension_numbers<[1], [0], [0], [1], [0, 0, 1, 1], [], []>} : vector<8x256xf32>, vector<256x768xf32>, vector<8x768xf32> -> vector<8x768xf32>
    %19 = vector.broadcast %12 : vector<1x768xf32> to vector<8x768xf32>
    %20 = arith.addf %18, %19 : vector<8x768xf32>
    %21 = vector.extract_strided_slice %16 {offsets = [0, 0], sizes = [8, 256], strides = [1, 1]} : vector<8x768xf32> to vector<8x256xf32>
    %22 = vector.extract_strided_slice %20 {offsets = [0, 0], sizes = [8, 256], strides = [1, 1]} : vector<8x768xf32> to vector<8x256xf32>
    %23 = arith.addf %21, %22 : vector<8x256xf32>
    %24 = arith.negf %23 : vector<8x256xf32>
    %25 = math.exp %24 : vector<8x256xf32>
    %cst_20 = arith.constant 1.000000e+00 : f32
    %26 = vector.broadcast %cst_20 : f32 to vector<8x256xf32>
    %27 = arith.addf %26, %25 : vector<8x256xf32>
    %28 = arith.divf %26, %27 : vector<8x256xf32>
    %29 = vector.extract_strided_slice %16 {offsets = [0, 256], sizes = [8, 256], strides = [1, 1]} : vector<8x768xf32> to vector<8x256xf32>
    %30 = vector.extract_strided_slice %20 {offsets = [0, 256], sizes = [8, 256], strides = [1, 1]} : vector<8x768xf32> to vector<8x256xf32>
    %31 = arith.addf %29, %30 : vector<8x256xf32>
    %32 = arith.negf %31 : vector<8x256xf32>
    %33 = math.exp %32 : vector<8x256xf32>
    %cst_21 = arith.constant 1.000000e+00 : f32
    %34 = vector.broadcast %cst_21 : f32 to vector<8x256xf32>
    %35 = arith.addf %34, %33 : vector<8x256xf32>
    %36 = arith.divf %34, %35 : vector<8x256xf32>
    %37 = vector.extract_strided_slice %16 {offsets = [0, 512], sizes = [8, 256], strides = [1, 1]} : vector<8x768xf32> to vector<8x256xf32>
    %38 = vector.extract_strided_slice %20 {offsets = [0, 512], sizes = [8, 256], strides = [1, 1]} : vector<8x768xf32> to vector<8x256xf32>
    %39 = arith.mulf %28, %38 : vector<8x256xf32>
    %40 = arith.addf %37, %39 : vector<8x256xf32>
    %41 = math.tanh %40 : vector<8x256xf32>
    %42 = arith.subf %13, %41 : vector<8x256xf32>
    %43 = arith.mulf %36, %42 : vector<8x256xf32>
    %44 = arith.addf %41, %43 : vector<8x256xf32>
    %45 = arith.index_cast %c0_i32_14 : i32 to index
    %c0_22 = arith.constant 0 : index
    %c0_23 = arith.constant 0 : index
    %46 = vector.load %arg17[%45, %c0_22, %c0_23] : memref<3x8x256xf32, #tpu.memory_space<vmem>>, vector<1x8x256xf32>
    %47 = vector.shape_cast %46 : vector<1x8x256xf32> to vector<8x256xf32>
    %48 = vector.shape_cast %44 : vector<8x256xf32> to vector<1x8x256xf32>
    tpu.vector_store %arg17[%45, %c0_22, %c0_23], %48 {strides = array<i32>} : memref<3x8x256xf32, #tpu.memory_space<vmem>>, vector<1x8x256xf32>,
    %c1_i32 = arith.constant 1 : i32
    %49 = arith.index_cast %c1_i32 : i32 to index
    %c0_24 = arith.constant 0 : index
    %c0_25 = arith.constant 0 : index
    %50 = vector.load %arg16[%49, %c0_24, %c0_25] : memref<3x8x768xf32, #tpu.memory_space<vmem>>, vector<1x8x768xf32>
    %51 = vector.shape_cast %50 : vector<1x8x768xf32> to vector<8x768xf32>
    %c0_26 = arith.constant 0 : index
    %c0_27 = arith.constant 0 : index
    %52 = vector.load %arg4[%c0_26, %c0_27] : memref<256x768xf32, #tpu.memory_space<vmem>>, vector<256x768xf32>
    %cst_28 = arith.constant dense<0.000000e+00> : vector<8x768xf32>
    %53 = tpu.matmul %44, %52, %cst_28 {dimension_numbers = #tpu.dot_dimension_numbers<[1], [0], [0], [1], [0, 0, 1, 1], [], []>} : vector<8x256xf32>, vector<256x768xf32>, vector<8x768xf32> -> vector<8x768xf32>
    %54 = vector.broadcast %12 : vector<1x768xf32> to vector<8x768xf32>
    %55 = arith.addf %53, %54 : vector<8x768xf32>
    %56 = vector.extract_strided_slice %51 {offsets = [0, 0], sizes = [8, 256], strides = [1, 1]} : vector<8x768xf32> to vector<8x256xf32>
    %57 = vector.extract_strided_slice %55 {offsets = [0, 0], sizes = [8, 256], strides = [1, 1]} : vector<8x768xf32> to vector<8x256xf32>
    %58 = arith.addf %56, %57 : vector<8x256xf32>
    %59 = arith.negf %58 : vector<8x256xf32>
    %60 = math.exp %59 : vector<8x256xf32>
    %cst_29 = arith.constant 1.000000e+00 : f32
    %61 = vector.broadcast %cst_29 : f32 to vector<8x256xf32>
    %62 = arith.addf %61, %60 : vector<8x256xf32>
    %63 = arith.divf %61, %62 : vector<8x256xf32>
    %64 = vector.extract_strided_slice %51 {offsets = [0, 256], sizes = [8, 256], strides = [1, 1]} : vector<8x768xf32> to vector<8x256xf32>
    %65 = vector.extract_strided_slice %55 {offsets = [0, 256], sizes = [8, 256], strides = [1, 1]} : vector<8x768xf32> to vector<8x256xf32>
    %66 = arith.addf %64, %65 : vector<8x256xf32>
    %67 = arith.negf %66 : vector<8x256xf32>
    %68 = math.exp %67 : vector<8x256xf32>
    %cst_30 = arith.constant 1.000000e+00 : f32
    %69 = vector.broadcast %cst_30 : f32 to vector<8x256xf32>
    %70 = arith.addf %69, %68 : vector<8x256xf32>
    %71 = arith.divf %69, %70 : vector<8x256xf32>
    %72 = vector.extract_strided_slice %51 {offsets = [0, 512], sizes = [8, 256], strides = [1, 1]} : vector<8x768xf32> to vector<8x256xf32>
    %73 = vector.extract_strided_slice %55 {offsets = [0, 512], sizes = [8, 256], strides = [1, 1]} : vector<8x768xf32> to vector<8x256xf32>
    %74 = arith.mulf %63, %73 : vector<8x256xf32>
    %75 = arith.addf %72, %74 : vector<8x256xf32>
    %76 = math.tanh %75 : vector<8x256xf32>
    %77 = arith.subf %44, %76 : vector<8x256xf32>
    %78 = arith.mulf %71, %77 : vector<8x256xf32>
    %79 = arith.addf %76, %78 : vector<8x256xf32>
    %80 = arith.index_cast %c1_i32 : i32 to index
    %c0_31 = arith.constant 0 : index
    %c0_32 = arith.constant 0 : index
    %81 = vector.load %arg17[%80, %c0_31, %c0_32] : memref<3x8x256xf32, #tpu.memory_space<vmem>>, vector<1x8x256xf32>
    %82 = vector.shape_cast %81 : vector<1x8x256xf32> to vector<8x256xf32>
    %83 = vector.shape_cast %79 : vector<8x256xf32> to vector<1x8x256xf32>
    tpu.vector_store %arg17[%80, %c0_31, %c0_32], %83 {strides = array<i32>} : memref<3x8x256xf32, #tpu.memory_space<vmem>>, vector<1x8x256xf32>,
    %c2_i32 = arith.constant 2 : i32
    %84 = arith.index_cast %c2_i32 : i32 to index
    %c0_33 = arith.constant 0 : index
    %c0_34 = arith.constant 0 : index
    %85 = vector.load %arg16[%84, %c0_33, %c0_34] : memref<3x8x768xf32, #tpu.memory_space<vmem>>, vector<1x8x768xf32>
    %86 = vector.shape_cast %85 : vector<1x8x768xf32> to vector<8x768xf32>
    %c0_35 = arith.constant 0 : index
    %c0_36 = arith.constant 0 : index
    %87 = vector.load %arg4[%c0_35, %c0_36] : memref<256x768xf32, #tpu.memory_space<vmem>>, vector<256x768xf32>
    %cst_37 = arith.constant dense<0.000000e+00> : vector<8x768xf32>
    %88 = tpu.matmul %79, %87, %cst_37 {dimension_numbers = #tpu.dot_dimension_numbers<[1], [0], [0], [1], [0, 0, 1, 1], [], []>} : vector<8x256xf32>, vector<256x768xf32>, vector<8x768xf32> -> vector<8x768xf32>
    %89 = vector.broadcast %12 : vector<1x768xf32> to vector<8x768xf32>
    %90 = arith.addf %88, %89 : vector<8x768xf32>
    %91 = vector.extract_strided_slice %86 {offsets = [0, 0], sizes = [8, 256], strides = [1, 1]} : vector<8x768xf32> to vector<8x256xf32>
    %92 = vector.extract_strided_slice %90 {offsets = [0, 0], sizes = [8, 256], strides = [1, 1]} : vector<8x768xf32> to vector<8x256xf32>
    %93 = arith.addf %91, %92 : vector<8x256xf32>
    %94 = arith.negf %93 : vector<8x256xf32>
    %95 = math.exp %94 : vector<8x256xf32>
    %cst_38 = arith.constant 1.000000e+00 : f32
    %96 = vector.broadcast %cst_38 : f32 to vector<8x256xf32>
    %97 = arith.addf %96, %95 : vector<8x256xf32>
    %98 = arith.divf %96, %97 : vector<8x256xf32>
    %99 = vector.extract_strided_slice %86 {offsets = [0, 256], sizes = [8, 256], strides = [1, 1]} : vector<8x768xf32> to vector<8x256xf32>
    %100 = vector.extract_strided_slice %90 {offsets = [0, 256], sizes = [8, 256], strides = [1, 1]} : vector<8x768xf32> to vector<8x256xf32>
    %101 = arith.addf %99, %100 : vector<8x256xf32>
    %102 = arith.negf %101 : vector<8x256xf32>
    %103 = math.exp %102 : vector<8x256xf32>
    %cst_39 = arith.constant 1.000000e+00 : f32
    %104 = vector.broadcast %cst_39 : f32 to vector<8x256xf32>
    %105 = arith.addf %104, %103 : vector<8x256xf32>
    %106 = arith.divf %104, %105 : vector<8x256xf32>
    %107 = vector.extract_strided_slice %86 {offsets = [0, 512], sizes = [8, 256], strides = [1, 1]} : vector<8x768xf32> to vector<8x256xf32>
    %108 = vector.extract_strided_slice %90 {offsets = [0, 512], sizes = [8, 256], strides = [1, 1]} : vector<8x768xf32> to vector<8x256xf32>
    %109 = arith.mulf %98, %108 : vector<8x256xf32>
    %110 = arith.addf %107, %109 : vector<8x256xf32>
    %111 = math.tanh %110 : vector<8x256xf32>
    %112 = arith.subf %79, %111 : vector<8x256xf32>
    %113 = arith.mulf %106, %112 : vector<8x256xf32>
    %114 = arith.addf %111, %113 : vector<8x256xf32>
    %115 = arith.index_cast %c2_i32 : i32 to index
    %c0_40 = arith.constant 0 : index
    %c0_41 = arith.constant 0 : index
    %116 = vector.load %arg17[%115, %c0_40, %c0_41] : memref<3x8x256xf32, #tpu.memory_space<vmem>>, vector<1x8x256xf32>
    %117 = vector.shape_cast %116 : vector<1x8x256xf32> to vector<8x256xf32>
    %118 = vector.shape_cast %114 : vector<8x256xf32> to vector<1x8x256xf32>
    tpu.vector_store %arg17[%115, %c0_40, %c0_41], %118 {strides = array<i32>} : memref<3x8x256xf32, #tpu.memory_space<vmem>>, vector<1x8x256xf32>,
    %c3_i32 = arith.constant 3 : i32
    %c0_42 = arith.constant 0 : index
    %c0_43 = arith.constant 0 : index
    %119 = vector.load %arg18[%c0_42, %c0_43] : memref<8x256xf32, #tpu.memory_space<vmem>>, vector<8x256xf32>
    tpu.vector_store %arg18[%c0_42, %c0_43], %114 {strides = array<i32>} : memref<8x256xf32, #tpu.memory_space<vmem>>, vector<8x256xf32>,
    %c0_44 = arith.constant 0 : index
    %c0_45 = arith.constant 0 : index
    %c0_46 = arith.constant 0 : index
    %120 = vector.load %arg17[%c0_44, %c0_45, %c0_46] : memref<3x8x256xf32, #tpu.memory_space<vmem>>, vector<3x8x256xf32>
    %121 = vector.shape_cast %120 : vector<3x8x256xf32> to vector<24x256xf32>
    %c0_47 = arith.constant 0 : index
    %c0_48 = arith.constant 0 : index
    %122 = vector.load %arg7[%c0_47, %c0_48] : memref<256x768xf32, #tpu.memory_space<vmem>>, vector<256x768xf32>
    %cst_49 = arith.constant dense<0.000000e+00> : vector<24x768xf32>
    %123 = tpu.matmul %121, %122, %cst_49 {dimension_numbers = #tpu.dot_dimension_numbers<[1], [0], [0], [1], [0, 0, 1, 1], [], []>} : vector<24x256xf32>, vector<256x768xf32>, vector<24x768xf32> -> vector<24x768xf32>
    %c0_50 = arith.constant 0 : index
    %c0_51 = arith.constant 0 : index
    %124 = vector.load %arg9[%c0_50, %c0_51] : memref<1x768xf32, #tpu.memory_space<vmem>>, vector<1x768xf32>
    %125 = vector.broadcast %124 : vector<1x768xf32> to vector<24x768xf32>
    %126 = arith.addf %123, %125 : vector<24x768xf32>
    %127 = vector.shape_cast %126 : vector<24x768xf32> to vector<3x8x768xf32>
    %c0_52 = arith.constant 0 : index
    %c0_53 = arith.constant 0 : index
    %c0_54 = arith.constant 0 : index
    %128 = vector.load %arg16[%c0_52, %c0_53, %c0_54] : memref<3x8x768xf32, #tpu.memory_space<vmem>>, vector<3x8x768xf32>
    tpu.vector_store %arg16[%c0_52, %c0_53, %c0_54], %127 {strides = array<i32>} : memref<3x8x768xf32, #tpu.memory_space<vmem>>, vector<3x8x768xf32>,
    %c0_55 = arith.constant 0 : index
    %c0_56 = arith.constant 0 : index
    %129 = vector.load %arg10[%c0_55, %c0_56] : memref<1x768xf32, #tpu.memory_space<vmem>>, vector<1x768xf32>
    %c0_57 = arith.constant 0 : index
    %c0_58 = arith.constant 0 : index
    %130 = vector.load %arg19[%c0_57, %c0_58] : memref<8x256xf32, #tpu.memory_space<vmem>>, vector<8x256xf32>
    %c0_59 = arith.constant 0 : index
    %c0_60 = arith.constant 0 : index
    %131 = vector.load %arg20[%c0_59, %c0_60] : memref<8x256xf32, #tpu.memory_space<vmem>>, vector<8x256xf32>
    %c0_i32_61 = arith.constant 0 : i32
    %132 = arith.index_cast %c0_i32_61 : i32 to index
    %c0_62 = arith.constant 0 : index
    %c0_63 = arith.constant 0 : index
    %133 = vector.load %arg16[%132, %c0_62, %c0_63] : memref<3x8x768xf32, #tpu.memory_space<vmem>>, vector<1x8x768xf32>
    %134 = vector.shape_cast %133 : vector<1x8x768xf32> to vector<8x768xf32>
    %c0_64 = arith.constant 0 : index
    %c0_65 = arith.constant 0 : index
    %135 = vector.load %arg8[%c0_64, %c0_65] : memref<256x768xf32, #tpu.memory_space<vmem>>, vector<256x768xf32>
    %cst_66 = arith.constant dense<0.000000e+00> : vector<8x768xf32>
    %136 = tpu.matmul %130, %135, %cst_66 {dimension_numbers = #tpu.dot_dimension_numbers<[1], [0], [0], [1], [0, 0, 1, 1], [], []>} : vector<8x256xf32>, vector<256x768xf32>, vector<8x768xf32> -> vector<8x768xf32>
    %137 = vector.broadcast %129 : vector<1x768xf32> to vector<8x768xf32>
    %138 = arith.addf %136, %137 : vector<8x768xf32>
    %139 = vector.extract_strided_slice %134 {offsets = [0, 0], sizes = [8, 256], strides = [1, 1]} : vector<8x768xf32> to vector<8x256xf32>
    %140 = vector.extract_strided_slice %138 {offsets = [0, 0], sizes = [8, 256], strides = [1, 1]} : vector<8x768xf32> to vector<8x256xf32>
    %141 = arith.addf %139, %140 : vector<8x256xf32>
    %142 = arith.negf %141 : vector<8x256xf32>
    %143 = math.exp %142 : vector<8x256xf32>
    %cst_67 = arith.constant 1.000000e+00 : f32
    %144 = vector.broadcast %cst_67 : f32 to vector<8x256xf32>
    %145 = arith.addf %144, %143 : vector<8x256xf32>
    %146 = arith.divf %144, %145 : vector<8x256xf32>
    %147 = vector.extract_strided_slice %134 {offsets = [0, 256], sizes = [8, 256], strides = [1, 1]} : vector<8x768xf32> to vector<8x256xf32>
    %148 = vector.extract_strided_slice %138 {offsets = [0, 256], sizes = [8, 256], strides = [1, 1]} : vector<8x768xf32> to vector<8x256xf32>
    %149 = arith.addf %147, %148 : vector<8x256xf32>
    %150 = arith.negf %149 : vector<8x256xf32>
    %151 = math.exp %150 : vector<8x256xf32>
    %cst_68 = arith.constant 1.000000e+00 : f32
    %152 = vector.broadcast %cst_68 : f32 to vector<8x256xf32>
    %153 = arith.addf %152, %151 : vector<8x256xf32>
    %154 = arith.divf %152, %153 : vector<8x256xf32>
    %155 = vector.extract_strided_slice %134 {offsets = [0, 512], sizes = [8, 256], strides = [1, 1]} : vector<8x768xf32> to vector<8x256xf32>
    %156 = vector.extract_strided_slice %138 {offsets = [0, 512], sizes = [8, 256], strides = [1, 1]} : vector<8x768xf32> to vector<8x256xf32>
    %157 = arith.mulf %146, %156 : vector<8x256xf32>
    %158 = arith.addf %155, %157 : vector<8x256xf32>
    %159 = math.tanh %158 : vector<8x256xf32>
    %160 = arith.subf %130, %159 : vector<8x256xf32>
    %161 = arith.mulf %154, %160 : vector<8x256xf32>
    %162 = arith.addf %159, %161 : vector<8x256xf32>
    %163 = arith.addf %131, %162 : vector<8x256xf32>
    %c1_i32_69 = arith.constant 1 : i32
    %164 = arith.index_cast %c1_i32_69 : i32 to index
    %c0_70 = arith.constant 0 : index
    %c0_71 = arith.constant 0 : index
    %165 = vector.load %arg16[%164, %c0_70, %c0_71] : memref<3x8x768xf32, #tpu.memory_space<vmem>>, vector<1x8x768xf32>
    %166 = vector.shape_cast %165 : vector<1x8x768xf32> to vector<8x768xf32>
    %c0_72 = arith.constant 0 : index
    %c0_73 = arith.constant 0 : index
    %167 = vector.load %arg8[%c0_72, %c0_73] : memref<256x768xf32, #tpu.memory_space<vmem>>, vector<256x768xf32>
    %cst_74 = arith.constant dense<0.000000e+00> : vector<8x768xf32>
    %168 = tpu.matmul %162, %167, %cst_74 {dimension_numbers = #tpu.dot_dimension_numbers<[1], [0], [0], [1], [0, 0, 1, 1], [], []>} : vector<8x256xf32>, vector<256x768xf32>, vector<8x768xf32> -> vector<8x768xf32>
    %169 = vector.broadcast %129 : vector<1x768xf32> to vector<8x768xf32>
    %170 = arith.addf %168, %169 : vector<8x768xf32>
    %171 = vector.extract_strided_slice %166 {offsets = [0, 0], sizes = [8, 256], strides = [1, 1]} : vector<8x768xf32> to vector<8x256xf32>
    %172 = vector.extract_strided_slice %170 {offsets = [0, 0], sizes = [8, 256], strides = [1, 1]} : vector<8x768xf32> to vector<8x256xf32>
    %173 = arith.addf %171, %172 : vector<8x256xf32>
    %174 = arith.negf %173 : vector<8x256xf32>
    %175 = math.exp %174 : vector<8x256xf32>
    %cst_75 = arith.constant 1.000000e+00 : f32
    %176 = vector.broadcast %cst_75 : f32 to vector<8x256xf32>
    %177 = arith.addf %176, %175 : vector<8x256xf32>
    %178 = arith.divf %176, %177 : vector<8x256xf32>
    %179 = vector.extract_strided_slice %166 {offsets = [0, 256], sizes = [8, 256], strides = [1, 1]} : vector<8x768xf32> to vector<8x256xf32>
    %180 = vector.extract_strided_slice %170 {offsets = [0, 256], sizes = [8, 256], strides = [1, 1]} : vector<8x768xf32> to vector<8x256xf32>
    %181 = arith.addf %179, %180 : vector<8x256xf32>
    %182 = arith.negf %181 : vector<8x256xf32>
    %183 = math.exp %182 : vector<8x256xf32>
    %cst_76 = arith.constant 1.000000e+00 : f32
    %184 = vector.broadcast %cst_76 : f32 to vector<8x256xf32>
    %185 = arith.addf %184, %183 : vector<8x256xf32>
    %186 = arith.divf %184, %185 : vector<8x256xf32>
    %187 = vector.extract_strided_slice %166 {offsets = [0, 512], sizes = [8, 256], strides = [1, 1]} : vector<8x768xf32> to vector<8x256xf32>
    %188 = vector.extract_strided_slice %170 {offsets = [0, 512], sizes = [8, 256], strides = [1, 1]} : vector<8x768xf32> to vector<8x256xf32>
    %189 = arith.mulf %178, %188 : vector<8x256xf32>
    %190 = arith.addf %187, %189 : vector<8x256xf32>
    %191 = math.tanh %190 : vector<8x256xf32>
    %192 = arith.subf %162, %191 : vector<8x256xf32>
    %193 = arith.mulf %186, %192 : vector<8x256xf32>
    %194 = arith.addf %191, %193 : vector<8x256xf32>
    %195 = arith.addf %163, %194 : vector<8x256xf32>
    %c2_i32_77 = arith.constant 2 : i32
    %196 = arith.index_cast %c2_i32_77 : i32 to index
    %c0_78 = arith.constant 0 : index
    %c0_79 = arith.constant 0 : index
    %197 = vector.load %arg16[%196, %c0_78, %c0_79] : memref<3x8x768xf32, #tpu.memory_space<vmem>>, vector<1x8x768xf32>
    %198 = vector.shape_cast %197 : vector<1x8x768xf32> to vector<8x768xf32>
    %c0_80 = arith.constant 0 : index
    %c0_81 = arith.constant 0 : index
    %199 = vector.load %arg8[%c0_80, %c0_81] : memref<256x768xf32, #tpu.memory_space<vmem>>, vector<256x768xf32>
    %cst_82 = arith.constant dense<0.000000e+00> : vector<8x768xf32>
    %200 = tpu.matmul %194, %199, %cst_82 {dimension_numbers = #tpu.dot_dimension_numbers<[1], [0], [0], [1], [0, 0, 1, 1], [], []>} : vector<8x256xf32>, vector<256x768xf32>, vector<8x768xf32> -> vector<8x768xf32>
    %201 = vector.broadcast %129 : vector<1x768xf32> to vector<8x768xf32>
    %202 = arith.addf %200, %201 : vector<8x768xf32>
    %203 = vector.extract_strided_slice %198 {offsets = [0, 0], sizes = [8, 256], strides = [1, 1]} : vector<8x768xf32> to vector<8x256xf32>
    %204 = vector.extract_strided_slice %202 {offsets = [0, 0], sizes = [8, 256], strides = [1, 1]} : vector<8x768xf32> to vector<8x256xf32>
    %205 = arith.addf %203, %204 : vector<8x256xf32>
    %206 = arith.negf %205 : vector<8x256xf32>
    %207 = math.exp %206 : vector<8x256xf32>
    %cst_83 = arith.constant 1.000000e+00 : f32
    %208 = vector.broadcast %cst_83 : f32 to vector<8x256xf32>
    %209 = arith.addf %208, %207 : vector<8x256xf32>
    %210 = arith.divf %208, %209 : vector<8x256xf32>
    %211 = vector.extract_strided_slice %198 {offsets = [0, 256], sizes = [8, 256], strides = [1, 1]} : vector<8x768xf32> to vector<8x256xf32>
    %212 = vector.extract_strided_slice %202 {offsets = [0, 256], sizes = [8, 256], strides = [1, 1]} : vector<8x768xf32> to vector<8x256xf32>
    %213 = arith.addf %211, %212 : vector<8x256xf32>
    %214 = arith.negf %213 : vector<8x256xf32>
    %215 = math.exp %214 : vector<8x256xf32>
    %cst_84 = arith.constant 1.000000e+00 : f32
    %216 = vector.broadcast %cst_84 : f32 to vector<8x256xf32>
    %217 = arith.addf %216, %215 : vector<8x256xf32>
    %218 = arith.divf %216, %217 : vector<8x256xf32>
    %219 = vector.extract_strided_slice %198 {offsets = [0, 512], sizes = [8, 256], strides = [1, 1]} : vector<8x768xf32> to vector<8x256xf32>
    %220 = vector.extract_strided_slice %202 {offsets = [0, 512], sizes = [8, 256], strides = [1, 1]} : vector<8x768xf32> to vector<8x256xf32>
    %221 = arith.mulf %210, %220 : vector<8x256xf32>
    %222 = arith.addf %219, %221 : vector<8x256xf32>
    %223 = math.tanh %222 : vector<8x256xf32>
    %224 = arith.subf %194, %223 : vector<8x256xf32>
    %225 = arith.mulf %218, %224 : vector<8x256xf32>
    %226 = arith.addf %223, %225 : vector<8x256xf32>
    %227 = arith.addf %195, %226 : vector<8x256xf32>
    %c3_i32_85 = arith.constant 3 : i32
    %c0_86 = arith.constant 0 : index
    %c0_87 = arith.constant 0 : index
    %228 = vector.load %arg19[%c0_86, %c0_87] : memref<8x256xf32, #tpu.memory_space<vmem>>, vector<8x256xf32>
    tpu.vector_store %arg19[%c0_86, %c0_87], %226 {strides = array<i32>} : memref<8x256xf32, #tpu.memory_space<vmem>>, vector<8x256xf32>,
    %c0_88 = arith.constant 0 : index
    %c0_89 = arith.constant 0 : index
    %229 = vector.load %arg20[%c0_88, %c0_89] : memref<8x256xf32, #tpu.memory_space<vmem>>, vector<8x256xf32>
    tpu.vector_store %arg20[%c0_88, %c0_89], %227 {strides = array<i32>} : memref<8x256xf32, #tpu.memory_space<vmem>>, vector<8x256xf32>,
    %c0_i32_90 = arith.constant 0 : i32
    %230 = arith.cmpi eq, %arg1, %c0_i32_90 : i32
    %231 = arith.extui %230 : i1 to i32
    %c0_i32_91 = arith.constant 0 : i32
    %232 = arith.cmpi ne, %231, %c0_i32_91 : i32
    scf.if %232 {
      %c0_92 = arith.constant 0 : index
      %c0_93 = arith.constant 0 : index
      %233 = vector.load %arg20[%c0_92, %c0_93] : memref<8x256xf32, #tpu.memory_space<vmem>>, vector<8x256xf32>
      %c0_94 = arith.constant 0 : index
      %c0_95 = arith.constant 0 : index
      %234 = vector.load %arg11[%c0_94, %c0_95] : memref<256x256xf32, #tpu.memory_space<vmem>>, vector<256x256xf32>
      %cst_96 = arith.constant dense<0.000000e+00> : vector<8x256xf32>
      %235 = tpu.matmul %233, %234, %cst_96 {dimension_numbers = #tpu.dot_dimension_numbers<[1], [0], [0], [1], [0, 0, 1, 1], [], []>} : vector<8x256xf32>, vector<256x256xf32>, vector<8x256xf32> -> vector<8x256xf32>
      %c0_97 = arith.constant 0 : index
      %c0_98 = arith.constant 0 : index
      %236 = vector.load %arg12[%c0_97, %c0_98] : memref<1x256xf32, #tpu.memory_space<vmem>>, vector<1x256xf32>
      %237 = vector.broadcast %236 : vector<1x256xf32> to vector<8x256xf32>
      %238 = arith.addf %235, %237 : vector<8x256xf32>
      %cst_99 = arith.constant 0.000000e+00 : f32
      %239 = vector.broadcast %cst_99 : f32 to vector<8x256xf32>
      %240 = arith.maximumf %238, %239 : vector<8x256xf32>
      %c0_100 = arith.constant 0 : index
      %c0_101 = arith.constant 0 : index
      %241 = vector.load %arg13[%c0_100, %c0_101] : memref<1x256xf32, #tpu.memory_space<vmem>>, vector<1x256xf32>
      %242 = vector.broadcast %241 : vector<1x256xf32> to vector<8x256xf32>
      %243 = arith.mulf %240, %242 : vector<8x256xf32>
      %cst_102 = arith.constant dense<0.000000e+00> : vector<8xf32>
      %244 = vector.multi_reduction <add>, %243, %cst_102 [1] : vector<8x256xf32> to vector<8xf32>
      %245 = vector.shape_cast %244 : vector<8xf32> to vector<8x1xf32>
      %c0_103 = arith.constant 0 : index
      %c0_104 = arith.constant 0 : index
      %246 = vector.load %arg14[%c0_103, %c0_104] : memref<1x1xf32, #tpu.memory_space<vmem>>, vector<1x1xf32>
      %247 = vector.broadcast %246 : vector<1x1xf32> to vector<8x1xf32>
      %248 = arith.addf %245, %247 : vector<8x1xf32>
      %cst_105 = arith.constant 0.000000e+00 : f32
      %249 = vector.broadcast %cst_105 : f32 to vector<8x1xf32>
      %250 = arith.maximumf %248, %249 : vector<8x1xf32>
      %c0_106 = arith.constant 0 : index
      %c0_107 = arith.constant 0 : index
      %251 = vector.load %arg15[%c0_106, %c0_107] : memref<8x1xf32, #tpu.memory_space<vmem>>, vector<8x1xf32>
      tpu.vector_store %arg15[%c0_106, %c0_107], %250 {strides = array<i32>} : memref<8x1xf32, #tpu.memory_space<vmem>>, vector<8x1xf32>,
    } else {
    }
    return
  }
  func.func @transform_0(%arg0: i32, %arg1: i32) -> (i32, i32, i32) {
    %c0_i32 = arith.constant 0 : i32
    %c0_i32_0 = arith.constant 0 : i32
    return %arg1, %arg0, %c0_i32 : i32, i32, i32
  }
  func.func @transform_1(%arg0: i32, %arg1: i32) -> (i32, i32) {
    %c0_i32 = arith.constant 0 : i32
    %c0_i32_0 = arith.constant 0 : i32
    %c0_i32_1 = arith.constant 0 : i32
    return %c0_i32, %c0_i32_0 : i32, i32
  }
  func.func @transform_2(%arg0: i32, %arg1: i32) -> (i32, i32) {
    %c0_i32 = arith.constant 0 : i32
    %c0_i32_0 = arith.constant 0 : i32
    %c0_i32_1 = arith.constant 0 : i32
    return %c0_i32, %c0_i32_0 : i32, i32
  }
  func.func @transform_3(%arg0: i32, %arg1: i32) -> (i32, i32) {
    %c0_i32 = arith.constant 0 : i32
    %c0_i32_0 = arith.constant 0 : i32
    %c0_i32_1 = arith.constant 0 : i32
    return %c0_i32, %c0_i32_0 : i32, i32
  }
  func.func @transform_4(%arg0: i32, %arg1: i32) -> (i32, i32) {
    %c0_i32 = arith.constant 0 : i32
    %c0_i32_0 = arith.constant 0 : i32
    %c0_i32_1 = arith.constant 0 : i32
    return %c0_i32, %c0_i32_0 : i32, i32
  }
  func.func @transform_5(%arg0: i32, %arg1: i32) -> (i32, i32) {
    %c0_i32 = arith.constant 0 : i32
    %c0_i32_0 = arith.constant 0 : i32
    %c0_i32_1 = arith.constant 0 : i32
    return %c0_i32, %c0_i32_0 : i32, i32
  }
  func.func @transform_6(%arg0: i32, %arg1: i32) -> (i32, i32) {
    %c0_i32 = arith.constant 0 : i32
    %c0_i32_0 = arith.constant 0 : i32
    %c0_i32_1 = arith.constant 0 : i32
    return %c0_i32, %c0_i32_0 : i32, i32
  }
  func.func @transform_7(%arg0: i32, %arg1: i32) -> (i32, i32) {
    %c0_i32 = arith.constant 0 : i32
    %c0_i32_0 = arith.constant 0 : i32
    %c0_i32_1 = arith.constant 0 : i32
    return %c0_i32, %c0_i32_0 : i32, i32
  }
  func.func @transform_8(%arg0: i32, %arg1: i32) -> (i32, i32) {
    %c0_i32 = arith.constant 0 : i32
    %c0_i32_0 = arith.constant 0 : i32
    %c0_i32_1 = arith.constant 0 : i32
    return %c0_i32, %c0_i32_0 : i32, i32
  }
  func.func @transform_9(%arg0: i32, %arg1: i32) -> (i32, i32) {
    %c0_i32 = arith.constant 0 : i32
    %c0_i32_0 = arith.constant 0 : i32
    %c0_i32_1 = arith.constant 0 : i32
    return %c0_i32, %c0_i32_0 : i32, i32
  }
  func.func @transform_10(%arg0: i32, %arg1: i32) -> (i32, i32) {
    %c0_i32 = arith.constant 0 : i32
    %c0_i32_0 = arith.constant 0 : i32
    %c0_i32_1 = arith.constant 0 : i32
    return %c0_i32, %c0_i32_0 : i32, i32
  }
  func.func @transform_11(%arg0: i32, %arg1: i32) -> (i32, i32) {
    %c0_i32 = arith.constant 0 : i32
    %c0_i32_0 = arith.constant 0 : i32
    %c0_i32_1 = arith.constant 0 : i32
    return %c0_i32, %c0_i32_0 : i32, i32
  }
  func.func @transform_12(%arg0: i32, %arg1: i32) -> (i32, i32) {
    %c0_i32 = arith.constant 0 : i32
    %c0_i32_0 = arith.constant 0 : i32
    %c0_i32_1 = arith.constant 0 : i32
    return %c0_i32, %c0_i32_0 : i32, i32
  }
  func.func @transform_13(%arg0: i32, %arg1: i32) -> (i32, i32) {
    %c0_i32 = arith.constant 0 : i32
    %c0_i32_0 = arith.constant 0 : i32
    return %arg0, %c0_i32 : i32, i32
  }
}

</mosaic_0001>

<bundles_post_ra>
// kernel: tpu_custom_call.1
= control target key start
LH: loop header
LB: loop body
LE: loop exit
PB: predicated region body
PF: predicated region fallthrough
CT: control target
= control target key end

     0   :  { %s7188_s0 = inlined_call_operand.hbm [shape: f32[3,8,256], index: 0, kind: input, shape index: {}]   ;;  %s7189_s1 = inlined_call_operand.hbm [shape: f32[256,768], index: 1, kind: input, shape index: {}]   ;;  %s7190_s2 = inlined_call_operand.hbm [shape: f32[256,768], index: 2, kind: input, shape index: {}]   ;;  %s7191_s3 = inlined_call_operand.hbm [shape: f32[1,768], index: 3, kind: input, shape index: {}]   ;;  %s7192_s4 = inlined_call_operand.hbm [shape: f32[1,768], index: 4, kind: input, shape index: {}]   ;;  %s7193_s5 = inlined_call_operand.hbm [shape: f32[256,768], index: 5, kind: input, shape index: {}]   ;;  %s7194_s6 = inlined_call_operand.hbm [shape: f32[256,768], index: 6, kind: input, shape index: {}]   ;;  %s7195_s7 = inlined_call_operand.vmem [shape: f32[1,768], index: 7, kind: input, shape index: {}]   ;;  %s7196_s8 = inlined_call_operand.hbm [shape: f32[1,768], index: 8, kind: input, shape index: {}]   ;;  %s7197_s9 = inlined_call_operand.hbm [shape: f32[256,256], index: 9, kind: input, shape index: {}]   ;;  %s7198_s10 = inlined_call_operand.vmem [shape: f32[1,256], index: 10, kind: input, shape index: {}]   ;;  %s7199_s11 = inlined_call_operand.vmem [shape: f32[1,256], index: 11, kind: input, shape index: {}]   ;;  %s7200_s12 = inlined_call_operand.<no memory space> [shape: f32[1,1], index: 12, kind: input, shape index: {}]   ;;  %s7201_s13 = inlined_call_operand.vmem [shape: f32[8,1], index: 13, kind: output, shape index: {}]  }
   0x1   :  { %v18_v0 = vstv %s7200_s12 }
   0x2   :  { %19 = vst [vmem:[#allocation7] sm:$0x1] %v18_v0 }
   0x3   :  { %20 = vsyncpa [#allocation9], 0 }
   0x4   :  { %21 = vsyncpa [#allocation11], 0 }
   0x5   :  { %22 = vsyncpa [#allocation14], 0 }
   0x6   :  { %23 = vsyncpa [#allocation17], 0  ;;  %s42_s29 = sshll.u32 %s7189_s1, 4  ;;  %s43_s29 = int_to_ptr.hbm [resolvable:$true] %s42_s29 }
   0x7   :  { %24 = vsyncpa [#allocation20], 0  ;;  %s4922_s30 = smov [#allocation10]   ;;  %s69_s17 = sshll.u32 %s7191_s3, 4  ;;  %s70_s17 = int_to_ptr.hbm [resolvable:$true] %s69_s17 }
   0x8   :  { %s44_s14 = sshll.u32 %s4922_s30, 4  ;;  %s4923_s18 = smov 768   ;;  %s45_s14 = int_to_ptr.vmem [resolvable:$true] %s44_s14 }
   0x9   :  { %s4924_s12 = smov 48   ;;  %s4925_s19 = smov [#allocation13]  }
   0xa   :  { %50 = dma.hbm_to_vmem [thread:$0]  %s43_s29, 24576, %s45_s14, [#allocation11], %s4923_s18, %s4923_s18, %s4924_s12  }
   0xb   :  { %s71_s20 = sshll.u32 %s4925_s19, 4  ;;  %s90_s22 = sshll.u32 %s7193_s5, 4  ;;  %s72_s20 = int_to_ptr.vmem [resolvable:$true] %s71_s20  ;;  %s91_s22 = int_to_ptr.hbm [resolvable:$true] %s90_s22 }
   0xc   :  { %74 = dma.hbm_to_vmem [thread:$0]  %s70_s17, 96, %s72_s20, [#allocation14]  }
   0xd   :  { %s119_s3 = sshll.u32 %s7196_s8, 4  ;;  %s4926_s25 = smov [#allocation16]   ;;  %s120_s3 = int_to_ptr.hbm [resolvable:$true] %s119_s3 }
   0xe   :  { %s92_s26 = sshll.u32 %s4926_s25, 4  ;;  %s4927_s27 = smov [#allocation19]   ;;  %s93_s26 = int_to_ptr.vmem [resolvable:$true] %s92_s26 }
   0xf   :  { %98 = dma.hbm_to_vmem [thread:$0]  %s91_s22, 24576, %s93_s26, [#allocation17], %s4923_s18, %s4923_s18, %s4924_s12  }
  0x10   :  { %s121_s28 = sshll.u32 %s4927_s27, 4  ;;  %s29_s5 = sshll.u32 %s7188_s0, 4  ;;  %s122_s28 = int_to_ptr.vmem [resolvable:$true] %s121_s28  ;;  %s30_s5 = int_to_ptr.hbm [resolvable:$true] %s29_s5 }
  0x11   :  { %124 = dma.hbm_to_vmem [thread:$0]  %s120_s3, 96, %s122_s28, [#allocation20]  }
  0x12   :  { %s4928_s14 = smov [#allocation8]   ;;  %s55_s17 = sshll.u32 %s7190_s2, 4  ;;  %s56_s17 = int_to_ptr.hbm [resolvable:$true] %s55_s17 }
  0x13   :  { %s31_s15 = sshll.u32 %s4928_s14, 4  ;;  %s4929_s19 = smov 256   ;;  %s32_s15 = int_to_ptr.vmem [resolvable:$true] %s31_s15 }
  0x14   :  { %s4930_s20 = smov 16   ;;  %s4931_s21 = smov [#allocation12]  }
  0x15   :  { %37 = dma.hbm_to_vmem [thread:$0]  %s30_s5, 768, %s32_s15, [#allocation9], %s4929_s19, %s4929_s19, %s4930_s20  }
  0x16   :  { %s57_s1 = sshll.u32 %s4931_s21, 4  ;;  %s80_s0 = sshll.u32 %s7192_s4, 4  ;;  %s58_s1 = int_to_ptr.vmem [resolvable:$true] %s57_s1  ;;  %s81_s0 = int_to_ptr.hbm [resolvable:$true] %s80_s0 }
  0x17   :  { %63 = dma.hbm_to_vmem [thread:$0]  %s56_s17, 24576, %s58_s1, [#allocation11], %s4923_s18, %s4923_s18, %s4924_s12  }
  0x18   :  { %s103_s2 = sshll.u32 %s7194_s6, 4  ;;  %s4932_s25 = smov [#allocation15]   ;;  %s104_s2 = int_to_ptr.hbm [resolvable:$true] %s103_s2 }
  0x19   :  { %s82_s26 = sshll.u32 %s4932_s25, 4  ;;  %s4933_s27 = smov [#allocation18]   ;;  %s83_s26 = int_to_ptr.vmem [resolvable:$true] %s82_s26 }
  0x1a   :  { %85 = dma.hbm_to_vmem [thread:$0]  %s81_s0, 96, %s83_s26, [#allocation14]  }
  0x1b   :  { %s105_s28 = sshll.u32 %s4933_s27, 4  ;;  %s129_s4 = sshll.u32 %s7197_s9, 4  ;;  %s106_s28 = int_to_ptr.vmem [resolvable:$true] %s105_s28  ;;  %s130_s4 = int_to_ptr.hbm [resolvable:$true] %s129_s4 }
  0x1c   :  { %111 = dma.hbm_to_vmem [thread:$0]  %s104_s2, 24576, %s106_s28, [#allocation17], %s4923_s18, %s4923_s18, %s4924_s12  }
  0x1d   :  { %s4934_s5 = smov [#allocation21]  }
  0x1e   :  { %s131_s14 = sshll.u32 %s4934_s5, 4  ;;  %s132_s14 = int_to_ptr.vmem [resolvable:$true] %s131_s14 }
  0x1f   :  { %137 = dma.hbm_to_vmem [thread:$0]  %s130_s4, 8192, %s132_s14, [#allocation20], %s4929_s19, %s4929_s19, %s4930_s20  }
  0x20   :  { %4912 = dma.done.wait [#allocation9], 768  }
  0x21   :  { %4913 = vsyncadd [#allocation9], 4294966528 }
  0x22   :  { %4914 = dma.done.wait [#allocation11], 49152  }
  0x23   :  { %4915 = vsyncadd [#allocation11], 4294918144 }
  0x24   :  { %4916 = dma.done.wait [#allocation14], 192  }
  0x25   :  { %4917 = vsyncadd [#allocation14], 4294967104 }
  0x26   :  { %4918 = dma.done.wait [#allocation17], 49152  }
  0x27   :  { %4919 = vsyncadd [#allocation17], 4294918144 }
  0x28   :  { %4920 = dma.done.wait [#allocation20], 8288  }
  0x29   :  { %4921 = vsyncadd [#allocation20], 4294959008  ;;  %v286_v1 = vld [vmem:[#allocation10 + $0x2d0] sm:$0xff]  ;;  %v287_v2 = vld [vmem:[#allocation10 + $0x2d8] sm:$0xff] }
  0x2a   :  { %v280_v3 = vld [vmem:[#allocation10 + $0x2a0] sm:$0xff]  ;;  %402 = vmatpush.msra.mxu0 %v286_v1  ;;  %454 = vmatpush.msra.mxu2 %v287_v2  ;;  %v382_v4 = vld [vmem:[#allocation10 + $0x5d0] sm:$0xff]  ;;  %v281_v5 = vld [vmem:[#allocation10 + $0x2a8] sm:$0xff] }
  0x2b   :  { %v383_v6 = vld [vmem:[#allocation10 + $0x5d8] sm:$0xff]  ;;  %428 = vmatpush.msra.mxu1 %v382_v4  ;;  %v274_v7 = vld [vmem:[#allocation10 + $0x270] sm:$0xff]  ;;  %v376_v8 = vld [vmem:[#allocation10 + $0x5a0] sm:$0xff] }
  0x2c   :  { %480 = vmatpush.msra.mxu3 %v383_v6  ;;  %v275_v9 = vld [vmem:[#allocation10 + $0x278] sm:$0xff]  ;;  %403 = vmatpush.msra.mxu0 %v280_v3  ;;  %v377_v10 = vld [vmem:[#allocation10 + $0x5a8] sm:$0xff]  ;;  %v370_v11 = vld [vmem:[#allocation10 + $0x570] sm:$0xff] }
  0x2d   :  { %455 = vmatpush.msra.mxu2 %v281_v5  ;;  %429 = vmatpush.msra.mxu1 %v376_v8  ;;  %v268_v12 = vld [vmem:[#allocation10 + $0x240] sm:$0xff]  ;;  %v269_v13 = vld [vmem:[#allocation10 + $0x248] sm:$0xff]  ;;  %v371_v14 = vld [vmem:[#allocation10 + $0x578] sm:$0xff] }
  0x2e   :  { %481 = vmatpush.msra.mxu3 %v377_v10  ;;  %404 = vmatpush.msra.mxu0 %v274_v7  ;;  %v364_v15 = vld [vmem:[#allocation10 + $0x540] sm:$0xff]  ;;  %v365_v16 = vld [vmem:[#allocation10 + $0x548] sm:$0xff]  ;;  %v262_v17 = vld [vmem:[#allocation10 + $0x210] sm:$0xff] }
  0x2f   :  { %456 = vmatpush.msra.mxu2 %v275_v9  ;;  %430 = vmatpush.msra.mxu1 %v370_v11  ;;  %v263_v18 = vld [vmem:[#allocation10 + $0x218] sm:$0xff]  ;;  %v358_v19 = vld [vmem:[#allocation10 + $0x510] sm:$0xff]  ;;  %v256_v21 = vld [vmem:[#allocation10 + $0x1e0] sm:$0xff] }
  0x30   :  { %482 = vmatpush.msra.mxu3 %v371_v14  ;;  %405 = vmatpush.msra.mxu0 %v268_v12  ;;  %v359_v20 = vld [vmem:[#allocation10 + $0x518] sm:$0xff]  ;;  %v257_v22 = vld [vmem:[#allocation10 + $0x1e8] sm:$0xff]  ;;  %v352_v23 = vld [vmem:[#allocation10 + $0x4e0] sm:$0xff] }
  0x31   :  { %457 = vmatpush.msra.mxu2 %v269_v13  ;;  %431 = vmatpush.msra.mxu1 %v364_v15  ;;  %v353_v24 = vld [vmem:[#allocation10 + $0x4e8] sm:$0xff]  ;;  %v250_v25 = vld [vmem:[#allocation10 + $0x1b0] sm:$0xff]  ;;  %v251_v26 = vld [vmem:[#allocation10 + $0x1b8] sm:$0xff] }
  0x32   :  { %483 = vmatpush.msra.mxu3 %v365_v16  ;;  %406 = vmatpush.msra.mxu0 %v262_v17  ;;  %v346_v27 = vld [vmem:[#allocation10 + $0x4b0] sm:$0xff]  ;;  %v347_v28 = vld [vmem:[#allocation10 + $0x4b8] sm:$0xff]  ;;  %v244_v29 = vld [vmem:[#allocation10 + $0x180] sm:$0xff] }
  0x33   :  { %458 = vmatpush.msra.mxu2 %v263_v18  ;;  %432 = vmatpush.msra.mxu1 %v358_v19  ;;  %v245_v30 = vld [vmem:[#allocation10 + $0x188] sm:$0xff]  ;;  %v340_v31 = vld [vmem:[#allocation10 + $0x480] sm:$0xff]  ;;  %v238_v33 = vld [vmem:[#allocation10 + $0x150] sm:$0xff] }
  0x34   :  { %484 = vmatpush.msra.mxu3 %v359_v20  ;;  %407 = vmatpush.msra.mxu0 %v256_v21  ;;  %v341_v32 = vld [vmem:[#allocation10 + $0x488] sm:$0xff]  ;;  %v239_v34 = vld [vmem:[#allocation10 + $0x158] sm:$0xff]  ;;  %v334_v35 = vld [vmem:[#allocation10 + $0x450] sm:$0xff] }
  0x35   :  { %459 = vmatpush.msra.mxu2 %v257_v22  ;;  %433 = vmatpush.msra.mxu1 %v352_v23  ;;  %v335_v36 = vld [vmem:[#allocation10 + $0x458] sm:$0xff]  ;;  %v232_v37 = vld [vmem:[#allocation10 + $0x120] sm:$0xff]  ;;  %v233_v38 = vld [vmem:[#allocation10 + $0x128] sm:$0xff] }
  0x36   :  { %485 = vmatpush.msra.mxu3 %v353_v24  ;;  %408 = vmatpush.msra.mxu0 %v250_v25  ;;  %v328_v39 = vld [vmem:[#allocation10 + $0x420] sm:$0xff]  ;;  %v329_v40 = vld [vmem:[#allocation10 + $0x428] sm:$0xff]  ;;  %v226_v41 = vld [vmem:[#allocation10 + $0xf0] sm:$0xff] }
  0x37   :  { %460 = vmatpush.msra.mxu2 %v251_v26  ;;  %434 = vmatpush.msra.mxu1 %v346_v27  ;;  %v227_v42 = vld [vmem:[#allocation10 + $0xf8] sm:$0xff]  ;;  %v322_v43 = vld [vmem:[#allocation10 + $0x3f0] sm:$0xff]  ;;  %v220_v45 = vld [vmem:[#allocation10 + $0xc0] sm:$0xff] }
  0x38   :  { %486 = vmatpush.msra.mxu3 %v347_v28  ;;  %409 = vmatpush.msra.mxu0 %v244_v29  ;;  %v323_v44 = vld [vmem:[#allocation10 + $0x3f8] sm:$0xff]  ;;  %v221_v46 = vld [vmem:[#allocation10 + $0xc8] sm:$0xff]  ;;  %v316_v47 = vld [vmem:[#allocation10 + $0x3c0] sm:$0xff] }
  0x39   :  { %461 = vmatpush.msra.mxu2 %v245_v30  ;;  %435 = vmatpush.msra.mxu1 %v340_v31  ;;  %v317_v48 = vld [vmem:[#allocation10 + $0x3c8] sm:$0xff]  ;;  %v214_v49 = vld [vmem:[#allocation10 + $0x90] sm:$0xff]  ;;  %v215_v50 = vld [vmem:[#allocation10 + $0x98] sm:$0xff] }
  0x3a   :  { %487 = vmatpush.msra.mxu3 %v341_v32  ;;  %410 = vmatpush.msra.mxu0 %v238_v33  ;;  %v310_v51 = vld [vmem:[#allocation10 + $0x390] sm:$0xff]  ;;  %v311_v52 = vld [vmem:[#allocation10 + $0x398] sm:$0xff]  ;;  %v208_v53 = vld [vmem:[#allocation10 + $0x60] sm:$0xff] }
  0x3b   :  { %462 = vmatpush.msra.mxu2 %v239_v34  ;;  %436 = vmatpush.msra.mxu1 %v334_v35  ;;  %v209_v54 = vld [vmem:[#allocation10 + $0x68] sm:$0xff]  ;;  %v304_v55 = vld [vmem:[#allocation10 + $0x360] sm:$0xff]  ;;  %v202_v57 = vld [vmem:[#allocation10 + $0x30] sm:$0xff] }
  0x3c   :  { %488 = vmatpush.msra.mxu3 %v335_v36  ;;  %411 = vmatpush.msra.mxu0 %v232_v37  ;;  %v305_v56 = vld [vmem:[#allocation10 + $0x368] sm:$0xff]  ;;  %v203_v58 = vld [vmem:[#allocation10 + $0x38] sm:$0xff]  ;;  %v298_v59 = vld [vmem:[#allocation10 + $0x330] sm:$0xff] }
  0x3d   :  { %463 = vmatpush.msra.mxu2 %v233_v38  ;;  %437 = vmatpush.msra.mxu1 %v328_v39  ;;  %v299_v60 = vld [vmem:[#allocation10 + $0x338] sm:$0xff]  ;;  %v196_v61 = vld [vmem:[#allocation10] sm:$0xff]  ;;  %v197_v62 = vld [vmem:[#allocation10 + $0x8] sm:$0xff] }
  0x3e   :  { %489 = vmatpush.msra.mxu3 %v329_v40  ;;  %412 = vmatpush.msra.mxu0 %v226_v41  ;;  %v288_v63 = vld [vmem:[#allocation10 + $0x2e0] sm:$0xff]  ;;  %v289_v0 = vld [vmem:[#allocation10 + $0x2e8] sm:$0xff]  ;;  %v282_v3 = vld [vmem:[#allocation10 + $0x2b0] sm:$0xff] }
  0x3f   :  { %464 = vmatpush.msra.mxu2 %v227_v42  ;;  %438 = vmatpush.msra.mxu1 %v322_v43  ;;  %v292_v1 = vld [vmem:[#allocation10 + $0x300] sm:$0xff]  ;;  %v293_v2 = vld [vmem:[#allocation10 + $0x308] sm:$0xff]  ;;  %v283_v5 = vld [vmem:[#allocation10 + $0x2b8] sm:$0xff] }
  0x40   :  { %490 = vmatpush.msra.mxu3 %v323_v44  ;;  %413 = vmatpush.msra.mxu0 %v220_v45  ;;  %v384_v4 = vld [vmem:[#allocation10 + $0x5e0] sm:$0xff]  ;;  %v385_v6 = vld [vmem:[#allocation10 + $0x5e8] sm:$0xff]  ;;  %v378_v8 = vld [vmem:[#allocation10 + $0x5b0] sm:$0xff] }
  0x41   :  { %465 = vmatpush.msra.mxu2 %v221_v46  ;;  %439 = vmatpush.msra.mxu1 %v316_v47  ;;  %v276_v7 = vld [vmem:[#allocation10 + $0x280] sm:$0xff]  ;;  %v277_v9 = vld [vmem:[#allocation10 + $0x288] sm:$0xff]  ;;  %v379_v10 = vld [vmem:[#allocation10 + $0x5b8] sm:$0xff] }
  0x42   :  { %491 = vmatpush.msra.mxu3 %v317_v48  ;;  %414 = vmatpush.msra.mxu0 %v214_v49  ;;  %v270_v11 = vld [vmem:[#allocation10 + $0x250] sm:$0xff]  ;;  %v372_v12 = vld [vmem:[#allocation10 + $0x580] sm:$0xff]  ;;  %v271_v13 = vld [vmem:[#allocation10 + $0x258] sm:$0xff] }
  0x43   :  { %466 = vmatpush.msra.mxu2 %v215_v50  ;;  %440 = vmatpush.msra.mxu1 %v310_v51  ;;  %v373_v14 = vld [vmem:[#allocation10 + $0x588] sm:$0xff]  ;;  %v264_v15 = vld [vmem:[#allocation10 + $0x220] sm:$0xff]  ;;  %v366_v16 = vld [vmem:[#allocation10 + $0x550] sm:$0xff] }
  0x44   :  { %492 = vmatpush.msra.mxu3 %v311_v52  ;;  %415 = vmatpush.msra.mxu0 %v208_v53  ;;  %v265_v17 = vld [vmem:[#allocation10 + $0x228] sm:$0xff]  ;;  %v367_v18 = vld [vmem:[#allocation10 + $0x558] sm:$0xff]  ;;  %v258_v19 = vld [vmem:[#allocation10 + $0x1f0] sm:$0xff] }
  0x45   :  { %467 = vmatpush.msra.mxu2 %v209_v54  ;;  %441 = vmatpush.msra.mxu1 %v304_v55  ;;  %v360_v20 = vld [vmem:[#allocation10 + $0x520] sm:$0xff]  ;;  %v259_v21 = vld [vmem:[#allocation10 + $0x1f8] sm:$0xff]  ;;  %v361_v22 = vld [vmem:[#allocation10 + $0x528] sm:$0xff] }
  0x46   :  { %493 = vmatpush.msra.mxu3 %v305_v56  ;;  %416 = vmatpush.msra.mxu0 %v202_v57  ;;  %v252_v23 = vld [vmem:[#allocation10 + $0x1c0] sm:$0xff]  ;;  %v354_v24 = vld [vmem:[#allocation10 + $0x4f0] sm:$0xff]  ;;  %v253_v25 = vld [vmem:[#allocation10 + $0x1c8] sm:$0xff] }
  0x47   :  { %468 = vmatpush.msra.mxu2 %v203_v58  ;;  %442 = vmatpush.msra.mxu1 %v298_v59  ;;  %v355_v26 = vld [vmem:[#allocation10 + $0x4f8] sm:$0xff]  ;;  %v246_v27 = vld [vmem:[#allocation10 + $0x190] sm:$0xff]  ;;  %v348_v28 = vld [vmem:[#allocation10 + $0x4c0] sm:$0xff] }
  0x48   :  { %494 = vmatpush.msra.mxu3 %v299_v60  ;;  %417 = vmatpush.msra.mxu0 %v196_v61  ;;  %v247_v29 = vld [vmem:[#allocation10 + $0x198] sm:$0xff]  ;;  %v349_v30 = vld [vmem:[#allocation10 + $0x4c8] sm:$0xff]  ;;  %v240_v31 = vld [vmem:[#allocation10 + $0x160] sm:$0xff] }
  0x49   :  { %469 = vmatpush.msra.mxu2 %v197_v62  ;;  %443 = vmatpush.msra.mxu1 %v292_v1  ;;  %v342_v32 = vld [vmem:[#allocation10 + $0x490] sm:$0xff]  ;;  %v241_v33 = vld [vmem:[#allocation10 + $0x168] sm:$0xff]  ;;  %v343_v34 = vld [vmem:[#allocation10 + $0x498] sm:$0xff] }
  0x4a   :  { %506 = vmatpush.msrb.mxu0 %v288_v63  ;;  %495 = vmatpush.msra.mxu3 %v293_v2  ;;  %v234_v35 = vld [vmem:[#allocation10 + $0x130] sm:$0xff]  ;;  %v336_v36 = vld [vmem:[#allocation10 + $0x460] sm:$0xff]  ;;  %v235_v37 = vld [vmem:[#allocation10 + $0x138] sm:$0xff] }
  0x4b   :  { %558 = vmatpush.msrb.mxu2 %v289_v0  ;;  %532 = vmatpush.msrb.mxu1 %v384_v4  ;;  %v337_v38 = vld [vmem:[#allocation10 + $0x468] sm:$0xff]  ;;  %v228_v39 = vld [vmem:[#allocation10 + $0x100] sm:$0xff]  ;;  %v330_v40 = vld [vmem:[#allocation10 + $0x430] sm:$0xff] }
  0x4c   :  { %507 = vmatpush.msrb.mxu0 %v282_v3  ;;  %584 = vmatpush.msrb.mxu3 %v385_v6  ;;  %v229_v41 = vld [vmem:[#allocation10 + $0x108] sm:$0xff]  ;;  %v331_v42 = vld [vmem:[#allocation10 + $0x438] sm:$0xff]  ;;  %v5048_v43 = vld [vmem:[#allocation8] sm:$0xff] }
  0x4d   :  { %559 = vmatpush.msrb.mxu2 %v283_v5  ;;  %533 = vmatpush.msrb.mxu1 %v378_v8  ;;  %v222_v44 = vld [vmem:[#allocation10 + $0xd0] sm:$0xff]  ;;  %v324_v45 = vld [vmem:[#allocation10 + $0x400] sm:$0xff]  ;;  %v223_v46 = vld [vmem:[#allocation10 + $0xd8] sm:$0xff] }
  0x4e   :  { %508 = vmatpush.msrb.mxu0 %v276_v7  ;;  %585 = vmatpush.msrb.mxu3 %v379_v10  ;;  %v325_v47 = vld [vmem:[#allocation10 + $0x408] sm:$0xff]  ;;  %v5052_v48 = vld [vmem:[#allocation8 + $0x8] sm:$0xff]  ;;  %v216_v49 = vld [vmem:[#allocation10 + $0xa0] sm:$0xff] }
  0x4f   :  { %560 = vmatpush.msrb.mxu2 %v277_v9  ;;  %534 = vmatpush.msrb.mxu1 %v372_v12  ;;  %v318_v50 = vld [vmem:[#allocation10 + $0x3d0] sm:$0xff]  ;;  %v217_v51 = vld [vmem:[#allocation10 + $0xa8] sm:$0xff]  ;;  %v319_v52 = vld [vmem:[#allocation10 + $0x3d8] sm:$0xff] }
  0x50   :  { %509 = vmatpush.msrb.mxu0 %v270_v11  ;;  %586 = vmatpush.msrb.mxu3 %v373_v14  ;;  %v210_v53 = vld [vmem:[#allocation10 + $0x70] sm:$0xff]  ;;  %v312_v54 = vld [vmem:[#allocation10 + $0x3a0] sm:$0xff]  ;;  %v211_v55 = vld [vmem:[#allocation10 + $0x78] sm:$0xff] }
  0x51   :  { %561 = vmatpush.msrb.mxu2 %v271_v13  ;;  %535 = vmatpush.msrb.mxu1 %v366_v16  ;;  %v313_v56 = vld [vmem:[#allocation10 + $0x3a8] sm:$0xff]  ;;  %v204_v57 = vld [vmem:[#allocation10 + $0x40] sm:$0xff]  ;;  %v306_v58 = vld [vmem:[#allocation10 + $0x370] sm:$0xff] }
  0x52   :  { %510 = vmatpush.msrb.mxu0 %v264_v15  ;;  %587 = vmatpush.msrb.mxu3 %v367_v18  ;;  %v205_v59 = vld [vmem:[#allocation10 + $0x48] sm:$0xff]  ;;  %v307_v60 = vld [vmem:[#allocation10 + $0x378] sm:$0xff]  ;;  %v5056_v61 = vld [vmem:[#allocation8 + $0x10] sm:$0xff] }
  0x53   :  { %562 = vmatpush.msrb.mxu2 %v265_v17  ;;  %536 = vmatpush.msrb.mxu1 %v360_v20  ;;  %v198_v62 = vld [vmem:[#allocation10 + $0x10] sm:$0xff]  ;;  %v300_v63 = vld [vmem:[#allocation10 + $0x340] sm:$0xff]  ;;  %v199_v0 = vld [vmem:[#allocation10 + $0x18] sm:$0xff] }
  0x54   :  { %511 = vmatpush.msrb.mxu0 %v258_v19  ;;  %588 = vmatpush.msrb.mxu3 %v361_v22  ;;  %v301_v1 = vld [vmem:[#allocation10 + $0x348] sm:$0xff]  ;;  %v290_v3 = vld [vmem:[#allocation10 + $0x2f0] sm:$0xff]  ;;  %v291_v4 = vld [vmem:[#allocation10 + $0x2f8] sm:$0xff] }
  0x55   :  { %563 = vmatpush.msrb.mxu2 %v259_v21  ;;  %537 = vmatpush.msrb.mxu1 %v354_v24  ;;  %v5060_v2 = vld [vmem:[#allocation8 + $0x18] sm:$0xff]  ;;  %v294_v5 = vld [vmem:[#allocation10 + $0x310] sm:$0xff]  ;;  %v295_v6 = vld [vmem:[#allocation10 + $0x318] sm:$0xff] }
  0x56   :  { %512 = vmatpush.msrb.mxu0 %v252_v23  ;;  %589 = vmatpush.msrb.mxu3 %v355_v26  ;;  %v284_v7 = vld [vmem:[#allocation10 + $0x2c0] sm:$0xff]  ;;  %v386_v8 = vld [vmem:[#allocation10 + $0x5f0] sm:$0xff]  ;;  %v285_v9 = vld [vmem:[#allocation10 + $0x2c8] sm:$0xff] }
  0x57   :  { %564 = vmatpush.msrb.mxu2 %v253_v25  ;;  %538 = vmatpush.msrb.mxu1 %v348_v28  ;;  %v387_v10 = vld [vmem:[#allocation10 + $0x5f8] sm:$0xff]  ;;  %v278_v11 = vld [vmem:[#allocation10 + $0x290] sm:$0xff]  ;;  %v380_v12 = vld [vmem:[#allocation10 + $0x5c0] sm:$0xff] }
  0x58   :  { %513 = vmatpush.msrb.mxu0 %v246_v27  ;;  %590 = vmatpush.msrb.mxu3 %v349_v30  ;;  %v279_v13 = vld [vmem:[#allocation10 + $0x298] sm:$0xff]  ;;  %v381_v14 = vld [vmem:[#allocation10 + $0x5c8] sm:$0xff]  ;;  %v5064_v15 = vld [vmem:[#allocation8 + $0x20] sm:$0xff] }
  0x59   :  { %565 = vmatpush.msrb.mxu2 %v247_v29  ;;  %539 = vmatpush.msrb.mxu1 %v342_v32  ;;  %v272_v16 = vld [vmem:[#allocation10 + $0x260] sm:$0xff]  ;;  %v374_v17 = vld [vmem:[#allocation10 + $0x590] sm:$0xff]  ;;  %v273_v18 = vld [vmem:[#allocation10 + $0x268] sm:$0xff] }
  0x5a   :  { %514 = vmatpush.msrb.mxu0 %v240_v31  ;;  %591 = vmatpush.msrb.mxu3 %v343_v34  ;;  %v375_v19 = vld [vmem:[#allocation10 + $0x598] sm:$0xff]  ;;  %v266_v21 = vld [vmem:[#allocation10 + $0x230] sm:$0xff]  ;;  %v368_v22 = vld [vmem:[#allocation10 + $0x560] sm:$0xff] }
  0x5b   :  { %566 = vmatpush.msrb.mxu2 %v241_v33  ;;  %540 = vmatpush.msrb.mxu1 %v336_v36  ;;  %v5068_v20 = vld [vmem:[#allocation8 + $0x28] sm:$0xff]  ;;  %v369_v24 = vld [vmem:[#allocation10 + $0x568] sm:$0xff]  ;;  %v260_v25 = vld [vmem:[#allocation10 + $0x200] sm:$0xff] }
  0x5c   :  { %515 = vmatpush.msrb.mxu0 %v234_v35  ;;  %592 = vmatpush.msrb.mxu3 %v337_v38  ;;  %v267_v23 = vld [vmem:[#allocation10 + $0x238] sm:$0xff]  ;;  %v362_v26 = vld [vmem:[#allocation10 + $0x530] sm:$0xff]  ;;  %v261_v27 = vld [vmem:[#allocation10 + $0x208] sm:$0xff] }
  0x5d   :  { %567 = vmatpush.msrb.mxu2 %v235_v37  ;;  %541 = vmatpush.msrb.mxu1 %v330_v40  ;;  %v363_v28 = vld [vmem:[#allocation10 + $0x538] sm:$0xff]  ;;  %v254_v29 = vld [vmem:[#allocation10 + $0x1d0] sm:$0xff]  ;;  %v356_v30 = vld [vmem:[#allocation10 + $0x500] sm:$0xff] }
  0x5e   :  { %516 = vmatpush.msrb.mxu0 %v228_v39  ;;  %593 = vmatpush.msrb.mxu3 %v331_v42  ;;  %v255_v31 = vld [vmem:[#allocation10 + $0x1d8] sm:$0xff]  ;;  %v357_v32 = vld [vmem:[#allocation10 + $0x508] sm:$0xff]  ;;  %v248_v33 = vld [vmem:[#allocation10 + $0x1a0] sm:$0xff] }
  0x5f   :  { %568 = vmatpush.msrb.mxu2 %v229_v41  ;;  %418 = vmatmul.f32.vlgmr.msra.gmra.mxu0 %v5048_v43  ;;  %v350_v34 = vld [vmem:[#allocation10 + $0x4d0] sm:$0xff]  ;;  %v249_v35 = vld [vmem:[#allocation10 + $0x1a8] sm:$0xff]  ;;  %v351_v36 = vld [vmem:[#allocation10 + $0x4d8] sm:$0xff] }
  0x60   :  { %470 = vmatmul.f32.vlgmr.msra.gmra.mxu2 %v5048_v43  ;;  %517 = vmatpush.msrb.mxu0 %v222_v44  ;;  %v242_v37 = vld [vmem:[#allocation10 + $0x170] sm:$0xff]  ;;  %v344_v38 = vld [vmem:[#allocation10 + $0x4a0] sm:$0xff]  ;;  %v243_v39 = vld [vmem:[#allocation10 + $0x178] sm:$0xff] }
  0x61   :  { %542 = vmatpush.msrb.mxu1 %v324_v45  ;;  %569 = vmatpush.msrb.mxu2 %v223_v46  ;;  %v345_v40 = vld [vmem:[#allocation10 + $0x4a8] sm:$0xff]  ;;  %v236_v41 = vld [vmem:[#allocation10 + $0x140] sm:$0xff]  ;;  %v338_v42 = vld [vmem:[#allocation10 + $0x470] sm:$0xff] }
  0x62   :  { %594 = vmatpush.msrb.mxu3 %v325_v47  ;;  %444 = vmatmul.f32.vlgmr.msra.gmra.mxu1 %v5052_v48  ;;  %v237_v44 = vld [vmem:[#allocation10 + $0x148] sm:$0xff]  ;;  %v339_v45 = vld [vmem:[#allocation10 + $0x478] sm:$0xff]  ;;  %v230_v46 = vld [vmem:[#allocation10 + $0x110] sm:$0xff] }
  0x63   :  { %496 = vmatmul.f32.vlgmr.msra.gmra.mxu3 %v5052_v48  ;;  %518 = vmatpush.msrb.mxu0 %v216_v49  ;;  %v332_v47 = vld [vmem:[#allocation10 + $0x440] sm:$0xff]  ;;  %v231_v49 = vld [vmem:[#allocation10 + $0x118] sm:$0xff] }
  0x64   :  { %543 = vmatpush.msrb.mxu1 %v318_v50  ;;  %570 = vmatpush.msrb.mxu2 %v217_v51  ;;  %v333_v50 = vld [vmem:[#allocation10 + $0x448] sm:$0xff]  ;;  %v224_v51 = vld [vmem:[#allocation10 + $0xe0] sm:$0xff] }
  0x65   :  { %595 = vmatpush.msrb.mxu3 %v319_v52  ;;  %519 = vmatpush.msrb.mxu0 %v210_v53  ;;  %v326_v52 = vld [vmem:[#allocation10 + $0x410] sm:$0xff]  ;;  %v225_v53 = vld [vmem:[#allocation10 + $0xe8] sm:$0xff] }
  0x66   :  { %544 = vmatpush.msrb.mxu1 %v312_v54  ;;  %571 = vmatpush.msrb.mxu2 %v211_v55  ;;  %v327_v54 = vld [vmem:[#allocation10 + $0x418] sm:$0xff]  ;;  %v218_v55 = vld [vmem:[#allocation10 + $0xb0] sm:$0xff] }
  0x67   :  { %596 = vmatpush.msrb.mxu3 %v313_v56  ;;  %520 = vmatpush.msrb.mxu0 %v204_v57  ;;  %v320_v56 = vld [vmem:[#allocation10 + $0x3e0] sm:$0xff]  ;;  %v219_v57 = vld [vmem:[#allocation10 + $0xb8] sm:$0xff] }
  0x68   :  { %545 = vmatpush.msrb.mxu1 %v306_v58  ;;  %572 = vmatpush.msrb.mxu2 %v205_v59  ;;  %v321_v58 = vld [vmem:[#allocation10 + $0x3e8] sm:$0xff]  ;;  %v212_v59 = vld [vmem:[#allocation10 + $0x80] sm:$0xff] }
  0x69   :  { %597 = vmatpush.msrb.mxu3 %v307_v60  ;;  %421 = vmatmul.f32.gmra.mxu0 %v5056_v61  ;;  %v314_v60 = vld [vmem:[#allocation10 + $0x3b0] sm:$0xff] }
  0x6a   :  { %473 = vmatmul.f32.gmra.mxu2 %v5056_v61  ;;  %521 = vmatpush.msrb.mxu0 %v198_v62  ;;  %v213_v62 = vld [vmem:[#allocation10 + $0x88] sm:$0xff] }
  0x6b   :  { %546 = vmatpush.msrb.mxu1 %v300_v63  ;;  %573 = vmatpush.msrb.mxu2 %v199_v0  ;;  %v315_v63 = vld [vmem:[#allocation10 + $0x3b8] sm:$0xff]  ;;  %v206_v0 = vld [vmem:[#allocation10 + $0x50] sm:$0xff] }
  0x6c   :  { %598 = vmatpush.msrb.mxu3 %v301_v1  ;;  %447 = vmatmul.f32.gmra.mxu1 %v5060_v2  ;;  %v308_v1 = vld [vmem:[#allocation10 + $0x380] sm:$0xff] }
  0x6d   :  { %499 = vmatmul.f32.gmra.mxu3 %v5060_v2  ;;  %610 = vmatpush.msra.mxu0 %v290_v3  ;;  %v207_v3 = vld [vmem:[#allocation10 + $0x58] sm:$0xff] }
  0x6e   :  { %662 = vmatpush.msra.mxu2 %v291_v4  ;;  %547 = vmatpush.msrb.mxu1 %v294_v5  ;;  %v309_v4 = vld [vmem:[#allocation10 + $0x388] sm:$0xff]  ;;  %v200_v5 = vld [vmem:[#allocation10 + $0x20] sm:$0xff] }
  0x6f   :  { %599 = vmatpush.msrb.mxu3 %v295_v6  ;;  %611 = vmatpush.msra.mxu0 %v284_v7  ;;  %v302_v6 = vld [vmem:[#allocation10 + $0x350] sm:$0xff]  ;;  %v201_v7 = vld [vmem:[#allocation10 + $0x28] sm:$0xff] }
  0x70   :  { %636 = vmatpush.msra.mxu1 %v386_v8  ;;  %663 = vmatpush.msra.mxu2 %v285_v9  ;;  %v303_v8 = vld [vmem:[#allocation10 + $0x358] sm:$0xff]  ;;  %v831_v9 = vld [vmem:[#allocation12 + $0x2d0] sm:$0xff] }
  0x71   :  { %688 = vmatpush.msra.mxu3 %v387_v10  ;;  %612 = vmatpush.msra.mxu0 %v278_v11  ;;  %v832_v10 = vld [vmem:[#allocation12 + $0x2d8] sm:$0xff]  ;;  %v296_v11 = vld [vmem:[#allocation10 + $0x320] sm:$0xff] }
  0x72   :  { %637 = vmatpush.msra.mxu1 %v380_v12  ;;  %664 = vmatpush.msra.mxu2 %v279_v13  ;;  %v297_v12 = vld [vmem:[#allocation10 + $0x328] sm:$0xff]  ;;  %v5082_v13 = vld [vmem:[#allocation12 + $0x2a0] sm:$0xff] }
  0x73   :  { %689 = vmatpush.msra.mxu3 %v381_v14  ;;  %424 = vmatmul.f32.gmra.mxu0 %v5064_v15  ;;  %v927_v14 = vld [vmem:[#allocation12 + $0x5d0] sm:$0xff] }
  0x74   :  { %476 = vmatmul.f32.gmra.mxu2 %v5064_v15  ;;  %613 = vmatpush.msra.mxu0 %v272_v16  ;;  %v5086_v16 = vld [vmem:[#allocation12 + $0x2a8] sm:$0xff] }
  0x75   :  { %638 = vmatpush.msra.mxu1 %v374_v17  ;;  %665 = vmatpush.msra.mxu2 %v273_v18  ;;  %v928_v17 = vld [vmem:[#allocation12 + $0x5d8] sm:$0xff]  ;;  %v5088_v18 = vld [vmem:[#allocation12 + $0x270] sm:$0xff] }
  0x76   :  { %690 = vmatpush.msra.mxu3 %v375_v19  ;;  %450 = vmatmul.f32.gmra.mxu1 %v5068_v20  ;;  %v921_v19 = vld [vmem:[#allocation12 + $0x5a0] sm:$0xff] }
  0x77   :  { %502 = vmatmul.f32.gmra.mxu3 %v5068_v20  ;;  %614 = vmatpush.msra.mxu0 %v266_v21  ;;  %v5091_v21 = vld [vmem:[#allocation12 + $0x278] sm:$0xff] }
  0x78   :  { %639 = vmatpush.msra.mxu1 %v368_v22  ;;  %666 = vmatpush.msra.mxu2 %v267_v23  ;;  %v922_v22 = vld [vmem:[#allocation12 + $0x5a8] sm:$0xff]  ;;  %v5094_v23 = vld [vmem:[#allocation12 + $0x240] sm:$0xff] }
  0x79   :  { %691 = vmatpush.msra.mxu3 %v369_v24  ;;  %615 = vmatpush.msra.mxu0 %v260_v25  ;;  %v915_v24 = vld [vmem:[#allocation12 + $0x570] sm:$0xff]  ;;  %v5097_v25 = vld [vmem:[#allocation12 + $0x248] sm:$0xff] }
  0x7a   :  { %640 = vmatpush.msra.mxu1 %v362_v26  ;;  %667 = vmatpush.msra.mxu2 %v261_v27  ;;  %v916_v26 = vld [vmem:[#allocation12 + $0x578] sm:$0xff]  ;;  %v5101_v27 = vld [vmem:[#allocation12 + $0x210] sm:$0xff] }
  0x7b   :  { %692 = vmatpush.msra.mxu3 %v363_v28  ;;  %616 = vmatpush.msra.mxu0 %v254_v29  ;;  %v909_v28 = vld [vmem:[#allocation12 + $0x540] sm:$0xff]  ;;  %v5104_v29 = vld [vmem:[#allocation12 + $0x218] sm:$0xff] }
  0x7c   :  { %641 = vmatpush.msra.mxu1 %v356_v30  ;;  %668 = vmatpush.msra.mxu2 %v255_v31  ;;  %v910_v30 = vld [vmem:[#allocation12 + $0x548] sm:$0xff]  ;;  %v5109_v31 = vld [vmem:[#allocation12 + $0x1e0] sm:$0xff] }
  0x7d   :  { %693 = vmatpush.msra.mxu3 %v357_v32  ;;  %522 = vmatmul.f32.vlgmr.msrb.gmra.mxu0 %v5048_v43  ;;  %v903_v32 = vld [vmem:[#allocation12 + $0x510] sm:$0xff] }
  0x7e   :  { %574 = vmatmul.f32.vlgmr.msrb.gmra.mxu2 %v5048_v43  ;;  %617 = vmatpush.msra.mxu0 %v248_v33  ;;  %v5112_v33 = vld [vmem:[#allocation12 + $0x1e8] sm:$0xff] }
  0x7f   :  { %642 = vmatpush.msra.mxu1 %v350_v34  ;;  %669 = vmatpush.msra.mxu2 %v249_v35  ;;  %v904_v34 = vld [vmem:[#allocation12 + $0x518] sm:$0xff]  ;;  %v795_v35 = vld [vmem:[#allocation12 + $0x1b0] sm:$0xff] }
  0x80   :  { %694 = vmatpush.msra.mxu3 %v351_v36  ;;  %548 = vmatmul.f32.vlgmr.msrb.gmra.mxu1 %v5052_v48  ;;  %v897_v36 = vld [vmem:[#allocation12 + $0x4e0] sm:$0xff] }
  0x81   :  { %600 = vmatmul.f32.vlgmr.msrb.gmra.mxu3 %v5052_v48  ;;  %618 = vmatpush.msra.mxu0 %v242_v37  ;;  %v898_v37 = vld [vmem:[#allocation12 + $0x4e8] sm:$0xff] }
  0x82   :  { %643 = vmatpush.msra.mxu1 %v344_v38  ;;  %670 = vmatpush.msra.mxu2 %v243_v39  ;;  %v789_v38 = vld [vmem:[#allocation12 + $0x180] sm:$0xff]  ;;  %v891_v39 = vld [vmem:[#allocation12 + $0x4b0] sm:$0xff] }
  0x83   :  { %695 = vmatpush.msra.mxu3 %v345_v40  ;;  %619 = vmatpush.msra.mxu0 %v236_v41  ;;  %v790_v40 = vld [vmem:[#allocation12 + $0x188] sm:$0xff]  ;;  %v892_v41 = vld [vmem:[#allocation12 + $0x4b8] sm:$0xff] }
  0x84   :  { %644 = vmatpush.msra.mxu1 %v338_v42  ;;  %671 = vmatpush.msra.mxu2 %v237_v44  ;;  %v885_v42 = vld [vmem:[#allocation12 + $0x480] sm:$0xff]  ;;  %v784_v44 = vld [vmem:[#allocation12 + $0x158] sm:$0xff] }
  0x85   :  { %696 = vmatpush.msra.mxu3 %v339_v45  ;;  %620 = vmatpush.msra.mxu0 %v230_v46  ;;  %v886_v45 = vld [vmem:[#allocation12 + $0x488] sm:$0xff]  ;;  %v777_v46 = vld [vmem:[#allocation12 + $0x120] sm:$0xff] }
  0x86   :  { %645 = vmatpush.msra.mxu1 %v332_v47  ;;  %672 = vmatpush.msra.mxu2 %v231_v49  ;;  %v879_v47 = vld [vmem:[#allocation12 + $0x450] sm:$0xff]  ;;  %v778_v49 = vld [vmem:[#allocation12 + $0x128] sm:$0xff] }
  0x87   :  { %697 = vmatpush.msra.mxu3 %v333_v50  ;;  %525 = vmatmul.f32.gmra.mxu0 %v5056_v61  ;;  %v880_v50 = vld [vmem:[#allocation12 + $0x458] sm:$0xff] }
  0x88   :  { %577 = vmatmul.f32.gmra.mxu2 %v5056_v61  ;;  %621 = vmatpush.msra.mxu0 %v224_v51  ;;  %v771_v51 = vld [vmem:[#allocation12 + $0xf0] sm:$0xff] }
  0x89   :  { %646 = vmatpush.msra.mxu1 %v326_v52  ;;  %673 = vmatpush.msra.mxu2 %v225_v53  ;;  %v873_v52 = vld [vmem:[#allocation12 + $0x420] sm:$0xff]  ;;  %v772_v53 = vld [vmem:[#allocation12 + $0xf8] sm:$0xff] }
  0x8a   :  { %698 = vmatpush.msra.mxu3 %v327_v54  ;;  %551 = vmatmul.f32.gmra.mxu1 %v5060_v2  ;;  %v874_v54 = vld [vmem:[#allocation12 + $0x428] sm:$0xff] }
  0x8b   :  { %603 = vmatmul.f32.gmra.mxu3 %v5060_v2  ;;  %622 = vmatpush.msra.mxu0 %v218_v55  ;;  %v867_v55 = vld [vmem:[#allocation12 + $0x3f0] sm:$0xff] }
  0x8c   :  { %647 = vmatpush.msra.mxu1 %v320_v56  ;;  %674 = vmatpush.msra.mxu2 %v219_v57  ;;  %v766_v56 = vld [vmem:[#allocation12 + $0xc8] sm:$0xff]  ;;  %v868_v57 = vld [vmem:[#allocation12 + $0x3f8] sm:$0xff] }
  0x8d   :  { %699 = vmatpush.msra.mxu3 %v321_v58  ;;  %623 = vmatpush.msra.mxu0 %v212_v59  ;;  %v759_v58 = vld [vmem:[#allocation12 + $0x90] sm:$0xff]  ;;  %v760_v59 = vld [vmem:[#allocation12 + $0x98] sm:$0xff] }
  0x8e   :  { %648 = vmatpush.msra.mxu1 %v314_v60  ;;  %675 = vmatpush.msra.mxu2 %v213_v62  ;;  %v862_v60 = vld [vmem:[#allocation12 + $0x3c8] sm:$0xff]  ;;  %v753_v62 = vld [vmem:[#allocation12 + $0x60] sm:$0xff] }
  0x8f   :  { %700 = vmatpush.msra.mxu3 %v315_v63  ;;  %624 = vmatpush.msra.mxu0 %v206_v0  ;;  %v855_v63 = vld [vmem:[#allocation12 + $0x390] sm:$0xff]  ;;  %v754_v0 = vld [vmem:[#allocation12 + $0x68] sm:$0xff] }
  0x90   :  { %649 = vmatpush.msra.mxu1 %v308_v1  ;;  %676 = vmatpush.msra.mxu2 %v207_v3  ;;  %v856_v1 = vld [vmem:[#allocation12 + $0x398] sm:$0xff]  ;;  %v747_v3 = vld [vmem:[#allocation12 + $0x30] sm:$0xff] }
  0x91   :  { %701 = vmatpush.msra.mxu3 %v309_v4  ;;  %528 = vmatmul.f32.gmra.mxu0 %v5064_v15  ;;  %v849_v4 = vld [vmem:[#allocation12 + $0x360] sm:$0xff] }
  0x92   :  { %580 = vmatmul.f32.gmra.mxu2 %v5064_v15  ;;  %625 = vmatpush.msra.mxu0 %v200_v5  ;;  %v748_v5 = vld [vmem:[#allocation12 + $0x38] sm:$0xff] }
  0x93   :  { %650 = vmatpush.msra.mxu1 %v302_v6  ;;  %677 = vmatpush.msra.mxu2 %v201_v7  ;;  %v850_v6 = vld [vmem:[#allocation12 + $0x368] sm:$0xff]  ;;  %v843_v7 = vld [vmem:[#allocation12 + $0x330] sm:$0xff] }
  0x94   :  { %702 = vmatpush.msra.mxu3 %v303_v8  ;;  %946 = vmatpush.msrb.mxu0 %v831_v9  ;;  %v742_v8 = vld [vmem:[#allocation12 + $0x8] sm:$0xff]  ;;  %v844_v9 = vld [vmem:[#allocation12 + $0x338] sm:$0xff] }
  0x95   :  { %986 = vmatpush.msrb.mxu2 %v832_v10  ;;  %554 = vmatmul.f32.gmra.mxu1 %v5068_v20  ;;  %v833_v10 = vld [vmem:[#allocation12 + $0x2e0] sm:$0xff] }
  0x96   :  { %606 = vmatmul.f32.gmra.mxu3 %v5068_v20  ;;  %651 = vmatpush.msra.mxu1 %v296_v11  ;;  %v837_v11 = vld [vmem:[#allocation12 + $0x300] sm:$0xff] }
  0x97   :  { %703 = vmatpush.msra.mxu3 %v297_v12  ;;  %947 = vmatpush.msrb.mxu0 %v5082_v13  ;;  %v838_v12 = vld [vmem:[#allocation12 + $0x308] sm:$0xff] }
  0x98   :  { %966 = vmatpush.msrb.mxu1 %v927_v14  ;;  %987 = vmatpush.msrb.mxu2 %v5086_v16  ;;  %v7202_v14 = vmov 0.0  }
  0x99   :  { %1006 = vmatpush.msrb.mxu3 %v928_v17  ;;  %948 = vmatpush.msrb.mxu0 %v5088_v18  ;;  %v827_v17 = vld [vmem:[#allocation12 + $0x2b0] sm:$0xff] }
  0x9a   :  { %967 = vmatpush.msrb.mxu1 %v921_v19  ;;  %988 = vmatpush.msrb.mxu2 %v5091_v21  ;;  %v929_v19 = vld [vmem:[#allocation12 + $0x5e0] sm:$0xff] }
  0x9b   :  { %1007 = vmatpush.msrb.mxu3 %v922_v22  ;;  %949 = vmatpush.msrb.mxu0 %v5094_v23  ;;  %v828_v22 = vld [vmem:[#allocation12 + $0x2b8] sm:$0xff] }
  0x9c   :  { %968 = vmatpush.msrb.mxu1 %v915_v24  ;;  %989 = vmatpush.msrb.mxu2 %v5097_v25  ;;  %v930_v24 = vld [vmem:[#allocation12 + $0x5e8] sm:$0xff] }
  0x9d   :  { %1008 = vmatpush.msrb.mxu3 %v916_v26  ;;  %626 = vmatmul.f32.vlgmr.msra.gmra.mxu0 %v5048_v43  ;;  %v821_v26 = vld [vmem:[#allocation12 + $0x280] sm:$0xff] }
  0x9e   :  { %678 = vmatmul.f32.vlgmr.msra.gmra.mxu2 %v5048_v43  ;;  %950 = vmatpush.msrb.mxu0 %v5101_v27  ;;  %v796_v43 = vld [vmem:[#allocation12 + $0x1b8] sm:$0xff] }
  0x9f   :  { %969 = vmatpush.msrb.mxu1 %v909_v28  ;;  %990 = vmatpush.msrb.mxu2 %v5104_v29  ;;  %v923_v28 = vld [vmem:[#allocation12 + $0x5b0] sm:$0xff] }
  0xa0   :  { %1009 = vmatpush.msrb.mxu3 %v910_v30  ;;  %652 = vmatmul.f32.vlgmr.msra.gmra.mxu1 %v5052_v48  ;;  %v822_v30 = vld [vmem:[#allocation12 + $0x288] sm:$0xff] }
  0xa1   :  { %704 = vmatmul.f32.vlgmr.msra.gmra.mxu3 %v5052_v48  ;;  %951 = vmatpush.msrb.mxu0 %v5109_v31  ;;  %v783_v48 = vld [vmem:[#allocation12 + $0x150] sm:$0xff] }
  0xa2   :  { %970 = vmatpush.msrb.mxu1 %v903_v32  ;;  %991 = vmatpush.msrb.mxu2 %v5112_v33  ;;  %v924_v32 = vld [vmem:[#allocation12 + $0x5b8] sm:$0xff] }
  0xa3   :  { %1010 = vmatpush.msrb.mxu3 %v904_v34  ;;  %952 = vmatpush.msrb.mxu0 %v795_v35  ;;  %v815_v34 = vld [vmem:[#allocation12 + $0x250] sm:$0xff]  ;;  %v917_v35 = vld [vmem:[#allocation12 + $0x580] sm:$0xff] }
  0xa4   :  { %971 = vmatpush.msrb.mxu1 %v897_v36  ;;  %992 = vmatpush.msrb.mxu2 %v796_v43  ;;  %v816_v36 = vld [vmem:[#allocation12 + $0x258] sm:$0xff]  ;;  %v918_v43 = vld [vmem:[#allocation12 + $0x588] sm:$0xff] }
  0xa5   :  { %1011 = vmatpush.msrb.mxu3 %v898_v37  ;;  %953 = vmatpush.msrb.mxu0 %v789_v38  ;;  %v809_v37 = vld [vmem:[#allocation12 + $0x220] sm:$0xff]  ;;  %v911_v38 = vld [vmem:[#allocation12 + $0x550] sm:$0xff] }
  0xa6   :  { %972 = vmatpush.msrb.mxu1 %v891_v39  ;;  %993 = vmatpush.msrb.mxu2 %v790_v40  ;;  %v810_v39 = vld [vmem:[#allocation12 + $0x228] sm:$0xff]  ;;  %v912_v40 = vld [vmem:[#allocation12 + $0x558] sm:$0xff] }
  0xa7   :  { %1012 = vmatpush.msrb.mxu3 %v892_v41  ;;  %629 = vmatmul.f32.gmra.mxu0 %v5056_v61  ;;  %v803_v41 = vld [vmem:[#allocation12 + $0x1f0] sm:$0xff] }
  0xa8   :  { %681 = vmatmul.f32.gmra.mxu2 %v5056_v61  ;;  %954 = vmatpush.msrb.mxu0 %v783_v48  ;;  %v765_v61 = vld [vmem:[#allocation12 + $0xc0] sm:$0xff] }
  0xa9   :  { %973 = vmatpush.msrb.mxu1 %v885_v42  ;;  %994 = vmatpush.msrb.mxu2 %v784_v44  ;;  %v905_v48 = vld [vmem:[#allocation12 + $0x520] sm:$0xff]  ;;  %v804_v42 = vld [vmem:[#allocation12 + $0x1f8] sm:$0xff]  ;;  %v906_v44 = vld [vmem:[#allocation12 + $0x528] sm:$0xff] }
  0xaa   :  { %1013 = vmatpush.msrb.mxu3 %v886_v45  ;;  %655 = vmatmul.f32.gmra.mxu1 %v5060_v2  ;;  %v797_v45 = vld [vmem:[#allocation12 + $0x1c0] sm:$0xff] }
  0xab   :  { %707 = vmatmul.f32.gmra.mxu3 %v5060_v2  ;;  %955 = vmatpush.msrb.mxu0 %v777_v46  ;;  %v861_v2 = vld [vmem:[#allocation12 + $0x3c0] sm:$0xff]  ;;  %v899_v46 = vld [vmem:[#allocation12 + $0x4f0] sm:$0xff] }
  0xac   :  { %974 = vmatpush.msrb.mxu1 %v879_v47  ;;  %995 = vmatpush.msrb.mxu2 %v778_v49  ;;  %v798_v47 = vld [vmem:[#allocation12 + $0x1c8] sm:$0xff]  ;;  %v900_v49 = vld [vmem:[#allocation12 + $0x4f8] sm:$0xff] }
  0xad   :  { %1014 = vmatpush.msrb.mxu3 %v880_v50  ;;  %956 = vmatpush.msrb.mxu0 %v771_v51  ;;  %v791_v50 = vld [vmem:[#allocation12 + $0x190] sm:$0xff]  ;;  %v893_v51 = vld [vmem:[#allocation12 + $0x4c0] sm:$0xff] }
  0xae   :  { %975 = vmatpush.msrb.mxu1 %v873_v52  ;;  %996 = vmatpush.msrb.mxu2 %v772_v53  ;;  %v792_v52 = vld [vmem:[#allocation12 + $0x198] sm:$0xff]  ;;  %v894_v53 = vld [vmem:[#allocation12 + $0x4c8] sm:$0xff] }
  0xaf   :  { %1015 = vmatpush.msrb.mxu3 %v874_v54  ;;  %957 = vmatpush.msrb.mxu0 %v765_v61  ;;  %v785_v54 = vld [vmem:[#allocation12 + $0x160] sm:$0xff]  ;;  %v887_v61 = vld [vmem:[#allocation12 + $0x490] sm:$0xff] }
  0xb0   :  { %976 = vmatpush.msrb.mxu1 %v867_v55  ;;  %997 = vmatpush.msrb.mxu2 %v766_v56  ;;  %v786_v55 = vld [vmem:[#allocation12 + $0x168] sm:$0xff]  ;;  %v888_v56 = vld [vmem:[#allocation12 + $0x498] sm:$0xff] }
  0xb1   :  { %1016 = vmatpush.msrb.mxu3 %v868_v57  ;;  %632 = vmatmul.f32.gmra.mxu0 %v5064_v15  ;;  %v779_v57 = vld [vmem:[#allocation12 + $0x130] sm:$0xff] }
  0xb2   :  { %684 = vmatmul.f32.gmra.mxu2 %v5064_v15  ;;  %958 = vmatpush.msrb.mxu0 %v759_v58  ;;  %v741_v15 = vld [vmem:[#allocation12] sm:$0xff] }
  0xb3   :  { %977 = vmatpush.msrb.mxu1 %v861_v2  ;;  %998 = vmatpush.msrb.mxu2 %v760_v59  ;;  %v881_v58 = vld [vmem:[#allocation12 + $0x460] sm:$0xff]  ;;  %v780_v2 = vld [vmem:[#allocation12 + $0x138] sm:$0xff]  ;;  %v882_v59 = vld [vmem:[#allocation12 + $0x468] sm:$0xff] }
  0xb4   :  { %1017 = vmatpush.msrb.mxu3 %v862_v60  ;;  %658 = vmatmul.f32.gmra.mxu1 %v5068_v20  ;;  %v773_v60 = vld [vmem:[#allocation12 + $0x100] sm:$0xff] }
  0xb5   :  { %710 = vmatmul.f32.gmra.mxu3 %v5068_v20  ;;  %959 = vmatpush.msrb.mxu0 %v753_v62  ;;  %v834_v20 = vld [vmem:[#allocation12 + $0x2e8] sm:$0xff]  ;;  %v875_v62 = vld [vmem:[#allocation12 + $0x430] sm:$0xff] }
  0xb6   :  { %978 = vmatpush.msrb.mxu1 %v855_v63  ;;  %999 = vmatpush.msrb.mxu2 %v754_v0  ;;  %v774_v63 = vld [vmem:[#allocation12 + $0x108] sm:$0xff]  ;;  %v876_v0 = vld [vmem:[#allocation12 + $0x438] sm:$0xff] }
  0xb7   :  { %1018 = vmatpush.msrb.mxu3 %v856_v1  ;;  %960 = vmatpush.msrb.mxu0 %v747_v3  ;;  %v767_v1 = vld [vmem:[#allocation12 + $0xd0] sm:$0xff]  ;;  %v869_v3 = vld [vmem:[#allocation12 + $0x400] sm:$0xff] }
  0xb8   :  { %979 = vmatpush.msrb.mxu1 %v849_v4  ;;  %1000 = vmatpush.msrb.mxu2 %v748_v5  ;;  %v768_v4 = vld [vmem:[#allocation12 + $0xd8] sm:$0xff]  ;;  %v870_v5 = vld [vmem:[#allocation12 + $0x408] sm:$0xff] }
  0xb9   :  { %1019 = vmatpush.msrb.mxu3 %v850_v6  ;;  %961 = vmatpush.msrb.mxu0 %v741_v15  ;;  %v761_v6 = vld [vmem:[#allocation12 + $0xa0] sm:$0xff]  ;;  %v863_v15 = vld [vmem:[#allocation12 + $0x3d0] sm:$0xff] }
  0xba   :  { %980 = vmatpush.msrb.mxu1 %v843_v7  ;;  %1001 = vmatpush.msrb.mxu2 %v742_v8  ;;  %v762_v7 = vld [vmem:[#allocation12 + $0xa8] sm:$0xff]  ;;  %v864_v8 = vld [vmem:[#allocation12 + $0x3d8] sm:$0xff] }
  0xbb   :  { %1020 = vmatpush.msrb.mxu3 %v844_v9  ;;  %962 = vmatmul.f32.vlgmr.msrb.gmra.mxu0 %v7202_v14  ;;  %v755_v9 = vld [vmem:[#allocation12 + $0x70] sm:$0xff] }
  0xbc   :  { %1002 = vmatmul.f32.vlgmr.msrb.gmra.mxu2 %v7202_v14  ;;  %1026 = vmatpush.msra.mxu0 %v833_v10  ;;  %v857_v10 = vld [vmem:[#allocation12 + $0x3a0] sm:$0xff] }
  0xbd   :  { %1066 = vmatpush.msra.mxu2 %v834_v20  ;;  %981 = vmatpush.msrb.mxu1 %v837_v11  ;;  %v756_v20 = vld [vmem:[#allocation12 + $0x78] sm:$0xff]  ;;  %v858_v11 = vld [vmem:[#allocation12 + $0x3a8] sm:$0xff] }
  0xbe   :  { %1021 = vmatpush.msrb.mxu3 %v838_v12  ;;  %982 = vmatmul.f32.vlgmr.msrb.gmra.mxu1 %v7202_v14  ;;  %v749_v12 = vld [vmem:[#allocation12 + $0x40] sm:$0xff] }
  0xbf   :  { %1022 = vmatmul.f32.vlgmr.msrb.gmra.mxu3 %v7202_v14  ;;  %1027 = vmatpush.msra.mxu0 %v827_v17  ;;  %v851_v17 = vld [vmem:[#allocation12 + $0x370] sm:$0xff] }
  0xc0   :  { %1046 = vmatpush.msra.mxu1 %v929_v19  ;;  %1067 = vmatpush.msra.mxu2 %v828_v22  ;;  %v750_v19 = vld [vmem:[#allocation12 + $0x48] sm:$0xff]  ;;  %v852_v22 = vld [vmem:[#allocation12 + $0x378] sm:$0xff] }
  0xc1   :  { %1086 = vmatpush.msra.mxu3 %v930_v24  ;;  %1028 = vmatpush.msra.mxu0 %v821_v26  ;;  %v743_v24 = vld [vmem:[#allocation12 + $0x10] sm:$0xff]  ;;  %v845_v26 = vld [vmem:[#allocation12 + $0x340] sm:$0xff] }
  0xc2   :  { %1047 = vmatpush.msra.mxu1 %v923_v28  ;;  %1068 = vmatpush.msra.mxu2 %v822_v30  ;;  %v744_v28 = vld [vmem:[#allocation12 + $0x18] sm:$0xff]  ;;  %v846_v30 = vld [vmem:[#allocation12 + $0x348] sm:$0xff] }
  0xc3   :  { %1087 = vmatpush.msra.mxu3 %v924_v32  ;;  %1029 = vmatpush.msra.mxu0 %v815_v34  ;;  %v835_v32 = vld [vmem:[#allocation12 + $0x2f0] sm:$0xff]  ;;  %v836_v34 = vld [vmem:[#allocation12 + $0x2f8] sm:$0xff] }
  0xc4   :  { %1048 = vmatpush.msra.mxu1 %v917_v35  ;;  %1069 = vmatpush.msra.mxu2 %v816_v36  ;;  %v839_v35 = vld [vmem:[#allocation12 + $0x310] sm:$0xff]  ;;  %v840_v36 = vld [vmem:[#allocation12 + $0x318] sm:$0xff] }
  0xc5   :  { %1088 = vmatpush.msra.mxu3 %v918_v43  ;;  %1030 = vmatpush.msra.mxu0 %v809_v37  ;;  %v829_v43 = vld [vmem:[#allocation12 + $0x2c0] sm:$0xff]  ;;  %v931_v37 = vld [vmem:[#allocation12 + $0x5f0] sm:$0xff] }
  0xc6   :  { %1049 = vmatpush.msra.mxu1 %v911_v38  ;;  %1070 = vmatpush.msra.mxu2 %v810_v39  ;;  %v830_v38 = vld [vmem:[#allocation12 + $0x2c8] sm:$0xff]  ;;  %v932_v39 = vld [vmem:[#allocation12 + $0x5f8] sm:$0xff] }
  0xc7   :  { %1089 = vmatpush.msra.mxu3 %v912_v40  ;;  %1031 = vmatpush.msra.mxu0 %v803_v41  ;;  %v823_v40 = vld [vmem:[#allocation12 + $0x290] sm:$0xff]  ;;  %v925_v41 = vld [vmem:[#allocation12 + $0x5c0] sm:$0xff] }
  0xc8   :  { %1050 = vmatpush.msra.mxu1 %v905_v48  ;;  %1071 = vmatpush.msra.mxu2 %v804_v42  ;;  %v824_v48 = vld [vmem:[#allocation12 + $0x298] sm:$0xff]  ;;  %v926_v42 = vld [vmem:[#allocation12 + $0x5c8] sm:$0xff] }
  0xc9   :  { %1090 = vmatpush.msra.mxu3 %v906_v44  ;;  %1032 = vmatpush.msra.mxu0 %v797_v45  ;;  %v817_v44 = vld [vmem:[#allocation12 + $0x260] sm:$0xff]  ;;  %v919_v45 = vld [vmem:[#allocation12 + $0x590] sm:$0xff] }
  0xca   :  { %1051 = vmatpush.msra.mxu1 %v899_v46  ;;  %1072 = vmatpush.msra.mxu2 %v798_v47  ;;  %v818_v46 = vld [vmem:[#allocation12 + $0x268] sm:$0xff]  ;;  %v920_v47 = vld [vmem:[#allocation12 + $0x598] sm:$0xff] }
  0xcb   :  { %1091 = vmatpush.msra.mxu3 %v900_v49  ;;  %1033 = vmatpush.msra.mxu0 %v791_v50  ;;  %v811_v49 = vld [vmem:[#allocation12 + $0x230] sm:$0xff]  ;;  %v913_v50 = vld [vmem:[#allocation12 + $0x560] sm:$0xff] }
  0xcc   :  { %1052 = vmatpush.msra.mxu1 %v893_v51  ;;  %1073 = vmatpush.msra.mxu2 %v792_v52  ;;  %v812_v51 = vld [vmem:[#allocation12 + $0x238] sm:$0xff]  ;;  %v914_v52 = vld [vmem:[#allocation12 + $0x568] sm:$0xff] }
  0xcd   :  { %1092 = vmatpush.msra.mxu3 %v894_v53  ;;  %1034 = vmatpush.msra.mxu0 %v785_v54  ;;  %v805_v53 = vld [vmem:[#allocation12 + $0x200] sm:$0xff]  ;;  %v907_v54 = vld [vmem:[#allocation12 + $0x530] sm:$0xff] }
  0xce   :  { %1053 = vmatpush.msra.mxu1 %v887_v61  ;;  %1074 = vmatpush.msra.mxu2 %v786_v55  ;;  %v806_v61 = vld [vmem:[#allocation12 + $0x208] sm:$0xff]  ;;  %v908_v55 = vld [vmem:[#allocation12 + $0x538] sm:$0xff] }
  0xcf   :  { %1093 = vmatpush.msra.mxu3 %v888_v56  ;;  %1035 = vmatpush.msra.mxu0 %v779_v57  ;;  %v799_v56 = vld [vmem:[#allocation12 + $0x1d0] sm:$0xff]  ;;  %v901_v57 = vld [vmem:[#allocation12 + $0x500] sm:$0xff] }
  0xd0   :  { %1054 = vmatpush.msra.mxu1 %v881_v58  ;;  %1075 = vmatpush.msra.mxu2 %v780_v2  ;;  %v800_v58 = vld [vmem:[#allocation12 + $0x1d8] sm:$0xff]  ;;  %v902_v2 = vld [vmem:[#allocation12 + $0x508] sm:$0xff] }
  0xd1   :  { %1094 = vmatpush.msra.mxu3 %v882_v59  ;;  %1036 = vmatpush.msra.mxu0 %v773_v60  ;;  %v793_v60 = vld [vmem:[#allocation12 + $0x1a0] sm:$0xff] }
  0xd2   :  { %1055 = vmatpush.msra.mxu1 %v875_v62  ;;  %1076 = vmatpush.msra.mxu2 %v774_v63  ;;  %v895_v62 = vld [vmem:[#allocation12 + $0x4d0] sm:$0xff]  ;;  %v794_v63 = vld [vmem:[#allocation12 + $0x1a8] sm:$0xff] }
  0xd3   :  { %1095 = vmatpush.msra.mxu3 %v876_v0  ;;  %1037 = vmatpush.msra.mxu0 %v767_v1  ;;  %v896_v0 = vld [vmem:[#allocation12 + $0x4d8] sm:$0xff]  ;;  %v787_v1 = vld [vmem:[#allocation12 + $0x170] sm:$0xff] }
  0xd4   :  { %1056 = vmatpush.msra.mxu1 %v869_v3  ;;  %1077 = vmatpush.msra.mxu2 %v768_v4  ;;  %v889_v3 = vld [vmem:[#allocation12 + $0x4a0] sm:$0xff]  ;;  %v788_v4 = vld [vmem:[#allocation12 + $0x178] sm:$0xff] }
  0xd5   :  { %1096 = vmatpush.msra.mxu3 %v870_v5  ;;  %1038 = vmatpush.msra.mxu0 %v761_v6  ;;  %v890_v5 = vld [vmem:[#allocation12 + $0x4a8] sm:$0xff] }
  0xd6   :  { %1057 = vmatpush.msra.mxu1 %v863_v15  ;;  %1078 = vmatpush.msra.mxu2 %v762_v7  ;;  %v781_v15 = vld [vmem:[#allocation12 + $0x140] sm:$0xff]  ;;  %v883_v7 = vld [vmem:[#allocation12 + $0x470] sm:$0xff] }
  0xd7   :  { %1097 = vmatpush.msra.mxu3 %v864_v8  ;;  %1039 = vmatpush.msra.mxu0 %v755_v9  ;;  %v782_v8 = vld [vmem:[#allocation12 + $0x148] sm:$0xff]  ;;  %v884_v9 = vld [vmem:[#allocation12 + $0x478] sm:$0xff] }
  0xd8   :  { %1058 = vmatpush.msra.mxu1 %v857_v10  ;;  %1079 = vmatpush.msra.mxu2 %v756_v20  ;;  %v775_v20 = vld [vmem:[#allocation12 + $0x110] sm:$0xff] }
  0xd9   :  { %1098 = vmatpush.msra.mxu3 %v858_v11  ;;  %1040 = vmatpush.msra.mxu0 %v749_v12  ;;  %v877_v11 = vld [vmem:[#allocation12 + $0x440] sm:$0xff]  ;;  %v776_v12 = vld [vmem:[#allocation12 + $0x118] sm:$0xff] }
  0xda   :  { %1059 = vmatpush.msra.mxu1 %v851_v17  ;;  %1080 = vmatpush.msra.mxu2 %v750_v19  ;;  %v878_v17 = vld [vmem:[#allocation12 + $0x448] sm:$0xff]  ;;  %v769_v19 = vld [vmem:[#allocation12 + $0xe0] sm:$0xff] }
  0xdb   :  { %1099 = vmatpush.msra.mxu3 %v852_v22  ;;  %1041 = vmatpush.msra.mxu0 %v743_v24  ;;  %v871_v22 = vld [vmem:[#allocation12 + $0x410] sm:$0xff]  ;;  %v770_v24 = vld [vmem:[#allocation12 + $0xe8] sm:$0xff] }
  0xdc   :  { %1060 = vmatpush.msra.mxu1 %v845_v26  ;;  %1081 = vmatpush.msra.mxu2 %v744_v28  ;;  %v5134_v59 = vpop.f32.mrf.mxu0  ;;  %v872_v26 = vld [vmem:[#allocation12 + $0x418] sm:$0xff] }
  0xdd   :  { %1100 = vmatpush.msra.mxu3 %v846_v30  ;;  %1042 = vmatmul.f32.vlgmr.msra.gmra.mxu0 %v7202_v14 }
  0xde   :  { %1082 = vmatmul.f32.vlgmr.msra.gmra.mxu2 %v7202_v14  ;;  %1106 = vmatpush.msrb.mxu0 %v835_v32  ;;  %v763_v32 = vld [vmem:[#allocation12 + $0xb0] sm:$0xff] }
  0xdf   :  { %1146 = vmatpush.msrb.mxu2 %v836_v34  ;;  %1061 = vmatpush.msra.mxu1 %v839_v35  ;;  %v5136_v6 = vpop.f32.mrf.mxu1  ;;  %v865_v34 = vld [vmem:[#allocation12 + $0x3e0] sm:$0xff]  ;;  %v764_v35 = vld [vmem:[#allocation12 + $0xb8] sm:$0xff] }
  0xe0   :  { %1101 = vmatpush.msra.mxu3 %v840_v36  ;;  %1062 = vmatmul.f32.vlgmr.msra.gmra.mxu1 %v7202_v14  ;;  %v866_v36 = vld [vmem:[#allocation12 + $0x3e8] sm:$0xff] }
  0xe1   :  { %1102 = vmatmul.f32.vlgmr.msra.gmra.mxu3 %v7202_v14  ;;  %1107 = vmatpush.msrb.mxu0 %v829_v43  ;;  %v757_v43 = vld [vmem:[#allocation12 + $0x80] sm:$0xff] }
  0xe2   :  { %1126 = vmatpush.msrb.mxu1 %v931_v37  ;;  %1147 = vmatpush.msrb.mxu2 %v830_v38  ;;  %v859_v37 = vld [vmem:[#allocation12 + $0x3b0] sm:$0xff]  ;;  %v758_v38 = vld [vmem:[#allocation12 + $0x88] sm:$0xff] }
  0xe3   :  { %1166 = vmatpush.msrb.mxu3 %v932_v39  ;;  %1108 = vmatpush.msrb.mxu0 %v823_v40  ;;  %v5138_v10 = vpop.f32.mrf.mxu2  ;;  %v860_v39 = vld [vmem:[#allocation12 + $0x3b8] sm:$0xff] }
  0xe4   :  { %1127 = vmatpush.msrb.mxu1 %v925_v41  ;;  %1148 = vmatpush.msrb.mxu2 %v824_v48  ;;  %v751_v41 = vld [vmem:[#allocation12 + $0x50] sm:$0xff]  ;;  %v853_v48 = vld [vmem:[#allocation12 + $0x380] sm:$0xff] }
  0xe5   :  { %1167 = vmatpush.msrb.mxu3 %v926_v42  ;;  %1109 = vmatpush.msrb.mxu0 %v817_v44  ;;  %v752_v42 = vld [vmem:[#allocation12 + $0x58] sm:$0xff]  ;;  %v854_v44 = vld [vmem:[#allocation12 + $0x388] sm:$0xff] }
  0xe6   :  { %1128 = vmatpush.msrb.mxu1 %v919_v45  ;;  %1149 = vmatpush.msrb.mxu2 %v818_v46  ;;  %v5140_v28 = vpop.f32.mrf.mxu0  ;;  %v5142_v30 = vpop.f32.mrf.mxu3  ;;  %v745_v46 = vld [vmem:[#allocation12 + $0x20] sm:$0xff] }
  0xe7   :  { %1168 = vmatpush.msrb.mxu3 %v920_v47  ;;  %1110 = vmatpush.msrb.mxu0 %v811_v49  ;;  %7455 = vst [vmem:[#allocation27_spill] sm:$0xff] %v5140_v28  ;;  %v847_v47 = vld [vmem:[#allocation12 + $0x350] sm:$0xff]  ;;  %v746_v49 = vld [vmem:[#allocation12 + $0x28] sm:$0xff] }
  0xe8   :  { %1129 = vmatpush.msrb.mxu1 %v913_v50  ;;  %1150 = vmatpush.msrb.mxu2 %v812_v51  ;;  %v848_v50 = vld [vmem:[#allocation12 + $0x358] sm:$0xff]  ;;  %v841_v51 = vld [vmem:[#allocation12 + $0x320] sm:$0xff] }
  0xe9   :  { %1169 = vmatpush.msrb.mxu3 %v914_v52  ;;  %1111 = vmatpush.msrb.mxu0 %v805_v53  ;;  %v5144_v40 = vpop.f32.mrf.mxu1  ;;  %v842_v52 = vld [vmem:[#allocation12 + $0x328] sm:$0xff] }
  0xea   :  { %1130 = vmatpush.msrb.mxu1 %v907_v54  ;;  %1151 = vmatpush.msrb.mxu2 %v806_v61  ;;  %7456 = vst [vmem:[#allocation28_spill] sm:$0xff] %v5144_v40  ;;  %v5385_v40 = vld [vmem:[#allocation12 + $0x558] sm:$0xff] }
  0xeb   :  { %1170 = vmatpush.msrb.mxu3 %v908_v55  ;;  %1112 = vmatpush.msrb.mxu0 %v799_v56 }
  0xec   :  { %1131 = vmatpush.msrb.mxu1 %v901_v57  ;;  %1152 = vmatpush.msrb.mxu2 %v800_v58 }
  0xed   :  { %1171 = vmatpush.msrb.mxu3 %v902_v2  ;;  %1113 = vmatpush.msrb.mxu0 %v793_v60  ;;  %v5146_v45 = vpop.f32.mrf.mxu2 }
  0xee   :  { %1132 = vmatpush.msrb.mxu1 %v895_v62  ;;  %1153 = vmatpush.msrb.mxu2 %v794_v63  ;;  %7457 = vst [vmem:[#allocation29_spill] sm:$0xff] %v5146_v45  ;;  %v5379_v45 = vld [vmem:[#allocation12 + $0x1c8] sm:$0xff] }
  0xef   :  { %1172 = vmatpush.msrb.mxu3 %v896_v0  ;;  %1114 = vmatpush.msrb.mxu0 %v787_v1  ;;  %7498 = vst [vmem:[#allocation70_spill] sm:$0xff] %v5379_v45 }
  0xf0   :  { %1133 = vmatpush.msrb.mxu1 %v889_v3  ;;  %1154 = vmatpush.msrb.mxu2 %v788_v4  ;;  %v5148_v53 = vpop.f32.mrf.mxu0  ;;  %v5150_v54 = vpop.f32.mrf.mxu3 }
  0xf1   :  { %1173 = vmatpush.msrb.mxu3 %v890_v5  ;;  %1115 = vmatpush.msrb.mxu0 %v781_v15  ;;  %7458 = vst [vmem:[#allocation30_spill] sm:$0xff] %v5148_v53  ;;  %v5345_v53 = vld [vmem:[#allocation12 + $0x5b0] sm:$0xff] }
  0xf2   :  { %1134 = vmatpush.msrb.mxu1 %v883_v7  ;;  %1155 = vmatpush.msrb.mxu2 %v782_v8  ;;  %7459 = vst [vmem:[#allocation31_spill] sm:$0xff] %v5150_v54  ;;  %v5375_v54 = vld [vmem:[#allocation12 + $0x1c0] sm:$0xff] }
  0xf3   :  { %1174 = vmatpush.msrb.mxu3 %v884_v9  ;;  %1116 = vmatpush.msrb.mxu0 %v775_v20  ;;  %v5156_v61 = vpop.f32.mrf.mxu1  ;;  %7497 = vst [vmem:[#allocation69_spill] sm:$0xff] %v5375_v54 }
  0xf4   :  { %1135 = vmatpush.msrb.mxu1 %v877_v11  ;;  %1156 = vmatpush.msrb.mxu2 %v776_v12  ;;  %7460 = vst [vmem:[#allocation32_spill] sm:$0xff] %v5156_v61  ;;  %v1377_v12 = vld [vmem:[#allocation12 + $0x2d0] sm:$0xff]  ;;  %v5343_v61 = vld [vmem:[#allocation12 + $0x220] sm:$0xff] }
  0xf5   :  { %1175 = vmatpush.msrb.mxu3 %v878_v17  ;;  %1117 = vmatpush.msrb.mxu0 %v769_v19  ;;  %v1378_v17 = vld [vmem:[#allocation12 + $0x2d8] sm:$0xff]  ;;  %v1473_v19 = vld [vmem:[#allocation12 + $0x5d0] sm:$0xff]  ;;  %7491 = vst [vmem:[#allocation63_spill] sm:$0xff] %v5343_v61 }
  0xf6   :  { %1136 = vmatpush.msrb.mxu1 %v871_v22  ;;  %1157 = vmatpush.msrb.mxu2 %v770_v24  ;;  %v1474_v22 = vld [vmem:[#allocation12 + $0x5d8] sm:$0xff]  ;;  %v1467_v24 = vld [vmem:[#allocation12 + $0x5a0] sm:$0xff] }
  0xf7   :  { %1176 = vmatpush.msrb.mxu3 %v872_v26  ;;  %1118 = vmatpush.msrb.mxu0 %v763_v32  ;;  %v5158_v55 = vpop.f32.mrf.mxu2  ;;  %v1468_v26 = vld [vmem:[#allocation12 + $0x5a8] sm:$0xff] }
  0xf8   :  { %1137 = vmatpush.msrb.mxu1 %v865_v34  ;;  %1158 = vmatpush.msrb.mxu2 %v764_v35  ;;  %7461 = vst [vmem:[#allocation33_spill] sm:$0xff] %v5158_v55 }
  0xf9   :  { %1177 = vmatpush.msrb.mxu3 %v866_v36  ;;  %1119 = vmatpush.msrb.mxu0 %v757_v43  ;;  %v1455_v43 = vld [vmem:[#allocation12 + $0x540] sm:$0xff] }
  0xfa   :  { %1138 = vmatpush.msrb.mxu1 %v859_v37  ;;  %1159 = vmatpush.msrb.mxu2 %v758_v38  ;;  %v5160_v56 = vpop.f32.mrf.mxu3  ;;  %v5162_v57 = vpop.f32.mrf.mxu0  ;;  %v1342_v37 = vld [vmem:[#allocation12 + $0x1b8] sm:$0xff]  ;;  %v1449_v38 = vld [vmem:[#allocation12 + $0x510] sm:$0xff] }
  0xfb   :  { %1178 = vmatpush.msrb.mxu3 %v860_v39  ;;  %1120 = vmatpush.msrb.mxu0 %v751_v41  ;;  %7462 = vst [vmem:[#allocation34_spill] sm:$0xff] %v5160_v56  ;;  %v1336_v39 = vld [vmem:[#allocation12 + $0x188] sm:$0xff]  ;;  %v5225_v41 = vld [vmem:[#allocation12 + $0x518] sm:$0xff] }
  0xfc   :  { %1139 = vmatpush.msrb.mxu1 %v853_v48  ;;  %1160 = vmatpush.msrb.mxu2 %v752_v42  ;;  %v5337_v56 = vld [vmem:[#allocation12 + $0x5e8] sm:$0xff] }
  0xfd   :  { %1179 = vmatpush.msrb.mxu3 %v854_v44  ;;  %1121 = vmatpush.msrb.mxu0 %v745_v46  ;;  %v5164_v58 = vpop.f32.mrf.mxu1  ;;  %v1329_v44 = vld [vmem:[#allocation12 + $0x150] sm:$0xff]  ;;  %v5230_v46 = vld [vmem:[#allocation12 + $0x4e0] sm:$0xff] }
  0xfe   :  { %1140 = vmatpush.msrb.mxu1 %v847_v47  ;;  %1161 = vmatpush.msrb.mxu2 %v746_v49  ;;  %v1330_v47 = vld [vmem:[#allocation12 + $0x158] sm:$0xff] }
  0xff   :  { %1180 = vmatpush.msrb.mxu3 %v848_v50  ;;  %1122 = vmatmul.f32.vlgmr.msrb.gmra.mxu0 %v7202_v14  ;;  %v5236_v50 = vld [vmem:[#allocation12 + $0x4e8] sm:$0xff] }
 0x100   :  { %1162 = vmatmul.f32.vlgmr.msrb.gmra.mxu2 %v7202_v14  ;;  %1141 = vmatpush.msrb.mxu1 %v841_v51  ;;  %v1323_v51 = vld [vmem:[#allocation12 + $0x120] sm:$0xff] }
 0x101   :  { %1181 = vmatpush.msrb.mxu3 %v842_v52  ;;  %1142 = vmatmul.f32.vlgmr.msrb.gmra.mxu1 %v7202_v14  ;;  %v5166_v2 = vpop.f32.mrf.mxu2  ;;  %v5239_v52 = vld [vmem:[#allocation12 + $0x4b0] sm:$0xff] }
 0x102   :  { %1182 = vmatmul.f32.vlgmr.msrb.gmra.mxu3 %v7202_v14  ;;  %1479 = vmatpush.msra.mxu0 %v1377_v12  ;;  %v1324_v12 = vld [vmem:[#allocation12 + $0x128] sm:$0xff] }
 0x103   :  { %1519 = vmatpush.msra.mxu2 %v1378_v17  ;;  %1499 = vmatpush.msra.mxu1 %v1473_v19  ;;  %v5243_v19 = vld [vmem:[#allocation12 + $0x4b8] sm:$0xff] }
 0x104   :  { %v5168_v60 = vpop.f32.mrf.mxu0  ;;  %v5170_v62 = vpop.f32.mrf.mxu3  ;;  %1539 = vmatpush.msra.mxu3 %v1474_v22  ;;  %1480 = vmatpush.msra.mxu0 %v5082_v13  ;;  %v1461_v13 = vld [vmem:[#allocation12 + $0x570] sm:$0xff] }
 0x105   :  { %7463 = vst [vmem:[#allocation35_spill] sm:$0xff] %v5168_v60  ;;  %1520 = vmatpush.msra.mxu2 %v5086_v16  ;;  %1500 = vmatpush.msra.mxu1 %v1467_v24  ;;  %v1462_v16 = vld [vmem:[#allocation12 + $0x578] sm:$0xff]  ;;  %v1317_v24 = vld [vmem:[#allocation12 + $0xf0] sm:$0xff]  ;;  %v5370_v60 = vld [vmem:[#allocation12 + $0x588] sm:$0xff] }
 0x106   :  { %1540 = vmatpush.msra.mxu3 %v1468_v26  ;;  %1481 = vmatpush.msra.mxu0 %v5088_v18  ;;  %v5246_v26 = vld [vmem:[#allocation12 + $0x480] sm:$0xff] }
 0x107   :  { %v5172_v63 = vpop.f32.mrf.mxu1  ;;  %1521 = vmatpush.msra.mxu2 %v5091_v21  ;;  %1501 = vmatpush.msra.mxu1 %v1461_v13  ;;  %v5216_v21 = vld [vmem:[#allocation15] sm:$0x3f]  ;;  %v1318_v13 = vld [vmem:[#allocation12 + $0xf8] sm:$0xff] }
 0x108   :  { %7464 = vst [vmem:[#allocation36_spill] sm:$0xff] %v5172_v63  ;;  %1482 = vmatpush.msra.mxu0 %v5094_v23  ;;  %1541 = vmatpush.msra.mxu3 %v1462_v16 }
 0x109   :  { %1522 = vmatpush.msra.mxu2 %v5097_v25  ;;  %v1341_v25 = vld [vmem:[#allocation12 + $0x1b0] sm:$0xff]  ;;  %1502 = vmatpush.msra.mxu1 %v1455_v43  ;;  %v5254_v43 = vld [vmem:[#allocation12 + $0x488] sm:$0xff] }
 0x10a   :  { %1483 = vmatpush.msra.mxu0 %v5101_v27  ;;  %v5220_v27 = vld [vmem:[#allocation13] sm:$0x3f] }
 0x10b   :  { %v5174_v0 = vpop.f32.mrf.mxu2  ;;  %1523 = vmatpush.msra.mxu2 %v5104_v29  ;;  %v1456_v29 = vld [vmem:[#allocation12 + $0x548] sm:$0xff]  ;;  %1503 = vmatpush.msra.mxu1 %v1449_v38  ;;  %v5233_v49 = vperm.slane %v5220_v27, 0 }
 0x10c   :  { %7465 = vst [vmem:[#allocation37_spill] sm:$0xff] %v5174_v0  ;;  %1484 = vmatpush.msra.mxu0 %v5109_v31  ;;  %1542 = vmatpush.msra.mxu3 %v1456_v29  ;;  %v1335_v31 = vld [vmem:[#allocation12 + $0x180] sm:$0xff]  ;;  %v1312_v38 = vld [vmem:[#allocation12 + $0xc8] sm:$0xff] }
 0x10d   :  { %1524 = vmatpush.msra.mxu2 %v5112_v33  ;;  %v5223_v33 = vperm.slane %v5216_v21, 0  ;;  %7480 = vst [vmem:[#allocation52_spill] sm:$0xff] %v5233_v49  ;;  %1504 = vmatpush.msra.mxu1 %v5230_v46  ;;  %v420_v16 = vadd.f32 %v5134_v59, %v5233_v49  ;;  %v1311_v29 = vld [vmem:[#allocation12 + $0xc0] sm:$0xff]  ;;  %v5463_v49 = vld [vmem:[#allocation12 + $0xa8] sm:$0xff] }
 0x10e   :  { %v5176_v1 = vpop.f32.mrf.mxu0  ;;  %v5178_v3 = vpop.f32.mrf.mxu3  ;;  %1485 = vmatpush.msra.mxu0 %v1341_v25  ;;  %1543 = vmatpush.msra.mxu3 %v5225_v41  ;;  %v5251_v25 = vperm.slane %v5216_v21, 1  ;;  %v5361_v0 = vld [vmem:[#allocation12 + $0x580] sm:$0xff]  ;;  %7520 = vst [vmem:[#allocation92_spill] sm:$0xff] %v5463_v49 }
 0x10f   :  { %7466 = vst [vmem:[#allocation38_spill] sm:$0xff] %v5176_v1  ;;  %1525 = vmatpush.msra.mxu2 %v1342_v37  ;;  %1505 = vmatpush.msra.mxu1 %v5239_v52  ;;  %v5333_v1 = vld [vmem:[#allocation12 + $0x258] sm:$0xff] }
 0x110   :  { %7467 = vst [vmem:[#allocation39_spill] sm:$0xff] %v5178_v3  ;;  %1486 = vmatpush.msra.mxu0 %v1335_v31  ;;  %1544 = vmatpush.msra.mxu3 %v5236_v50  ;;  %v5257_v31 = vld [vmem:[#allocation12 + $0x450] sm:$0xff] }
 0x111   :  { %7478 = vst [vmem:[#allocation50_spill] sm:$0xff] %v5223_v33  ;;  %1526 = vmatpush.msra.mxu2 %v1336_v39  ;;  %1506 = vmatpush.msra.mxu1 %v5246_v26  ;;  %v5260_v39 = vperm.slane %v5220_v27, 1  ;;  %v5359_v3 = vld [vmem:[#allocation12 + $0x1f0] sm:$0xff] }
 0x112   :  { %v5180_v4 = vpop.f32.mrf.mxu1  ;;  %1487 = vmatpush.msra.mxu0 %v1329_v44  ;;  %1545 = vmatpush.msra.mxu3 %v5243_v19  ;;  %7481 = vst [vmem:[#allocation53_spill] sm:$0xff] %v5251_v25  ;;  %v1305_v44 = vld [vmem:[#allocation12 + $0x90] sm:$0xff] }
 0x113   :  { %7468 = vst [vmem:[#allocation40_spill] sm:$0xff] %v5180_v4  ;;  %1527 = vmatpush.msra.mxu2 %v1330_v47  ;;  %1507 = vmatpush.msra.mxu1 %v5257_v31  ;;  %v5266_v47 = vld [vmem:[#allocation12 + $0x420] sm:$0xff]  ;;  %v472_v14 = vadd.f32 %v5138_v10, %v5260_v39 }
 0x114   :  { %1488 = vmatpush.msra.mxu0 %v1323_v51  ;;  %1546 = vmatpush.msra.mxu3 %v5254_v43  ;;  %7482 = vst [vmem:[#allocation54_spill] sm:$0xff] %v5260_v39  ;;  %v1306_v51 = vld [vmem:[#allocation12 + $0x98] sm:$0xff]  ;;  %v1287_v10 = vld [vmem:[#allocation12] sm:$0xff] }
 0x115   :  { %v5182_v5 = vpop.f32.mrf.mxu2  ;;  %1528 = vmatpush.msra.mxu2 %v1324_v12  ;;  %v446_v12 = vadd.f32 %v5136_v6, %v420_v16  ;;  %1508 = vmatpush.msra.mxu1 %v5266_v47  ;;  %v5279_v6 = vld [vmem:[#allocation12 + $0x3f8] sm:$0xff]  ;;  %v1293_v16 = vld [vmem:[#allocation12 + $0x30] sm:$0xff]  ;;  %v5331_v4 = vld [vmem:[#allocation12 + $0x5e0] sm:$0xff]  ;;  %7490 = vst [vmem:[#allocation62_spill] sm:$0xff] %v5333_v1 }
 0x116   :  { %7469 = vst [vmem:[#allocation41_spill] sm:$0xff] %v5182_v5  ;;  %1489 = vmatpush.msra.mxu0 %v1317_v24  ;;  %v5329_v5 = vld [vmem:[#allocation12 + $0x250] sm:$0xff] }
 0x117   :  { %1529 = vmatpush.msra.mxu2 %v1318_v13  ;;  %v1299_v13 = vld [vmem:[#allocation12 + $0x60] sm:$0xff]  ;;  %7489 = vst [vmem:[#allocation61_spill] sm:$0xff] %v5329_v5 }
 0x118   :  { %1490 = vmatpush.msra.mxu0 %v1311_v29  ;;  %v5274_v29 = vld [vmem:[#allocation12 + $0x3f0] sm:$0xff]  ;;  %7494 = vst [vmem:[#allocation66_spill] sm:$0xff] %v5359_v3 }
 0x119   :  { %v5184_v15 = vpop.f32.mrf.mxu3  ;;  %1530 = vmatpush.msra.mxu2 %v1312_v38  ;;  %v1300_v38 = vld [vmem:[#allocation12 + $0x68] sm:$0xff]  ;;  %1509 = vmatpush.msra.mxu1 %v5274_v29 }
 0x11a   :  { %7470 = vst [vmem:[#allocation42_spill] sm:$0xff] %v5184_v15  ;;  %v5186_v7 = vpop.f32.mrf.mxu0  ;;  %1491 = vmatpush.msra.mxu0 %v1305_v44  ;;  %v1294_v44 = vld [vmem:[#allocation12 + $0x38] sm:$0xff]  ;;  %v5299_v15 = vld [vmem:[#allocation12 + $0x2b0] sm:$0xff] }
 0x11b   :  { %1531 = vmatpush.msra.mxu2 %v1306_v51  ;;  %7483 = vst [vmem:[#allocation55_spill] sm:$0xff] %v5299_v15 }
 0x11c   :  { %1492 = vmatpush.msra.mxu0 %v1299_v13  ;;  %v498_v13 = vadd.f32 %v5142_v30, %v472_v14  ;;  %v5301_v14 = vld [vmem:[#allocation12 + $0x2b8] sm:$0xff]  ;;  %v5305_v30 = vld [vmem:[#allocation12 + $0x330] sm:$0xff] }
 0x11d   :  { %v5188_v8 = vpop.f32.mrf.mxu1  ;;  %1532 = vmatpush.msra.mxu2 %v1300_v38  ;;  %7484 = vst [vmem:[#allocation56_spill] sm:$0xff] %v5301_v14 }
 0x11e   :  { %1493 = vmatpush.msra.mxu0 %v1293_v16  ;;  %v5295_v16 = vld [vmem:[#allocation12 + $0x360] sm:$0xff] }
 0x11f   :  { %1533 = vmatpush.msra.mxu2 %v1294_v44  ;;  %v5297_v44 = vld [vmem:[#allocation12 + $0x368] sm:$0xff] }
 0x120   :  { %1494 = vmatpush.msra.mxu0 %v1287_v10  ;;  %v5310_v10 = vperm.slane %v5220_v27, 2 }
 0x121   :  { %v5190_v9 = vpop.f32.mrf.mxu2 }
 0x122   :  { %7485 = vst [vmem:[#allocation57_spill] sm:$0xff] %v5310_v10  ;;  %v524_v55 = vadd.f32 %v5162_v57, %v5310_v10 }
 0x124   :  { %v5192_v20 = vpop.f32.mrf.mxu0  ;;  %v5194_v11 = vpop.f32.mrf.mxu3 }
 0x125   :  { %7471 = vst [vmem:[#allocation43_spill] sm:$0xff] %v5192_v20  ;;  %v5355_v20 = vperm.slane %v5220_v27, 3 }
 0x127   :  { %v5196_v32 = vpop.f32.mrf.mxu1  ;;  %7493 = vst [vmem:[#allocation65_spill] sm:$0xff] %v5355_v20 }
 0x128   :  { %7472 = vst [vmem:[#allocation44_spill] sm:$0xff] %v5196_v32  ;;  %v5352_v32 = vld [vmem:[#allocation12 + $0x5b8] sm:$0xff] }
 0x12b   :  { %v5200_v34 = vpop.f32.mrf.mxu2 }
 0x12c   :  { %7473 = vst [vmem:[#allocation45_spill] sm:$0xff] %v5200_v34 }
 0x12e   :  { %v5206_v35 = vpop.f32.mrf.mxu0  ;;  %v5208_v36 = vpop.f32.mrf.mxu3 }
 0x12f   :  { %7474 = vst [vmem:[#allocation46_spill] sm:$0xff] %v5206_v35 }
 0x130   :  { %7475 = vst [vmem:[#allocation47_spill] sm:$0xff] %v5208_v36  ;;  %v5347_v36 = vld [vmem:[#allocation12 + $0x228] sm:$0xff] }
 0x131   :  { %v5213_v18 = vpop.f32.mrf.mxu1  ;;  %7492 = vst [vmem:[#allocation64_spill] sm:$0xff] %v5347_v36 }
 0x132   :  { %7476 = vst [vmem:[#allocation48_spill] sm:$0xff] %v5213_v18  ;;  %v5292_v18 = vld [vmem:[#allocation12 + $0x398] sm:$0xff] }
 0x135   :  { %v5218_v23 = vpop.f32.mrf.mxu2 }
 0x136   :  { %7477 = vst [vmem:[#allocation49_spill] sm:$0xff] %v5218_v23  ;;  %v5285_v23 = vld [vmem:[#allocation12 + $0x3c8] sm:$0xff] }
 0x138   :  { %v5227_v48 = vpop.f32.mrf.mxu3  ;;  %v963_v42 = vpop.f32.mrf.mxu0 }
 0x139   :  { %7479 = vst [vmem:[#allocation51_spill] sm:$0xff] %v5227_v48  ;;  %v964_v17 = vadd.f32 %v963_v42, %v5223_v33  ;;  %v5263_v42 = vld [vmem:[#allocation12 + $0x458] sm:$0xff]  ;;  %v5400_v33 = vld [vmem:[#allocation12 + $0x528] sm:$0xff] }
 0x13a   :  { %1547 = vmatpush.msra.mxu3 %v5263_v42  ;;  %7501 = vst [vmem:[#allocation73_spill] sm:$0xff] %v5400_v33 }
 0x13b   :  { %v983_v22 = vpop.f32.mrf.mxu1 }
 0x13c   :  { %v984_v59 = vadd.f32 %v983_v22, %v964_v17  ;;  %v5271_v17 = vld [vmem:[#allocation12 + $0x428] sm:$0xff] }
 0x13d   :  { %1548 = vmatpush.msra.mxu3 %v5271_v17 }
 0x13e   :  { %v1186_v48 = vadd.f32 %v984_v59, %v446_v12  ;;  %v5288_v59 = vld [vmem:[#allocation12 + $0x390] sm:$0xff]  ;;  %v1288_v12 = vld [vmem:[#allocation12 + $0x8] sm:$0xff] }
 0x13f   :  { %v1003_v37 = vpop.f32.mrf.mxu2  ;;  %1549 = vmatpush.msra.mxu3 %v5279_v6  ;;  %1534 = vmatpush.msra.mxu2 %v1288_v12  ;;  %v5316_v12 = vld [vmem:[#allocation12 + $0x288] sm:$0xff] }
 0x140   :  { %v1004_v24 = vadd.f32 %v1003_v37, %v5251_v25  ;;  %v5282_v37 = vld [vmem:[#allocation12 + $0x3c0] sm:$0xff]  ;;  %v4311_v38 = vmul.f32 -1.442695, %v1186_v48  ;;  %v5307_v48 = vld [vmem:[#allocation12 + $0x338] sm:$0xff]  ;;  %7487 = vst [vmem:[#allocation59_spill] sm:$0xff] %v5316_v12  ;;  %v5377_v25 = vld [vmem:[#allocation12 + $0x550] sm:$0xff] }
 0x141   :  { %1510 = vmatpush.msra.mxu1 %v5282_v37  ;;  %1550 = vmatpush.msra.mxu3 %v5285_v23 }
 0x142   :  { %v1023_v22 = vpop.f32.mrf.mxu3  ;;  %4350 = vpow2.f32 %v4311_v38 }
 0x143   :  { %v1024_v51 = vadd.f32 %v1023_v22, %v1004_v24  ;;  %1511 = vmatpush.msra.mxu1 %v5288_v59  ;;  %v1379_v24 = vld [vmem:[#allocation12 + $0x2e0] sm:$0xff]  ;;  %v1380_v22 = vld [vmem:[#allocation12 + $0x2e8] sm:$0xff]  ;;  %1551 = vmatpush.msra.mxu3 %v5292_v18 }
 0x144   :  { %1559 = vmatpush.msrb.mxu0 %v1379_v24  ;;  %1599 = vmatpush.msrb.mxu2 %v1380_v22  ;;  %v5323_v24 = vld [vmem:[#allocation12 + $0x300] sm:$0xff]  ;;  %v5325_v22 = vld [vmem:[#allocation12 + $0x308] sm:$0xff] }
 0x145   :  { %v1187_v35 = vadd.f32 %v1024_v51, %v498_v13  ;;  %1512 = vmatpush.msra.mxu1 %v5295_v16  ;;  %1552 = vmatpush.msra.mxu3 %v5297_v44  ;;  %v5314_v51 = vld [vmem:[#allocation12 + $0x280] sm:$0xff]  ;;  %v5319_v13 = vperm.slane %v5216_v21, 2 }
 0x146   :  { %1560 = vmatpush.msrb.mxu0 %v5299_v15  ;;  %1600 = vmatpush.msrb.mxu2 %v5301_v14  ;;  %7486 = vst [vmem:[#allocation58_spill] sm:$0xff] %v5314_v51  ;;  %v5491_v14 = vld [vmem:[#allocation12 + $0x48] sm:$0xff] }
 0x147   :  { %7488 = vst [vmem:[#allocation60_spill] sm:$0xff] %v5319_v13  ;;  %1513 = vmatpush.msra.mxu1 %v5305_v30  ;;  %1553 = vmatpush.msra.mxu3 %v5307_v48  ;;  %v4312_v38 = vmul.f32 -1.442695, %v1187_v35 }
 0x148   :  { %1561 = vmatpush.msrb.mxu0 %v5314_v51  ;;  %1601 = vmatpush.msrb.mxu2 %v5316_v12  ;;  %v4351_v57 = vpop.eup %4350  ;;  %v5489_v51 = vld [vmem:[#allocation12 + $0x3d0] sm:$0xff]  ;;  %7528 = vst [vmem:[#allocation100_spill] sm:$0xff] %v5491_v14 }
 0x149   :  { %1514 = vmatpush.msra.mxu1 %v5323_v24  ;;  %1554 = vmatpush.msra.mxu3 %v5325_v22  ;;  %4352 = vpow2.f32 %v4312_v38  ;;  %v550_v38 = vadd.f32 %v5164_v58, %v524_v55  ;;  %v5381_v39 = vadd.f32 1.0, %v4351_v57  ;;  %v576_v55 = vadd.f32 %v5166_v2, %v5355_v20  ;;  %v5395_v57 = vld [vmem:[#allocation12 + $0x198] sm:$0xff]  ;;  %v5406_v20 = vld [vmem:[#allocation12 + $0x4f0] sm:$0xff]  ;;  %7527 = vst [vmem:[#allocation99_spill] sm:$0xff] %v5489_v51 }
 0x14a   :  { %1562 = vmatpush.msrb.mxu0 %v5329_v5  ;;  %1602 = vmatpush.msrb.mxu2 %v5333_v1  ;;  %7500 = vst [vmem:[#allocation72_spill] sm:$0xff] %v5395_v57  ;;  %v5475_v1 = vld [vmem:[#allocation12 + $0x78] sm:$0xff] }
 0x14b   :  { %1579 = vmatpush.msrb.mxu1 %v5331_v4  ;;  %1619 = vmatpush.msrb.mxu3 %v5337_v56  ;;  %7503 = vst [vmem:[#allocation75_spill] sm:$0xff] %v5406_v20  ;;  %4354 = vrcp.f32 %v5381_v39  ;;  %vm1201_vm1 = vweird.f32 %v5381_v39 }
 0x14c   :  { %1563 = vmatpush.msrb.mxu0 %v5343_v61  ;;  %1603 = vmatpush.msrb.mxu2 %v5347_v36  ;;  %v5420_v36 = vld [vmem:[#allocation12 + $0x4c0] sm:$0xff]  ;;  %v5422_v61 = vld [vmem:[#allocation12 + $0x138] sm:$0xff]  ;;  %7524 = vst [vmem:[#allocation96_spill] sm:$0xff] %v5475_v1 }
 0x14d   :  { %1580 = vmatpush.msrb.mxu1 %v5345_v53  ;;  %1620 = vmatpush.msrb.mxu3 %v5352_v32  ;;  %7507 = vst [vmem:[#allocation79_spill] sm:$0xff] %v5420_v36 }
 0x14e   :  { %1564 = vmatpush.msrb.mxu0 %v5359_v3  ;;  %v5393_v3 = vld [vmem:[#allocation12 + $0x520] sm:$0xff]  ;;  %7508 = vst [vmem:[#allocation80_spill] sm:$0xff] %v5422_v61 }
 0x14f   :  { %1581 = vmatpush.msrb.mxu1 %v5361_v0  ;;  %1621 = vmatpush.msrb.mxu3 %v5370_v60  ;;  %v4353_v2 = vpop.eup %4352 }
 0x150   :  { %1565 = vmatpush.msrb.mxu0 %v5375_v54  ;;  %v5408_v54 = vld [vmem:[#allocation12 + $0x168] sm:$0xff]  ;;  %v5424_v28 = vadd.f32 1.0, %v4353_v2  ;;  %v5440_v2 = vld [vmem:[#allocation12 + $0x498] sm:$0xff] }
 0x151   :  { %1582 = vmatpush.msrb.mxu1 %v5377_v25  ;;  %1622 = vmatpush.msrb.mxu3 %v5385_v40  ;;  %7504 = vst [vmem:[#allocation76_spill] sm:$0xff] %v5408_v54 }
 0x152   :  { %7513 = vst [vmem:[#allocation85_spill] sm:$0xff] %v5440_v2  ;;  %vm1216_vm5 = vweird.f32 %v5424_v28 }
 0x153   :  { %1583 = vmatpush.msrb.mxu1 %v5393_v3  ;;  %1623 = vmatpush.msrb.mxu3 %v5400_v33 }
 0x155   :  { %1584 = vmatpush.msrb.mxu1 %v5406_v20  ;;  %v5572_v20 = vperm.slane %v5216_v21, 5 }
 0x157   :  { %1585 = vmatpush.msrb.mxu1 %v5420_v36 }
 0x15a   :  { %v1043_v35 = vpop.f32.mrf.mxu0 }
 0x15b   :  { %v1044_v34 = vadd.f32 %v1043_v35, %v5319_v13  ;;  %v5363_v35 = vld [vmem:[#allocation12 + $0x1f8] sm:$0xff]  ;;  %v5366_v13 = vperm.slane %v5216_v21, 3 }
 0x15c   :  { %7495 = vst [vmem:[#allocation67_spill] sm:$0xff] %v5363_v35  ;;  %1604 = vmatpush.msrb.mxu2 %v5363_v35 }
 0x15d   :  { %v1063_v63 = vpop.f32.mrf.mxu1  ;;  %7496 = vst [vmem:[#allocation68_spill] sm:$0xff] %v5366_v13 }
 0x15e   :  { %v1064_v10 = vadd.f32 %v1063_v63, %v1044_v34  ;;  %v5391_v34 = vld [vmem:[#allocation12 + $0x190] sm:$0xff]  ;;  %1605 = vmatpush.msrb.mxu2 %v5379_v45 }
 0x15f   :  { %7499 = vst [vmem:[#allocation71_spill] sm:$0xff] %v5391_v34  ;;  %1566 = vmatpush.msrb.mxu0 %v5391_v34  ;;  %v5418_v45 = vld [vmem:[#allocation12 + $0x130] sm:$0xff] }
 0x160   :  { %v1226_v58 = vadd.f32 %v1064_v10, %v550_v38  ;;  %v5404_v38 = vld [vmem:[#allocation12 + $0x160] sm:$0xff]  ;;  %1606 = vmatpush.msrb.mxu2 %v5395_v57  ;;  %7506 = vst [vmem:[#allocation78_spill] sm:$0xff] %v5418_v45  ;;  %v5428_v57 = vld [vmem:[#allocation12 + $0x4c8] sm:$0xff] }
 0x161   :  { %v1083_v63 = vpop.f32.mrf.mxu2  ;;  %7502 = vst [vmem:[#allocation74_spill] sm:$0xff] %v5404_v38  ;;  %1567 = vmatpush.msrb.mxu0 %v5404_v38  ;;  %v5461_v38 = vld [vmem:[#allocation12 + $0x430] sm:$0xff] }
 0x162   :  { %v1084_v35 = vadd.f32 %v1083_v63, %v5366_v13  ;;  %v4313_v10 = vmul.f32 -1.442695, %v1226_v58  ;;  %v5413_v13 = vld [vmem:[#allocation12 + $0x4f8] sm:$0xff]  ;;  %v602_v58 = vadd.f32 %v5170_v62, %v576_v55  ;;  %1607 = vmatpush.msrb.mxu2 %v5408_v54  ;;  %7509 = vst [vmem:[#allocation81_spill] sm:$0xff] %v5428_v57  ;;  %v5434_v55 = vld [vmem:[#allocation12 + $0x490] sm:$0xff]  ;;  %v5450_v54 = vpop.eup %4354 }
 0x163   :  { %7505 = vst [vmem:[#allocation77_spill] sm:$0xff] %v5413_v13  ;;  %1624 = vmatpush.msrb.mxu3 %v5413_v13  ;;  %1568 = vmatpush.msrb.mxu0 %v5418_v45  ;;  %v5448_v45 = vld [vmem:[#allocation12 + $0xd8] sm:$0xff]  ;;  %v1197_v12 = vmul.f32 %v5450_v54, %v5381_v39  ;;  %vm1202_vm0 = vweird.f32 %v5450_v54 }
 0x164   :  { %v1103_v63 = vpop.f32.mrf.mxu3  ;;  %4356 = vpow2.f32 %v4313_v10  ;;  %7511 = vst [vmem:[#allocation83_spill] sm:$0xff] %v5434_v55  ;;  %v5436_v10 = vld [vmem:[#allocation12 + $0x108] sm:$0xff]  ;;  %1608 = vmatpush.msrb.mxu2 %v5422_v61  ;;  %1586 = vmatpush.msrb.mxu1 %v5434_v55  ;;  %vm5556_vm2 = vmor %vm1201_vm1, %vm1202_vm0 }
 0x165   :  { %v1104_v34 = vadd.f32 %v1103_v63, %v1084_v35  ;;  %v5432_v35 = vld [vmem:[#allocation12 + $0x100] sm:$0xff]  ;;  %7512 = vst [vmem:[#allocation84_spill] sm:$0xff] %v5436_v10  ;;  %1625 = vmatpush.msrb.mxu3 %v5428_v57  ;;  %4358 = vrcp.f32 %v5424_v28  ;;  %v5455_v61 = vld [vmem:[#allocation12 + $0x468] sm:$0xff] }
 0x166   :  { %7510 = vst [vmem:[#allocation82_spill] sm:$0xff] %v5432_v35  ;;  %1569 = vmatpush.msrb.mxu0 %v5432_v35  ;;  %1609 = vmatpush.msrb.mxu2 %v5436_v10  ;;  %v5459_v35 = vld [vmem:[#allocation12 + $0xa0] sm:$0xff]  ;;  %v5467_v10 = vld [vmem:[#allocation12 + $0x438] sm:$0xff] }
 0x167   :  { %v1227_v62 = vadd.f32 %v1104_v34, %v602_v58  ;;  %v5444_v34 = vld [vmem:[#allocation12 + $0xd0] sm:$0xff]  ;;  %v5446_v58 = vld [vmem:[#allocation12 + $0x460] sm:$0xff]  ;;  %7516 = vst [vmem:[#allocation88_spill] sm:$0xff] %v5448_v45  ;;  %1626 = vmatpush.msrb.mxu3 %v5440_v2 }
 0x168   :  { %7514 = vst [vmem:[#allocation86_spill] sm:$0xff] %v5444_v34  ;;  %1570 = vmatpush.msrb.mxu0 %v5444_v34  ;;  %1587 = vmatpush.msrb.mxu1 %v5446_v58  ;;  %v5473_v34 = vld [vmem:[#allocation12 + $0x400] sm:$0xff] }
 0x169   :  { %v4314_v63 = vmul.f32 -1.442695, %v1227_v62  ;;  %7515 = vst [vmem:[#allocation87_spill] sm:$0xff] %v5446_v58  ;;  %1610 = vmatpush.msrb.mxu2 %v5448_v45  ;;  %1627 = vmatpush.msrb.mxu3 %v5455_v61  ;;  %v5483_v45 = vld [vmem:[#allocation12 + $0x408] sm:$0xff] }
 0x16a   :  { %7517 = vst [vmem:[#allocation89_spill] sm:$0xff] %v5455_v61  ;;  %v4357_v62 = vpop.eup %4356  ;;  %1571 = vmatpush.msrb.mxu0 %v5459_v35  ;;  %1588 = vmatpush.msrb.mxu1 %v5461_v38 }
 0x16b   :  { %4360 = vpow2.f32 %v4314_v63  ;;  %7518 = vst [vmem:[#allocation90_spill] sm:$0xff] %v5459_v35  ;;  %v5471_v63 = vld [vmem:[#allocation12 + $0x70] sm:$0xff]  ;;  %v5477_v5 = vadd.f32 1.0, %v4357_v62  ;;  %1611 = vmatpush.msrb.mxu2 %v5463_v49  ;;  %1628 = vmatpush.msrb.mxu3 %v5467_v10  ;;  %v5487_v35 = vld [vmem:[#allocation12 + $0x40] sm:$0xff]  ;;  %v5493_v62 = vpop.eup %4358  ;;  %v5497_v49 = vld [vmem:[#allocation12 + $0x3d8] sm:$0xff] }
 0x16c   :  { %7519 = vst [vmem:[#allocation91_spill] sm:$0xff] %v5461_v38  ;;  %1572 = vmatpush.msrb.mxu0 %v5471_v63  ;;  %1589 = vmatpush.msrb.mxu1 %v5473_v34  ;;  %v1198_v38 = vsub.f32 1.0, %v1197_v12  ;;  %v5520_v12 = vld [vmem:[#allocation12 + $0x370] sm:$0xff]  ;;  %vm1217_vm4 = vweird.f32 %v5493_v62 }
 0x16d   :  { %7521 = vst [vmem:[#allocation93_spill] sm:$0xff] %v5467_v10  ;;  %1612 = vmatpush.msrb.mxu2 %v5475_v1  ;;  %1629 = vmatpush.msrb.mxu3 %v5483_v45  ;;  %v5505_v10 = vld [vmem:[#allocation12 + $0x18] sm:$0xff]  ;;  %4362 = vrcp.f32 %v5477_v5  ;;  %v5510_v1 = vld [vmem:[#allocation12 + $0x3a8] sm:$0xff]  ;;  %vm1218_vm6 = vmor %vm1216_vm5, %vm1217_vm4  ;;  %vm1241_vm9 = vweird.f32 %v5477_v5 }
 0x16e   :  { %7522 = vst [vmem:[#allocation94_spill] sm:$0xff] %v5471_v63  ;;  %1573 = vmatpush.msrb.mxu0 %v5487_v35  ;;  %1590 = vmatpush.msrb.mxu1 %v5489_v51  ;;  %v5501_v63 = vld [vmem:[#allocation12 + $0x10] sm:$0xff]  ;;  %v1212_v51 = vmul.f32 %v5493_v62, %v5424_v28 }
 0x16f   :  { %7523 = vst [vmem:[#allocation95_spill] sm:$0xff] %v5473_v34  ;;  %v5503_v34 = vld [vmem:[#allocation12 + $0x3a0] sm:$0xff]  ;;  %1613 = vmatpush.msrb.mxu2 %v5491_v14  ;;  %1630 = vmatpush.msrb.mxu3 %v5497_v49  ;;  %v5522_v14 = vld [vmem:[#allocation12 + $0x378] sm:$0xff] }
 0x170   :  { %7525 = vst [vmem:[#allocation97_spill] sm:$0xff] %v5483_v45  ;;  %1574 = vmatpush.msrb.mxu0 %v5501_v63  ;;  %1591 = vmatpush.msrb.mxu1 %v5503_v34  ;;  %v1207_v45 = vand.u32 2147483648, %v5381_v39 }
 0x171   :  { %7526 = vst [vmem:[#allocation98_spill] sm:$0xff] %v5487_v35  ;;  %v4361_v15 = vpop.eup %4360  ;;  %1614 = vmatpush.msrb.mxu2 %v5505_v10  ;;  %1631 = vmatpush.msrb.mxu3 %v5510_v1 }
 0x172   :  { %7529 = vst [vmem:[#allocation101_spill] sm:$0xff] %v5497_v49  ;;  %v5514_v35 = vadd.f32 1.0, %v4361_v15  ;;  %1592 = vmatpush.msrb.mxu1 %v5520_v12  ;;  %v1199_v49 = vmul.f32 %v5450_v54, %v1198_v38  ;;  %v5529_v15 = vld [vmem:[#allocation12 + $0x348] sm:$0xff]  ;;  %v5542_v38 = vperm.slane %v5220_v27, 4  ;;  %v1208_v36 = vor.u32 1.1754944e-38, %v1207_v45 }
 0x173   :  { %7530 = vst [vmem:[#allocation102_spill] sm:$0xff] %v5501_v63  ;;  %1632 = vmatpush.msrb.mxu3 %v5522_v14  ;;  %v5527_v63 = vld [vmem:[#allocation12 + $0x340] sm:$0xff]  ;;  %v1220_v45 = vand.u32 2147483647, %v5424_v28 }
 0x174   :  { %7531 = vst [vmem:[#allocation103_spill] sm:$0xff] %v5503_v34  ;;  %1593 = vmatpush.msrb.mxu1 %v5527_v63  ;;  %v5532_v34 = vpop.eup %4362  ;;  %4364 = vrcp.f32 %v5514_v35  ;;  %vm1256_vm13 = vweird.f32 %v5514_v35 }
 0x175   :  { %7532 = vst [vmem:[#allocation104_spill] sm:$0xff] %v5505_v10  ;;  %v1213_v10 = vsub.f32 1.0, %v1212_v51  ;;  %1633 = vmatpush.msrb.mxu3 %v5529_v15  ;;  %v1237_v51 = vmul.f32 %v5532_v34, %v5477_v5  ;;  %vm1221_vm7 = vcmp.eq.f32.partialorder %v1220_v45, 8.507059e+37  ;;  %vm1242_vm8 = vweird.f32 %v5532_v34 }
 0x176   :  { %7533 = vst [vmem:[#allocation105_spill] sm:$0xff] %v5510_v1  ;;  %v5536_v1 = vld [vmem:[#allocation12 + $0x310] sm:$0xff]  ;;  %vm1243_vm10 = vmor %vm1241_vm9, %vm1242_vm8  ;;  %v1262_v45 = vand.u32 2147483648, %v5514_v35 }
 0x177   :  { %7534 = vst [vmem:[#allocation106_spill] sm:$0xff] %v5520_v12  ;;  %v5538_v12 = vld [vmem:[#allocation12 + $0x318] sm:$0xff]  ;;  %1594 = vmatpush.msrb.mxu1 %v5536_v1 }
 0x178   :  { %7535 = vst [vmem:[#allocation107_spill] sm:$0xff] %v5522_v14  ;;  %v5545_v14 = vperm.slane %v5216_v21, 4  ;;  %1634 = vmatpush.msrb.mxu3 %v5538_v12 }
 0x179   :  { %7536 = vst [vmem:[#allocation108_spill] sm:$0xff] %v5527_v63  ;;  %v1200_v63 = vadd.f32 %v5450_v54, %v1199_v49 }
 0x17a   :  { %7537 = vst [vmem:[#allocation109_spill] sm:$0xff] %v5529_v15  ;;  %v1205_v15 = vand.u32 2147483647, %v5381_v39  ;;  %v5560_v49 = vpop.eup %4364  ;;  %v5569_v39 = vperm.slane %v5220_v27, 5 }
 0x17b   :  { %7538 = vst [vmem:[#allocation110_spill] sm:$0xff] %v5536_v1  ;;  %v1214_v1 = vmul.f32 %v5493_v62, %v1213_v10  ;;  %v1204_v55 = vsel %vm5556_vm2, %v5450_v54, %v1200_v63  ;;  %v1238_v10 = vsub.f32 1.0, %v1237_v51  ;;  %v1222_v54 = vand.u32 2147483648, %v5424_v28 }
 0x17c   :  { %7539 = vst [vmem:[#allocation111_spill] sm:$0xff] %v5538_v12  ;;  %v1123_v61 = vpop.f32.mrf.mxu0  ;;  %v628_v12 = vadd.f32 %v5186_v7, %v5542_v38  ;;  %vm1206_vm3 = vcmp.eq.f32.partialorder %v1205_v15, 8.507059e+37  ;;  %vm1257_vm11 = vweird.f32 %v5560_v49 }
 0x17d   :  { %v1124_v2 = vadd.f32 %v1123_v61, %v5545_v14  ;;  %v1215_v33 = vadd.f32 %v5493_v62, %v1214_v1  ;;  %v1252_v61 = vmul.f32 %v5560_v49, %v5514_v35  ;;  %v1209_v7 = vsel %vm1206_vm3, %v1208_v36, %v1204_v55  ;;  %vm1258_vm14 = vmor %vm1256_vm13, %vm1257_vm11 }
 0x17e   :  { %v1143_v57 = vpop.f32.mrf.mxu1  ;;  %v654_v27 = vadd.f32 %v5188_v8, %v628_v12  ;;  %v1239_v21 = vmul.f32 %v5532_v34, %v1238_v10  ;;  %v680_v1 = vadd.f32 %v5190_v9, %v5569_v39  ;;  %v1223_v8 = vor.u32 1.1754944e-38, %v1222_v54 }
 0x17f   :  { %v1144_v13 = vadd.f32 %v1143_v57, %v1124_v2  ;;  %v1219_v36 = vsel %vm1218_vm6, %v5493_v62, %v1215_v33  ;;  %v1253_v55 = vsub.f32 1.0, %v1252_v61  ;;  %v1247_v9 = vand.u32 2147483648, %v5477_v5 }
 0x180   :  { %v1240_v28 = vadd.f32 %v5532_v34, %v1239_v21  ;;  %v1224_v12 = vsel %vm1221_vm7, %v1223_v8, %v1219_v36  ;;  %v706_v51 = vadd.f32 %v5194_v11, %v680_v1  ;;  %v1245_v62 = vand.u32 2147483647, %v5477_v5  ;;  %v5609_v8 = vld [vmem:[#allocation12 + $0x2c0] sm:$0xff] }
 0x181   :  { %v1266_v58 = vmul.f32 %v1209_v7, %v1144_v13  ;;  %v1254_v33 = vmul.f32 %v5560_v49, %v1253_v55  ;;  %v1260_v5 = vand.u32 2147483647, %v5514_v35  ;;  %v1263_v55 = vor.u32 1.1754944e-38, %v1262_v45  ;;  %v5611_v35 = vld [vmem:[#allocation12 + $0x2c8] sm:$0xff] }
 0x182   :  { %v1244_v7 = vsel %vm1243_vm10, %v5532_v34, %v1240_v28  ;;  %vm1246_vm12 = vcmp.eq.f32.partialorder %v1245_v62, 8.507059e+37  ;;  %v5615_v28 = vld [vmem:[#allocation12 + $0x290] sm:$0xff]  ;;  %v5631_v62 = vld [vmem:[#allocation12 + $0x5f8] sm:$0xff]  ;;  %v5655_v45 = vld [vmem:[#allocation12 + $0x208] sm:$0xff] }
 0x183   :  { %v1163_v57 = vpop.f32.mrf.mxu2  ;;  %v1268_v2 = vadd.f32 %v1266_v58, %v654_v27  ;;  %v1248_v27 = vor.u32 1.1754944e-38, %v1247_v9  ;;  %v1255_v58 = vadd.f32 %v5560_v49, %v1254_v33  ;;  %vm1261_vm15 = vcmp.eq.f32.partialorder %v1260_v5, 8.507059e+37  ;;  %v5623_v9 = vld [vmem:[#allocation12 + $0x260] sm:$0xff]  ;;  %v5629_v33 = vld [vmem:[#allocation12 + $0x268] sm:$0xff]  ;;  %7544 = vst [vmem:[#allocation114_spill] sm:$0xff] %v5655_v45 }
 0x184   :  { %v1164_v63 = vadd.f32 %v1163_v57, %v5572_v20  ;;  %v5663_v5 = vld [vmem:[#allocation12 + $0x560] sm:$0xff] }
 0x185   :  { %v1183_v15 = vpop.f32.mrf.mxu3  ;;  %4366 = vtanh.f32 %v1268_v2  ;;  %v1249_v21 = vsel %vm1246_vm12, %v1248_v27, %v1244_v7  ;;  %v1259_v34 = vsel %vm1258_vm14, %v5560_v49, %v1255_v58  ;;  %v5603_v2 = vld [vmem:[#allocation12 + $0x2f0] sm:$0xff]  ;;  %v5639_v7 = vld [vmem:[#allocation12 + $0x5c0] sm:$0xff]  ;;  %v5645_v27 = vld [vmem:[#allocation12 + $0x5c8] sm:$0xff]  ;;  %7547 = vst [vmem:[#allocation117_spill] sm:$0xff] %v5663_v5 }
 0x186   :  { %v1184_v13 = vadd.f32 %v1183_v15, %v1164_v63  ;;  %v5605_v63 = vld [vmem:[#allocation12 + $0x2f8] sm:$0xff]  ;;  %v5651_v58 = vld [vmem:[#allocation12 + $0x590] sm:$0xff] }
 0x187   :  { %7543 = vst [vmem:[#allocation113_spill] sm:$0xff] %v5651_v58 }
 0x188   :  { %v1267_v10 = vmul.f32 %v1224_v12, %v1184_v13  ;;  %v1264_v13 = vsel %vm1261_vm15, %v1263_v55, %v1259_v34  ;;  %v5617_v12 = vld [vmem:[#allocation12 + $0x298] sm:$0xff]  ;;  %v5675_v55 = vld [vmem:[#allocation12 + $0x1a0] sm:$0xff] }
 0x189   :  { %v5667_v34 = vld [vmem:[#allocation12 + $0x1d8] sm:$0xff]  ;;  %7550 = vst [vmem:[#allocation120_spill] sm:$0xff] %v5675_v55 }
 0x18a   :  { %v1269_v61 = vadd.f32 %v1267_v10, %v706_v51  ;;  %v5625_v10 = vld [vmem:[#allocation12 + $0x5f0] sm:$0xff]  ;;  %7548 = vst [vmem:[#allocation118_spill] sm:$0xff] %v5667_v34 }
 0x18b   :  { %v4367_v54 = vpop.eup %4366 }
 0x18c   :  { %4368 = vtanh.f32 %v1269_v61  ;;  %v1272_v11 = vsub.f32 0.0, %v4367_v54  ;;  %v5637_v61 = vld [vmem:[#allocation12 + $0x230] sm:$0xff] }
 0x18e   :  { %v1274_v57 = vmul.f32 %v1272_v11, %v1249_v21  ;;  %v5649_v11 = vld [vmem:[#allocation12 + $0x200] sm:$0xff]  ;;  %v5657_v21 = vld [vmem:[#allocation12 + $0x598] sm:$0xff] }
 0x18f   :  { %7542 = vst [vmem:[#allocation112_spill] sm:$0xff] %v5649_v11 }
 0x190   :  { %v5600_v1 = vadd.f32 %v4367_v54, %v1274_v57  ;;  %v5643_v54 = vld [vmem:[#allocation12 + $0x238] sm:$0xff]  ;;  %7545 = vst [vmem:[#allocation115_spill] sm:$0xff] %v5657_v21  ;;  %v5661_v57 = vld [vmem:[#allocation12 + $0x1d0] sm:$0xff] }
 0x191   :  { %7546 = vst [vmem:[#allocation116_spill] sm:$0xff] %v5661_v57 }
 0x192   :  { %v4369_v36 = vpop.eup %4368  ;;  %1495 = vmatmul.f32.vlgmr.msra.gmra.mxu0 %v5600_v1  ;;  %1535 = vmatmul.f32.vlgmr.msra.gmra.mxu2 %v5600_v1 }
 0x193   :  { %v1273_v15 = vsub.f32 0.0, %v4369_v36  ;;  %1639 = vmatpush.msra.mxu0 %v5603_v2  ;;  %1679 = vmatpush.msra.mxu2 %v5605_v63 }
 0x195   :  { %v1275_v49 = vmul.f32 %v1273_v15, %v1264_v13  ;;  %1640 = vmatpush.msra.mxu0 %v5609_v8  ;;  %1680 = vmatpush.msra.mxu2 %v5611_v35  ;;  %v5677_v15 = vld [vmem:[#allocation12 + $0x530] sm:$0xff]  ;;  %v5681_v13 = vld [vmem:[#allocation12 + $0x1a8] sm:$0xff] }
 0x196   :  { %7551 = vst [vmem:[#allocation121_spill] sm:$0xff] %v5677_v15 }
 0x197   :  { %v5621_v51 = vadd.f32 %v4369_v36, %v1275_v49  ;;  %1641 = vmatpush.msra.mxu0 %v5615_v28  ;;  %1681 = vmatpush.msra.mxu2 %v5617_v12  ;;  %v5669_v36 = vld [vmem:[#allocation12 + $0x568] sm:$0xff]  ;;  %7552 = vst [vmem:[#allocation122_spill] sm:$0xff] %v5681_v13  ;;  %v5683_v49 = vld [vmem:[#allocation12 + $0x538] sm:$0xff] }
 0x198   :  { %7549 = vst [vmem:[#allocation119_spill] sm:$0xff] %v5669_v36 }
 0x199   :  { %1515 = vmatmul.f32.vlgmr.msra.gmra.mxu1 %v5621_v51  ;;  %1555 = vmatmul.f32.vlgmr.msra.gmra.mxu3 %v5621_v51  ;;  %7553 = vst [vmem:[#allocation123_spill] sm:$0xff] %v5683_v49 }
 0x19a   :  { %1642 = vmatpush.msra.mxu0 %v5623_v9  ;;  %1659 = vmatpush.msra.mxu1 %v5625_v10 }
 0x19b   :  { %1682 = vmatpush.msra.mxu2 %v5629_v33  ;;  %1699 = vmatpush.msra.mxu3 %v5631_v62 }
 0x19c   :  { %1575 = vmatmul.f32.vlgmr.msrb.gmra.mxu0 %v5600_v1  ;;  %1615 = vmatmul.f32.vlgmr.msrb.gmra.mxu2 %v5600_v1 }
 0x19d   :  { %1643 = vmatpush.msra.mxu0 %v5637_v61  ;;  %1660 = vmatpush.msra.mxu1 %v5639_v7 }
 0x19e   :  { %1683 = vmatpush.msra.mxu2 %v5643_v54  ;;  %1700 = vmatpush.msra.mxu3 %v5645_v27 }
 0x19f   :  { %1644 = vmatpush.msra.mxu0 %v5649_v11  ;;  %1661 = vmatpush.msra.mxu1 %v5651_v58  ;;  %v5705_v58 = vld [vmem:[#allocation12 + $0x148] sm:$0xff]  ;;  %v1900_v11 = vld [vmem:[#allocation12 + $0x278] sm:$0xff] }
 0x1a0   :  { %1684 = vmatpush.msra.mxu2 %v5655_v45  ;;  %1701 = vmatpush.msra.mxu3 %v5657_v21  ;;  %v5687_v21 = vld [vmem:[#allocation12 + $0x170] sm:$0xff]  ;;  %7560 = vst [vmem:[#allocation130_spill] sm:$0xff] %v5705_v58 }
 0x1a1   :  { %1645 = vmatpush.msra.mxu0 %v5661_v57  ;;  %1662 = vmatpush.msra.mxu1 %v5663_v5  ;;  %7554 = vst [vmem:[#allocation124_spill] sm:$0xff] %v5687_v21  ;;  %v5689_v57 = vld [vmem:[#allocation12 + $0x500] sm:$0xff]  ;;  %v5693_v5 = vld [vmem:[#allocation12 + $0x178] sm:$0xff]  ;;  %v5701_v45 = vld [vmem:[#allocation12 + $0x4d0] sm:$0xff] }
 0x1a2   :  { %1685 = vmatpush.msra.mxu2 %v5667_v34  ;;  %1702 = vmatpush.msra.mxu3 %v5669_v36  ;;  %7555 = vst [vmem:[#allocation125_spill] sm:$0xff] %v5689_v57  ;;  %v5695_v34 = vld [vmem:[#allocation12 + $0x508] sm:$0xff]  ;;  %v5699_v36 = vld [vmem:[#allocation12 + $0x140] sm:$0xff] }
 0x1a3   :  { %1595 = vmatmul.f32.vlgmr.msrb.gmra.mxu1 %v5621_v51  ;;  %1635 = vmatmul.f32.vlgmr.msrb.gmra.mxu3 %v5621_v51  ;;  %7556 = vst [vmem:[#allocation126_spill] sm:$0xff] %v5693_v5 }
 0x1a4   :  { %1646 = vmatpush.msra.mxu0 %v5675_v55  ;;  %1663 = vmatpush.msra.mxu1 %v5677_v15  ;;  %7557 = vst [vmem:[#allocation127_spill] sm:$0xff] %v5695_v34  ;;  %v5707_v55 = vld [vmem:[#allocation12 + $0x4d8] sm:$0xff]  ;;  %v5711_v15 = vld [vmem:[#allocation12 + $0x110] sm:$0xff] }
 0x1a5   :  { %1686 = vmatpush.msra.mxu2 %v5681_v13  ;;  %1703 = vmatpush.msra.mxu3 %v5683_v49  ;;  %7558 = vst [vmem:[#allocation128_spill] sm:$0xff] %v5699_v36  ;;  %v5713_v13 = vld [vmem:[#allocation12 + $0x4a0] sm:$0xff]  ;;  %v5717_v49 = vld [vmem:[#allocation12 + $0x118] sm:$0xff] }
 0x1a6   :  { %7559 = vst [vmem:[#allocation129_spill] sm:$0xff] %v5701_v45  ;;  %1647 = vmatpush.msra.mxu0 %v5687_v21  ;;  %1664 = vmatpush.msra.mxu1 %v5689_v57  ;;  %v5719_v21 = vld [vmem:[#allocation12 + $0x4a8] sm:$0xff]  ;;  %v5723_v57 = vld [vmem:[#allocation12 + $0xe0] sm:$0xff] }
 0x1a7   :  { %7561 = vst [vmem:[#allocation131_spill] sm:$0xff] %v5707_v55  ;;  %1687 = vmatpush.msra.mxu2 %v5693_v5  ;;  %1704 = vmatpush.msra.mxu3 %v5695_v34  ;;  %v5725_v5 = vld [vmem:[#allocation12 + $0x470] sm:$0xff]  ;;  %v5729_v34 = vld [vmem:[#allocation12 + $0xe8] sm:$0xff] }
 0x1a8   :  { %7562 = vst [vmem:[#allocation132_spill] sm:$0xff] %v5711_v15  ;;  %1648 = vmatpush.msra.mxu0 %v5699_v36  ;;  %1665 = vmatpush.msra.mxu1 %v5701_v45  ;;  %v5731_v36 = vld [vmem:[#allocation12 + $0x478] sm:$0xff]  ;;  %v5735_v45 = vld [vmem:[#allocation12 + $0xb0] sm:$0xff] }
 0x1a9   :  { %7563 = vst [vmem:[#allocation133_spill] sm:$0xff] %v5713_v13  ;;  %1688 = vmatpush.msra.mxu2 %v5705_v58  ;;  %1705 = vmatpush.msra.mxu3 %v5707_v55  ;;  %v5737_v58 = vld [vmem:[#allocation12 + $0x440] sm:$0xff]  ;;  %v5741_v55 = vld [vmem:[#allocation12 + $0xb8] sm:$0xff] }
 0x1aa   :  { %7564 = vst [vmem:[#allocation134_spill] sm:$0xff] %v5717_v49  ;;  %1649 = vmatpush.msra.mxu0 %v5711_v15  ;;  %1666 = vmatpush.msra.mxu1 %v5713_v13  ;;  %v5743_v15 = vld [vmem:[#allocation12 + $0x448] sm:$0xff]  ;;  %v5747_v13 = vld [vmem:[#allocation12 + $0x80] sm:$0xff] }
 0x1ab   :  { %7565 = vst [vmem:[#allocation135_spill] sm:$0xff] %v5719_v21  ;;  %1689 = vmatpush.msra.mxu2 %v5717_v49  ;;  %1706 = vmatpush.msra.mxu3 %v5719_v21  ;;  %v5749_v49 = vld [vmem:[#allocation12 + $0x410] sm:$0xff]  ;;  %v5753_v21 = vld [vmem:[#allocation12 + $0x88] sm:$0xff] }
 0x1ac   :  { %7566 = vst [vmem:[#allocation136_spill] sm:$0xff] %v5723_v57  ;;  %1650 = vmatpush.msra.mxu0 %v5723_v57  ;;  %1667 = vmatpush.msra.mxu1 %v5725_v5  ;;  %v5755_v57 = vld [vmem:[#allocation12 + $0x418] sm:$0xff] }
 0x1ad   :  { %7567 = vst [vmem:[#allocation137_spill] sm:$0xff] %v5725_v5  ;;  %1690 = vmatpush.msra.mxu2 %v5729_v34  ;;  %1707 = vmatpush.msra.mxu3 %v5731_v36  ;;  %v5759_v5 = vld [vmem:[#allocation12 + $0x50] sm:$0xff] }
 0x1ae   :  { %7568 = vst [vmem:[#allocation138_spill] sm:$0xff] %v5729_v34  ;;  %1651 = vmatpush.msra.mxu0 %v5735_v45  ;;  %1668 = vmatpush.msra.mxu1 %v5737_v58  ;;  %v5761_v34 = vld [vmem:[#allocation12 + $0x3e0] sm:$0xff] }
 0x1af   :  { %7569 = vst [vmem:[#allocation139_spill] sm:$0xff] %v5731_v36  ;;  %1691 = vmatpush.msra.mxu2 %v5741_v55  ;;  %1708 = vmatpush.msra.mxu3 %v5743_v15  ;;  %v5765_v36 = vld [vmem:[#allocation12 + $0x58] sm:$0xff] }
 0x1b0   :  { %7570 = vst [vmem:[#allocation140_spill] sm:$0xff] %v5735_v45  ;;  %1652 = vmatpush.msra.mxu0 %v5747_v13  ;;  %1669 = vmatpush.msra.mxu1 %v5749_v49  ;;  %v5767_v45 = vld [vmem:[#allocation12 + $0x3e8] sm:$0xff] }
 0x1b1   :  { %7571 = vst [vmem:[#allocation141_spill] sm:$0xff] %v5737_v58  ;;  %1692 = vmatpush.msra.mxu2 %v5753_v21  ;;  %1709 = vmatpush.msra.mxu3 %v5755_v57  ;;  %v5771_v58 = vld [vmem:[#allocation12 + $0x20] sm:$0xff] }
 0x1b2   :  { %7572 = vst [vmem:[#allocation142_spill] sm:$0xff] %v5741_v55  ;;  %v5773_v55 = vld [vmem:[#allocation12 + $0x3b0] sm:$0xff]  ;;  %1653 = vmatpush.msra.mxu0 %v5759_v5  ;;  %1670 = vmatpush.msra.mxu1 %v5761_v34 }
 0x1b3   :  { %7573 = vst [vmem:[#allocation143_spill] sm:$0xff] %v5743_v15  ;;  %v5777_v15 = vld [vmem:[#allocation12 + $0x28] sm:$0xff]  ;;  %1693 = vmatpush.msra.mxu2 %v5765_v36  ;;  %1710 = vmatpush.msra.mxu3 %v5767_v45 }
 0x1b4   :  { %7574 = vst [vmem:[#allocation144_spill] sm:$0xff] %v5747_v13  ;;  %v5779_v13 = vld [vmem:[#allocation12 + $0x3b8] sm:$0xff]  ;;  %1654 = vmatpush.msra.mxu0 %v5771_v58  ;;  %1671 = vmatpush.msra.mxu1 %v5773_v55 }
 0x1b5   :  { %7575 = vst [vmem:[#allocation145_spill] sm:$0xff] %v5749_v49  ;;  %1694 = vmatpush.msra.mxu2 %v5777_v15  ;;  %1711 = vmatpush.msra.mxu3 %v5779_v13  ;;  %v4470_v49 = vld [vmem:[#allocation12 + $0x2d0] sm:$0xff] }
 0x1b6   :  { %7576 = vst [vmem:[#allocation146_spill] sm:$0xff] %v5753_v21  ;;  %v5787_v21 = vld [vmem:[#allocation12 + $0x388] sm:$0xff]  ;;  %1655 = vmatmul.f32.vlgmr.msra.gmra.mxu0 %v5600_v1  ;;  %1695 = vmatmul.f32.vlgmr.msra.gmra.mxu2 %v5600_v1 }
 0x1b7   :  { %7577 = vst [vmem:[#allocation147_spill] sm:$0xff] %v5755_v57  ;;  %v5785_v57 = vld [vmem:[#allocation12 + $0x380] sm:$0xff]  ;;  %1712 = vmatpush.msra.mxu3 %v5787_v21  ;;  %2013 = vmatpush.msrb.mxu0 %v4470_v49  ;;  %v4473_v49 = vld [vmem:[#allocation12 + $0x5d8] sm:$0xff] }
 0x1b8   :  { %7578 = vst [vmem:[#allocation148_spill] sm:$0xff] %v5759_v5  ;;  %1672 = vmatpush.msra.mxu1 %v5785_v57  ;;  %v1388_v5 = vld [vmem:[#allocation12 + $0x328] sm:$0xff] }
 0x1b9   :  { %7579 = vst [vmem:[#allocation149_spill] sm:$0xff] %v5761_v34  ;;  %v5793_v34 = vld [vmem:[#allocation12 + $0x350] sm:$0xff] }
 0x1ba   :  { %7580 = vst [vmem:[#allocation150_spill] sm:$0xff] %v5765_v36  ;;  %v5795_v36 = vld [vmem:[#allocation12 + $0x358] sm:$0xff]  ;;  %1673 = vmatpush.msra.mxu1 %v5793_v34 }
 0x1bb   :  { %7581 = vst [vmem:[#allocation151_spill] sm:$0xff] %v5767_v45  ;;  %v1387_v45 = vld [vmem:[#allocation12 + $0x320] sm:$0xff]  ;;  %1713 = vmatpush.msra.mxu3 %v5795_v36 }
 0x1bc   :  { %7582 = vst [vmem:[#allocation152_spill] sm:$0xff] %v5771_v58  ;;  %v1906_v58 = vld [vmem:[#allocation12 + $0x2a8] sm:$0xff]  ;;  %1674 = vmatpush.msra.mxu1 %v1387_v45  ;;  %v4478_v45 = vld [vmem:[#allocation12 + $0x540] sm:$0xff] }
 0x1bd   :  { %7583 = vst [vmem:[#allocation153_spill] sm:$0xff] %v5773_v55  ;;  %v1905_v55 = vld [vmem:[#allocation12 + $0x2a0] sm:$0xff]  ;;  %1714 = vmatpush.msra.mxu3 %v1388_v5  ;;  %1675 = vmatmul.f32.vlgmr.msra.gmra.mxu1 %v5621_v51  ;;  %v4479_v5 = vld [vmem:[#allocation12 + $0x548] sm:$0xff] }
 0x1be   :  { %7584 = vst [vmem:[#allocation154_spill] sm:$0xff] %v5777_v15  ;;  %v4471_v15 = vld [vmem:[#allocation12 + $0x2d8] sm:$0xff]  ;;  %2014 = vmatpush.msrb.mxu0 %v1905_v55  ;;  %1715 = vmatmul.f32.vlgmr.msra.gmra.mxu3 %v5621_v51  ;;  %v4476_v55 = vld [vmem:[#allocation12 + $0x570] sm:$0xff] }
 0x1bf   :  { %7585 = vst [vmem:[#allocation155_spill] sm:$0xff] %v5779_v13  ;;  %2053 = vmatpush.msrb.mxu2 %v4471_v15  ;;  %v1899_v13 = vld [vmem:[#allocation12 + $0x270] sm:$0xff]  ;;  %2073 = vmatpush.msrb.mxu3 %v4473_v49  ;;  %v4474_v15 = vld [vmem:[#allocation12 + $0x5a0] sm:$0xff] }
 0x1c0   :  { %7586 = vst [vmem:[#allocation156_spill] sm:$0xff] %v5787_v21  ;;  %2015 = vmatpush.msrb.mxu0 %v1899_v13  ;;  %v4472_v21 = vld [vmem:[#allocation12 + $0x5d0] sm:$0xff]  ;;  %v4488_v13 = vld [vmem:[#allocation12 + $0x128] sm:$0xff] }
 0x1c1   :  { %7587 = vst [vmem:[#allocation157_spill] sm:$0xff] %v5793_v34  ;;  %2054 = vmatpush.msrb.mxu2 %v1906_v58  ;;  %2033 = vmatpush.msrb.mxu1 %v4472_v21  ;;  %v4475_v34 = vld [vmem:[#allocation12 + $0x5a8] sm:$0xff]  ;;  %v4477_v58 = vld [vmem:[#allocation12 + $0x578] sm:$0xff]  ;;  %v4485_v21 = vld [vmem:[#allocation12 + $0x150] sm:$0xff] }
 0x1c2   :  { %7588 = vst [vmem:[#allocation158_spill] sm:$0xff] %v5795_v36  ;;  %2074 = vmatpush.msrb.mxu3 %v4475_v34  ;;  %v4480_v36 = vld [vmem:[#allocation12 + $0x510] sm:$0xff]  ;;  %v4486_v34 = vld [vmem:[#allocation12 + $0x158] sm:$0xff] }
 0x1c3   :  { %2055 = vmatpush.msrb.mxu2 %v1900_v11  ;;  %2034 = vmatpush.msrb.mxu1 %v4474_v15  ;;  %v7611_v11 = vld [vmem:[#allocation111_spill] sm:$0xff] }
 0x1c4   :  { %2075 = vmatpush.msrb.mxu3 %v4477_v58  ;;  %v4489_v49 = vld [vmem:[#allocation12 + $0xf0] sm:$0xff]  ;;  %v4490_v15 = vld [vmem:[#allocation12 + $0xf8] sm:$0xff]  ;;  %v4492_v58 = vld [vmem:[#allocation12 + $0xc8] sm:$0xff] }
 0x1c5   :  { %2035 = vmatpush.msrb.mxu1 %v4476_v55  ;;  %v4491_v55 = vld [vmem:[#allocation12 + $0xc0] sm:$0xff] }
 0x1c6   :  { %2076 = vmatpush.msrb.mxu3 %v4479_v5  ;;  %v4494_v5 = vld [vmem:[#allocation12 + $0x98] sm:$0xff] }
 0x1c7   :  { %2036 = vmatpush.msrb.mxu1 %v4478_v45  ;;  %v4493_v45 = vld [vmem:[#allocation12 + $0x90] sm:$0xff] }
 0x1c8   :  { %2077 = vmatpush.msrb.mxu3 %v5225_v41  ;;  %v7597_v41 = vld [vmem:[#allocation89_spill] sm:$0xff] }
 0x1c9   :  { %2037 = vmatpush.msrb.mxu1 %v4480_v36  ;;  %v4487_v36 = vld [vmem:[#allocation12 + $0x120] sm:$0xff] }
 0x1ca   :  { %2078 = vmatpush.msrb.mxu3 %v5236_v50  ;;  %v1894_v50 = vld [vmem:[#allocation12 + $0x248] sm:$0xff] }
 0x1cb   :  { %2038 = vmatpush.msrb.mxu1 %v5230_v46  ;;  %v1893_v46 = vld [vmem:[#allocation12 + $0x240] sm:$0xff]  ;;  %2056 = vmatpush.msrb.mxu2 %v1894_v50 }
 0x1cc   :  { %2079 = vmatpush.msrb.mxu3 %v5243_v19  ;;  %v7600_v19 = vld [vmem:[#allocation95_spill] sm:$0xff]  ;;  %2016 = vmatpush.msrb.mxu0 %v1893_v46  ;;  %v7616_v50 = vld [vmem:[#allocation61_spill] sm:$0xff] }
 0x1cd   :  { %2039 = vmatpush.msrb.mxu1 %v5239_v52  ;;  %v1887_v52 = vld [vmem:[#allocation12 + $0x210] sm:$0xff] }
 0x1ce   :  { %2080 = vmatpush.msrb.mxu3 %v5254_v43  ;;  %v1881_v43 = vld [vmem:[#allocation12 + $0x1e0] sm:$0xff]  ;;  %2017 = vmatpush.msrb.mxu0 %v1887_v52  ;;  %v7615_v46 = vld [vmem:[#allocation59_spill] sm:$0xff]  ;;  %v7617_v52 = vld [vmem:[#allocation62_spill] sm:$0xff] }
 0x1cf   :  { %2040 = vmatpush.msrb.mxu1 %v5246_v26  ;;  %v7601_v26 = vld [vmem:[#allocation97_spill] sm:$0xff] }
 0x1d0   :  { %2081 = vmatpush.msrb.mxu3 %v5263_v42  ;;  %v7602_v42 = vld [vmem:[#allocation99_spill] sm:$0xff]  ;;  %2018 = vmatpush.msrb.mxu0 %v1881_v43 }
 0x1d1   :  { %2041 = vmatpush.msrb.mxu1 %v5257_v31  ;;  %v1882_v31 = vld [vmem:[#allocation12 + $0x1e8] sm:$0xff] }
 0x1d2   :  { %2082 = vmatpush.msrb.mxu3 %v5271_v17  ;;  %v7604_v17 = vld [vmem:[#allocation103_spill] sm:$0xff] }
 0x1d3   :  { %2042 = vmatpush.msrb.mxu1 %v5266_v47  ;;  %v7603_v47 = vld [vmem:[#allocation101_spill] sm:$0xff] }
 0x1d4   :  { %2083 = vmatpush.msrb.mxu3 %v5279_v6  ;;  %v7606_v6 = vld [vmem:[#allocation106_spill] sm:$0xff] }
 0x1d5   :  { %2043 = vmatpush.msrb.mxu1 %v5274_v29  ;;  %v7605_v29 = vld [vmem:[#allocation105_spill] sm:$0xff] }
 0x1d6   :  { %2084 = vmatpush.msrb.mxu3 %v5285_v23  ;;  %v7590_v23 = vld [vmem:[#allocation75_spill] sm:$0xff] }
 0x1d7   :  { %2044 = vmatpush.msrb.mxu1 %v5282_v37  ;;  %v7607_v37 = vld [vmem:[#allocation107_spill] sm:$0xff] }
 0x1d8   :  { %2085 = vmatpush.msrb.mxu3 %v5292_v18  ;;  %v7589_v18 = vld [vmem:[#allocation73_spill] sm:$0xff] }
 0x1d9   :  { %2045 = vmatpush.msrb.mxu1 %v5288_v59  ;;  %v4481_v59 = vld [vmem:[#allocation12 + $0x1b0] sm:$0xff] }
 0x1da   :  { %2086 = vmatpush.msrb.mxu3 %v5297_v44  ;;  %2019 = vmatpush.msrb.mxu0 %v4481_v59  ;;  %v7608_v44 = vld [vmem:[#allocation108_spill] sm:$0xff] }
 0x1db   :  { %2046 = vmatpush.msrb.mxu1 %v5295_v16  ;;  %v4482_v16 = vld [vmem:[#allocation12 + $0x1b8] sm:$0xff] }
 0x1dc   :  { %2087 = vmatpush.msrb.mxu3 %v5307_v48  ;;  %v4483_v48 = vld [vmem:[#allocation12 + $0x180] sm:$0xff] }
 0x1dd   :  { %2047 = vmatpush.msrb.mxu1 %v5305_v30  ;;  %v7609_v30 = vld [vmem:[#allocation109_spill] sm:$0xff]  ;;  %2020 = vmatpush.msrb.mxu0 %v4483_v48  ;;  %v7625_v59 = vld [vmem:[#allocation28_spill] sm:$0xff]  ;;  %v7627_v48 = vld [vmem:[#allocation70_spill] sm:$0xff] }
 0x1de   :  { %2088 = vmatpush.msrb.mxu3 %v5325_v22  ;;  %v7610_v22 = vld [vmem:[#allocation110_spill] sm:$0xff] }
 0x1df   :  { %2048 = vmatpush.msrb.mxu1 %v5323_v24  ;;  %v4484_v24 = vld [vmem:[#allocation12 + $0x188] sm:$0xff]  ;;  %2021 = vmatpush.msrb.mxu0 %v4485_v21 }
 0x1e0   :  { %2153 = vmatpush.msra.mxu3 %v5337_v56  ;;  %v7592_v56 = vld [vmem:[#allocation79_spill] sm:$0xff] }
 0x1e1   :  { %2113 = vmatpush.msra.mxu1 %v5331_v4  ;;  %v7591_v4 = vld [vmem:[#allocation77_spill] sm:$0xff]  ;;  %2022 = vmatpush.msrb.mxu0 %v4487_v36  ;;  %v7630_v36 = vld [vmem:[#allocation71_spill] sm:$0xff] }
 0x1e2   :  { %2154 = vmatpush.msra.mxu3 %v5352_v32  ;;  %v7594_v32 = vld [vmem:[#allocation83_spill] sm:$0xff] }
 0x1e3   :  { %2114 = vmatpush.msra.mxu1 %v5345_v53  ;;  %v7593_v53 = vld [vmem:[#allocation81_spill] sm:$0xff]  ;;  %2023 = vmatpush.msrb.mxu0 %v4489_v49 }
 0x1e4   :  { %2155 = vmatpush.msra.mxu3 %v5370_v60  ;;  %v7596_v60 = vld [vmem:[#allocation87_spill] sm:$0xff] }
 0x1e5   :  { %2115 = vmatpush.msra.mxu1 %v5361_v0  ;;  %v7595_v0 = vld [vmem:[#allocation85_spill] sm:$0xff]  ;;  %2024 = vmatpush.msrb.mxu0 %v4491_v55 }
 0x1e6   :  { %2156 = vmatpush.msra.mxu3 %v5385_v40  ;;  %v7598_v40 = vld [vmem:[#allocation91_spill] sm:$0xff] }
 0x1e7   :  { %2116 = vmatpush.msra.mxu1 %v5377_v25  ;;  %v1888_v25 = vld [vmem:[#allocation12 + $0x218] sm:$0xff]  ;;  %2025 = vmatpush.msrb.mxu0 %v4493_v45 }
 0x1e8   :  { %2157 = vmatpush.msra.mxu3 %v7589_v18  ;;  %2057 = vmatpush.msrb.mxu2 %v1888_v25  ;;  %v4495_v18 = vld [vmem:[#allocation12 + $0x60] sm:$0xff]  ;;  %v7619_v25 = vld [vmem:[#allocation27_spill] sm:$0xff] }
 0x1e9   :  { %2117 = vmatpush.msra.mxu1 %v5393_v3  ;;  %v7599_v3 = vld [vmem:[#allocation93_spill] sm:$0xff]  ;;  %2026 = vmatpush.msrb.mxu0 %v4495_v18  ;;  %v7634_v45 = vld [vmem:[#allocation76_spill] sm:$0xff] }
 0x1ea   :  { %2158 = vmatpush.msra.mxu3 %v7591_v4  ;;  %2058 = vmatpush.msrb.mxu2 %v1882_v31  ;;  %v4497_v4 = vld [vmem:[#allocation12 + $0x30] sm:$0xff] }
 0x1eb   :  { %2118 = vmatpush.msra.mxu1 %v7590_v23  ;;  %v4496_v23 = vld [vmem:[#allocation12 + $0x68] sm:$0xff]  ;;  %2027 = vmatpush.msrb.mxu0 %v4497_v4  ;;  %v7620_v31 = vld [vmem:[#allocation63_spill] sm:$0xff] }
 0x1ec   :  { %2159 = vmatpush.msra.mxu3 %v7593_v53  ;;  %2059 = vmatpush.msrb.mxu2 %v4482_v16  ;;  %v4499_v53 = vld [vmem:[#allocation12] sm:$0xff] }
 0x1ed   :  { %2119 = vmatpush.msra.mxu1 %v7592_v56  ;;  %v4498_v56 = vld [vmem:[#allocation12 + $0x38] sm:$0xff]  ;;  %2028 = vmatpush.msrb.mxu0 %v4499_v53 }
 0x1ee   :  { %2160 = vmatpush.msra.mxu3 %v7595_v0  ;;  %2060 = vmatpush.msrb.mxu2 %v4484_v24  ;;  %v4501_v0 = vld [vmem:[#allocation12 + $0x2e0] sm:$0xff]  ;;  %v7637_v53 = vld [vmem:[#allocation35_spill] sm:$0xff] }
 0x1ef   :  { %2120 = vmatpush.msra.mxu1 %v7594_v32  ;;  %v4500_v32 = vld [vmem:[#allocation12 + $0x8] sm:$0xff]  ;;  %2093 = vmatpush.msra.mxu0 %v4501_v0 }
 0x1f0   :  { %2161 = vmatpush.msra.mxu3 %v7597_v41  ;;  %2061 = vmatpush.msrb.mxu2 %v4486_v34  ;;  %v7612_v41 = vld [vmem:[#allocation55_spill] sm:$0xff] }
 0x1f1   :  { %2121 = vmatpush.msra.mxu1 %v7596_v60  ;;  %v4502_v60 = vld [vmem:[#allocation12 + $0x2e8] sm:$0xff]  ;;  %2094 = vmatpush.msra.mxu0 %v7612_v41  ;;  %v7639_v41 = vld [vmem:[#allocation80_spill] sm:$0xff] }
 0x1f2   :  { %2162 = vmatpush.msra.mxu3 %v7599_v3  ;;  %2062 = vmatpush.msrb.mxu2 %v4488_v13  ;;  %v7614_v3 = vld [vmem:[#allocation58_spill] sm:$0xff]  ;;  %v7631_v13 = vld [vmem:[#allocation72_spill] sm:$0xff] }
 0x1f3   :  { %2122 = vmatpush.msra.mxu1 %v7598_v40  ;;  %v7613_v40 = vld [vmem:[#allocation56_spill] sm:$0xff]  ;;  %2095 = vmatpush.msra.mxu0 %v7614_v3 }
 0x1f4   :  { %2163 = vmatpush.msra.mxu3 %v7601_v26  ;;  %2063 = vmatpush.msrb.mxu2 %v4490_v15  ;;  %v7618_v26 = vld [vmem:[#allocation52_spill] sm:$0xff]  ;;  %v7632_v15 = vld [vmem:[#allocation53_spill] sm:$0xff] }
 0x1f5   :  { %2123 = vmatpush.msra.mxu1 %v7600_v19  ;;  %2096 = vmatpush.msra.mxu0 %v7616_v50  ;;  %v423_v43 = vadd.f32 %v7619_v25, %v7618_v26  ;;  %v7641_v50 = vld [vmem:[#allocation82_spill] sm:$0xff]  ;;  %v7643_v25 = vld [vmem:[#allocation36_spill] sm:$0xff] }
 0x1f6   :  { %2164 = vmatpush.msra.mxu3 %v7603_v47  ;;  %2064 = vmatpush.msrb.mxu2 %v4492_v58  ;;  %v7622_v47 = vld [vmem:[#allocation50_spill] sm:$0xff] }
 0x1f7   :  { %2124 = vmatpush.msra.mxu1 %v7602_v42  ;;  %2097 = vmatpush.msra.mxu0 %v7620_v31  ;;  %v7621_v42 = vld [vmem:[#allocation64_spill] sm:$0xff]  ;;  %v449_v16 = vadd.f32 %v7625_v59, %v423_v43  ;;  %v7633_v58 = vld [vmem:[#allocation74_spill] sm:$0xff]  ;;  %v7646_v59 = vld [vmem:[#allocation65_spill] sm:$0xff] }
 0x1f8   :  { %2165 = vmatpush.msra.mxu3 %v7605_v29  ;;  %2065 = vmatpush.msrb.mxu2 %v4494_v5  ;;  %v7623_v29 = vld [vmem:[#allocation66_spill] sm:$0xff] }
 0x1f9   :  { %2125 = vmatpush.msra.mxu1 %v7604_v17  ;;  %2098 = vmatpush.msra.mxu0 %v7623_v29  ;;  %v7645_v29 = vld [vmem:[#allocation88_spill] sm:$0xff] }
 0x1fa   :  { %2166 = vmatpush.msra.mxu3 %v7607_v37  ;;  %2066 = vmatpush.msrb.mxu2 %v4496_v23  ;;  %v7635_v23 = vld [vmem:[#allocation31_spill] sm:$0xff] }
 0x1fb   :  { %2126 = vmatpush.msra.mxu1 %v7606_v6  ;;  %v7624_v6 = vld [vmem:[#allocation67_spill] sm:$0xff] }
 0x1fc   :  { %2167 = vmatpush.msra.mxu3 %v7609_v30  ;;  %2067 = vmatpush.msrb.mxu2 %v4498_v56  ;;  %v7626_v30 = vld [vmem:[#allocation69_spill] sm:$0xff] }
 0x1fd   :  { %2127 = vmatpush.msra.mxu1 %v7608_v44  ;;  %2099 = vmatpush.msra.mxu0 %v7626_v30  ;;  %v7636_v56 = vld [vmem:[#allocation57_spill] sm:$0xff] }
 0x1fe   :  { %2168 = vmatpush.msra.mxu3 %v7611_v11  ;;  %2068 = vmatpush.msrb.mxu2 %v4500_v32  ;;  %v7629_v11 = vld [vmem:[#allocation29_spill] sm:$0xff]  ;;  %v527_v32 = vadd.f32 %v7637_v53, %v7636_v56 }
 0x1ff   :  { %2128 = vmatpush.msra.mxu1 %v7610_v22  ;;  %v7628_v22 = vld [vmem:[#allocation54_spill] sm:$0xff]  ;;  %2100 = vmatpush.msra.mxu0 %v7630_v36 }
 0x200   :  { %2133 = vmatpush.msra.mxu2 %v4502_v60  ;;  %v475_v21 = vadd.f32 %v7629_v11, %v7628_v22  ;;  %v7638_v60 = vld [vmem:[#allocation78_spill] sm:$0xff]  ;;  %v553_v43 = vadd.f32 %v7643_v25, %v527_v32 }
 0x201   :  { %2101 = vmatpush.msra.mxu0 %v7633_v58  ;;  %v7653_v58 = vld [vmem:[#allocation39_spill] sm:$0xff]  ;;  %v7656_v32 = vld [vmem:[#allocation102_spill] sm:$0xff] }
 0x202   :  { %2134 = vmatpush.msra.mxu2 %v7613_v40  ;;  %v501_v4 = vadd.f32 %v7635_v23, %v475_v21  ;;  %v7640_v40 = vld [vmem:[#allocation60_spill] sm:$0xff] }
 0x203   :  { %2102 = vmatpush.msra.mxu0 %v7638_v60  ;;  %v7655_v23 = vld [vmem:[#allocation100_spill] sm:$0xff] }
 0x204   :  { %2135 = vmatpush.msra.mxu2 %v7615_v46 }
 0x205   :  { %2103 = vmatpush.msra.mxu0 %v7641_v50 }
 0x206   :  { %2136 = vmatpush.msra.mxu2 %v7617_v52  ;;  %v7642_v52 = vld [vmem:[#allocation84_spill] sm:$0xff] }
 0x208   :  { %2137 = vmatpush.msra.mxu2 %v7621_v42 }
 0x20a   :  { %2138 = vmatpush.msra.mxu2 %v7624_v6 }
 0x20c   :  { %2139 = vmatpush.msra.mxu2 %v7627_v48  ;;  %v7648_v48 = vld [vmem:[#allocation90_spill] sm:$0xff] }
 0x20e   :  { %2140 = vmatpush.msra.mxu2 %v7631_v13  ;;  %v7651_v13 = vld [vmem:[#allocation94_spill] sm:$0xff] }
 0x20f   :  { %v1496_v19 = vpop.f32.mrf.mxu0 }
 0x210   :  { %v1497_v17 = vadd.f32 %v1496_v19, %v7622_v47  ;;  %2141 = vmatpush.msra.mxu2 %v7634_v45 }
 0x212   :  { %2142 = vmatpush.msra.mxu2 %v7639_v41 }
 0x214   :  { %2143 = vmatpush.msra.mxu2 %v7642_v52 }
 0x215   :  { %v1536_v24 = vpop.f32.mrf.mxu2 }
 0x216   :  { %v1516_v37 = vpop.f32.mrf.mxu1  ;;  %v1537_v55 = vadd.f32 %v1536_v24, %v7632_v15  ;;  %2144 = vmatpush.msra.mxu2 %v7645_v29  ;;  %v7649_v24 = vld [vmem:[#allocation92_spill] sm:$0xff] }
 0x217   :  { %v1517_v44 = vadd.f32 %v1516_v37, %v1497_v17  ;;  %v7644_v17 = vld [vmem:[#allocation86_spill] sm:$0xff] }
 0x218   :  { %2104 = vmatpush.msra.mxu0 %v7644_v17  ;;  %2145 = vmatpush.msra.mxu2 %v7649_v24 }
 0x219   :  { %v1719_v34 = vadd.f32 %v1517_v44, %v449_v16  ;;  %v1576_v5 = vpop.f32.mrf.mxu0  ;;  %v7647_v16 = vld [vmem:[#allocation37_spill] sm:$0xff] }
 0x21a   :  { %v1577_v3 = vadd.f32 %v1576_v5, %v7640_v40  ;;  %v579_v44 = vadd.f32 %v7647_v16, %v7646_v59  ;;  %2105 = vmatpush.msra.mxu0 %v7648_v48 }
 0x21b   :  { %v4315_v49 = vmul.f32 -1.442695, %v1719_v34  ;;  %v7650_v34 = vld [vmem:[#allocation68_spill] sm:$0xff] }
 0x21c   :  { %v1556_v18 = vpop.f32.mrf.mxu3  ;;  %2106 = vmatpush.msra.mxu0 %v7651_v13  ;;  %v605_v45 = vadd.f32 %v7653_v58, %v579_v44  ;;  %v7658_v13 = vld [vmem:[#allocation43_spill] sm:$0xff] }
 0x21d   :  { %4370 = vpow2.f32 %v4315_v49  ;;  %v1557_v0 = vadd.f32 %v1556_v18, %v1537_v55  ;;  %v7652_v49 = vld [vmem:[#allocation96_spill] sm:$0xff]  ;;  %v7654_v18 = vld [vmem:[#allocation98_spill] sm:$0xff] }
 0x21e   :  { %2146 = vmatpush.msra.mxu2 %v7652_v49  ;;  %2107 = vmatpush.msra.mxu0 %v7654_v18  ;;  %v631_v49 = vadd.f32 %v7658_v13, %v5542_v38 }
 0x21f   :  { %v1720_v46 = vadd.f32 %v1557_v0, %v501_v4  ;;  %v1616_v6 = vpop.f32.mrf.mxu2  ;;  %v7657_v0 = vld [vmem:[#allocation104_spill] sm:$0xff] }
 0x220   :  { %v1596_v19 = vpop.f32.mrf.mxu1  ;;  %v1617_v36 = vadd.f32 %v1616_v6, %v7650_v34  ;;  %2147 = vmatpush.msra.mxu2 %v7655_v23  ;;  %2108 = vmatpush.msra.mxu0 %v7656_v32 }
 0x221   :  { %v4316_v31 = vmul.f32 -1.442695, %v1720_v46  ;;  %v1597_v42 = vadd.f32 %v1596_v19, %v1577_v3 }
 0x222   :  { %2148 = vmatpush.msra.mxu2 %v7657_v0  ;;  %v7659_v0 = vld [vmem:[#allocation44_spill] sm:$0xff] }
 0x223   :  { %v4371_v37 = vpop.eup %4370  ;;  %4372 = vpow2.f32 %v4316_v31  ;;  %v1759_v30 = vadd.f32 %v1597_v42, %v553_v43 }
 0x224   :  { %v1727_v11 = vadd.f32 1.0, %v4371_v37 }
 0x225   :  { %v4317_v21 = vmul.f32 -1.442695, %v1759_v30 }
 0x226   :  { %4374 = vrcp.f32 %v1727_v11  ;;  %v1636_v55 = vpop.f32.mrf.mxu3  ;;  %v1740_v17 = vand.u32 2147483648, %v1727_v11  ;;  %vm1734_vm1 = vweird.f32 %v1727_v11  ;;  %v1738_v37 = vand.u32 2147483647, %v1727_v11 }
 0x227   :  { %4376 = vpow2.f32 %v4317_v21  ;;  %v1637_v5 = vadd.f32 %v1636_v55, %v1617_v36 }
 0x228   :  { %v1741_v21 = vor.u32 1.1754944e-38, %v1740_v17  ;;  %vm1739_vm3 = vcmp.eq.f32.partialorder %v1738_v37, 8.507059e+37 }
 0x229   :  { %v4373_v4 = vpop.eup %4372  ;;  %v1760_v53 = vadd.f32 %v1637_v5, %v605_v45 }
 0x22a   :  { %v1728_v60 = vadd.f32 1.0, %v4373_v4 }
 0x22b   :  { %v4318_v41 = vmul.f32 -1.442695, %v1760_v53 }
 0x22c   :  { %v4375_v3 = vpop.eup %4374  ;;  %4378 = vrcp.f32 %v1728_v60  ;;  %v1755_v18 = vand.u32 2147483648, %v1728_v60  ;;  %vm1749_vm5 = vweird.f32 %v1728_v60  ;;  %v1753_v4 = vand.u32 2147483647, %v1728_v60 }
 0x22d   :  { %v4377_v46 = vpop.eup %4376  ;;  %4380 = vpow2.f32 %v4318_v41  ;;  %v1730_v50 = vmul.f32 %v4375_v3, %v1727_v11  ;;  %vm1735_vm0 = vweird.f32 %v4375_v3  ;;  %v657_v41 = vadd.f32 %v7659_v0, %v631_v49 }
 0x22e   :  { %v5904_v52 = vadd.f32 1.0, %v4377_v46  ;;  %vm1736_vm2 = vmor %vm1734_vm1, %vm1735_vm0  ;;  %vm1754_vm7 = vcmp.eq.f32.partialorder %v1753_v4, 8.507059e+37 }
 0x22f   :  { %v1731_v19 = vsub.f32 1.0, %v1730_v50 }
 0x230   :  { %4382 = vrcp.f32 %v5904_v52  ;;  %vm1774_vm9 = vweird.f32 %v5904_v52  ;;  %v1778_v49 = vand.u32 2147483647, %v5904_v52 }
 0x231   :  { %v1732_v25 = vmul.f32 %v4375_v3, %v1731_v19 }
 0x232   :  { %v4379_v43 = vpop.eup %4378  ;;  %vm1779_vm12 = vcmp.eq.f32.partialorder %v1778_v49, 8.507059e+37  ;;  %v7692_v49 = vld [vmem:[#allocation142_spill] sm:$0xff] }
 0x233   :  { %v4381_v31 = vpop.eup %4380  ;;  %v1733_v42 = vadd.f32 %v4375_v3, %v1732_v25  ;;  %v1745_v29 = vmul.f32 %v4379_v43, %v1728_v60  ;;  %v1656_v16 = vpop.f32.mrf.mxu0  ;;  %vm1750_vm4 = vweird.f32 %v4379_v43  ;;  %v1756_v25 = vor.u32 1.1754944e-38, %v1755_v18 }
 0x234   :  { %v5907_v6 = vadd.f32 1.0, %v4381_v31  ;;  %v1657_v55 = vadd.f32 %v1656_v16, %v5545_v14  ;;  %vm1751_vm6 = vmor %vm1749_vm5, %vm1750_vm4  ;;  %v7660_v31 = vld [vmem:[#allocation45_spill] sm:$0xff] }
 0x235   :  { %v1746_v44 = vsub.f32 1.0, %v1745_v29  ;;  %v1737_v48 = vsel %vm1736_vm2, %v4375_v3, %v1733_v42  ;;  %v683_v42 = vadd.f32 %v7660_v31, %v5569_v39  ;;  %v7678_v31 = vld [vmem:[#allocation128_spill] sm:$0xff] }
 0x236   :  { %v4383_v30 = vpop.eup %4382  ;;  %4384 = vrcp.f32 %v5907_v6  ;;  %v1742_v45 = vsel %vm1739_vm3, %v1741_v21, %v1737_v48  ;;  %v1780_v21 = vand.u32 2147483648, %v5904_v52  ;;  %vm1789_vm13 = vweird.f32 %v5907_v6 }
 0x237   :  { %v1770_v24 = vmul.f32 %v4383_v30, %v5904_v52  ;;  %v1747_v36 = vmul.f32 %v4379_v43, %v1746_v44  ;;  %vm1775_vm8 = vweird.f32 %v4383_v30  ;;  %v1793_v0 = vand.u32 2147483647, %v5907_v6 }
 0x238   :  { %vm1776_vm10 = vmor %vm1774_vm9, %vm1775_vm8 }
 0x239   :  { %v1771_v58 = vsub.f32 1.0, %v1770_v24  ;;  %v1748_v5 = vadd.f32 %v4379_v43, %v1747_v36  ;;  %v1696_v53 = vpop.f32.mrf.mxu2  ;;  %v7661_v24 = vld [vmem:[#allocation47_spill] sm:$0xff]  ;;  %vm1794_vm15 = vcmp.eq.f32.partialorder %v1793_v0, 8.507059e+37  ;;  %v7702_v0 = vld [vmem:[#allocation152_spill] sm:$0xff] }
 0x23a   :  { %v1676_v11 = vpop.f32.mrf.mxu1  ;;  %v1697_v29 = vadd.f32 %v1696_v53, %v5572_v20 }
 0x23b   :  { %v1677_v23 = vadd.f32 %v1676_v11, %v1657_v55  ;;  %v1752_v46 = vsel %vm1751_vm6, %v4379_v43, %v1748_v5  ;;  %v1772_v50 = vmul.f32 %v4383_v30, %v1771_v58  ;;  %v709_v43 = vadd.f32 %v7661_v24, %v683_v42  ;;  %v7679_v42 = vld [vmem:[#allocation129_spill] sm:$0xff] }
 0x23c   :  { %v4385_v32 = vpop.eup %4384  ;;  %v1757_v16 = vsel %vm1754_vm7, %v1756_v25, %v1752_v46  ;;  %v7677_v25 = vld [vmem:[#allocation127_spill] sm:$0xff]  ;;  %v7687_v24 = vld [vmem:[#allocation137_spill] sm:$0xff] }
 0x23d   :  { %v1799_v3 = vmul.f32 %v1742_v45, %v1677_v23  ;;  %v1785_v19 = vmul.f32 %v4385_v32, %v5907_v6  ;;  %v1773_v48 = vadd.f32 %v4383_v30, %v1772_v50  ;;  %v1781_v45 = vor.u32 1.1754944e-38, %v1780_v21  ;;  %v7689_v21 = vld [vmem:[#allocation139_spill] sm:$0xff] }
 0x23e   :  { %vm1790_vm11 = vweird.f32 %v4385_v32  ;;  %v1795_v23 = vand.u32 2147483648, %v5907_v6 }
 0x23f   :  { %v1801_v17 = vadd.f32 %v1799_v3, %v657_v41  ;;  %v1786_v37 = vsub.f32 1.0, %v1785_v19  ;;  %v1777_v58 = vsel %vm1776_vm10, %v4383_v30, %v1773_v48  ;;  %vm1791_vm14 = vmor %vm1789_vm13, %vm1790_vm11  ;;  %v7686_v48 = vld [vmem:[#allocation136_spill] sm:$0xff] }
 0x240   :  { %v1782_v4 = vsel %vm1779_vm12, %v1781_v45, %v1777_v58  ;;  %v1796_v3 = vor.u32 1.1754944e-38, %v1795_v23  ;;  %v7694_v58 = vld [vmem:[#allocation144_spill] sm:$0xff]  ;;  %v7696_v45 = vld [vmem:[#allocation146_spill] sm:$0xff]  ;;  %v7699_v23 = vld [vmem:[#allocation149_spill] sm:$0xff] }
 0x241   :  { %v1716_v60 = vpop.f32.mrf.mxu3  ;;  %4386 = vtanh.f32 %v1801_v17  ;;  %v1787_v13 = vmul.f32 %v4385_v32, %v1786_v37  ;;  %v7680_v17 = vld [vmem:[#allocation130_spill] sm:$0xff]  ;;  %v7682_v37 = vld [vmem:[#allocation132_spill] sm:$0xff] }
 0x242   :  { %v1717_v44 = vadd.f32 %v1716_v60, %v1697_v29  ;;  %v7681_v29 = vld [vmem:[#allocation131_spill] sm:$0xff]  ;;  %v7683_v60 = vld [vmem:[#allocation133_spill] sm:$0xff] }
 0x243   :  { %v1788_v18 = vadd.f32 %v4385_v32, %v1787_v13  ;;  %v7691_v13 = vld [vmem:[#allocation141_spill] sm:$0xff] }
 0x244   :  { %v1800_v36 = vmul.f32 %v1757_v16, %v1717_v44  ;;  %v7684_v16 = vld [vmem:[#allocation134_spill] sm:$0xff]  ;;  %v7685_v44 = vld [vmem:[#allocation135_spill] sm:$0xff] }
 0x245   :  { %v1792_v30 = vsel %vm1791_vm14, %v4385_v32, %v1788_v18  ;;  %v7676_v32 = vld [vmem:[#allocation126_spill] sm:$0xff]  ;;  %v7698_v18 = vld [vmem:[#allocation148_spill] sm:$0xff] }
 0x246   :  { %v1802_v55 = vadd.f32 %v1800_v36, %v709_v43  ;;  %v1797_v50 = vsel %vm1794_vm15, %v1796_v3, %v1792_v30  ;;  %v7688_v43 = vld [vmem:[#allocation138_spill] sm:$0xff]  ;;  %v7690_v36 = vld [vmem:[#allocation140_spill] sm:$0xff]  ;;  %v7703_v30 = vld [vmem:[#allocation153_spill] sm:$0xff] }
 0x247   :  { %v4387_v11 = vpop.eup %4386  ;;  %v2447_v3 = vld [vmem:[#allocation16 + $0x2d8] sm:$0xff] }
 0x248   :  { %4388 = vtanh.f32 %v1802_v55  ;;  %v1805_v5 = vsub.f32 %v5600_v1, %v4387_v11  ;;  %v7693_v55 = vld [vmem:[#allocation143_spill] sm:$0xff] }
 0x24a   :  { %v1807_v53 = vmul.f32 %v1805_v5, %v1782_v4  ;;  %v7697_v5 = vld [vmem:[#allocation147_spill] sm:$0xff]  ;;  %v7700_v4 = vld [vmem:[#allocation150_spill] sm:$0xff] }
 0x24c   :  { %v5927_v52 = vadd.f32 %v4387_v11, %v1807_v53  ;;  %v7695_v11 = vld [vmem:[#allocation145_spill] sm:$0xff]  ;;  %v7701_v53 = vld [vmem:[#allocation151_spill] sm:$0xff] }
 0x24e   :  { %v4389_v41 = vpop.eup %4388  ;;  %2029 = vmatmul.f32.vlgmr.msrb.gmra.mxu0 %v5927_v52  ;;  %2069 = vmatmul.f32.vlgmr.msrb.gmra.mxu2 %v5927_v52 }
 0x24f   :  { %v1806_v46 = vsub.f32 %v5621_v51, %v4389_v41  ;;  %2173 = vmatpush.msrb.mxu0 %v5603_v2  ;;  %2213 = vmatpush.msrb.mxu2 %v5605_v63  ;;  %v7662_v2 = vld [vmem:[#allocation112_spill] sm:$0xff]  ;;  %v7663_v63 = vld [vmem:[#allocation113_spill] sm:$0xff] }
 0x251   :  { %v1808_v19 = vmul.f32 %v1806_v46, %v1797_v50  ;;  %2174 = vmatpush.msrb.mxu0 %v5609_v8  ;;  %2214 = vmatpush.msrb.mxu2 %v5611_v35  ;;  %v7664_v8 = vld [vmem:[#allocation114_spill] sm:$0xff]  ;;  %v7665_v35 = vld [vmem:[#allocation115_spill] sm:$0xff] }
 0x252   :  { %v7704_v46 = vld [vmem:[#allocation154_spill] sm:$0xff]  ;;  %v7705_v50 = vld [vmem:[#allocation155_spill] sm:$0xff] }
 0x253   :  { %v5936_v6 = vadd.f32 %v4389_v41, %v1808_v19  ;;  %2175 = vmatpush.msrb.mxu0 %v5615_v28  ;;  %2215 = vmatpush.msrb.mxu2 %v5617_v12  ;;  %v7666_v28 = vld [vmem:[#allocation116_spill] sm:$0xff]  ;;  %v7667_v12 = vld [vmem:[#allocation117_spill] sm:$0xff]  ;;  %v2440_v19 = vld [vmem:[#allocation16 + $0x2a0] sm:$0xff] }
 0x254   :  { %v2446_v41 = vld [vmem:[#allocation16 + $0x2d0] sm:$0xff] }
 0x255   :  { %2049 = vmatmul.f32.vlgmr.msrb.gmra.mxu1 %v5936_v6  ;;  %2089 = vmatmul.f32.vlgmr.msrb.gmra.mxu3 %v5936_v6 }
 0x256   :  { %2176 = vmatpush.msrb.mxu0 %v5623_v9  ;;  %2193 = vmatpush.msrb.mxu1 %v5625_v10  ;;  %v7668_v9 = vld [vmem:[#allocation118_spill] sm:$0xff]  ;;  %v7669_v10 = vld [vmem:[#allocation119_spill] sm:$0xff] }
 0x257   :  { %2216 = vmatpush.msrb.mxu2 %v5629_v33  ;;  %2233 = vmatpush.msrb.mxu3 %v5631_v62  ;;  %v7670_v33 = vld [vmem:[#allocation120_spill] sm:$0xff]  ;;  %v7671_v62 = vld [vmem:[#allocation121_spill] sm:$0xff] }
 0x258   :  { %2109 = vmatmul.f32.vlgmr.msra.gmra.mxu0 %v5927_v52  ;;  %2149 = vmatmul.f32.vlgmr.msra.gmra.mxu2 %v5927_v52 }
 0x259   :  { %2177 = vmatpush.msrb.mxu0 %v5637_v61  ;;  %2194 = vmatpush.msrb.mxu1 %v5639_v7  ;;  %v7672_v61 = vld [vmem:[#allocation122_spill] sm:$0xff]  ;;  %v7673_v7 = vld [vmem:[#allocation123_spill] sm:$0xff] }
 0x25a   :  { %2217 = vmatpush.msrb.mxu2 %v5643_v54  ;;  %2234 = vmatpush.msrb.mxu3 %v5645_v27  ;;  %v7674_v54 = vld [vmem:[#allocation124_spill] sm:$0xff]  ;;  %v7675_v27 = vld [vmem:[#allocation125_spill] sm:$0xff] }
 0x25b   :  { %2178 = vmatpush.msrb.mxu0 %v7662_v2  ;;  %2195 = vmatpush.msrb.mxu1 %v7663_v63  ;;  %v2441_v2 = vld [vmem:[#allocation16 + $0x2a8] sm:$0xff] }
 0x25c   :  { %2218 = vmatpush.msrb.mxu2 %v7664_v8  ;;  %2235 = vmatpush.msrb.mxu3 %v7665_v35  ;;  %v7706_v63 = vld [vmem:[#allocation156_spill] sm:$0xff]  ;;  %v2435_v35 = vld [vmem:[#allocation16 + $0x278] sm:$0xff] }
 0x25d   :  { %2179 = vmatpush.msrb.mxu0 %v7666_v28  ;;  %2196 = vmatpush.msrb.mxu1 %v7667_v12  ;;  %v2434_v8 = vld [vmem:[#allocation16 + $0x270] sm:$0xff]  ;;  %v1922_v12 = vld [vmem:[#allocation12 + $0x328] sm:$0xff] }
 0x25e   :  { %2219 = vmatpush.msrb.mxu2 %v7668_v9  ;;  %2236 = vmatpush.msrb.mxu3 %v7669_v10  ;;  %v1921_v28 = vld [vmem:[#allocation12 + $0x320] sm:$0xff]  ;;  %v7708_v10 = vld [vmem:[#allocation158_spill] sm:$0xff] }
 0x25f   :  { %2129 = vmatmul.f32.vlgmr.msra.gmra.mxu1 %v5936_v6  ;;  %2169 = vmatmul.f32.vlgmr.msra.gmra.mxu3 %v5936_v6  ;;  %v7707_v9 = vld [vmem:[#allocation157_spill] sm:$0xff] }
 0x260   :  { %2180 = vmatpush.msrb.mxu0 %v7670_v33  ;;  %2197 = vmatpush.msrb.mxu1 %v7671_v62  ;;  %v2428_v33 = vld [vmem:[#allocation16 + $0x240] sm:$0xff]  ;;  %v2542_v62 = vld [vmem:[#allocation16 + $0x5d0] sm:$0xff] }
 0x261   :  { %2220 = vmatpush.msrb.mxu2 %v7672_v61  ;;  %2237 = vmatpush.msrb.mxu3 %v7673_v7  ;;  %v2429_v61 = vld [vmem:[#allocation16 + $0x248] sm:$0xff]  ;;  %v2422_v7 = vld [vmem:[#allocation16 + $0x210] sm:$0xff] }
 0x262   :  { %2181 = vmatpush.msrb.mxu0 %v7674_v54  ;;  %2198 = vmatpush.msrb.mxu1 %v7675_v27  ;;  %v2536_v54 = vld [vmem:[#allocation16 + $0x5a0] sm:$0xff]  ;;  %v2423_v27 = vld [vmem:[#allocation16 + $0x218] sm:$0xff] }
 0x263   :  { %2221 = vmatpush.msrb.mxu2 %v7676_v32  ;;  %2238 = vmatpush.msrb.mxu3 %v7677_v25  ;;  %v2537_v32 = vld [vmem:[#allocation16 + $0x5a8] sm:$0xff]  ;;  %v2416_v25 = vld [vmem:[#allocation16 + $0x1e0] sm:$0xff] }
 0x264   :  { %2182 = vmatpush.msrb.mxu0 %v7678_v31  ;;  %2199 = vmatpush.msrb.mxu1 %v7679_v42  ;;  %v2530_v31 = vld [vmem:[#allocation16 + $0x570] sm:$0xff]  ;;  %v2417_v42 = vld [vmem:[#allocation16 + $0x1e8] sm:$0xff] }
 0x265   :  { %2222 = vmatpush.msrb.mxu2 %v7680_v17  ;;  %2239 = vmatpush.msrb.mxu3 %v7681_v29  ;;  %v2531_v17 = vld [vmem:[#allocation16 + $0x578] sm:$0xff]  ;;  %v2410_v29 = vld [vmem:[#allocation16 + $0x1b0] sm:$0xff] }
 0x266   :  { %2183 = vmatpush.msrb.mxu0 %v7682_v37  ;;  %2200 = vmatpush.msrb.mxu1 %v7683_v60  ;;  %v2524_v37 = vld [vmem:[#allocation16 + $0x540] sm:$0xff]  ;;  %v2411_v60 = vld [vmem:[#allocation16 + $0x1b8] sm:$0xff] }
 0x267   :  { %2223 = vmatpush.msrb.mxu2 %v7684_v16  ;;  %2240 = vmatpush.msrb.mxu3 %v7685_v44  ;;  %v2525_v16 = vld [vmem:[#allocation16 + $0x548] sm:$0xff]  ;;  %v2404_v44 = vld [vmem:[#allocation16 + $0x180] sm:$0xff] }
 0x268   :  { %2184 = vmatpush.msrb.mxu0 %v7686_v48  ;;  %2201 = vmatpush.msrb.mxu1 %v7687_v24  ;;  %v2518_v48 = vld [vmem:[#allocation16 + $0x510] sm:$0xff]  ;;  %v2405_v24 = vld [vmem:[#allocation16 + $0x188] sm:$0xff] }
 0x269   :  { %2224 = vmatpush.msrb.mxu2 %v7688_v43  ;;  %2241 = vmatpush.msrb.mxu3 %v7689_v21  ;;  %v2519_v43 = vld [vmem:[#allocation16 + $0x518] sm:$0xff]  ;;  %v2398_v21 = vld [vmem:[#allocation16 + $0x150] sm:$0xff] }
 0x26a   :  { %2185 = vmatpush.msrb.mxu0 %v7690_v36  ;;  %2202 = vmatpush.msrb.mxu1 %v7691_v13  ;;  %v2512_v36 = vld [vmem:[#allocation16 + $0x4e0] sm:$0xff]  ;;  %v2399_v13 = vld [vmem:[#allocation16 + $0x158] sm:$0xff] }
 0x26b   :  { %2225 = vmatpush.msrb.mxu2 %v7692_v49  ;;  %2242 = vmatpush.msrb.mxu3 %v7693_v55  ;;  %v2513_v49 = vld [vmem:[#allocation16 + $0x4e8] sm:$0xff]  ;;  %v2392_v55 = vld [vmem:[#allocation16 + $0x120] sm:$0xff] }
 0x26c   :  { %2186 = vmatpush.msrb.mxu0 %v7694_v58  ;;  %2203 = vmatpush.msrb.mxu1 %v7695_v11  ;;  %v2506_v58 = vld [vmem:[#allocation16 + $0x4b0] sm:$0xff]  ;;  %v2393_v11 = vld [vmem:[#allocation16 + $0x128] sm:$0xff] }
 0x26d   :  { %2226 = vmatpush.msrb.mxu2 %v7696_v45  ;;  %2243 = vmatpush.msrb.mxu3 %v7697_v5  ;;  %v2507_v45 = vld [vmem:[#allocation16 + $0x4b8] sm:$0xff]  ;;  %v2386_v5 = vld [vmem:[#allocation16 + $0xf0] sm:$0xff] }
 0x26e   :  { %2187 = vmatpush.msrb.mxu0 %v7698_v18  ;;  %2204 = vmatpush.msrb.mxu1 %v7699_v23  ;;  %v2500_v18 = vld [vmem:[#allocation16 + $0x480] sm:$0xff]  ;;  %v2387_v23 = vld [vmem:[#allocation16 + $0xf8] sm:$0xff] }
 0x26f   :  { %2227 = vmatpush.msrb.mxu2 %v7700_v4  ;;  %2244 = vmatpush.msrb.mxu3 %v7701_v53  ;;  %v2501_v4 = vld [vmem:[#allocation16 + $0x488] sm:$0xff]  ;;  %v2380_v53 = vld [vmem:[#allocation16 + $0xc0] sm:$0xff] }
 0x270   :  { %2188 = vmatpush.msrb.mxu0 %v7702_v0  ;;  %2205 = vmatpush.msrb.mxu1 %v7703_v30  ;;  %v2494_v0 = vld [vmem:[#allocation16 + $0x450] sm:$0xff]  ;;  %v2381_v30 = vld [vmem:[#allocation16 + $0xc8] sm:$0xff] }
 0x271   :  { %2228 = vmatpush.msrb.mxu2 %v7704_v46  ;;  %2245 = vmatpush.msrb.mxu3 %v7705_v50  ;;  %v2488_v46 = vld [vmem:[#allocation16 + $0x420] sm:$0xff]  ;;  %v2375_v50 = vld [vmem:[#allocation16 + $0x98] sm:$0xff] }
 0x272   :  { %2189 = vmatmul.f32.vlgmr.msrb.gmra.mxu0 %v5927_v52  ;;  %2229 = vmatmul.f32.vlgmr.msrb.gmra.mxu2 %v5927_v52 }
 0x273   :  { %2562 = vmatpush.msra.mxu0 %v2446_v41  ;;  %2614 = vmatpush.msra.mxu2 %v2447_v3  ;;  %v2495_v41 = vld [vmem:[#allocation16 + $0x458] sm:$0xff]  ;;  %v2374_v3 = vld [vmem:[#allocation16 + $0x90] sm:$0xff] }
 0x274   :  { %2206 = vmatpush.msrb.mxu1 %v5785_v57  ;;  %2246 = vmatpush.msrb.mxu3 %v7706_v63  ;;  %v2543_v57 = vld [vmem:[#allocation16 + $0x5d8] sm:$0xff]  ;;  %v2482_v63 = vld [vmem:[#allocation16 + $0x3f0] sm:$0xff] }
 0x275   :  { %2563 = vmatpush.msra.mxu0 %v2440_v19  ;;  %2615 = vmatpush.msra.mxu2 %v2441_v2  ;;  %v2489_v19 = vld [vmem:[#allocation16 + $0x428] sm:$0xff]  ;;  %v2368_v2 = vld [vmem:[#allocation16 + $0x60] sm:$0xff] }
 0x276   :  { %2207 = vmatpush.msrb.mxu1 %v7707_v9  ;;  %2247 = vmatpush.msrb.mxu3 %v7708_v10  ;;  %v2363_v9 = vld [vmem:[#allocation16 + $0x38] sm:$0xff]  ;;  %v2477_v10 = vld [vmem:[#allocation16 + $0x3c8] sm:$0xff] }
 0x277   :  { %2564 = vmatpush.msra.mxu0 %v2434_v8  ;;  %2616 = vmatpush.msra.mxu2 %v2435_v35  ;;  %v2369_v8 = vld [vmem:[#allocation16 + $0x68] sm:$0xff]  ;;  %v2483_v35 = vld [vmem:[#allocation16 + $0x3f8] sm:$0xff] }
 0x278   :  { %2208 = vmatpush.msrb.mxu1 %v1921_v28  ;;  %2248 = vmatpush.msrb.mxu3 %v1922_v12  ;;  %v2362_v28 = vld [vmem:[#allocation16 + $0x30] sm:$0xff]  ;;  %v2476_v12 = vld [vmem:[#allocation16 + $0x3c0] sm:$0xff] }
 0x279   :  { %2209 = vmatmul.f32.vlgmr.msrb.gmra.mxu1 %v5936_v6  ;;  %2249 = vmatmul.f32.vlgmr.msrb.gmra.mxu3 %v5936_v6 }
 0x27a   :  { %2565 = vmatpush.msra.mxu0 %v2428_v33  ;;  %2588 = vmatpush.msra.mxu1 %v2542_v62  ;;  %v2356_v33 = vld [vmem:[#allocation16] sm:$0xff]  ;;  %v2470_v62 = vld [vmem:[#allocation16 + $0x390] sm:$0xff] }
 0x27b   :  { %2617 = vmatpush.msra.mxu2 %v2429_v61  ;;  %2640 = vmatpush.msra.mxu3 %v2543_v57  ;;  %v2357_v61 = vld [vmem:[#allocation16 + $0x8] sm:$0xff]  ;;  %v2471_v57 = vld [vmem:[#allocation16 + $0x398] sm:$0xff] }
 0x27c   :  { %2566 = vmatpush.msra.mxu0 %v2422_v7  ;;  %2589 = vmatpush.msra.mxu1 %v2536_v54  ;;  %v2464_v7 = vld [vmem:[#allocation16 + $0x360] sm:$0xff]  ;;  %v2465_v54 = vld [vmem:[#allocation16 + $0x368] sm:$0xff] }
 0x27d   :  { %2618 = vmatpush.msra.mxu2 %v2423_v27  ;;  %2641 = vmatpush.msra.mxu3 %v2537_v32  ;;  %v2458_v27 = vld [vmem:[#allocation16 + $0x330] sm:$0xff]  ;;  %v2459_v32 = vld [vmem:[#allocation16 + $0x338] sm:$0xff] }
 0x27e   :  { %2567 = vmatpush.msra.mxu0 %v2416_v25  ;;  %2590 = vmatpush.msra.mxu1 %v2530_v31  ;;  %v2452_v25 = vld [vmem:[#allocation16 + $0x300] sm:$0xff]  ;;  %v2453_v31 = vld [vmem:[#allocation16 + $0x308] sm:$0xff] }
 0x27f   :  { %2619 = vmatpush.msra.mxu2 %v2417_v42  ;;  %2642 = vmatpush.msra.mxu3 %v2531_v17  ;;  %v2448_v42 = vld [vmem:[#allocation16 + $0x2e0] sm:$0xff]  ;;  %v2449_v17 = vld [vmem:[#allocation16 + $0x2e8] sm:$0xff] }
 0x280   :  { %2568 = vmatpush.msra.mxu0 %v2410_v29  ;;  %2591 = vmatpush.msra.mxu1 %v2524_v37  ;;  %v2442_v29 = vld [vmem:[#allocation16 + $0x2b0] sm:$0xff]  ;;  %v2544_v37 = vld [vmem:[#allocation16 + $0x5e0] sm:$0xff] }
 0x281   :  { %2620 = vmatpush.msra.mxu2 %v2411_v60  ;;  %2643 = vmatpush.msra.mxu3 %v2525_v16  ;;  %v2443_v60 = vld [vmem:[#allocation16 + $0x2b8] sm:$0xff]  ;;  %v2545_v16 = vld [vmem:[#allocation16 + $0x5e8] sm:$0xff] }
 0x282   :  { %2569 = vmatpush.msra.mxu0 %v2404_v44  ;;  %2592 = vmatpush.msra.mxu1 %v2518_v48  ;;  %v2436_v44 = vld [vmem:[#allocation16 + $0x280] sm:$0xff]  ;;  %v2538_v48 = vld [vmem:[#allocation16 + $0x5b0] sm:$0xff] }
 0x283   :  { %2621 = vmatpush.msra.mxu2 %v2405_v24  ;;  %2644 = vmatpush.msra.mxu3 %v2519_v43  ;;  %v2437_v24 = vld [vmem:[#allocation16 + $0x288] sm:$0xff]  ;;  %v2539_v43 = vld [vmem:[#allocation16 + $0x5b8] sm:$0xff] }
 0x284   :  { %2570 = vmatpush.msra.mxu0 %v2398_v21  ;;  %2593 = vmatpush.msra.mxu1 %v2512_v36  ;;  %v2430_v21 = vld [vmem:[#allocation16 + $0x250] sm:$0xff]  ;;  %v2532_v36 = vld [vmem:[#allocation16 + $0x580] sm:$0xff] }
 0x285   :  { %2622 = vmatpush.msra.mxu2 %v2399_v13  ;;  %2645 = vmatpush.msra.mxu3 %v2513_v49  ;;  %v2431_v13 = vld [vmem:[#allocation16 + $0x258] sm:$0xff]  ;;  %v2533_v49 = vld [vmem:[#allocation16 + $0x588] sm:$0xff] }
 0x286   :  { %2571 = vmatpush.msra.mxu0 %v2392_v55  ;;  %2594 = vmatpush.msra.mxu1 %v2506_v58  ;;  %v2424_v55 = vld [vmem:[#allocation16 + $0x220] sm:$0xff]  ;;  %v2526_v58 = vld [vmem:[#allocation16 + $0x550] sm:$0xff] }
 0x287   :  { %2623 = vmatpush.msra.mxu2 %v2393_v11  ;;  %2646 = vmatpush.msra.mxu3 %v2507_v45  ;;  %v2425_v11 = vld [vmem:[#allocation16 + $0x228] sm:$0xff]  ;;  %v2527_v45 = vld [vmem:[#allocation16 + $0x558] sm:$0xff] }
 0x288   :  { %2572 = vmatpush.msra.mxu0 %v2386_v5  ;;  %2595 = vmatpush.msra.mxu1 %v2500_v18  ;;  %v2418_v5 = vld [vmem:[#allocation16 + $0x1f0] sm:$0xff]  ;;  %v2520_v18 = vld [vmem:[#allocation16 + $0x520] sm:$0xff] }
 0x289   :  { %2624 = vmatpush.msra.mxu2 %v2387_v23  ;;  %2647 = vmatpush.msra.mxu3 %v2501_v4  ;;  %v2419_v23 = vld [vmem:[#allocation16 + $0x1f8] sm:$0xff]  ;;  %v2521_v4 = vld [vmem:[#allocation16 + $0x528] sm:$0xff] }
 0x28a   :  { %2573 = vmatpush.msra.mxu0 %v2380_v53  ;;  %2596 = vmatpush.msra.mxu1 %v2494_v0  ;;  %v2412_v53 = vld [vmem:[#allocation16 + $0x1c0] sm:$0xff]  ;;  %v2514_v0 = vld [vmem:[#allocation16 + $0x4f0] sm:$0xff] }
 0x28b   :  { %2625 = vmatpush.msra.mxu2 %v2381_v30  ;;  %2648 = vmatpush.msra.mxu3 %v2495_v41  ;;  %v2413_v30 = vld [vmem:[#allocation16 + $0x1c8] sm:$0xff]  ;;  %v2515_v41 = vld [vmem:[#allocation16 + $0x4f8] sm:$0xff] }
 0x28c   :  { %2574 = vmatpush.msra.mxu0 %v2374_v3  ;;  %2597 = vmatpush.msra.mxu1 %v2488_v46  ;;  %v2406_v3 = vld [vmem:[#allocation16 + $0x190] sm:$0xff]  ;;  %v2508_v46 = vld [vmem:[#allocation16 + $0x4c0] sm:$0xff] }
 0x28d   :  { %2626 = vmatpush.msra.mxu2 %v2375_v50  ;;  %2649 = vmatpush.msra.mxu3 %v2489_v19  ;;  %v2407_v50 = vld [vmem:[#allocation16 + $0x198] sm:$0xff]  ;;  %v2509_v19 = vld [vmem:[#allocation16 + $0x4c8] sm:$0xff] }
 0x28e   :  { %2575 = vmatpush.msra.mxu0 %v2368_v2  ;;  %2598 = vmatpush.msra.mxu1 %v2482_v63  ;;  %v2400_v2 = vld [vmem:[#allocation16 + $0x160] sm:$0xff]  ;;  %v2502_v63 = vld [vmem:[#allocation16 + $0x490] sm:$0xff] }
 0x28f   :  { %2627 = vmatpush.msra.mxu2 %v2369_v8  ;;  %2650 = vmatpush.msra.mxu3 %v2483_v35  ;;  %v2401_v8 = vld [vmem:[#allocation16 + $0x168] sm:$0xff]  ;;  %v2503_v35 = vld [vmem:[#allocation16 + $0x498] sm:$0xff] }
 0x290   :  { %2576 = vmatpush.msra.mxu0 %v2362_v28  ;;  %2599 = vmatpush.msra.mxu1 %v2476_v12  ;;  %v2394_v28 = vld [vmem:[#allocation16 + $0x130] sm:$0xff]  ;;  %v2496_v12 = vld [vmem:[#allocation16 + $0x460] sm:$0xff] }
 0x291   :  { %2628 = vmatpush.msra.mxu2 %v2363_v9  ;;  %2651 = vmatpush.msra.mxu3 %v2477_v10  ;;  %v2395_v9 = vld [vmem:[#allocation16 + $0x138] sm:$0xff]  ;;  %v2497_v10 = vld [vmem:[#allocation16 + $0x468] sm:$0xff] }
 0x292   :  { %2577 = vmatpush.msra.mxu0 %v2356_v33  ;;  %2600 = vmatpush.msra.mxu1 %v2470_v62  ;;  %v2388_v33 = vld [vmem:[#allocation16 + $0x100] sm:$0xff]  ;;  %v2490_v62 = vld [vmem:[#allocation16 + $0x430] sm:$0xff] }
 0x293   :  { %2629 = vmatpush.msra.mxu2 %v2357_v61  ;;  %2652 = vmatpush.msra.mxu3 %v2471_v57  ;;  %v2389_v61 = vld [vmem:[#allocation16 + $0x108] sm:$0xff] }
 0x294   :  { %2578 = vmatmul.f32.vlgmr.msra.gmra.mxu0 %v5600_v1  ;;  %2630 = vmatmul.f32.vlgmr.msra.gmra.mxu2 %v5600_v1 }
 0x295   :  { %2601 = vmatpush.msra.mxu1 %v2464_v7  ;;  %2653 = vmatpush.msra.mxu3 %v2465_v54  ;;  %v2491_v7 = vld [vmem:[#allocation16 + $0x438] sm:$0xff] }
 0x296   :  { %2666 = vmatpush.msrb.mxu0 %v2448_v42  ;;  %2718 = vmatpush.msrb.mxu2 %v2449_v17  ;;  %v7709_v54 = vld [vmem:[#allocation30_spill] sm:$0xff]  ;;  %v2485_v42 = vld [vmem:[#allocation16 + $0x408] sm:$0xff] }
 0x297   :  { %2602 = vmatpush.msra.mxu1 %v2458_v27  ;;  %2654 = vmatpush.msra.mxu3 %v2459_v32  ;;  %v426_v27 = vadd.f32 %v7709_v54, %v7618_v26  ;;  %v2382_v32 = vld [vmem:[#allocation16 + $0xd0] sm:$0xff]  ;;  %v2439_v54 = vld [vmem:[#allocation16 + $0x298] sm:$0xff] }
 0x298   :  { %2667 = vmatpush.msrb.mxu0 %v2442_v29  ;;  %2719 = vmatpush.msrb.mxu2 %v2443_v60  ;;  %v2376_v29 = vld [vmem:[#allocation16 + $0xa0] sm:$0xff]  ;;  %v2377_v60 = vld [vmem:[#allocation16 + $0xa8] sm:$0xff] }
 0x299   :  { %2603 = vmatpush.msra.mxu1 %v2452_v25  ;;  %2655 = vmatpush.msra.mxu3 %v2453_v31  ;;  %v2484_v25 = vld [vmem:[#allocation16 + $0x400] sm:$0xff]  ;;  %v2383_v31 = vld [vmem:[#allocation16 + $0xd8] sm:$0xff]  ;;  %v7710_v26 = vld [vmem:[#allocation32_spill] sm:$0xff] }
 0x29a   :  { %2604 = vmatmul.f32.vlgmr.msra.gmra.mxu1 %v5621_v51  ;;  %2656 = vmatmul.f32.vlgmr.msra.gmra.mxu3 %v5621_v51 }
 0x29b   :  { %2692 = vmatpush.msrb.mxu1 %v2544_v37  ;;  %2744 = vmatpush.msrb.mxu3 %v2545_v16  ;;  %v2478_v37 = vld [vmem:[#allocation16 + $0x3d0] sm:$0xff] }
 0x29c   :  { %2581 = vmatmul.f32.gmra.mxu0 %v5927_v52  ;;  %2633 = vmatmul.f32.gmra.mxu2 %v5927_v52 }
 0x29d   :  { %2668 = vmatpush.msrb.mxu0 %v2436_v44  ;;  %2693 = vmatpush.msrb.mxu1 %v2538_v48  ;;  %v2479_v44 = vld [vmem:[#allocation16 + $0x3d8] sm:$0xff]  ;;  %v452_v48 = vadd.f32 %v7710_v26, %v426_v27  ;;  %v7714_v27 = vld [vmem:[#allocation40_spill] sm:$0xff] }
 0x29e   :  { %2720 = vmatpush.msrb.mxu2 %v2437_v24  ;;  %2745 = vmatpush.msrb.mxu3 %v2539_v43  ;;  %v2370_v43 = vld [vmem:[#allocation16 + $0x70] sm:$0xff] }
 0x29f   :  { %2669 = vmatpush.msrb.mxu0 %v2430_v21  ;;  %2694 = vmatpush.msrb.mxu1 %v2532_v36  ;;  %v2472_v21 = vld [vmem:[#allocation16 + $0x3a0] sm:$0xff]  ;;  %v2371_v36 = vld [vmem:[#allocation16 + $0x78] sm:$0xff] }
 0x2a0   :  { %2721 = vmatpush.msrb.mxu2 %v2431_v13  ;;  %2746 = vmatpush.msrb.mxu3 %v2533_v49  ;;  %v7711_v49 = vld [vmem:[#allocation33_spill] sm:$0xff] }
 0x2a1   :  { %2670 = vmatpush.msrb.mxu0 %v2424_v55  ;;  %2695 = vmatpush.msrb.mxu1 %v2526_v58  ;;  %v478_v55 = vadd.f32 %v7711_v49, %v7628_v22  ;;  %v2461_v22 = vld [vmem:[#allocation16 + $0x348] sm:$0xff] }
 0x2a2   :  { %2607 = vmatmul.f32.gmra.mxu1 %v5936_v6  ;;  %2659 = vmatmul.f32.gmra.mxu3 %v5936_v6  ;;  %v2529_v49 = vld [vmem:[#allocation16 + $0x568] sm:$0xff] }
 0x2a3   :  { %2722 = vmatpush.msrb.mxu2 %v2425_v11  ;;  %2747 = vmatpush.msrb.mxu3 %v2527_v45  ;;  %v2364_v11 = vld [vmem:[#allocation16 + $0x40] sm:$0xff]  ;;  %v2466_v45 = vld [vmem:[#allocation16 + $0x370] sm:$0xff] }
 0x2a4   :  { %2671 = vmatpush.msrb.mxu0 %v2418_v5  ;;  %2696 = vmatpush.msrb.mxu1 %v2520_v18  ;;  %v2365_v5 = vld [vmem:[#allocation16 + $0x48] sm:$0xff]  ;;  %v2467_v18 = vld [vmem:[#allocation16 + $0x378] sm:$0xff] }
 0x2a5   :  { %2723 = vmatpush.msrb.mxu2 %v2419_v23  ;;  %2748 = vmatpush.msrb.mxu3 %v2521_v4 }
 0x2a6   :  { %2672 = vmatpush.msrb.mxu0 %v2412_v53  ;;  %2697 = vmatpush.msrb.mxu1 %v2514_v0  ;;  %v2358_v53 = vld [vmem:[#allocation16 + $0x10] sm:$0xff]  ;;  %v2460_v0 = vld [vmem:[#allocation16 + $0x340] sm:$0xff] }
 0x2a7   :  { %2724 = vmatpush.msrb.mxu2 %v2413_v30  ;;  %2749 = vmatpush.msrb.mxu3 %v2515_v41  ;;  %v2359_v30 = vld [vmem:[#allocation16 + $0x18] sm:$0xff] }
 0x2a8   :  { %2673 = vmatpush.msrb.mxu0 %v2406_v3  ;;  %2698 = vmatpush.msrb.mxu1 %v2508_v46  ;;  %v2450_v46 = vld [vmem:[#allocation16 + $0x2f0] sm:$0xff] }
 0x2a9   :  { %2725 = vmatpush.msrb.mxu2 %v2407_v50  ;;  %2750 = vmatpush.msrb.mxu3 %v2509_v19  ;;  %v2451_v50 = vld [vmem:[#allocation16 + $0x2f8] sm:$0xff] }
 0x2aa   :  { %2674 = vmatpush.msrb.mxu0 %v2400_v2  ;;  %2699 = vmatpush.msrb.mxu1 %v2502_v63  ;;  %v7712_v19 = vld [vmem:[#allocation34_spill] sm:$0xff] }
 0x2ab   :  { %2726 = vmatpush.msrb.mxu2 %v2401_v8  ;;  %2751 = vmatpush.msrb.mxu3 %v2503_v35  ;;  %v504_v2 = vadd.f32 %v7712_v19, %v478_v55  ;;  %v7713_v63 = vld [vmem:[#allocation38_spill] sm:$0xff] }
 0x2ac   :  { %2675 = vmatpush.msrb.mxu0 %v2394_v28  ;;  %2700 = vmatpush.msrb.mxu1 %v2496_v12  ;;  %v530_v8 = vadd.f32 %v7713_v63, %v7636_v56  ;;  %v2455_v28 = vld [vmem:[#allocation16 + $0x318] sm:$0xff]  ;;  %v2444_v12 = vld [vmem:[#allocation16 + $0x2c0] sm:$0xff]  ;;  %v2438_v56 = vld [vmem:[#allocation16 + $0x290] sm:$0xff] }
 0x2ad   :  { %2727 = vmatpush.msrb.mxu2 %v2395_v9  ;;  %2752 = vmatpush.msrb.mxu3 %v2497_v10  ;;  %v2546_v9 = vld [vmem:[#allocation16 + $0x5f0] sm:$0xff]  ;;  %v2445_v10 = vld [vmem:[#allocation16 + $0x2c8] sm:$0xff]  ;;  %v2420_v55 = vld [vmem:[#allocation16 + $0x200] sm:$0xff] }
 0x2ae   :  { %2676 = vmatpush.msrb.mxu0 %v2388_v33  ;;  %2701 = vmatpush.msrb.mxu1 %v2490_v62 }
 0x2af   :  { %2728 = vmatpush.msrb.mxu2 %v2389_v61  ;;  %2753 = vmatpush.msrb.mxu3 %v2491_v7  ;;  %v2547_v61 = vld [vmem:[#allocation16 + $0x5f8] sm:$0xff]  ;;  %v2540_v7 = vld [vmem:[#allocation16 + $0x5c0] sm:$0xff] }
 0x2b0   :  { %2677 = vmatpush.msrb.mxu0 %v2382_v32  ;;  %2702 = vmatpush.msrb.mxu1 %v2484_v25  ;;  %v556_v32 = vadd.f32 %v7714_v27, %v530_v8  ;;  %v2402_v8 = vld [vmem:[#allocation16 + $0x170] sm:$0xff]  ;;  %v2391_v27 = vld [vmem:[#allocation16 + $0x118] sm:$0xff] }
 0x2b1   :  { %2729 = vmatpush.msrb.mxu2 %v2383_v31  ;;  %2754 = vmatpush.msrb.mxu3 %v2485_v42  ;;  %v2541_v42 = vld [vmem:[#allocation16 + $0x5c8] sm:$0xff] }
 0x2b2   :  { %2678 = vmatpush.msrb.mxu0 %v2376_v29  ;;  %2703 = vmatpush.msrb.mxu1 %v2478_v37  ;;  %v2534_v29 = vld [vmem:[#allocation16 + $0x590] sm:$0xff]  ;;  %v2433_v37 = vld [vmem:[#allocation16 + $0x268] sm:$0xff] }
 0x2b3   :  { %2730 = vmatpush.msrb.mxu2 %v2377_v60  ;;  %2755 = vmatpush.msrb.mxu3 %v2479_v44 }
 0x2b4   :  { %2679 = vmatpush.msrb.mxu0 %v2370_v43  ;;  %2704 = vmatpush.msrb.mxu1 %v2472_v21  ;;  %v2426_v43 = vld [vmem:[#allocation16 + $0x230] sm:$0xff]  ;;  %v2528_v21 = vld [vmem:[#allocation16 + $0x560] sm:$0xff] }
 0x2b5   :  { %2731 = vmatpush.msrb.mxu2 %v2371_v36  ;;  %v2427_v36 = vld [vmem:[#allocation16 + $0x238] sm:$0xff] }
 0x2b6   :  { %2680 = vmatpush.msrb.mxu0 %v2364_v11  ;;  %2705 = vmatpush.msrb.mxu1 %v2466_v45  ;;  %v2421_v11 = vld [vmem:[#allocation16 + $0x208] sm:$0xff]  ;;  %v7716_v45 = vld [vmem:[#allocation42_spill] sm:$0xff] }
 0x2b7   :  { %2732 = vmatpush.msrb.mxu2 %v2365_v5 }
 0x2b8   :  { %2681 = vmatpush.msrb.mxu0 %v2358_v53  ;;  %2706 = vmatpush.msrb.mxu1 %v2460_v0  ;;  %v2415_v53 = vld [vmem:[#allocation16 + $0x1d8] sm:$0xff] }
 0x2b9   :  { %2733 = vmatpush.msrb.mxu2 %v2359_v30 }
 0x2ba   :  { %2770 = vmatpush.msra.mxu0 %v2450_v46  ;;  %v2510_v46 = vld [vmem:[#allocation16 + $0x4d0] sm:$0xff] }
 0x2bb   :  { %2822 = vmatpush.msra.mxu2 %v2451_v50  ;;  %v2409_v50 = vld [vmem:[#allocation16 + $0x1a8] sm:$0xff] }
 0x2bc   :  { %2771 = vmatpush.msra.mxu0 %v2444_v12 }
 0x2bd   :  { %2823 = vmatpush.msra.mxu2 %v2445_v10 }
 0x2be   :  { %2772 = vmatpush.msra.mxu0 %v2438_v56  ;;  %v2499_v56 = vld [vmem:[#allocation16 + $0x478] sm:$0xff] }
 0x2bf   :  { %2824 = vmatpush.msra.mxu2 %v2439_v54  ;;  %v2492_v54 = vld [vmem:[#allocation16 + $0x440] sm:$0xff] }
 0x2c1   :  { %2825 = vmatpush.msra.mxu2 %v2433_v37 }
 0x2c3   :  { %2826 = vmatpush.msra.mxu2 %v2427_v36 }
 0x2c5   :  { %2827 = vmatpush.msra.mxu2 %v2421_v11  ;;  %v2474_v11 = vld [vmem:[#allocation16 + $0x3b0] sm:$0xff] }
 0x2c7   :  { %2828 = vmatpush.msra.mxu2 %v2415_v53  ;;  %v7719_v53 = vld [vmem:[#allocation46_spill] sm:$0xff] }
 0x2c9   :  { %2829 = vmatpush.msra.mxu2 %v2409_v50 }
 0x2cb   :  { %v2030_v57 = vpop.f32.mrf.mxu0 }
 0x2cc   :  { %v2031_v17 = vadd.f32 %v2030_v57, %v7622_v47  ;;  %v2473_v47 = vld [vmem:[#allocation16 + $0x3a8] sm:$0xff] }
 0x2cd   :  { %2756 = vmatpush.msrb.mxu3 %v2473_v47 }
 0x2cf   :  { %2757 = vmatpush.msrb.mxu3 %v2467_v18 }
 0x2d1   :  { %v2070_v13 = vpop.f32.mrf.mxu2  ;;  %2758 = vmatpush.msrb.mxu3 %v2461_v22  ;;  %v2408_v22 = vld [vmem:[#allocation16 + $0x1a0] sm:$0xff] }
 0x2d2   :  { %v2050_v16 = vpop.f32.mrf.mxu1  ;;  %v2071_v4 = vadd.f32 %v2070_v13, %v7632_v15  ;;  %v2454_v15 = vld [vmem:[#allocation16 + $0x310] sm:$0xff] }
 0x2d3   :  { %v2051_v24 = vadd.f32 %v2050_v16, %v2031_v17  ;;  %2707 = vmatpush.msrb.mxu1 %v2454_v15  ;;  %2759 = vmatpush.msrb.mxu3 %v2455_v28  ;;  %v7715_v16 = vld [vmem:[#allocation41_spill] sm:$0xff] }
 0x2d4   :  { %v582_v44 = vadd.f32 %v7715_v16, %v7646_v59  ;;  %v2403_v15 = vld [vmem:[#allocation16 + $0x178] sm:$0xff] }
 0x2d5   :  { %v2253_v58 = vadd.f32 %v2051_v24, %v452_v48  ;;  %v2110_v41 = vpop.f32.mrf.mxu0  ;;  %2796 = vmatpush.msra.mxu1 %v2546_v9  ;;  %2848 = vmatpush.msra.mxu3 %v2547_v61  ;;  %v2535_v48 = vld [vmem:[#allocation16 + $0x598] sm:$0xff]  ;;  %v2505_v9 = vld [vmem:[#allocation16 + $0x4a8] sm:$0xff] }
 0x2d6   :  { %v2111_v33 = vadd.f32 %v2110_v41, %v7640_v40  ;;  %v2432_v40 = vld [vmem:[#allocation16 + $0x260] sm:$0xff]  ;;  %v608_v5 = vadd.f32 %v7716_v45, %v582_v44  ;;  %v2517_v41 = vld [vmem:[#allocation16 + $0x508] sm:$0xff]  ;;  %2830 = vmatpush.msra.mxu2 %v2403_v15  ;;  %v2487_v16 = vld [vmem:[#allocation16 + $0x418] sm:$0xff] }
 0x2d7   :  { %v4319_v23 = vmul.f32 -1.442695, %v2253_v58  ;;  %2797 = vmatpush.msra.mxu1 %v2540_v7  ;;  %2849 = vmatpush.msra.mxu3 %v2541_v42  ;;  %v2522_v58 = vld [vmem:[#allocation16 + $0x530] sm:$0xff]  ;;  %v2384_v42 = vld [vmem:[#allocation16 + $0xe0] sm:$0xff]  ;;  %v2373_v45 = vld [vmem:[#allocation16 + $0x88] sm:$0xff] }
 0x2d8   :  { %v2090_v3 = vpop.f32.mrf.mxu3  ;;  %2773 = vmatpush.msra.mxu0 %v2432_v40  ;;  %v2390_v7 = vld [vmem:[#allocation16 + $0x110] sm:$0xff]  ;;  %v2385_v40 = vld [vmem:[#allocation16 + $0xe8] sm:$0xff] }
 0x2d9   :  { %4390 = vpow2.f32 %v4319_v23  ;;  %v2091_v35 = vadd.f32 %v2090_v3, %v2071_v4  ;;  %2798 = vmatpush.msra.mxu1 %v2534_v29  ;;  %2850 = vmatpush.msra.mxu3 %v2535_v48  ;;  %v2523_v23 = vld [vmem:[#allocation16 + $0x538] sm:$0xff]  ;;  %v2516_v4 = vld [vmem:[#allocation16 + $0x500] sm:$0xff]  ;;  %v2378_v48 = vld [vmem:[#allocation16 + $0xb0] sm:$0xff] }
 0x2da   :  { %2774 = vmatpush.msra.mxu0 %v2426_v43  ;;  %v2480_v43 = vld [vmem:[#allocation16 + $0x3e0] sm:$0xff]  ;;  %v2361_v15 = vld [vmem:[#allocation16 + $0x28] sm:$0xff] }
 0x2db   :  { %v2254_v62 = vadd.f32 %v2091_v35, %v504_v2  ;;  %v2150_v17 = vpop.f32.mrf.mxu2  ;;  %2799 = vmatpush.msra.mxu1 %v2528_v21  ;;  %2851 = vmatpush.msra.mxu3 %v2529_v49  ;;  %v2511_v2 = vld [vmem:[#allocation16 + $0x4d8] sm:$0xff]  ;;  %v2504_v35 = vld [vmem:[#allocation16 + $0x4a0] sm:$0xff]  ;;  %v2481_v49 = vld [vmem:[#allocation16 + $0x3e8] sm:$0xff] }
 0x2dc   :  { %v2130_v57 = vpop.f32.mrf.mxu1  ;;  %v2151_v47 = vadd.f32 %v2150_v17, %v7650_v34  ;;  %2775 = vmatpush.msra.mxu0 %v2420_v55  ;;  %v2414_v34 = vld [vmem:[#allocation16 + $0x1d0] sm:$0xff] }
 0x2dd   :  { %v4320_v25 = vmul.f32 -1.442695, %v2254_v62  ;;  %v2131_v31 = vadd.f32 %v2130_v57, %v2111_v33  ;;  %2800 = vmatpush.msra.mxu1 %v2522_v58  ;;  %2852 = vmatpush.msra.mxu3 %v2523_v23  ;;  %v2396_v33 = vld [vmem:[#allocation16 + $0x140] sm:$0xff]  ;;  %v2498_v62 = vld [vmem:[#allocation16 + $0x470] sm:$0xff]  ;;  %v2397_v57 = vld [vmem:[#allocation16 + $0x148] sm:$0xff] }
 0x2de   :  { %2776 = vmatpush.msra.mxu0 %v2414_v34  ;;  %2831 = vmatpush.msra.mxu2 %v2397_v57  ;;  %v2486_v17 = vld [vmem:[#allocation16 + $0x410] sm:$0xff]  ;;  %v2372_v58 = vld [vmem:[#allocation16 + $0x80] sm:$0xff]  ;;  %v2475_v23 = vld [vmem:[#allocation16 + $0x3b8] sm:$0xff] }
 0x2df   :  { %v4391_v60 = vpop.eup %4390  ;;  %4392 = vpow2.f32 %v4320_v25  ;;  %v2293_v26 = vadd.f32 %v2131_v31, %v556_v32  ;;  %2801 = vmatpush.msra.mxu1 %v2516_v4  ;;  %2853 = vmatpush.msra.mxu3 %v2517_v41  ;;  %v2493_v25 = vld [vmem:[#allocation16 + $0x448] sm:$0xff]  ;;  %v2366_v34 = vld [vmem:[#allocation16 + $0x50] sm:$0xff]  ;;  %v2468_v4 = vld [vmem:[#allocation16 + $0x380] sm:$0xff] }
 0x2e0   :  { %v6028_v24 = vadd.f32 1.0, %v4391_v60  ;;  %2777 = vmatpush.msra.mxu0 %v2408_v22  ;;  %2832 = vmatpush.msra.mxu2 %v2391_v27  ;;  %v2367_v41 = vld [vmem:[#allocation16 + $0x58] sm:$0xff]  ;;  %v2469_v22 = vld [vmem:[#allocation16 + $0x388] sm:$0xff] }
 0x2e1   :  { %v4321_v13 = vmul.f32 -1.442695, %v2293_v26  ;;  %2802 = vmatpush.msra.mxu1 %v2510_v46  ;;  %2854 = vmatpush.msra.mxu3 %v2511_v2  ;;  %v6161_v57 = vld [vmem:[#allocation18 + $0x248] sm:$0xff] }
 0x2e2   :  { %4394 = vrcp.f32 %v6028_v24  ;;  %v2170_v59 = vpop.f32.mrf.mxu3  ;;  %2778 = vmatpush.msra.mxu0 %v2402_v8  ;;  %vm2268_vm1 = vweird.f32 %v6028_v24  ;;  %v2274_v26 = vand.u32 2147483648, %v6028_v24  ;;  %v2272_v36 = vand.u32 2147483647, %v6028_v24  ;;  %2833 = vmatpush.msra.mxu2 %v2385_v40 }
 0x2e3   :  { %4396 = vpow2.f32 %v4321_v13  ;;  %v2171_v18 = vadd.f32 %v2170_v59, %v2151_v47  ;;  %2803 = vmatpush.msra.mxu1 %v2504_v35  ;;  %2855 = vmatpush.msra.mxu3 %v2505_v9  ;;  %v2379_v47 = vld [vmem:[#allocation16 + $0xb8] sm:$0xff]  ;;  %v2462_v35 = vld [vmem:[#allocation16 + $0x350] sm:$0xff] }
 0x2e4   :  { %2779 = vmatpush.msra.mxu0 %v2396_v33  ;;  %2834 = vmatpush.msra.mxu2 %v2379_v47  ;;  %vm2273_vm3 = vcmp.eq.f32.partialorder %v2272_v36, 8.507059e+37  ;;  %v7720_v33 = vld [vmem:[#allocation48_spill] sm:$0xff] }
 0x2e5   :  { %v4393_v0 = vpop.eup %4392  ;;  %v2294_v30 = vadd.f32 %v2171_v18, %v608_v5  ;;  %2804 = vmatpush.msra.mxu1 %v2498_v62  ;;  %2856 = vmatpush.msra.mxu3 %v2499_v56  ;;  %v2456_v56 = vld [vmem:[#allocation16 + $0x320] sm:$0xff] }
 0x2e6   :  { %v6033_v3 = vadd.f32 1.0, %v4393_v0  ;;  %2780 = vmatpush.msra.mxu0 %v2390_v7  ;;  %v634_v0 = vadd.f32 %v7719_v53, %v5542_v38  ;;  %2835 = vmatpush.msra.mxu2 %v2373_v45  ;;  %v2360_v38 = vld [vmem:[#allocation16 + $0x20] sm:$0xff]  ;;  %v2457_v7 = vld [vmem:[#allocation16 + $0x328] sm:$0xff] }
 0x2e7   :  { %v4322_v19 = vmul.f32 -1.442695, %v2294_v30  ;;  %2805 = vmatpush.msra.mxu1 %v2492_v54  ;;  %2857 = vmatpush.msra.mxu3 %v2493_v25  ;;  %v2275_v30 = vor.u32 1.1754944e-38, %v2274_v26 }
 0x2e8   :  { %v6035_v63 = vpop.eup %4394  ;;  %4398 = vrcp.f32 %v6033_v3  ;;  %2781 = vmatpush.msra.mxu0 %v2384_v42  ;;  %v2289_v8 = vand.u32 2147483648, %v6033_v3  ;;  %vm2283_vm5 = vweird.f32 %v6033_v3  ;;  %2836 = vmatpush.msra.mxu2 %v2367_v41  ;;  %v660_v62 = vadd.f32 %v7720_v33, %v634_v0  ;;  %v7723_v42 = vld [vmem:[#allocation49_spill] sm:$0xff]  ;;  %v6155_v33 = vld [vmem:[#allocation18 + $0x5a8] sm:$0xff] }
 0x2e9   :  { %v4397_v28 = vpop.eup %4396  ;;  %4400 = vpow2.f32 %v4322_v19  ;;  %v2264_v12 = vmul.f32 %v6035_v63, %v6028_v24  ;;  %vm2269_vm0 = vweird.f32 %v6035_v63  ;;  %2806 = vmatpush.msra.mxu1 %v2486_v17  ;;  %2858 = vmatpush.msra.mxu3 %v2487_v16  ;;  %v686_v17 = vadd.f32 %v7723_v42, %v5569_v39  ;;  %v6118_v41 = vld [vmem:[#allocation18 + $0x2d0] sm:$0xff] }
 0x2ea   :  { %v6040_v10 = vadd.f32 1.0, %v4397_v28  ;;  %vm6056_vm2 = vmor %vm2268_vm1, %vm2269_vm0  ;;  %2782 = vmatpush.msra.mxu0 %v2378_v48  ;;  %2837 = vmatpush.msra.mxu2 %v2361_v15  ;;  %v2290_v25 = vor.u32 1.1754944e-38, %v2289_v8  ;;  %v7724_v48 = vld [vmem:[#allocation51_spill] sm:$0xff]  ;;  %v6135_v8 = vld [vmem:[#allocation18 + $0x278] sm:$0xff] }
 0x2eb   :  { %v2265_v61 = vsub.f32 1.0, %v2264_v12  ;;  %2807 = vmatpush.msra.mxu1 %v2480_v43  ;;  %2859 = vmatpush.msra.mxu3 %v2481_v49  ;;  %v2463_v12 = vld [vmem:[#allocation16 + $0x358] sm:$0xff]  ;;  %v712_v43 = vadd.f32 %v7724_v48, %v686_v17  ;;  %v6210_v48 = vld [vmem:[#allocation18 + $0x4e8] sm:$0xff] }
 0x2ec   :  { %4402 = vrcp.f32 %v6040_v10  ;;  %2783 = vmatpush.msra.mxu0 %v2372_v58  ;;  %v2314_v21 = vand.u32 2147483648, %v6040_v10  ;;  %vm2308_vm9 = vweird.f32 %v6040_v10  ;;  %v6142_v15 = vld [vmem:[#allocation18 + $0x5d8] sm:$0xff] }
 0x2ed   :  { %v2266_v32 = vmul.f32 %v6035_v63, %v2265_v61  ;;  %2808 = vmatpush.msra.mxu1 %v2474_v11  ;;  %2860 = vmatpush.msra.mxu3 %v2475_v23 }
 0x2ee   :  { %v6044_v31 = vpop.eup %4398  ;;  %2784 = vmatpush.msra.mxu0 %v2366_v34 }
 0x2ef   :  { %v4401_v29 = vpop.eup %4400  ;;  %v2267_v37 = vadd.f32 %v6035_v63, %v2266_v32  ;;  %v2279_v60 = vmul.f32 %v6044_v31, %v6033_v3  ;;  %v2190_v55 = vpop.f32.mrf.mxu0  ;;  %vm2284_vm4 = vweird.f32 %v6044_v31  ;;  %2809 = vmatpush.msra.mxu1 %v2468_v4  ;;  %2861 = vmatpush.msra.mxu3 %v2469_v22  ;;  %v6120_v22 = vld [vmem:[#allocation18 + $0x2d8] sm:$0xff] }
 0x2f0   :  { %v6050_v44 = vadd.f32 1.0, %v4401_v29  ;;  %v2191_v46 = vadd.f32 %v2190_v55, %v5545_v14  ;;  %v2287_v14 = vand.u32 2147483647, %v6033_v3  ;;  %vm6081_vm6 = vmor %vm2283_vm5, %vm2284_vm4  ;;  %2785 = vmatpush.msra.mxu0 %v2360_v38  ;;  %v2315_v55 = vor.u32 1.1754944e-38, %v2314_v21  ;;  %v6216_v21 = vld [vmem:[#allocation18 + $0x4b0] sm:$0xff] }
 0x2f1   :  { %v2280_v13 = vsub.f32 1.0, %v2279_v60  ;;  %v2271_v24 = vsel %vm6056_vm2, %v6035_v63, %v2267_v37  ;;  %2810 = vmatpush.msra.mxu1 %v2462_v35  ;;  %2862 = vmatpush.msra.mxu3 %v2463_v12  ;;  %v6140_v35 = vld [vmem:[#allocation18 + $0x5d0] sm:$0xff] }
 0x2f2   :  { %v6061_v59 = vpop.eup %4402  ;;  %4404 = vrcp.f32 %v6050_v44  ;;  %v2276_v63 = vsel %vm2273_vm3, %v2275_v30, %v2271_v24  ;;  %vm2288_vm7 = vcmp.eq.f32.partialorder %v2287_v14, 8.507059e+37  ;;  %v2329_v45 = vand.u32 2147483648, %v6050_v44 }
 0x2f3   :  { %v2304_v5 = vmul.f32 %v6061_v59, %v6040_v10  ;;  %v2281_v18 = vmul.f32 %v6044_v31, %v2280_v13  ;;  %2811 = vmatpush.msra.mxu1 %v2456_v56  ;;  %2863 = vmatpush.msra.mxu3 %v2457_v7  ;;  %vm2309_vm8 = vweird.f32 %v6061_v59  ;;  %vm2323_vm13 = vweird.f32 %v6050_v44  ;;  %v6165_v56 = vld [vmem:[#allocation18 + $0x570] sm:$0xff]  ;;  %v6167_v7 = vld [vmem:[#allocation18 + $0x578] sm:$0xff] }
 0x2f4   :  { %vm2310_vm10 = vmor %vm2308_vm9, %vm2309_vm8  ;;  %v2330_v34 = vor.u32 1.1754944e-38, %v2329_v45  ;;  %v6248_v45 = vld [vmem:[#allocation18 + $0x458] sm:$0xff] }
 0x2f5   :  { %v2282_v50 = vadd.f32 %v6044_v31, %v2281_v18  ;;  %v2305_v19 = vsub.f32 1.0, %v2304_v5  ;;  %v2230_v61 = vpop.f32.mrf.mxu2 }
 0x2f6   :  { %v2210_v2 = vpop.f32.mrf.mxu1  ;;  %v2231_v29 = vadd.f32 %v2230_v61, %v5572_v20  ;;  %v2312_v20 = vand.u32 2147483647, %v6040_v10  ;;  %v2327_v10 = vand.u32 2147483647, %v6050_v44  ;;  %v6159_v61 = vld [vmem:[#allocation18 + $0x240] sm:$0xff] }
 0x2f7   :  { %v2211_v28 = vadd.f32 %v2210_v2, %v2191_v46  ;;  %v2286_v27 = vsel %vm6081_vm6, %v6044_v31, %v2282_v50  ;;  %v2306_v32 = vmul.f32 %v6061_v59, %v2305_v19  ;;  %v6127_v50 = vld [vmem:[#allocation18 + $0x2a0] sm:$0xff]  ;;  %v6129_v19 = vld [vmem:[#allocation18 + $0x2a8] sm:$0xff] }
 0x2f8   :  { %v4405_v9 = vpop.eup %4404  ;;  %v2291_v16 = vsel %vm2288_vm7, %v2290_v25, %v2286_v27  ;;  %vm2313_vm12 = vcmp.eq.f32.partialorder %v2312_v20, 8.507059e+37  ;;  %vm2328_vm15 = vcmp.eq.f32.partialorder %v2327_v10, 8.507059e+37  ;;  %v6180_v25 = vld [vmem:[#allocation18 + $0x548] sm:$0xff]  ;;  %v6226_v20 = vld [vmem:[#allocation18 + $0x150] sm:$0xff]  ;;  %v6260_v10 = vld [vmem:[#allocation18 + $0xf8] sm:$0xff] }
 0x2f9   :  { %v2319_v54 = vmul.f32 %v4405_v9, %v6050_v44  ;;  %v2333_v3 = vmul.f32 %v2276_v63, %v2211_v28  ;;  %v2307_v31 = vadd.f32 %v6061_v59, %v2306_v32  ;;  %vm2324_vm11 = vweird.f32 %v4405_v9  ;;  %v6114_v44 = vld [vmem:[%s7195_s7] sm:$0x3f]  ;;  %v6133_v63 = vld [vmem:[#allocation18 + $0x270] sm:$0xff] }
 0x2fa   :  { %vm2325_vm14 = vmor %vm2323_vm13, %vm2324_vm11  ;;  %v6123_v46 = vperm.slane %v6114_v44, 0  ;;  %v6149_v12 = vperm.slane %v6114_v44, 1  ;;  %v6178_v32 = vld [vmem:[#allocation18 + $0x540] sm:$0xff] }
 0x2fb   :  { %v2335_v40 = vadd.f32 %v2333_v3, %v660_v62  ;;  %v2320_v37 = vsub.f32 1.0, %v2319_v54  ;;  %v2311_v47 = vsel %vm2310_vm10, %v6061_v59, %v2307_v31  ;;  %v6171_v54 = vld [vmem:[#allocation18 + $0x210] sm:$0xff]  ;;  %v6173_v3 = vld [vmem:[#allocation18 + $0x218] sm:$0xff] }
 0x2fc   :  { %v2250_v60 = vpop.f32.mrf.mxu3  ;;  %v2316_v5 = vsel %vm2313_vm12, %v2315_v55, %v2311_v47  ;;  %v6208_v31 = vld [vmem:[#allocation18 + $0x1b8] sm:$0xff]  ;;  %v6240_v55 = vld [vmem:[#allocation18 + $0x120] sm:$0xff] }
 0x2fd   :  { %4406 = vtanh.f32 %v2335_v40  ;;  %v2251_v26 = vadd.f32 %v2250_v60, %v2231_v29  ;;  %v2321_v39 = vmul.f32 %v4405_v9, %v2320_v37  ;;  %v6188_v40 = vld [vmem:[#allocation18 + $0x1e0] sm:$0xff]  ;;  %v6190_v29 = vld [vmem:[#allocation18 + $0x510] sm:$0xff]  ;;  %v6194_v37 = vld [vmem:[#allocation18 + $0x1e8] sm:$0xff] }
 0x2fe   :  { %v6196_v60 = vld [vmem:[#allocation18 + $0x518] sm:$0xff] }
 0x2ff   :  { %v2334_v36 = vmul.f32 %v2291_v16, %v2251_v26  ;;  %v2322_v11 = vadd.f32 %v4405_v9, %v2321_v39  ;;  %v6202_v16 = vld [vmem:[#allocation18 + $0x1b0] sm:$0xff]  ;;  %v6204_v26 = vld [vmem:[#allocation18 + $0x4e0] sm:$0xff]  ;;  %v6222_v39 = vld [vmem:[#allocation18 + $0x4b8] sm:$0xff] }
 0x300   :  { %v6232_v47 = vld [vmem:[#allocation18 + $0x158] sm:$0xff] }
 0x301   :  { %v2336_v13 = vadd.f32 %v2334_v36, %v712_v43  ;;  %v2326_v59 = vsel %vm2325_vm14, %v4405_v9, %v2322_v11  ;;  %v6153_v9 = vld [vmem:[#allocation18 + $0x5a0] sm:$0xff]  ;;  %v6220_v36 = vld [vmem:[#allocation18 + $0x188] sm:$0xff] }
 0x302   :  { %v2331_v53 = vsel %vm2328_vm15, %v2330_v34, %v2326_v59  ;;  %v6214_v43 = vld [vmem:[#allocation18 + $0x180] sm:$0xff]  ;;  %v6246_v11 = vld [vmem:[#allocation18 + $0x128] sm:$0xff]  ;;  %v6268_v34 = vld [vmem:[#allocation18 + $0x3f0] sm:$0xff] }
 0x303   :  { %v4407_v49 = vpop.eup %4406  ;;  %4408 = vtanh.f32 %v2336_v13  ;;  %v6228_v13 = vld [vmem:[#allocation18 + $0x480] sm:$0xff]  ;;  %v6262_v59 = vld [vmem:[#allocation18 + $0x428] sm:$0xff] }
 0x304   :  { %v2339_v58 = vsub.f32 %v5927_v52, %v4407_v49 }
 0x306   :  { %v2341_v24 = vmul.f32 %v2339_v58, %v2316_v5  ;;  %v6242_v58 = vld [vmem:[#allocation18 + $0x450] sm:$0xff] }
 0x307   :  { %v6254_v5 = vld [vmem:[#allocation18 + $0xf0] sm:$0xff] }
 0x308   :  { %v6104_v18 = vadd.f32 %v4407_v49, %v2341_v24  ;;  %v6234_v49 = vld [vmem:[#allocation18 + $0x488] sm:$0xff]  ;;  %v6256_v24 = vld [vmem:[#allocation18 + $0x420] sm:$0xff] }
 0x309   :  { %v4409_v23 = vpop.eup %4408 }
 0x30a   :  { %v2340_v4 = vsub.f32 %v5936_v6, %v4409_v23  ;;  %2584 = vmatmul.f32.gmra.mxu0 %v6104_v18  ;;  %2636 = vmatmul.f32.gmra.mxu2 %v6104_v18 }
 0x30c   :  { %v2342_v0 = vmul.f32 %v2340_v4, %v2331_v53  ;;  %v6272_v4 = vld [vmem:[#allocation18 + $0xc8] sm:$0xff]  ;;  %v6274_v53 = vld [vmem:[#allocation18 + $0x3f8] sm:$0xff] }
 0x30e   :  { %v6109_v30 = vadd.f32 %v4409_v23, %v2342_v0  ;;  %v6266_v23 = vld [vmem:[#allocation18 + $0xc0] sm:$0xff]  ;;  %v6278_v0 = vld [vmem:[#allocation18 + $0x90] sm:$0xff] }
 0x30f   :  { %7727 = vst [vmem:[#allocation77_spill] sm:$0xff] %v6278_v0 }
 0x310   :  { %2610 = vmatmul.f32.gmra.mxu1 %v6109_v30  ;;  %2662 = vmatmul.f32.gmra.mxu3 %v6109_v30 }
 0x311   :  { %v2579_v2 = vpop.f32.mrf.mxu0 }
 0x312   :  { %2682 = vmatmul.f32.vlgmr.msrb.gmra.mxu0 %v5600_v1  ;;  %2734 = vmatmul.f32.vlgmr.msrb.gmra.mxu2 %v5600_v1  ;;  %v2580_v38 = vadd.f32 %v2579_v2, %v6123_v46  ;;  %v6280_v2 = vld [vmem:[#allocation18 + $0x3c0] sm:$0xff] }
 0x313   :  { %3108 = vmatpush.msrb.mxu0 %v6118_v41  ;;  %3148 = vmatpush.msrb.mxu2 %v6120_v22 }
 0x315   :  { %3109 = vmatpush.msrb.mxu0 %v6127_v50  ;;  %3149 = vmatpush.msrb.mxu2 %v6129_v19 }
 0x317   :  { %v2605_v28 = vpop.f32.mrf.mxu1  ;;  %3110 = vmatpush.msrb.mxu0 %v6133_v63  ;;  %3150 = vmatpush.msrb.mxu2 %v6135_v8  ;;  %v2631_v62 = vpop.f32.mrf.mxu2 }
 0x318   :  { %v6146_v14 = vadd.f32 %v2605_v28, %v2580_v38  ;;  %2708 = vmatmul.f32.vlgmr.msrb.gmra.mxu1 %v5621_v51  ;;  %2760 = vmatmul.f32.vlgmr.msrb.gmra.mxu3 %v5621_v51  ;;  %v2632_v27 = vadd.f32 %v2631_v62, %v6149_v12  ;;  %v6286_v38 = vld [vmem:[#allocation18 + $0x3c8] sm:$0xff]  ;;  %v6292_v28 = vld [vmem:[#allocation18 + $0x60] sm:$0xff]  ;;  %v6294_v62 = vld [vmem:[#allocation18 + $0x390] sm:$0xff] }
 0x319   :  { %3128 = vmatpush.msrb.mxu1 %v6140_v35  ;;  %3168 = vmatpush.msrb.mxu3 %v6142_v15  ;;  %7729 = vst [vmem:[#allocation81_spill] sm:$0xff] %v6286_v38 }
 0x31a   :  { %7725 = vst [vmem:[#allocation73_spill] sm:$0xff] %v6146_v14  ;;  %2685 = vmatmul.f32.gmra.mxu0 %v5927_v52  ;;  %2737 = vmatmul.f32.gmra.mxu2 %v5927_v52  ;;  %v6308_v14 = vld [vmem:[#allocation18 + $0x360] sm:$0xff] }
 0x31b   :  { %3129 = vmatpush.msrb.mxu1 %v6153_v9  ;;  %3169 = vmatpush.msrb.mxu3 %v6155_v33  ;;  %7730 = vst [vmem:[#allocation83_spill] sm:$0xff] %v6292_v28 }
 0x31c   :  { %3111 = vmatpush.msrb.mxu0 %v6159_v61  ;;  %3151 = vmatpush.msrb.mxu2 %v6161_v57  ;;  %7731 = vst [vmem:[#allocation85_spill] sm:$0xff] %v6294_v62 }
 0x31d   :  { %v2657_v42 = vpop.f32.mrf.mxu3  ;;  %3130 = vmatpush.msrb.mxu1 %v6165_v56  ;;  %3170 = vmatpush.msrb.mxu3 %v6167_v7  ;;  %7735 = vst [vmem:[#allocation93_spill] sm:$0xff] %v6308_v14 }
 0x31e   :  { %v6184_v17 = vadd.f32 %v2657_v42, %v2632_v27  ;;  %3112 = vmatpush.msrb.mxu0 %v6171_v54  ;;  %3152 = vmatpush.msrb.mxu2 %v6173_v3  ;;  %v6298_v27 = vld [vmem:[#allocation18 + $0x68] sm:$0xff]  ;;  %v6300_v42 = vld [vmem:[#allocation18 + $0x398] sm:$0xff] }
 0x31f   :  { %3131 = vmatpush.msrb.mxu1 %v6178_v32  ;;  %3171 = vmatpush.msrb.mxu3 %v6180_v25  ;;  %7732 = vst [vmem:[#allocation87_spill] sm:$0xff] %v6298_v27 }
 0x320   :  { %7726 = vst [vmem:[#allocation75_spill] sm:$0xff] %v6184_v17  ;;  %2711 = vmatmul.f32.gmra.mxu1 %v5936_v6  ;;  %2763 = vmatmul.f32.gmra.mxu3 %v5936_v6  ;;  %v6306_v17 = vld [vmem:[#allocation18 + $0x30] sm:$0xff] }
 0x321   :  { %3113 = vmatpush.msrb.mxu0 %v6188_v40  ;;  %3132 = vmatpush.msrb.mxu1 %v6190_v29  ;;  %7733 = vst [vmem:[#allocation89_spill] sm:$0xff] %v6300_v42 }
 0x322   :  { %3153 = vmatpush.msrb.mxu2 %v6194_v37  ;;  %3172 = vmatpush.msrb.mxu3 %v6196_v60  ;;  %7734 = vst [vmem:[#allocation91_spill] sm:$0xff] %v6306_v17 }
 0x323   :  { %2688 = vmatmul.f32.gmra.mxu0 %v6104_v18  ;;  %2740 = vmatmul.f32.gmra.mxu2 %v6104_v18 }
 0x324   :  { %3114 = vmatpush.msrb.mxu0 %v6202_v16  ;;  %3133 = vmatpush.msrb.mxu1 %v6204_v26 }
 0x325   :  { %3154 = vmatpush.msrb.mxu2 %v6208_v31  ;;  %3173 = vmatpush.msrb.mxu3 %v6210_v48 }
 0x326   :  { %3115 = vmatpush.msrb.mxu0 %v6214_v43  ;;  %3134 = vmatpush.msrb.mxu1 %v6216_v21 }
 0x327   :  { %3155 = vmatpush.msrb.mxu2 %v6220_v36  ;;  %3174 = vmatpush.msrb.mxu3 %v6222_v39 }
 0x328   :  { %3116 = vmatpush.msrb.mxu0 %v6226_v20  ;;  %3135 = vmatpush.msrb.mxu1 %v6228_v13 }
 0x329   :  { %3156 = vmatpush.msrb.mxu2 %v6232_v47  ;;  %3175 = vmatpush.msrb.mxu3 %v6234_v49 }
 0x32a   :  { %2714 = vmatmul.f32.gmra.mxu1 %v6109_v30  ;;  %2766 = vmatmul.f32.gmra.mxu3 %v6109_v30 }
 0x32b   :  { %3117 = vmatpush.msrb.mxu0 %v6240_v55  ;;  %3136 = vmatpush.msrb.mxu1 %v6242_v58 }
 0x32c   :  { %3157 = vmatpush.msrb.mxu2 %v6246_v11  ;;  %3176 = vmatpush.msrb.mxu3 %v6248_v45 }
 0x32d   :  { %2786 = vmatmul.f32.vlgmr.msra.gmra.mxu0 %v5600_v1  ;;  %2838 = vmatmul.f32.vlgmr.msra.gmra.mxu2 %v5600_v1  ;;  %v6284_v1 = vld [vmem:[#allocation18 + $0x98] sm:$0xff] }
 0x32e   :  { %3118 = vmatpush.msrb.mxu0 %v6254_v5  ;;  %3137 = vmatpush.msrb.mxu1 %v6256_v24  ;;  %7728 = vst [vmem:[#allocation79_spill] sm:$0xff] %v6284_v1 }
 0x32f   :  { %3158 = vmatpush.msrb.mxu2 %v6260_v10  ;;  %3177 = vmatpush.msrb.mxu3 %v6262_v59 }
 0x330   :  { %3119 = vmatpush.msrb.mxu0 %v6266_v23  ;;  %3138 = vmatpush.msrb.mxu1 %v6268_v34 }
 0x331   :  { %3159 = vmatpush.msrb.mxu2 %v6272_v4  ;;  %3178 = vmatpush.msrb.mxu3 %v6274_v53 }
 0x332   :  { %3120 = vmatpush.msrb.mxu0 %v6278_v0  ;;  %3139 = vmatpush.msrb.mxu1 %v6280_v2  ;;  %v6314_v0 = vld [vmem:[#allocation18 + $0x368] sm:$0xff] }
 0x333   :  { %3160 = vmatpush.msrb.mxu2 %v6284_v1  ;;  %3179 = vmatpush.msrb.mxu3 %v6286_v38  ;;  %v6312_v1 = vld [vmem:[#allocation18 + $0x38] sm:$0xff]  ;;  %7737 = vst [vmem:[#allocation97_spill] sm:$0xff] %v6314_v0  ;;  %v6332_v38 = vld [vmem:[#allocation18 + $0x2e8] sm:$0xff] }
 0x334   :  { %2812 = vmatmul.f32.vlgmr.msra.gmra.mxu1 %v5621_v51  ;;  %2864 = vmatmul.f32.vlgmr.msra.gmra.mxu3 %v5621_v51  ;;  %7736 = vst [vmem:[#allocation95_spill] sm:$0xff] %v6312_v1  ;;  %v6318_v51 = vld [vmem:[#allocation18] sm:$0xff] }
 0x335   :  { %3121 = vmatpush.msrb.mxu0 %v6292_v28  ;;  %3140 = vmatpush.msrb.mxu1 %v6294_v62  ;;  %7738 = vst [vmem:[#allocation99_spill] sm:$0xff] %v6318_v51  ;;  %v6320_v28 = vld [vmem:[#allocation18 + $0x330] sm:$0xff]  ;;  %v6324_v62 = vld [vmem:[#allocation18 + $0x8] sm:$0xff] }
 0x336   :  { %3161 = vmatpush.msrb.mxu2 %v6298_v27  ;;  %3180 = vmatpush.msrb.mxu3 %v6300_v42  ;;  %7739 = vst [vmem:[#allocation101_spill] sm:$0xff] %v6324_v62  ;;  %v6326_v27 = vld [vmem:[#allocation18 + $0x338] sm:$0xff]  ;;  %v6330_v42 = vld [vmem:[#allocation18 + $0x2e0] sm:$0xff] }
 0x337   :  { %2789 = vmatmul.f32.gmra.mxu0 %v5927_v52  ;;  %2841 = vmatmul.f32.gmra.mxu2 %v5927_v52  ;;  %7740 = vst [vmem:[#allocation103_spill] sm:$0xff] %v6326_v27  ;;  %v6336_v52 = vld [vmem:[#allocation18 + $0x300] sm:$0xff] }
 0x338   :  { %3122 = vmatpush.msrb.mxu0 %v6306_v17  ;;  %3141 = vmatpush.msrb.mxu1 %v6308_v14  ;;  %7741 = vst [vmem:[#allocation105_spill] sm:$0xff] %v6330_v42  ;;  %v6338_v17 = vld [vmem:[#allocation18 + $0x308] sm:$0xff]  ;;  %v6342_v14 = vld [vmem:[#allocation18 + $0x2b0] sm:$0xff] }
 0x339   :  { %3162 = vmatpush.msrb.mxu2 %v6312_v1  ;;  %3181 = vmatpush.msrb.mxu3 %v6314_v0  ;;  %7742 = vst [vmem:[#allocation106_spill] sm:$0xff] %v6332_v38  ;;  %v6344_v1 = vld [vmem:[#allocation18 + $0x5e0] sm:$0xff]  ;;  %v6348_v0 = vld [vmem:[#allocation18 + $0x2b8] sm:$0xff] }
 0x33a   :  { %3123 = vmatpush.msrb.mxu0 %v6318_v51  ;;  %3142 = vmatpush.msrb.mxu1 %v6320_v28  ;;  %7743 = vst [vmem:[#allocation107_spill] sm:$0xff] %v6338_v17  ;;  %v6350_v51 = vld [vmem:[#allocation18 + $0x5e8] sm:$0xff] }
 0x33b   :  { %3163 = vmatpush.msrb.mxu2 %v6324_v62  ;;  %3182 = vmatpush.msrb.mxu3 %v6326_v27  ;;  %7744 = vst [vmem:[#allocation108_spill] sm:$0xff] %v6342_v14  ;;  %v6356_v62 = vld [vmem:[#allocation18 + $0x280] sm:$0xff]  ;;  %v6358_v27 = vld [vmem:[#allocation18 + $0x5b0] sm:$0xff] }
 0x33c   :  { %7745 = vst [vmem:[#allocation109_spill] sm:$0xff] %v6344_v1  ;;  %3188 = vmatpush.msra.mxu0 %v6330_v42  ;;  %3143 = vmatpush.msrb.mxu1 %v6336_v52  ;;  %v6364_v42 = vld [vmem:[#allocation18 + $0x5b8] sm:$0xff] }
 0x33d   :  { %3228 = vmatpush.msra.mxu2 %v6332_v38  ;;  %7746 = vst [vmem:[#allocation110_spill] sm:$0xff] %v6348_v0  ;;  %3183 = vmatpush.msrb.mxu3 %v6338_v17  ;;  %v6362_v38 = vld [vmem:[#allocation18 + $0x288] sm:$0xff]  ;;  %v6396_v17 = vld [vmem:[#allocation18 + $0x520] sm:$0xff] }
 0x33e   :  { %7747 = vst [vmem:[#allocation111_spill] sm:$0xff] %v6350_v51  ;;  %3189 = vmatpush.msra.mxu0 %v6342_v14  ;;  %3208 = vmatpush.msra.mxu1 %v6344_v1  ;;  %v6370_v1 = vld [vmem:[#allocation18 + $0x250] sm:$0xff]  ;;  %v6372_v14 = vld [vmem:[#allocation18 + $0x580] sm:$0xff] }
 0x33f   :  { %7748 = vst [vmem:[#allocation55_spill] sm:$0xff] %v6356_v62  ;;  %3229 = vmatpush.msra.mxu2 %v6348_v0  ;;  %3248 = vmatpush.msra.mxu3 %v6350_v51  ;;  %v6376_v51 = vld [vmem:[#allocation18 + $0x258] sm:$0xff]  ;;  %v6378_v0 = vld [vmem:[#allocation18 + $0x588] sm:$0xff] }
 0x340   :  { %7749 = vst [vmem:[#allocation56_spill] sm:$0xff] %v6358_v27  ;;  %2815 = vmatmul.f32.gmra.mxu1 %v5936_v6  ;;  %2867 = vmatmul.f32.gmra.mxu3 %v5936_v6  ;;  %v6382_v6 = vld [vmem:[#allocation18 + $0x220] sm:$0xff] }
 0x341   :  { %7750 = vst [vmem:[#allocation58_spill] sm:$0xff] %v6362_v38  ;;  %3190 = vmatpush.msra.mxu0 %v6356_v62  ;;  %3209 = vmatpush.msra.mxu1 %v6358_v27  ;;  %v6384_v62 = vld [vmem:[#allocation18 + $0x550] sm:$0xff]  ;;  %v6388_v27 = vld [vmem:[#allocation18 + $0x228] sm:$0xff] }
 0x342   :  { %7751 = vst [vmem:[#allocation59_spill] sm:$0xff] %v6364_v42  ;;  %3230 = vmatpush.msra.mxu2 %v6362_v38  ;;  %3249 = vmatpush.msra.mxu3 %v6364_v42  ;;  %v6390_v38 = vld [vmem:[#allocation18 + $0x558] sm:$0xff]  ;;  %v6394_v42 = vld [vmem:[#allocation18 + $0x1f0] sm:$0xff] }
 0x343   :  { %7752 = vst [vmem:[#allocation61_spill] sm:$0xff] %v6370_v1  ;;  %2792 = vmatmul.f32.gmra.mxu0 %v6104_v18  ;;  %2844 = vmatmul.f32.gmra.mxu2 %v6104_v18  ;;  %v6400_v18 = vld [vmem:[#allocation18 + $0x1f8] sm:$0xff] }
 0x344   :  { %7753 = vst [vmem:[#allocation62_spill] sm:$0xff] %v6372_v14  ;;  %3191 = vmatpush.msra.mxu0 %v6370_v1  ;;  %3210 = vmatpush.msra.mxu1 %v6372_v14  ;;  %v6402_v1 = vld [vmem:[#allocation18 + $0x528] sm:$0xff]  ;;  %v6410_v14 = vld [vmem:[#allocation18 + $0x4f0] sm:$0xff] }
 0x345   :  { %7754 = vst [vmem:[#allocation52_spill] sm:$0xff] %v6376_v51  ;;  %3231 = vmatpush.msra.mxu2 %v6376_v51  ;;  %3250 = vmatpush.msra.mxu3 %v6378_v0  ;;  %v6490_v51 = vld [vmem:[#allocation18 + $0xa8] sm:$0xff] }
 0x346   :  { %7755 = vst [vmem:[#allocation27_spill] sm:$0xff] %v6378_v0  ;;  %3192 = vmatpush.msra.mxu0 %v6382_v6  ;;  %3211 = vmatpush.msra.mxu1 %v6384_v62  ;;  %v6408_v0 = vld [vmem:[#allocation18 + $0x1c0] sm:$0xff] }
 0x347   :  { %7756 = vst [vmem:[#allocation63_spill] sm:$0xff] %v6382_v6  ;;  %3232 = vmatpush.msra.mxu2 %v6388_v27  ;;  %3251 = vmatpush.msra.mxu3 %v6390_v38  ;;  %v6416_v6 = vld [vmem:[#allocation18 + $0x4f8] sm:$0xff] }
 0x348   :  { %7757 = vst [vmem:[#allocation64_spill] sm:$0xff] %v6384_v62  ;;  %3193 = vmatpush.msra.mxu0 %v6394_v42  ;;  %3212 = vmatpush.msra.mxu1 %v6396_v17  ;;  %v6414_v62 = vld [vmem:[#allocation18 + $0x1c8] sm:$0xff] }
 0x349   :  { %7758 = vst [vmem:[#allocation50_spill] sm:$0xff] %v6388_v27  ;;  %3233 = vmatpush.msra.mxu2 %v6400_v18  ;;  %3252 = vmatpush.msra.mxu3 %v6402_v1  ;;  %v6434_v27 = vld [vmem:[#allocation18 + $0x490] sm:$0xff] }
 0x34a   :  { %7759 = vst [vmem:[#allocation66_spill] sm:$0xff] %v6390_v38  ;;  %2818 = vmatmul.f32.gmra.mxu1 %v6109_v30  ;;  %2870 = vmatmul.f32.gmra.mxu3 %v6109_v30  ;;  %v6420_v38 = vld [vmem:[#allocation18 + $0x190] sm:$0xff]  ;;  %v6438_v30 = vld [vmem:[#allocation18 + $0x168] sm:$0xff] }
 0x34b   :  { %7760 = vst [vmem:[#allocation67_spill] sm:$0xff] %v6394_v42  ;;  %v6422_v42 = vld [vmem:[#allocation18 + $0x4c0] sm:$0xff]  ;;  %3194 = vmatpush.msra.mxu0 %v6408_v0  ;;  %3213 = vmatpush.msra.mxu1 %v6410_v14 }
 0x34c   :  { %7761 = vst [vmem:[#allocation28_spill] sm:$0xff] %v6396_v17  ;;  %v6426_v17 = vld [vmem:[#allocation18 + $0x198] sm:$0xff]  ;;  %3234 = vmatpush.msra.mxu2 %v6414_v62  ;;  %3253 = vmatpush.msra.mxu3 %v6416_v6 }
 0x34d   :  { %7762 = vst [vmem:[#allocation69_spill] sm:$0xff] %v6400_v18  ;;  %v6428_v18 = vld [vmem:[#allocation18 + $0x4c8] sm:$0xff]  ;;  %3195 = vmatpush.msra.mxu0 %v6420_v38  ;;  %3214 = vmatpush.msra.mxu1 %v6422_v42 }
 0x34e   :  { %7763 = vst [vmem:[#allocation70_spill] sm:$0xff] %v6402_v1  ;;  %v6432_v1 = vld [vmem:[#allocation18 + $0x160] sm:$0xff]  ;;  %3235 = vmatpush.msra.mxu2 %v6426_v17  ;;  %3254 = vmatpush.msra.mxu3 %v6428_v18 }
 0x34f   :  { %7764 = vst [vmem:[#allocation54_spill] sm:$0xff] %v6408_v0  ;;  %v6440_v0 = vld [vmem:[#allocation18 + $0x498] sm:$0xff]  ;;  %3196 = vmatpush.msra.mxu0 %v6432_v1  ;;  %3215 = vmatpush.msra.mxu1 %v6434_v27 }
 0x350   :  { %7765 = vst [vmem:[#allocation29_spill] sm:$0xff] %v6410_v14  ;;  %v6448_v14 = vld [vmem:[#allocation18 + $0x460] sm:$0xff]  ;;  %3236 = vmatpush.msra.mxu2 %v6438_v30  ;;  %3255 = vmatpush.msra.mxu3 %v6440_v0 }
 0x351   :  { %7766 = vst [vmem:[#allocation71_spill] sm:$0xff] %v6414_v62  ;;  %v7780_v62 = vmov 0.0   ;;  %3216 = vmatpush.msra.mxu1 %v6448_v14 }
 0x352   :  { %7767 = vst [vmem:[#allocation72_spill] sm:$0xff] %v6416_v6  ;;  %v6446_v6 = vld [vmem:[#allocation18 + $0x130] sm:$0xff]  ;;  %3124 = vmatmul.f32.vlgmr.msrb.gmra.mxu0 %v7780_v62  ;;  %3164 = vmatmul.f32.vlgmr.msrb.gmra.mxu2 %v7780_v62 }
 0x353   :  { %7768 = vst [vmem:[#allocation53_spill] sm:$0xff] %v6420_v38  ;;  %v6454_v38 = vld [vmem:[#allocation18 + $0x468] sm:$0xff]  ;;  %3197 = vmatpush.msra.mxu0 %v6446_v6  ;;  %3144 = vmatmul.f32.vlgmr.msrb.gmra.mxu1 %v7780_v62 }
 0x354   :  { %7769 = vst [vmem:[#allocation74_spill] sm:$0xff] %v6422_v42  ;;  %v6452_v42 = vld [vmem:[#allocation18 + $0x138] sm:$0xff]  ;;  %3256 = vmatpush.msra.mxu3 %v6454_v38 }
 0x355   :  { %7770 = vst [vmem:[#allocation76_spill] sm:$0xff] %v6426_v17  ;;  %3237 = vmatpush.msra.mxu2 %v6452_v42  ;;  %3184 = vmatmul.f32.vlgmr.msrb.gmra.mxu3 %v7780_v62  ;;  %v6486_v17 = vld [vmem:[#allocation18 + $0x3d0] sm:$0xff] }
 0x356   :  { %7771 = vst [vmem:[#allocation31_spill] sm:$0xff] %v6428_v18  ;;  %v6472_v18 = vld [vmem:[#allocation18 + $0xd0] sm:$0xff] }
 0x357   :  { %7772 = vst [vmem:[#allocation57_spill] sm:$0xff] %v6432_v1  ;;  %v6462_v1 = vld [vmem:[#allocation18 + $0x430] sm:$0xff] }
 0x358   :  { %7773 = vst [vmem:[#allocation35_spill] sm:$0xff] %v6434_v27  ;;  %v6460_v27 = vld [vmem:[#allocation18 + $0x100] sm:$0xff]  ;;  %3217 = vmatpush.msra.mxu1 %v6462_v1 }
 0x359   :  { %7774 = vst [vmem:[#allocation78_spill] sm:$0xff] %v6438_v30  ;;  %v6468_v30 = vld [vmem:[#allocation18 + $0x438] sm:$0xff]  ;;  %3198 = vmatpush.msra.mxu0 %v6460_v27 }
 0x35a   :  { %7775 = vst [vmem:[#allocation80_spill] sm:$0xff] %v6440_v0  ;;  %v6466_v0 = vld [vmem:[#allocation18 + $0x108] sm:$0xff]  ;;  %3257 = vmatpush.msra.mxu3 %v6468_v30 }
 0x35b   :  { %7776 = vst [vmem:[#allocation60_spill] sm:$0xff] %v6446_v6  ;;  %v6474_v6 = vld [vmem:[#allocation18 + $0x400] sm:$0xff]  ;;  %3238 = vmatpush.msra.mxu2 %v6466_v0  ;;  %3199 = vmatpush.msra.mxu0 %v6472_v18 }
 0x35c   :  { %7777 = vst [vmem:[#allocation82_spill] sm:$0xff] %v6448_v14  ;;  %v6478_v14 = vld [vmem:[#allocation18 + $0xd8] sm:$0xff]  ;;  %3218 = vmatpush.msra.mxu1 %v6474_v6 }
 0x35d   :  { %7778 = vst [vmem:[#allocation84_spill] sm:$0xff] %v6452_v42  ;;  %v6480_v42 = vld [vmem:[#allocation18 + $0x408] sm:$0xff]  ;;  %3239 = vmatpush.msra.mxu2 %v6478_v14 }
 0x35e   :  { %7779 = vst [vmem:[#allocation36_spill] sm:$0xff] %v6454_v38  ;;  %v6484_v38 = vld [vmem:[#allocation18 + $0xa0] sm:$0xff]  ;;  %3258 = vmatpush.msra.mxu3 %v6480_v42  ;;  %3219 = vmatpush.msra.mxu1 %v6486_v17 }
 0x35f   :  { %7781 = vst [vmem:[#allocation86_spill] sm:$0xff] %v6460_v27  ;;  %v6492_v27 = vld [vmem:[#allocation18 + $0x3d8] sm:$0xff]  ;;  %3200 = vmatpush.msra.mxu0 %v6484_v38  ;;  %3240 = vmatpush.msra.mxu2 %v6490_v51 }
 0x360   :  { %7782 = vst [vmem:[#allocation88_spill] sm:$0xff] %v6462_v1  ;;  %v6496_v1 = vld [vmem:[#allocation18 + $0x70] sm:$0xff]  ;;  %3259 = vmatpush.msra.mxu3 %v6492_v27 }
 0x361   :  { %7783 = vst [vmem:[#allocation65_spill] sm:$0xff] %v6466_v0  ;;  %v6498_v0 = vld [vmem:[#allocation18 + $0x3a0] sm:$0xff]  ;;  %3201 = vmatpush.msra.mxu0 %v6496_v1 }
 0x362   :  { %7784 = vst [vmem:[#allocation37_spill] sm:$0xff] %v6468_v30  ;;  %v6502_v30 = vld [vmem:[#allocation18 + $0x78] sm:$0xff]  ;;  %3220 = vmatpush.msra.mxu1 %v6498_v0 }
 0x363   :  { %7785 = vst [vmem:[#allocation90_spill] sm:$0xff] %v6472_v18  ;;  %v6504_v18 = vld [vmem:[#allocation18 + $0x3a8] sm:$0xff]  ;;  %3241 = vmatpush.msra.mxu2 %v6502_v30 }
 0x364   :  { %7786 = vst [vmem:[#allocation92_spill] sm:$0xff] %v6474_v6  ;;  %v6508_v6 = vld [vmem:[#allocation18 + $0x40] sm:$0xff]  ;;  %3260 = vmatpush.msra.mxu3 %v6504_v18 }
 0x365   :  { %7787 = vst [vmem:[#allocation68_spill] sm:$0xff] %v6478_v14  ;;  %v6510_v14 = vld [vmem:[#allocation18 + $0x370] sm:$0xff]  ;;  %3202 = vmatpush.msra.mxu0 %v6508_v6 }
 0x366   :  { %7788 = vst [vmem:[#allocation94_spill] sm:$0xff] %v6480_v42  ;;  %v6514_v42 = vld [vmem:[#allocation18 + $0x48] sm:$0xff]  ;;  %3221 = vmatpush.msra.mxu1 %v6510_v14 }
 0x367   :  { %7789 = vst [vmem:[#allocation96_spill] sm:$0xff] %v6484_v38  ;;  %v6516_v38 = vld [vmem:[#allocation18 + $0x378] sm:$0xff]  ;;  %3242 = vmatpush.msra.mxu2 %v6514_v42 }
 0x368   :  { %7790 = vst [vmem:[#allocation39_spill] sm:$0xff] %v6486_v17  ;;  %v6520_v17 = vld [vmem:[#allocation18 + $0x10] sm:$0xff]  ;;  %3261 = vmatpush.msra.mxu3 %v6516_v38 }
 0x369   :  { %7791 = vst [vmem:[#allocation98_spill] sm:$0xff] %v6490_v51  ;;  %v6522_v51 = vld [vmem:[#allocation18 + $0x340] sm:$0xff]  ;;  %3203 = vmatpush.msra.mxu0 %v6520_v17 }
 0x36a   :  { %7792 = vst [vmem:[#allocation100_spill] sm:$0xff] %v6492_v27  ;;  %v6526_v27 = vld [vmem:[#allocation18 + $0x18] sm:$0xff]  ;;  %3222 = vmatpush.msra.mxu1 %v6522_v51  ;;  %3204 = vmatmul.f32.vlgmr.msra.gmra.mxu0 %v7780_v62 }
 0x36b   :  { %7793 = vst [vmem:[#allocation102_spill] sm:$0xff] %v6496_v1  ;;  %v6528_v1 = vld [vmem:[#allocation18 + $0x348] sm:$0xff]  ;;  %3243 = vmatpush.msra.mxu2 %v6526_v27 }
 0x36c   :  { %7794 = vst [vmem:[#allocation104_spill] sm:$0xff] %v6498_v0  ;;  %v6536_v0 = vld [vmem:[#allocation18 + $0x2f8] sm:$0xff]  ;;  %3262 = vmatpush.msra.mxu3 %v6528_v1  ;;  %3244 = vmatmul.f32.vlgmr.msra.gmra.mxu2 %v7780_v62 }
 0x36d   :  { %7795 = vst [vmem:[#allocation43_spill] sm:$0xff] %v6502_v30  ;;  %3308 = vmatpush.msrb.mxu2 %v6536_v0  ;;  %v6578_v30 = vld [vmem:[#allocation18 + $0x268] sm:$0xff] }
 0x36e   :  { %7796 = vst [vmem:[#allocation44_spill] sm:$0xff] %v6504_v18  ;;  %v6534_v18 = vld [vmem:[#allocation18 + $0x2f0] sm:$0xff] }
 0x36f   :  { %7797 = vst [vmem:[#allocation45_spill] sm:$0xff] %v6508_v6  ;;  %v6542_v6 = vld [vmem:[#allocation18 + $0x318] sm:$0xff]  ;;  %3268 = vmatpush.msrb.mxu0 %v6534_v18 }
 0x370   :  { %7798 = vst [vmem:[#allocation47_spill] sm:$0xff] %v6510_v14  ;;  %v6540_v14 = vld [vmem:[#allocation18 + $0x310] sm:$0xff]  ;;  %3263 = vmatpush.msra.mxu3 %v6542_v6 }
 0x371   :  { %7799 = vst [vmem:[#allocation112_spill] sm:$0xff] %v6514_v42  ;;  %3223 = vmatpush.msra.mxu1 %v6540_v14  ;;  %3264 = vmatmul.f32.vlgmr.msra.gmra.mxu3 %v7780_v62  ;;  %v6574_v42 = vld [vmem:[#allocation18 + $0x590] sm:$0xff] }
 0x372   :  { %7800 = vst [vmem:[#allocation113_spill] sm:$0xff] %v6516_v38  ;;  %3224 = vmatmul.f32.vlgmr.msra.gmra.mxu1 %v7780_v62  ;;  %v6560_v38 = vld [vmem:[#allocation18 + $0x290] sm:$0xff] }
 0x373   :  { %7801 = vst [vmem:[#allocation114_spill] sm:$0xff] %v6520_v17  ;;  %v6550_v17 = vld [vmem:[#allocation18 + $0x5f0] sm:$0xff] }
 0x374   :  { %7802 = vst [vmem:[#allocation115_spill] sm:$0xff] %v6522_v51  ;;  %v6548_v51 = vld [vmem:[#allocation18 + $0x2c0] sm:$0xff]  ;;  %3288 = vmatpush.msrb.mxu1 %v6550_v17 }
 0x375   :  { %7803 = vst [vmem:[#allocation116_spill] sm:$0xff] %v6526_v27  ;;  %v6556_v27 = vld [vmem:[#allocation18 + $0x5f8] sm:$0xff]  ;;  %3269 = vmatpush.msrb.mxu0 %v6548_v51 }
 0x376   :  { %7804 = vst [vmem:[#allocation117_spill] sm:$0xff] %v6528_v1  ;;  %v6554_v1 = vld [vmem:[#allocation18 + $0x2c8] sm:$0xff]  ;;  %3328 = vmatpush.msrb.mxu3 %v6556_v27 }
 0x377   :  { %7805 = vst [vmem:[#allocation118_spill] sm:$0xff] %v6534_v18  ;;  %v6562_v18 = vld [vmem:[#allocation18 + $0x5c0] sm:$0xff]  ;;  %3309 = vmatpush.msrb.mxu2 %v6554_v1  ;;  %3270 = vmatpush.msrb.mxu0 %v6560_v38 }
 0x378   :  { %7806 = vst [vmem:[#allocation119_spill] sm:$0xff] %v6536_v0  ;;  %v6566_v0 = vld [vmem:[#allocation18 + $0x298] sm:$0xff]  ;;  %3289 = vmatpush.msrb.mxu1 %v6562_v18 }
 0x379   :  { %7807 = vst [vmem:[#allocation120_spill] sm:$0xff] %v6540_v14  ;;  %v6568_v14 = vld [vmem:[#allocation18 + $0x5c8] sm:$0xff]  ;;  %3310 = vmatpush.msrb.mxu2 %v6566_v0 }
 0x37a   :  { %7808 = vst [vmem:[#allocation121_spill] sm:$0xff] %v6542_v6  ;;  %v6572_v6 = vld [vmem:[#allocation18 + $0x260] sm:$0xff]  ;;  %3329 = vmatpush.msrb.mxu3 %v6568_v14  ;;  %3290 = vmatpush.msrb.mxu1 %v6574_v42 }
 0x37b   :  { %7809 = vst [vmem:[#allocation122_spill] sm:$0xff] %v6548_v51  ;;  %v6580_v51 = vld [vmem:[#allocation18 + $0x598] sm:$0xff]  ;;  %3271 = vmatpush.msrb.mxu0 %v6572_v6  ;;  %3311 = vmatpush.msrb.mxu2 %v6578_v30 }
 0x37c   :  { %7810 = vst [vmem:[#allocation123_spill] sm:$0xff] %v6550_v17  ;;  %v6584_v17 = vld [vmem:[#allocation18 + $0x230] sm:$0xff]  ;;  %3330 = vmatpush.msrb.mxu3 %v6580_v51 }
 0x37d   :  { %7811 = vst [vmem:[#allocation124_spill] sm:$0xff] %v6554_v1  ;;  %v6586_v1 = vld [vmem:[#allocation18 + $0x560] sm:$0xff]  ;;  %3272 = vmatpush.msrb.mxu0 %v6584_v17 }
 0x37e   :  { %7812 = vst [vmem:[#allocation125_spill] sm:$0xff] %v6556_v27  ;;  %v6590_v27 = vld [vmem:[#allocation18 + $0x238] sm:$0xff]  ;;  %3291 = vmatpush.msrb.mxu1 %v6586_v1 }
 0x37f   :  { %7813 = vst [vmem:[#allocation126_spill] sm:$0xff] %v6560_v38  ;;  %v6592_v38 = vld [vmem:[#allocation18 + $0x568] sm:$0xff]  ;;  %3312 = vmatpush.msrb.mxu2 %v6590_v27 }
 0x380   :  { %7814 = vst [vmem:[#allocation127_spill] sm:$0xff] %v6562_v18  ;;  %v6596_v18 = vld [vmem:[#allocation18 + $0x200] sm:$0xff]  ;;  %3331 = vmatpush.msrb.mxu3 %v6592_v38 }
 0x381   :  { %7815 = vst [vmem:[#allocation128_spill] sm:$0xff] %v6566_v0  ;;  %v6598_v0 = vld [vmem:[#allocation18 + $0x530] sm:$0xff]  ;;  %3273 = vmatpush.msrb.mxu0 %v6596_v18 }
 0x382   :  { %7816 = vst [vmem:[#allocation129_spill] sm:$0xff] %v6568_v14  ;;  %v6602_v14 = vld [vmem:[#allocation18 + $0x208] sm:$0xff]  ;;  %3292 = vmatpush.msrb.mxu1 %v6598_v0 }
 0x383   :  { %7817 = vst [vmem:[#allocation130_spill] sm:$0xff] %v6572_v6  ;;  %v6604_v6 = vld [vmem:[#allocation18 + $0x538] sm:$0xff]  ;;  %3313 = vmatpush.msrb.mxu2 %v6602_v14 }
 0x384   :  { %7818 = vst [vmem:[#allocation131_spill] sm:$0xff] %v6574_v42  ;;  %v6608_v42 = vld [vmem:[#allocation18 + $0x1d0] sm:$0xff]  ;;  %3332 = vmatpush.msrb.mxu3 %v6604_v6 }
 0x385   :  { %7819 = vst [vmem:[#allocation132_spill] sm:$0xff] %v6578_v30  ;;  %v6610_v30 = vld [vmem:[#allocation18 + $0x500] sm:$0xff]  ;;  %3274 = vmatpush.msrb.mxu0 %v6608_v42 }
 0x386   :  { %7820 = vst [vmem:[#allocation133_spill] sm:$0xff] %v6580_v51  ;;  %v6614_v51 = vld [vmem:[#allocation18 + $0x1d8] sm:$0xff]  ;;  %3293 = vmatpush.msrb.mxu1 %v6610_v30 }
 0x387   :  { %7821 = vst [vmem:[#allocation134_spill] sm:$0xff] %v6584_v17  ;;  %v6616_v17 = vld [vmem:[#allocation18 + $0x508] sm:$0xff]  ;;  %3314 = vmatpush.msrb.mxu2 %v6614_v51 }
 0x388   :  { %7822 = vst [vmem:[#allocation135_spill] sm:$0xff] %v6586_v1  ;;  %v6620_v1 = vld [vmem:[#allocation18 + $0x1a0] sm:$0xff]  ;;  %3333 = vmatpush.msrb.mxu3 %v6616_v17 }
 0x389   :  { %7823 = vst [vmem:[#allocation136_spill] sm:$0xff] %v6590_v27  ;;  %v6622_v27 = vld [vmem:[#allocation18 + $0x4d0] sm:$0xff]  ;;  %3275 = vmatpush.msrb.mxu0 %v6620_v1 }
 0x38a   :  { %7824 = vst [vmem:[#allocation137_spill] sm:$0xff] %v6592_v38  ;;  %v6626_v38 = vld [vmem:[#allocation18 + $0x1a8] sm:$0xff]  ;;  %3294 = vmatpush.msrb.mxu1 %v6622_v27 }
 0x38b   :  { %7825 = vst [vmem:[#allocation138_spill] sm:$0xff] %v6596_v18  ;;  %v6628_v18 = vld [vmem:[#allocation18 + $0x4d8] sm:$0xff]  ;;  %3315 = vmatpush.msrb.mxu2 %v6626_v38 }
 0x38c   :  { %7826 = vst [vmem:[#allocation139_spill] sm:$0xff] %v6598_v0  ;;  %v6632_v0 = vld [vmem:[#allocation18 + $0x170] sm:$0xff]  ;;  %3334 = vmatpush.msrb.mxu3 %v6628_v18 }
 0x38d   :  { %7827 = vst [vmem:[#allocation140_spill] sm:$0xff] %v6602_v14  ;;  %v6634_v14 = vld [vmem:[#allocation18 + $0x4a0] sm:$0xff]  ;;  %3276 = vmatpush.msrb.mxu0 %v6632_v0 }
 0x38e   :  { %7828 = vst [vmem:[#allocation141_spill] sm:$0xff] %v6604_v6  ;;  %v6638_v6 = vld [vmem:[#allocation18 + $0x178] sm:$0xff]  ;;  %3295 = vmatpush.msrb.mxu1 %v6634_v14 }
 0x38f   :  { %7829 = vst [vmem:[#allocation142_spill] sm:$0xff] %v6608_v42  ;;  %v6640_v42 = vld [vmem:[#allocation18 + $0x4a8] sm:$0xff]  ;;  %3316 = vmatpush.msrb.mxu2 %v6638_v6 }
 0x390   :  { %7830 = vst [vmem:[#allocation143_spill] sm:$0xff] %v6610_v30  ;;  %v6644_v30 = vld [vmem:[#allocation18 + $0x140] sm:$0xff]  ;;  %3335 = vmatpush.msrb.mxu3 %v6640_v42 }
 0x391   :  { %7831 = vst [vmem:[#allocation144_spill] sm:$0xff] %v6614_v51  ;;  %v6646_v51 = vld [vmem:[#allocation18 + $0x470] sm:$0xff]  ;;  %3277 = vmatpush.msrb.mxu0 %v6644_v30 }
 0x392   :  { %7832 = vst [vmem:[#allocation145_spill] sm:$0xff] %v6616_v17  ;;  %v6650_v17 = vld [vmem:[#allocation18 + $0x148] sm:$0xff]  ;;  %3296 = vmatpush.msrb.mxu1 %v6646_v51 }
 0x393   :  { %7833 = vst [vmem:[#allocation146_spill] sm:$0xff] %v6620_v1  ;;  %v6652_v1 = vld [vmem:[#allocation18 + $0x478] sm:$0xff]  ;;  %3317 = vmatpush.msrb.mxu2 %v6650_v17 }
 0x394   :  { %7834 = vst [vmem:[#allocation147_spill] sm:$0xff] %v6622_v27  ;;  %v6656_v27 = vld [vmem:[#allocation18 + $0x110] sm:$0xff]  ;;  %3336 = vmatpush.msrb.mxu3 %v6652_v1 }
 0x395   :  { %7835 = vst [vmem:[#allocation148_spill] sm:$0xff] %v6626_v38  ;;  %v6658_v38 = vld [vmem:[#allocation18 + $0x440] sm:$0xff]  ;;  %3278 = vmatpush.msrb.mxu0 %v6656_v27 }
 0x396   :  { %7836 = vst [vmem:[#allocation149_spill] sm:$0xff] %v6628_v18  ;;  %v6662_v18 = vld [vmem:[#allocation18 + $0x118] sm:$0xff]  ;;  %3297 = vmatpush.msrb.mxu1 %v6658_v38 }
 0x397   :  { %7837 = vst [vmem:[#allocation150_spill] sm:$0xff] %v6632_v0  ;;  %v6664_v0 = vld [vmem:[#allocation18 + $0x448] sm:$0xff]  ;;  %3318 = vmatpush.msrb.mxu2 %v6662_v18 }
 0x398   :  { %7838 = vst [vmem:[#allocation151_spill] sm:$0xff] %v6634_v14  ;;  %v6668_v14 = vld [vmem:[#allocation18 + $0xe0] sm:$0xff]  ;;  %3337 = vmatpush.msrb.mxu3 %v6664_v0 }
 0x399   :  { %7839 = vst [vmem:[#allocation152_spill] sm:$0xff] %v6638_v6  ;;  %v6670_v6 = vld [vmem:[#allocation18 + $0x410] sm:$0xff]  ;;  %3279 = vmatpush.msrb.mxu0 %v6668_v14 }
 0x39a   :  { %7840 = vst [vmem:[#allocation153_spill] sm:$0xff] %v6640_v42  ;;  %v6674_v42 = vld [vmem:[#allocation18 + $0xe8] sm:$0xff]  ;;  %3298 = vmatpush.msrb.mxu1 %v6670_v6 }
 0x39b   :  { %7841 = vst [vmem:[#allocation154_spill] sm:$0xff] %v6644_v30  ;;  %v6676_v30 = vld [vmem:[#allocation18 + $0x418] sm:$0xff]  ;;  %3319 = vmatpush.msrb.mxu2 %v6674_v42 }
 0x39c   :  { %7842 = vst [vmem:[#allocation155_spill] sm:$0xff] %v6646_v51  ;;  %v6680_v51 = vld [vmem:[#allocation18 + $0xb0] sm:$0xff]  ;;  %3338 = vmatpush.msrb.mxu3 %v6676_v30 }
 0x39d   :  { %7843 = vst [vmem:[#allocation156_spill] sm:$0xff] %v6650_v17  ;;  %v6682_v17 = vld [vmem:[#allocation18 + $0x3e0] sm:$0xff]  ;;  %3280 = vmatpush.msrb.mxu0 %v6680_v51 }
 0x39e   :  { %7844 = vst [vmem:[#allocation157_spill] sm:$0xff] %v6652_v1  ;;  %v6686_v1 = vld [vmem:[#allocation18 + $0xb8] sm:$0xff]  ;;  %3299 = vmatpush.msrb.mxu1 %v6682_v17 }
 0x39f   :  { %7845 = vst [vmem:[#allocation158_spill] sm:$0xff] %v6656_v27  ;;  %v6688_v27 = vld [vmem:[#allocation18 + $0x3e8] sm:$0xff]  ;;  %3320 = vmatpush.msrb.mxu2 %v6686_v1 }
 0x3a0   :  { %7846 = vst [vmem:[#allocation30_spill] sm:$0xff] %v6658_v38  ;;  %v6692_v38 = vld [vmem:[#allocation18 + $0x80] sm:$0xff]  ;;  %3339 = vmatpush.msrb.mxu3 %v6688_v27 }
 0x3a1   :  { %7847 = vst [vmem:[#allocation32_spill] sm:$0xff] %v6662_v18  ;;  %v6694_v18 = vld [vmem:[#allocation18 + $0x3b0] sm:$0xff]  ;;  %3281 = vmatpush.msrb.mxu0 %v6692_v38 }
 0x3a2   :  { %7848 = vst [vmem:[#allocation33_spill] sm:$0xff] %v6664_v0  ;;  %v6698_v0 = vld [vmem:[#allocation18 + $0x88] sm:$0xff]  ;;  %3300 = vmatpush.msrb.mxu1 %v6694_v18 }
 0x3a3   :  { %7849 = vst [vmem:[#allocation34_spill] sm:$0xff] %v6668_v14  ;;  %v6700_v14 = vld [vmem:[#allocation18 + $0x3b8] sm:$0xff]  ;;  %3321 = vmatpush.msrb.mxu2 %v6698_v0 }
 0x3a4   :  { %7850 = vst [vmem:[#allocation38_spill] sm:$0xff] %v6670_v6  ;;  %v6704_v6 = vld [vmem:[#allocation18 + $0x50] sm:$0xff]  ;;  %3340 = vmatpush.msrb.mxu3 %v6700_v14 }
 0x3a5   :  { %7851 = vst [vmem:[#allocation40_spill] sm:$0xff] %v6674_v42  ;;  %v6706_v42 = vld [vmem:[#allocation18 + $0x380] sm:$0xff]  ;;  %3282 = vmatpush.msrb.mxu0 %v6704_v6 }
 0x3a6   :  { %7852 = vst [vmem:[#allocation41_spill] sm:$0xff] %v6676_v30  ;;  %v6710_v30 = vld [vmem:[#allocation18 + $0x58] sm:$0xff]  ;;  %3301 = vmatpush.msrb.mxu1 %v6706_v42 }
 0x3a7   :  { %7853 = vst [vmem:[#allocation42_spill] sm:$0xff] %v6680_v51  ;;  %v6712_v51 = vld [vmem:[#allocation18 + $0x388] sm:$0xff]  ;;  %3322 = vmatpush.msrb.mxu2 %v6710_v30 }
 0x3a8   :  { %7854 = vst [vmem:[#allocation46_spill] sm:$0xff] %v6682_v17  ;;  %v6716_v17 = vld [vmem:[#allocation18 + $0x20] sm:$0xff]  ;;  %3341 = vmatpush.msrb.mxu3 %v6712_v51 }
 0x3a9   :  { %7855 = vst [vmem:[#allocation48_spill] sm:$0xff] %v6686_v1  ;;  %v6718_v1 = vld [vmem:[#allocation18 + $0x350] sm:$0xff]  ;;  %3283 = vmatpush.msrb.mxu0 %v6716_v17 }
 0x3aa   :  { %7856 = vst [vmem:[#allocation49_spill] sm:$0xff] %v6688_v27  ;;  %v6720_v27 = vpop.f32.mrf.mxu0  ;;  %3302 = vmatpush.msrb.mxu1 %v6718_v1  ;;  %3284 = vmatmul.f32.vlgmr.msrb.gmra.mxu0 %v7780_v62 }
 0x3ab   :  { %7857 = vst [vmem:[#allocation51_spill] sm:$0xff] %v6692_v38  ;;  %v6724_v38 = vld [vmem:[#allocation18 + $0x28] sm:$0xff]  ;;  %3448 = vmatpush.msra.mxu0 %v6118_v41  ;;  %v6758_v41 = vpop.f32.mrf.mxu3 }
 0x3ac   :  { %7858 = vst [vmem:[#allocation159_spill] sm:$0xff] %v6694_v18  ;;  %v6726_v18 = vld [vmem:[#allocation18 + $0x358] sm:$0xff]  ;;  %3323 = vmatpush.msrb.mxu2 %v6724_v38 }
 0x3ad   :  { %7859 = vst [vmem:[#allocation160_spill] sm:$0xff] %v6698_v0  ;;  %v6734_v0 = vld [vmem:[#allocation18 + $0x328] sm:$0xff]  ;;  %3342 = vmatpush.msrb.mxu3 %v6726_v18  ;;  %3324 = vmatmul.f32.vlgmr.msrb.gmra.mxu2 %v7780_v62 }
 0x3ae   :  { %7860 = vst [vmem:[#allocation161_spill] sm:$0xff] %v6700_v14  ;;  %v6732_v14 = vld [vmem:[#allocation18 + $0x320] sm:$0xff]  ;;  %3488 = vmatpush.msra.mxu2 %v6120_v22  ;;  %3449 = vmatpush.msra.mxu0 %v6127_v50 }
 0x3af   :  { %7861 = vst [vmem:[#allocation162_spill] sm:$0xff] %v6712_v51  ;;  %3303 = vmatpush.msrb.mxu1 %v6732_v14  ;;  %3343 = vmatpush.msrb.mxu3 %v6734_v0  ;;  %v6744_v51 = vpop.f32.mrf.mxu2 }
 0x3b0   :  { %7862 = vst [vmem:[#allocation163_spill] sm:$0xff] %v6720_v27  ;;  %v6742_v27 = vpop.f32.mrf.mxu1  ;;  %3304 = vmatmul.f32.vlgmr.msrb.gmra.mxu1 %v7780_v62  ;;  %3344 = vmatmul.f32.vlgmr.msrb.gmra.mxu3 %v7780_v62  ;;  %v7885_v62 = vld [vmem:[#allocation55_spill] sm:$0xff] }
 0x3b1   :  { %7863 = vst [vmem:[#allocation164_spill] sm:$0xff] %v6726_v18  ;;  %3468 = vmatpush.msra.mxu1 %v6140_v35  ;;  %3508 = vmatpush.msra.mxu3 %v6142_v15 }
 0x3b2   :  { %v2585_v18 = vpop.f32.mrf.mxu0  ;;  %3489 = vmatpush.msra.mxu2 %v6129_v19  ;;  %3450 = vmatpush.msra.mxu0 %v6133_v63 }
 0x3b3   :  { %3469 = vmatpush.msra.mxu1 %v6153_v9  ;;  %3509 = vmatpush.msra.mxu3 %v6155_v33  ;;  %v2586_v22 = vadd.f32 %v2585_v18, %v6123_v46  ;;  %v2663_v15 = vpop.f32.mrf.mxu3  ;;  %v7886_v18 = vld [vmem:[#allocation58_spill] sm:$0xff] }
 0x3b4   :  { %3490 = vmatpush.msra.mxu2 %v6135_v8  ;;  %3451 = vmatpush.msra.mxu0 %v6159_v61 }
 0x3b5   :  { %3470 = vmatpush.msra.mxu1 %v6165_v56  ;;  %3510 = vmatpush.msra.mxu3 %v6167_v7 }
 0x3b6   :  { %3491 = vmatpush.msra.mxu2 %v6161_v57  ;;  %3452 = vmatpush.msra.mxu0 %v6171_v54  ;;  %v6795_v57 = vperm.slane %v6114_v44, 2 }
 0x3b7   :  { %v2637_v19 = vpop.f32.mrf.mxu2  ;;  %3471 = vmatpush.msra.mxu1 %v6178_v32  ;;  %3511 = vmatpush.msra.mxu3 %v6180_v25 }
 0x3b8   :  { %v2611_v50 = vpop.f32.mrf.mxu1  ;;  %3492 = vmatpush.msra.mxu2 %v6173_v3  ;;  %3453 = vmatpush.msra.mxu0 %v6188_v40  ;;  %v2638_v35 = vadd.f32 %v2637_v19, %v6149_v12  ;;  %v6813_v3 = vperm.slane %v6114_v44, 3  ;;  %v7864_v40 = vld [vmem:[#allocation81_spill] sm:$0xff] }
 0x3b9   :  { %v6767_v63 = vadd.f32 %v2611_v50, %v2586_v22  ;;  %3472 = vmatpush.msra.mxu1 %v6190_v29  ;;  %3512 = vmatpush.msra.mxu3 %v6196_v60  ;;  %v7865_v60 = vld [vmem:[#allocation77_spill] sm:$0xff]  ;;  %v7887_v22 = vld [vmem:[#allocation56_spill] sm:$0xff]  ;;  %v7888_v50 = vld [vmem:[#allocation59_spill] sm:$0xff] }
 0x3ba   :  { %v6771_v8 = vpop.f32.mrf.mxu0  ;;  %3493 = vmatpush.msra.mxu2 %v6194_v37  ;;  %3454 = vmatpush.msra.mxu0 %v6202_v16  ;;  %v6784_v9 = vadd.f32 %v2663_v15, %v2638_v35  ;;  %v7866_v16 = vld [vmem:[#allocation79_spill] sm:$0xff]  ;;  %v7867_v44 = vld [vmem:[#allocation85_spill] sm:$0xff]  ;;  %v7890_v35 = vld [vmem:[#allocation52_spill] sm:$0xff] }
 0x3bb   :  { %3473 = vmatpush.msra.mxu1 %v6204_v26  ;;  %3513 = vmatpush.msra.mxu3 %v6210_v48  ;;  %v6808_v54 = vpop.f32.mrf.mxu3  ;;  %v7868_v26 = vld [vmem:[#allocation89_spill] sm:$0xff]  ;;  %v7869_v48 = vld [vmem:[#allocation83_spill] sm:$0xff]  ;;  %v7891_v15 = vld [vmem:[#allocation62_spill] sm:$0xff] }
 0x3bc   :  { %3494 = vmatpush.msra.mxu2 %v6208_v31  ;;  %3455 = vmatpush.msra.mxu0 %v6214_v43  ;;  %v7870_v43 = vld [vmem:[#allocation87_spill] sm:$0xff]  ;;  %v7889_v19 = vld [vmem:[#allocation61_spill] sm:$0xff] }
 0x3bd   :  { %3474 = vmatpush.msra.mxu1 %v6216_v21  ;;  %3514 = vmatpush.msra.mxu3 %v6222_v39  ;;  %v7872_v39 = vld [vmem:[#allocation97_spill] sm:$0xff] }
 0x3be   :  { %3495 = vmatpush.msra.mxu2 %v6220_v36  ;;  %3456 = vmatpush.msra.mxu0 %v6226_v20  ;;  %v7871_v36 = vld [vmem:[#allocation93_spill] sm:$0xff]  ;;  %v7873_v20 = vld [vmem:[#allocation91_spill] sm:$0xff] }
 0x3bf   :  { %v6790_v61 = vpop.f32.mrf.mxu2  ;;  %3475 = vmatpush.msra.mxu1 %v6228_v13  ;;  %3515 = vmatpush.msra.mxu3 %v6234_v49  ;;  %v7874_v13 = vld [vmem:[#allocation95_spill] sm:$0xff] }
 0x3c0   :  { %v6788_v33 = vpop.f32.mrf.mxu1  ;;  %3496 = vmatpush.msra.mxu2 %v6232_v47  ;;  %3457 = vmatpush.msra.mxu0 %v6240_v55  ;;  %v7875_v49 = vld [vmem:[#allocation103_spill] sm:$0xff] }
 0x3c1   :  { %3476 = vmatpush.msra.mxu1 %v6242_v58  ;;  %3516 = vmatpush.msra.mxu3 %v6248_v45  ;;  %v7876_v58 = vld [vmem:[#allocation99_spill] sm:$0xff]  ;;  %v7878_v45 = vld [vmem:[#allocation105_spill] sm:$0xff] }
 0x3c2   :  { %v2686_v56 = vpop.f32.mrf.mxu0  ;;  %3497 = vmatpush.msra.mxu2 %v6246_v11  ;;  %3458 = vmatpush.msra.mxu0 %v6254_v5  ;;  %v7877_v11 = vld [vmem:[#allocation101_spill] sm:$0xff]  ;;  %v7879_v5 = vld [vmem:[#allocation106_spill] sm:$0xff] }
 0x3c3   :  { %v2687_v7 = vadd.f32 %v2686_v56, %v6795_v57  ;;  %3477 = vmatpush.msra.mxu1 %v6256_v24  ;;  %3517 = vmatpush.msra.mxu3 %v6262_v59  ;;  %v2764_v47 = vpop.f32.mrf.mxu3  ;;  %v7892_v56 = vld [vmem:[#allocation27_spill] sm:$0xff] }
 0x3c4   :  { %3498 = vmatpush.msra.mxu2 %v6260_v10  ;;  %3459 = vmatpush.msra.mxu0 %v6266_v23  ;;  %v7880_v10 = vld [vmem:[#allocation107_spill] sm:$0xff] }
 0x3c5   :  { %3478 = vmatpush.msra.mxu1 %v6268_v34  ;;  %3518 = vmatpush.msra.mxu3 %v6274_v53  ;;  %v7881_v34 = vld [vmem:[#allocation108_spill] sm:$0xff] }
 0x3c6   :  { %3499 = vmatpush.msra.mxu2 %v6272_v4  ;;  %3460 = vmatpush.msra.mxu0 %v7865_v60  ;;  %v7882_v4 = vld [vmem:[#allocation110_spill] sm:$0xff] }
 0x3c7   :  { %v2738_v25 = vpop.f32.mrf.mxu2  ;;  %3479 = vmatpush.msra.mxu1 %v6280_v2  ;;  %3519 = vmatpush.msra.mxu3 %v7864_v40  ;;  %v7883_v2 = vld [vmem:[#allocation109_spill] sm:$0xff]  ;;  %v7896_v60 = vld [vmem:[#allocation66_spill] sm:$0xff] }
 0x3c8   :  { %v2712_v32 = vpop.f32.mrf.mxu1  ;;  %v2739_v37 = vadd.f32 %v2738_v25, %v6813_v3  ;;  %3500 = vmatpush.msra.mxu2 %v7866_v16  ;;  %3461 = vmatpush.msra.mxu0 %v7869_v48  ;;  %v7894_v25 = vld [vmem:[#allocation50_spill] sm:$0xff]  ;;  %v7897_v16 = vld [vmem:[#allocation67_spill] sm:$0xff] }
 0x3c9   :  { %v6819_v29 = vadd.f32 %v2712_v32, %v2687_v7  ;;  %3480 = vmatpush.msra.mxu1 %v7867_v44  ;;  %3520 = vmatpush.msra.mxu3 %v7868_v26  ;;  %v7893_v32 = vld [vmem:[#allocation63_spill] sm:$0xff]  ;;  %v7898_v44 = vld [vmem:[#allocation69_spill] sm:$0xff]  ;;  %v7900_v48 = vld [vmem:[#allocation70_spill] sm:$0xff] }
 0x3ca   :  { %v2689_v31 = vpop.f32.mrf.mxu0  ;;  %3501 = vmatpush.msra.mxu2 %v7870_v43  ;;  %3462 = vmatpush.msra.mxu0 %v7873_v20  ;;  %v6835_v55 = vadd.f32 %v2764_v47, %v2739_v37  ;;  %v7895_v37 = vld [vmem:[#allocation64_spill] sm:$0xff]  ;;  %v7901_v43 = vld [vmem:[#allocation54_spill] sm:$0xff] }
 0x3cb   :  { %v2690_v21 = vadd.f32 %v2689_v31, %v6795_v57  ;;  %3481 = vmatpush.msra.mxu1 %v7871_v36  ;;  %3521 = vmatpush.msra.mxu3 %v7872_v39  ;;  %v2767_v7 = vpop.f32.mrf.mxu3  ;;  %v7899_v31 = vld [vmem:[#allocation28_spill] sm:$0xff]  ;;  %v7903_v36 = vld [vmem:[#allocation29_spill] sm:$0xff]  ;;  %v4503_v20 = vld [vmem:[%s7195_s7] sm:$0x3f] }
 0x3cc   :  { %3502 = vmatpush.msra.mxu2 %v7874_v13  ;;  %3463 = vmatpush.msra.mxu0 %v7876_v58  ;;  %v7904_v39 = vld [vmem:[#allocation72_spill] sm:$0xff]  ;;  %v6879_v13 = vperm.slane %v4503_v20, 4 }
 0x3cd   :  { %3482 = vmatpush.msra.mxu1 %v6320_v28  ;;  %3522 = vmatpush.msra.mxu3 %v7875_v49  ;;  %v7884_v28 = vld [vmem:[#allocation111_spill] sm:$0xff]  ;;  %v7905_v49 = vld [vmem:[#allocation53_spill] sm:$0xff]  ;;  %v7906_v58 = vld [vmem:[#allocation76_spill] sm:$0xff] }
 0x3ce   :  { %3503 = vmatpush.msra.mxu2 %v7877_v11  ;;  %3528 = vmatpush.msrb.mxu0 %v7878_v45  ;;  %v7907_v45 = vld [vmem:[#allocation74_spill] sm:$0xff] }
 0x3cf   :  { %v2741_v24 = vpop.f32.mrf.mxu2  ;;  %3483 = vmatpush.msra.mxu1 %v6336_v52  ;;  %3523 = vmatpush.msra.mxu3 %v7880_v10  ;;  %v7909_v10 = vld [vmem:[#allocation57_spill] sm:$0xff] }
 0x3d0   :  { %3568 = vmatpush.msrb.mxu2 %v7879_v5  ;;  %v2715_v59 = vpop.f32.mrf.mxu1  ;;  %v2742_v23 = vadd.f32 %v2741_v24, %v6813_v3  ;;  %3529 = vmatpush.msrb.mxu0 %v7881_v34  ;;  %v7908_v5 = vld [vmem:[#allocation31_spill] sm:$0xff]  ;;  %v7912_v34 = vld [vmem:[#allocation80_spill] sm:$0xff] }
 0x3d1   :  { %v6846_v53 = vadd.f32 %v2715_v59, %v2690_v21  ;;  %3548 = vmatpush.msrb.mxu1 %v7883_v2  ;;  %3588 = vmatpush.msrb.mxu3 %v7884_v28  ;;  %v7902_v21 = vld [vmem:[#allocation71_spill] sm:$0xff]  ;;  %v7910_v59 = vld [vmem:[#allocation78_spill] sm:$0xff]  ;;  %v7914_v2 = vld [vmem:[#allocation84_spill] sm:$0xff] }
 0x3d2   :  { %3569 = vmatpush.msrb.mxu2 %v7882_v4  ;;  %3530 = vmatpush.msrb.mxu0 %v7885_v62  ;;  %v6852_v52 = vpop.f32.mrf.mxu0  ;;  %v6862_v40 = vadd.f32 %v2767_v7, %v2742_v23  ;;  %v7911_v23 = vld [vmem:[#allocation35_spill] sm:$0xff]  ;;  %v7913_v4 = vld [vmem:[#allocation60_spill] sm:$0xff]  ;;  %v7915_v28 = vld [vmem:[#allocation82_spill] sm:$0xff] }
 0x3d3   :  { %3549 = vmatpush.msrb.mxu1 %v7887_v22  ;;  %3589 = vmatpush.msrb.mxu3 %v7888_v50  ;;  %v7916_v62 = vld [vmem:[#allocation36_spill] sm:$0xff]  ;;  %v6898_v22 = vpop.f32.mrf.mxu3  ;;  %v7917_v50 = vld [vmem:[#allocation86_spill] sm:$0xff] }
 0x3d4   :  { %3570 = vmatpush.msrb.mxu2 %v7886_v18  ;;  %3531 = vmatpush.msrb.mxu0 %v7889_v19  ;;  %v6896_v18 = vperm.slane %v4503_v20, 5  ;;  %v7918_v19 = vld [vmem:[#allocation65_spill] sm:$0xff] }
 0x3d5   :  { %3550 = vmatpush.msrb.mxu1 %v7891_v15  ;;  %3590 = vmatpush.msrb.mxu3 %v7892_v56  ;;  %v7919_v15 = vld [vmem:[#allocation88_spill] sm:$0xff]  ;;  %v7920_v56 = vld [vmem:[#allocation37_spill] sm:$0xff] }
 0x3d6   :  { %3571 = vmatpush.msrb.mxu2 %v7890_v35  ;;  %3532 = vmatpush.msrb.mxu0 %v7893_v32  ;;  %v7921_v32 = vld [vmem:[#allocation90_spill] sm:$0xff] }
 0x3d7   :  { %3551 = vmatpush.msrb.mxu1 %v7895_v37  ;;  %3591 = vmatpush.msrb.mxu3 %v7896_v60  ;;  %v6868_v26 = vpop.f32.mrf.mxu2  ;;  %v7923_v37 = vld [vmem:[#allocation92_spill] sm:$0xff]  ;;  %v7924_v60 = vld [vmem:[#allocation94_spill] sm:$0xff] }
 0x3d8   :  { %3572 = vmatpush.msrb.mxu2 %v7894_v25  ;;  %3533 = vmatpush.msrb.mxu0 %v7897_v16  ;;  %v6881_v47 = vpop.f32.mrf.mxu1  ;;  %v7922_v25 = vld [vmem:[#allocation68_spill] sm:$0xff] }
 0x3d9   :  { %3552 = vmatpush.msrb.mxu1 %v7899_v31  ;;  %3592 = vmatpush.msrb.mxu3 %v7900_v48  ;;  %v7926_v31 = vld [vmem:[#allocation98_spill] sm:$0xff] }
 0x3da   :  { %3573 = vmatpush.msrb.mxu2 %v7898_v44  ;;  %3534 = vmatpush.msrb.mxu0 %v7901_v43  ;;  %v2790_v11 = vpop.f32.mrf.mxu0  ;;  %v7925_v44 = vld [vmem:[#allocation96_spill] sm:$0xff]  ;;  %v7927_v43 = vld [vmem:[#allocation39_spill] sm:$0xff] }
 0x3db   :  { %3553 = vmatpush.msrb.mxu1 %v7903_v36  ;;  %3593 = vmatpush.msrb.mxu3 %v7904_v39  ;;  %v2791_v24 = vadd.f32 %v2790_v11, %v6879_v13  ;;  %v7929_v36 = vld [vmem:[#allocation102_spill] sm:$0xff]  ;;  %v7930_v39 = vld [vmem:[#allocation43_spill] sm:$0xff] }
 0x3dc   :  { %3574 = vmatpush.msrb.mxu2 %v7902_v21  ;;  %3535 = vmatpush.msrb.mxu0 %v7905_v49  ;;  %v7928_v21 = vld [vmem:[#allocation100_spill] sm:$0xff] }
 0x3dd   :  { %3554 = vmatpush.msrb.mxu1 %v7907_v45  ;;  %3594 = vmatpush.msrb.mxu3 %v7908_v5  ;;  %v7931_v49 = vld [vmem:[#allocation104_spill] sm:$0xff]  ;;  %v7933_v45 = vld [vmem:[#allocation45_spill] sm:$0xff] }
 0x3de   :  { %3575 = vmatpush.msrb.mxu2 %v7906_v58  ;;  %3536 = vmatpush.msrb.mxu0 %v7909_v10  ;;  %v7932_v58 = vld [vmem:[#allocation44_spill] sm:$0xff]  ;;  %v7936_v10 = vld [vmem:[#allocation113_spill] sm:$0xff] }
 0x3df   :  { %3555 = vmatpush.msrb.mxu1 %v7911_v23  ;;  %3595 = vmatpush.msrb.mxu3 %v7912_v34  ;;  %v2842_v35 = vpop.f32.mrf.mxu2  ;;  %v7934_v5 = vld [vmem:[#allocation112_spill] sm:$0xff]  ;;  %v7937_v23 = vld [vmem:[#allocation114_spill] sm:$0xff] }
 0x3e0   :  { %3576 = vmatpush.msrb.mxu2 %v7910_v59  ;;  %3537 = vmatpush.msrb.mxu0 %v7913_v4  ;;  %v2843_v7 = vadd.f32 %v2842_v35, %v6896_v18  ;;  %v2816_v16 = vpop.f32.mrf.mxu1  ;;  %v2868_v59 = vpop.f32.mrf.mxu3  ;;  %v7938_v34 = vld [vmem:[#allocation116_spill] sm:$0xff] }
 0x3e1   :  { %3556 = vmatpush.msrb.mxu1 %v7915_v28  ;;  %3596 = vmatpush.msrb.mxu3 %v7916_v62  ;;  %v6911_v48 = vadd.f32 %v2816_v16, %v2791_v24  ;;  %v7935_v24 = vld [vmem:[#allocation47_spill] sm:$0xff]  ;;  %v7940_v28 = vld [vmem:[#allocation117_spill] sm:$0xff] }
 0x3e2   :  { %3577 = vmatpush.msrb.mxu2 %v7914_v2  ;;  %3538 = vmatpush.msrb.mxu0 %v7917_v50  ;;  %v2793_v20 = vpop.f32.mrf.mxu0  ;;  %v6926_v4 = vadd.f32 %v2868_v59, %v2843_v7  ;;  %v7939_v2 = vld [vmem:[#allocation115_spill] sm:$0xff]  ;;  %v7941_v50 = vld [vmem:[#allocation120_spill] sm:$0xff] }
 0x3e3   :  { %3557 = vmatpush.msrb.mxu1 %v7919_v15  ;;  %3597 = vmatpush.msrb.mxu3 %v7920_v56  ;;  %v2794_v11 = vadd.f32 %v2793_v20, %v6879_v13 }
 0x3e4   :  { %3578 = vmatpush.msrb.mxu2 %v7918_v19  ;;  %3539 = vmatpush.msrb.mxu0 %v7921_v32  ;;  %v7942_v19 = vld [vmem:[#allocation121_spill] sm:$0xff]  ;;  %v6935_v32 = vld [vmem:[#allocation19] sm:$0x3f] }
 0x3e5   :  { %3558 = vmatpush.msrb.mxu1 %v7923_v37  ;;  %3598 = vmatpush.msrb.mxu3 %v7924_v60 }
 0x3e6   :  { %3579 = vmatpush.msrb.mxu2 %v7922_v25  ;;  %3540 = vmatpush.msrb.mxu0 %v7925_v44  ;;  %v6938_v25 = vperm.slane %v6935_v32, 0 }
 0x3e7   :  { %3559 = vmatpush.msrb.mxu1 %v7927_v43  ;;  %3599 = vmatpush.msrb.mxu3 %v7928_v21  ;;  %v2845_v62 = vpop.f32.mrf.mxu2  ;;  %v7943_v21 = vld [vmem:[#allocation73_spill] sm:$0xff] }
 0x3e8   :  { %3580 = vmatpush.msrb.mxu2 %v7926_v31  ;;  %3541 = vmatpush.msrb.mxu0 %v7929_v36  ;;  %v2819_v35 = vpop.f32.mrf.mxu1  ;;  %v2846_v15 = vadd.f32 %v2845_v62, %v6896_v18  ;;  %v2871_v7 = vpop.f32.mrf.mxu3  ;;  %v6944_v31 = vperm.slane %v6935_v32, 1  ;;  %v6956_v62 = vperm.slane %v6935_v32, 3 }
 0x3e9   :  { %3560 = vmatpush.msrb.mxu1 %v7931_v49  ;;  %3600 = vmatpush.msrb.mxu3 %v7932_v58  ;;  %v6933_v56 = vadd.f32 %v2819_v35, %v2794_v11 }
 0x3ea   :  { %3581 = vmatpush.msrb.mxu2 %v7930_v39  ;;  %3542 = vmatpush.msrb.mxu0 %v7933_v45  ;;  %v6940_v37 = vadd.f32 %v2871_v7, %v2846_v15  ;;  %v3125_v60 = vpop.f32.mrf.mxu0  ;;  %v7944_v45 = vld [vmem:[#allocation75_spill] sm:$0xff] }
 0x3eb   :  { %3561 = vmatpush.msrb.mxu1 %v7935_v24  ;;  %3601 = vmatpush.msrb.mxu3 %v7936_v10  ;;  %v3126_v16 = vadd.f32 %v3125_v60, %v6938_v25  ;;  %v6950_v24 = vperm.slane %v6935_v32, 2 }
 0x3ec   :  { %3582 = vmatpush.msrb.mxu2 %v7934_v5  ;;  %3543 = vmatpush.msrb.mxu0 %v7937_v23 }
 0x3ed   :  { %3562 = vmatpush.msrb.mxu1 %v7939_v2  ;;  %3602 = vmatpush.msrb.mxu3 %v7940_v28  ;;  %v2684_v2 = vadd.f32 %v6771_v8, %v6795_v57 }
 0x3ee   :  { %3583 = vmatpush.msrb.mxu2 %v7938_v34 }
 0x3ef   :  { %3563 = vmatpush.msrb.mxu1 %v7941_v50  ;;  %3603 = vmatpush.msrb.mxu3 %v7942_v19  ;;  %v3165_v39 = vpop.f32.mrf.mxu2  ;;  %v2710_v50 = vadd.f32 %v6788_v33, %v2684_v2 }
 0x3f0   :  { %v3145_v44 = vpop.f32.mrf.mxu1  ;;  %v3166_v20 = vadd.f32 %v3165_v39, %v6944_v31  ;;  %v3185_v58 = vpop.f32.mrf.mxu3 }
 0x3f1   :  { %v3146_v43 = vadd.f32 %v3145_v44, %v3126_v16  ;;  %v2736_v44 = vadd.f32 %v6790_v61, %v6813_v3 }
 0x3f2   :  { %v3186_v11 = vadd.f32 %v3185_v58, %v3166_v20  ;;  %v3205_v59 = vpop.f32.mrf.mxu0 }
 0x3f3   :  { %v3348_v36 = vadd.f32 %v3146_v43, %v7943_v21  ;;  %v3206_v23 = vadd.f32 %v3205_v59, %v6950_v24  ;;  %v2762_v57 = vadd.f32 %v6808_v54, %v2736_v44 }
 0x3f4   :  { %v3349_v5 = vadd.f32 %v3186_v11, %v7944_v45 }
 0x3f5   :  { %v4323_v49 = vmul.f32 -1.442695, %v3348_v36 }
 0x3f6   :  { %v4324_v10 = vmul.f32 -1.442695, %v3349_v5 }
 0x3f7   :  { %4410 = vpow2.f32 %v4323_v49  ;;  %v3245_v7 = vpop.f32.mrf.mxu2 }
 0x3f8   :  { %4412 = vpow2.f32 %v4324_v10  ;;  %v3225_v28 = vpop.f32.mrf.mxu1  ;;  %v3246_v60 = vadd.f32 %v3245_v7, %v6956_v62  ;;  %v3265_v8 = vpop.f32.mrf.mxu3 }
 0x3f9   :  { %v3226_v19 = vadd.f32 %v3225_v28, %v3206_v23 }
 0x3fa   :  { %v3266_v21 = vadd.f32 %v3265_v8, %v3246_v60 }
 0x3fb   :  { %v3388_v15 = vadd.f32 %v3226_v19, %v2710_v50 }
 0x3fc   :  { %v3389_v39 = vadd.f32 %v3266_v21, %v2762_v57 }
 0x3fd   :  { %v4411_v34 = vpop.eup %4410  ;;  %v4325_v43 = vmul.f32 -1.442695, %v3388_v15 }
 0x3fe   :  { %v3356_v35 = vadd.f32 1.0, %v4411_v34  ;;  %v4413_v16 = vpop.eup %4412  ;;  %v4326_v33 = vmul.f32 -1.442695, %v3389_v39  ;;  %v6972_v34 = vperm.slane %v6935_v32, 4 }
 0x3ff   :  { %v3357_v36 = vadd.f32 1.0, %v4413_v16 }
 0x400   :  { %4414 = vrcp.f32 %v3356_v35  ;;  %v3367_v50 = vand.u32 2147483647, %v3356_v35  ;;  %v3369_v19 = vand.u32 2147483648, %v3356_v35  ;;  %vm3363_vm1 = vweird.f32 %v3356_v35 }
 0x401   :  { %4416 = vpow2.f32 %v4325_v43  ;;  %v2788_v43 = vadd.f32 %v6852_v52, %v6879_v13  ;;  %vm3378_vm5 = vweird.f32 %v3357_v36  ;;  %v3382_v52 = vand.u32 2147483647, %v3357_v36 }
 0x402   :  { %4418 = vrcp.f32 %v3357_v36  ;;  %vm3368_vm3 = vcmp.eq.f32.partialorder %v3367_v50, 8.507059e+37  ;;  %v3370_v21 = vor.u32 1.1754944e-38, %v3369_v19  ;;  %v2840_v19 = vadd.f32 %v6868_v26, %v6896_v18 }
 0x403   :  { %4420 = vpow2.f32 %v4326_v33  ;;  %v6982_v33 = vperm.slane %v6935_v32, 5  ;;  %vm3383_vm7 = vcmp.eq.f32.partialorder %v3382_v52, 8.507059e+37 }
 0x406   :  { %v4415_v20 = vpop.eup %4414 }
 0x407   :  { %v4417_v49 = vpop.eup %4416  ;;  %v3359_v11 = vmul.f32 %v4415_v20, %v3356_v35  ;;  %vm3364_vm0 = vweird.f32 %v4415_v20 }
 0x408   :  { %v6963_v58 = vadd.f32 1.0, %v4417_v49  ;;  %v4419_v45 = vpop.eup %4418  ;;  %vm3365_vm2 = vmor %vm3363_vm1, %vm3364_vm0 }
 0x409   :  { %v4421_v5 = vpop.eup %4420  ;;  %v3360_v61 = vsub.f32 1.0, %v3359_v11  ;;  %v3374_v54 = vmul.f32 %v4419_v45, %v3357_v36  ;;  %vm3379_vm4 = vweird.f32 %v4419_v45 }
 0x40a   :  { %4422 = vrcp.f32 %v6963_v58  ;;  %v6966_v3 = vadd.f32 1.0, %v4421_v5  ;;  %v3384_v5 = vand.u32 2147483648, %v3357_v36  ;;  %vm3380_vm6 = vmor %vm3378_vm5, %vm3379_vm4  ;;  %vm3403_vm9 = vweird.f32 %v6963_v58 }
 0x40b   :  { %v3361_v10 = vmul.f32 %v4415_v20, %v3360_v61  ;;  %v3375_v23 = vsub.f32 1.0, %v3374_v54 }
 0x40c   :  { %4424 = vrcp.f32 %v6966_v3  ;;  %v3385_v50 = vor.u32 1.1754944e-38, %v3384_v5  ;;  %vm3418_vm13 = vweird.f32 %v6966_v3 }
 0x40d   :  { %v3362_v2 = vadd.f32 %v4415_v20, %v3361_v10  ;;  %v3376_v15 = vmul.f32 %v4419_v45, %v3375_v23 }
 0x40f   :  { %v3366_v44 = vsel %vm3365_vm2, %v4415_v20, %v3362_v2  ;;  %v3377_v35 = vadd.f32 %v4419_v45, %v3376_v15  ;;  %v2814_v20 = vadd.f32 %v6881_v47, %v2788_v43  ;;  %v3407_v43 = vand.u32 2147483647, %v6963_v58 }
 0x410   :  { %v6968_v59 = vpop.eup %4422  ;;  %v3371_v11 = vsel %vm3368_vm3, %v3370_v21, %v3366_v44 }
 0x411   :  { %v3399_v28 = vmul.f32 %v6968_v59, %v6963_v58  ;;  %v3381_v23 = vsel %vm3380_vm6, %v4419_v45, %v3377_v35  ;;  %vm3404_vm8 = vweird.f32 %v6968_v59  ;;  %vm3408_vm12 = vcmp.eq.f32.partialorder %v3407_v43, 8.507059e+37  ;;  %v7961_v43 = vld [vmem:[#allocation140_spill] sm:$0xff] }
 0x412   :  { %v6976_v60 = vpop.eup %4424  ;;  %v3386_v36 = vsel %vm3383_vm7, %v3385_v50, %v3381_v23  ;;  %vm3405_vm10 = vmor %vm3403_vm9, %vm3404_vm8  ;;  %v7952_v50 = vld [vmem:[#allocation123_spill] sm:$0xff] }
 0x413   :  { %v3400_v8 = vsub.f32 1.0, %v3399_v28  ;;  %v3414_v49 = vmul.f32 %v6976_v60, %v6966_v3  ;;  %vm3419_vm11 = vweird.f32 %v6976_v60 }
 0x414   :  { %vm3420_vm14 = vmor %vm3418_vm13, %vm3419_vm11 }
 0x415   :  { %v3401_v13 = vmul.f32 %v6968_v59, %v3400_v8  ;;  %v3415_v2 = vsub.f32 1.0, %v3414_v49 }
 0x417   :  { %v3402_v47 = vadd.f32 %v6968_v59, %v3401_v13  ;;  %v3416_v45 = vmul.f32 %v6976_v60, %v3415_v2  ;;  %v7945_v13 = vld [vmem:[#allocation118_spill] sm:$0xff]  ;;  %v7950_v2 = vld [vmem:[#allocation128_spill] sm:$0xff] }
 0x419   :  { %v3406_v18 = vsel %vm3405_vm10, %v6968_v59, %v3402_v47  ;;  %v3417_v21 = vadd.f32 %v6976_v60, %v3416_v45  ;;  %v7955_v47 = vld [vmem:[#allocation134_spill] sm:$0xff]  ;;  %v7960_v45 = vld [vmem:[#allocation131_spill] sm:$0xff] }
 0x41b   :  { %v3421_v59 = vsel %vm3420_vm14, %v6976_v60, %v3417_v21  ;;  %v7949_v60 = vld [vmem:[#allocation126_spill] sm:$0xff] }
 0x41c   :  { %v7967_v21 = vld [vmem:[#allocation146_spill] sm:$0xff] }
 0x427   :  { %v3285_v7 = vpop.f32.mrf.mxu0 }
 0x428   :  { %v3286_v16 = vadd.f32 %v3285_v7, %v6972_v34  ;;  %v2866_v7 = vadd.f32 %v6898_v22, %v2840_v19  ;;  %v7953_v19 = vld [vmem:[#allocation132_spill] sm:$0xff] }
 0x42d   :  { %v3305_v57 = vpop.f32.mrf.mxu1 }
 0x42e   :  { %v3306_v39 = vadd.f32 %v3305_v57, %v3286_v16  ;;  %v3409_v16 = vand.u32 2147483648, %v6963_v58  ;;  %v3422_v58 = vand.u32 2147483647, %v6966_v3 }
 0x430   :  { %v3428_v61 = vmul.f32 %v3371_v11, %v3306_v39  ;;  %v3325_v54 = vpop.f32.mrf.mxu2  ;;  %v3410_v57 = vor.u32 1.1754944e-38, %v3409_v16  ;;  %v3424_v39 = vand.u32 2147483648, %v6966_v3  ;;  %vm3423_vm15 = vcmp.eq.f32.partialorder %v3422_v58, 8.507059e+37  ;;  %v7947_v3 = vld [vmem:[#allocation122_spill] sm:$0xff]  ;;  %v7958_v16 = vld [vmem:[#allocation129_spill] sm:$0xff] }
 0x431   :  { %v3326_v32 = vadd.f32 %v3325_v54, %v6982_v33  ;;  %v7946_v54 = vld [vmem:[#allocation119_spill] sm:$0xff]  ;;  %v7971_v58 = vld [vmem:[#allocation150_spill] sm:$0xff] }
 0x432   :  { %v3430_v10 = vadd.f32 %v3428_v61, %v2814_v20  ;;  %v3411_v35 = vsel %vm3408_vm12, %v3410_v57, %v3406_v18  ;;  %v3425_v20 = vor.u32 1.1754944e-38, %v3424_v39  ;;  %v7963_v18 = vld [vmem:[#allocation142_spill] sm:$0xff]  ;;  %v7965_v57 = vld [vmem:[#allocation144_spill] sm:$0xff]  ;;  %v7968_v39 = vld [vmem:[#allocation139_spill] sm:$0xff] }
 0x433   :  { %v3345_v28 = vpop.f32.mrf.mxu3 }
 0x434   :  { %4426 = vtanh.f32 %v3430_v10  ;;  %v3346_v15 = vadd.f32 %v3345_v28, %v3326_v32  ;;  %v3426_v52 = vsel %vm3423_vm15, %v3425_v20, %v3421_v59  ;;  %v7948_v32 = vld [vmem:[#allocation124_spill] sm:$0xff]  ;;  %v7951_v28 = vld [vmem:[#allocation130_spill] sm:$0xff]  ;;  %v7972_v59 = vld [vmem:[#allocation143_spill] sm:$0xff] }
 0x435   :  { %v7974_v20 = vld [vmem:[#allocation145_spill] sm:$0xff] }
 0x436   :  { %v3429_v44 = vmul.f32 %v3386_v36, %v3346_v15  ;;  %v7954_v15 = vld [vmem:[#allocation125_spill] sm:$0xff]  ;;  %v7956_v36 = vld [vmem:[#allocation127_spill] sm:$0xff] }
 0x438   :  { %v3431_v26 = vadd.f32 %v3429_v44, %v2866_v7  ;;  %v7957_v7 = vld [vmem:[#allocation136_spill] sm:$0xff]  ;;  %v7959_v44 = vld [vmem:[#allocation138_spill] sm:$0xff] }
 0x43a   :  { %v4427_v8 = vpop.eup %4426  ;;  %4428 = vtanh.f32 %v3431_v26  ;;  %v7962_v26 = vld [vmem:[#allocation133_spill] sm:$0xff] }
 0x43b   :  { %v3434_v22 = vsub.f32 0.0, %v4427_v8 }
 0x43d   :  { %v3436_v49 = vmul.f32 %v3434_v22, %v3411_v35  ;;  %v7966_v22 = vld [vmem:[#allocation137_spill] sm:$0xff]  ;;  %v7969_v35 = vld [vmem:[#allocation148_spill] sm:$0xff] }
 0x43f   :  { %v7004_v11 = vadd.f32 %v4427_v8, %v3436_v49  ;;  %v7964_v8 = vld [vmem:[#allocation135_spill] sm:$0xff]  ;;  %v7970_v49 = vld [vmem:[#allocation141_spill] sm:$0xff] }
 0x440   :  { %v4429_v5 = vpop.eup %4428 }
 0x441   :  { %v3435_v61 = vsub.f32 0.0, %v4429_v5  ;;  %3464 = vmatmul.f32.vlgmr.msra.gmra.mxu0 %v7004_v11  ;;  %3504 = vmatmul.f32.vlgmr.msra.gmra.mxu2 %v7004_v11 }
 0x442   :  { %3608 = vmatpush.msra.mxu0 %v7945_v13  ;;  %3648 = vmatpush.msra.mxu2 %v7946_v54  ;;  %v7977_v13 = vld [vmem:[#allocation156_spill] sm:$0xff]  ;;  %v7978_v54 = vld [vmem:[#allocation149_spill] sm:$0xff] }
 0x443   :  { %v3437_v10 = vmul.f32 %v3435_v61, %v3426_v52  ;;  %v7975_v61 = vld [vmem:[#allocation154_spill] sm:$0xff]  ;;  %v7976_v52 = vld [vmem:[#allocation147_spill] sm:$0xff] }
 0x444   :  { %3609 = vmatpush.msra.mxu0 %v7947_v3  ;;  %3649 = vmatpush.msra.mxu2 %v7948_v32  ;;  %v7980_v3 = vld [vmem:[#allocation151_spill] sm:$0xff]  ;;  %v7981_v32 = vld [vmem:[#allocation32_spill] sm:$0xff] }
 0x445   :  { %v7013_v23 = vadd.f32 %v4429_v5, %v3437_v10  ;;  %v7973_v5 = vld [vmem:[#allocation152_spill] sm:$0xff]  ;;  %v7979_v10 = vld [vmem:[#allocation158_spill] sm:$0xff] }
 0x446   :  { %3610 = vmatpush.msra.mxu0 %v7949_v60  ;;  %3650 = vmatpush.msra.mxu2 %v7950_v2  ;;  %v7982_v60 = vld [vmem:[#allocation153_spill] sm:$0xff]  ;;  %v7983_v2 = vld [vmem:[#allocation34_spill] sm:$0xff] }
 0x447   :  { %3484 = vmatmul.f32.vlgmr.msra.gmra.mxu1 %v7013_v23  ;;  %3524 = vmatmul.f32.vlgmr.msra.gmra.mxu3 %v7013_v23 }
 0x448   :  { %3611 = vmatpush.msra.mxu0 %v7951_v28  ;;  %3628 = vmatpush.msra.mxu1 %v7952_v50  ;;  %v7984_v28 = vld [vmem:[#allocation155_spill] sm:$0xff]  ;;  %v7985_v50 = vld [vmem:[#allocation40_spill] sm:$0xff] }
 0x449   :  { %3651 = vmatpush.msra.mxu2 %v7953_v19  ;;  %3668 = vmatpush.msra.mxu3 %v7954_v15  ;;  %v7986_v19 = vld [vmem:[#allocation157_spill] sm:$0xff]  ;;  %v7987_v15 = vld [vmem:[#allocation42_spill] sm:$0xff] }
 0x44a   :  { %3544 = vmatmul.f32.vlgmr.msrb.gmra.mxu0 %v7004_v11  ;;  %3584 = vmatmul.f32.vlgmr.msrb.gmra.mxu2 %v7004_v11 }
 0x44b   :  { %3612 = vmatpush.msra.mxu0 %v7955_v47  ;;  %3629 = vmatpush.msra.mxu1 %v7956_v36  ;;  %v7988_v47 = vld [vmem:[#allocation30_spill] sm:$0xff]  ;;  %v7989_v36 = vld [vmem:[#allocation48_spill] sm:$0xff] }
 0x44c   :  { %3652 = vmatpush.msra.mxu2 %v7957_v7  ;;  %3669 = vmatpush.msra.mxu3 %v7958_v16  ;;  %v7990_v7 = vld [vmem:[#allocation33_spill] sm:$0xff]  ;;  %v7991_v16 = vld [vmem:[#allocation51_spill] sm:$0xff] }
 0x44d   :  { %3613 = vmatpush.msra.mxu0 %v7959_v44  ;;  %3630 = vmatpush.msra.mxu1 %v7960_v45  ;;  %v7992_v44 = vld [vmem:[#allocation38_spill] sm:$0xff]  ;;  %v7993_v45 = vld [vmem:[#allocation160_spill] sm:$0xff] }
 0x44e   :  { %3653 = vmatpush.msra.mxu2 %v7961_v43  ;;  %3670 = vmatpush.msra.mxu3 %v7962_v26  ;;  %v7994_v43 = vld [vmem:[#allocation41_spill] sm:$0xff]  ;;  %v7995_v26 = vld [vmem:[#allocation46_spill] sm:$0xff] }
 0x44f   :  { %3614 = vmatpush.msra.mxu0 %v7963_v18  ;;  %3631 = vmatpush.msra.mxu1 %v7964_v8  ;;  %v7996_v18 = vld [vmem:[#allocation49_spill] sm:$0xff]  ;;  %v7997_v8 = vld [vmem:[#allocation159_spill] sm:$0xff] }
 0x450   :  { %3654 = vmatpush.msra.mxu2 %v7965_v57  ;;  %3671 = vmatpush.msra.mxu3 %v7966_v22  ;;  %v7998_v57 = vld [vmem:[#allocation161_spill] sm:$0xff] }
 0x451   :  { %3564 = vmatmul.f32.vlgmr.msrb.gmra.mxu1 %v7013_v23  ;;  %3604 = vmatmul.f32.vlgmr.msrb.gmra.mxu3 %v7013_v23  ;;  %v4504_v22 = vld [vmem:[#allocation18 + $0x2d0] sm:$0xff] }
 0x452   :  { %3615 = vmatpush.msra.mxu0 %v7967_v21  ;;  %3632 = vmatpush.msra.mxu1 %v7968_v39  ;;  %v4506_v21 = vld [vmem:[#allocation18 + $0x2a0] sm:$0xff]  ;;  %v4509_v39 = vld [vmem:[#allocation18 + $0x278] sm:$0xff] }
 0x453   :  { %3655 = vmatpush.msra.mxu2 %v7969_v35  ;;  %3672 = vmatpush.msra.mxu3 %v7970_v49  ;;  %v4510_v35 = vld [vmem:[#allocation18 + $0x5d0] sm:$0xff]  ;;  %v4512_v49 = vld [vmem:[#allocation18 + $0x240] sm:$0xff] }
 0x454   :  { %3616 = vmatpush.msra.mxu0 %v7971_v58  ;;  %3633 = vmatpush.msra.mxu1 %v7972_v59  ;;  %v4513_v58 = vld [vmem:[#allocation18 + $0x248] sm:$0xff]  ;;  %v4514_v59 = vld [vmem:[#allocation18 + $0x5a0] sm:$0xff] }
 0x455   :  { %3656 = vmatpush.msra.mxu2 %v7973_v5  ;;  %3673 = vmatpush.msra.mxu3 %v7974_v20  ;;  %v4517_v5 = vld [vmem:[#allocation18 + $0x218] sm:$0xff]  ;;  %v4518_v20 = vld [vmem:[#allocation18 + $0x570] sm:$0xff] }
 0x456   :  { %3617 = vmatpush.msra.mxu0 %v7975_v61  ;;  %3634 = vmatpush.msra.mxu1 %v7976_v52  ;;  %v4519_v61 = vld [vmem:[#allocation18 + $0x578] sm:$0xff]  ;;  %v4520_v52 = vld [vmem:[#allocation18 + $0x1e0] sm:$0xff] }
 0x457   :  { %3657 = vmatpush.msra.mxu2 %v7977_v13  ;;  %3674 = vmatpush.msra.mxu3 %v7978_v54  ;;  %v4521_v13 = vld [vmem:[#allocation18 + $0x1e8] sm:$0xff]  ;;  %v4522_v54 = vld [vmem:[#allocation18 + $0x540] sm:$0xff] }
 0x458   :  { %3618 = vmatpush.msra.mxu0 %v7979_v10  ;;  %3635 = vmatpush.msra.mxu1 %v7980_v3  ;;  %v4523_v10 = vld [vmem:[#allocation18 + $0x548] sm:$0xff]  ;;  %v4524_v3 = vld [vmem:[#allocation18 + $0x1b0] sm:$0xff] }
 0x459   :  { %3658 = vmatpush.msra.mxu2 %v7981_v32  ;;  %3675 = vmatpush.msra.mxu3 %v7982_v60  ;;  %v4525_v32 = vld [vmem:[#allocation18 + $0x1b8] sm:$0xff]  ;;  %v4526_v60 = vld [vmem:[#allocation18 + $0x510] sm:$0xff] }
 0x45a   :  { %3619 = vmatpush.msra.mxu0 %v7983_v2  ;;  %3636 = vmatpush.msra.mxu1 %v7984_v28  ;;  %v4527_v2 = vld [vmem:[#allocation18 + $0x518] sm:$0xff]  ;;  %v4528_v28 = vld [vmem:[#allocation18 + $0x180] sm:$0xff] }
 0x45b   :  { %3659 = vmatpush.msra.mxu2 %v7985_v50  ;;  %3676 = vmatpush.msra.mxu3 %v7986_v19  ;;  %v4529_v50 = vld [vmem:[#allocation18 + $0x188] sm:$0xff]  ;;  %v4530_v19 = vld [vmem:[#allocation18 + $0x4e0] sm:$0xff] }
 0x45c   :  { %3620 = vmatpush.msra.mxu0 %v7987_v15  ;;  %3637 = vmatpush.msra.mxu1 %v7988_v47  ;;  %v4531_v15 = vld [vmem:[#allocation18 + $0x4e8] sm:$0xff]  ;;  %v4532_v47 = vld [vmem:[#allocation18 + $0x150] sm:$0xff] }
 0x45d   :  { %3660 = vmatpush.msra.mxu2 %v7989_v36  ;;  %3677 = vmatpush.msra.mxu3 %v7990_v7  ;;  %v4533_v36 = vld [vmem:[#allocation18 + $0x158] sm:$0xff]  ;;  %v4534_v7 = vld [vmem:[#allocation18 + $0x4b0] sm:$0xff] }
 0x45e   :  { %3621 = vmatpush.msra.mxu0 %v7991_v16  ;;  %3638 = vmatpush.msra.mxu1 %v7992_v44  ;;  %v4535_v16 = vld [vmem:[#allocation18 + $0x4b8] sm:$0xff]  ;;  %v4536_v44 = vld [vmem:[#allocation18 + $0x120] sm:$0xff] }
 0x45f   :  { %3661 = vmatpush.msra.mxu2 %v7993_v45  ;;  %3678 = vmatpush.msra.mxu3 %v7994_v43  ;;  %v4537_v45 = vld [vmem:[#allocation18 + $0x128] sm:$0xff]  ;;  %v4538_v43 = vld [vmem:[#allocation18 + $0x480] sm:$0xff] }
 0x460   :  { %3622 = vmatpush.msra.mxu0 %v6704_v6  ;;  %3639 = vmatpush.msra.mxu1 %v7995_v26  ;;  %v7999_v6 = vld [vmem:[#allocation162_spill] sm:$0xff]  ;;  %v4539_v26 = vld [vmem:[#allocation18 + $0x488] sm:$0xff] }
 0x461   :  { %3662 = vmatpush.msra.mxu2 %v6710_v30  ;;  %3679 = vmatpush.msra.mxu3 %v7996_v18  ;;  %v4505_v30 = vld [vmem:[#allocation18 + $0x2d8] sm:$0xff]  ;;  %v4540_v18 = vld [vmem:[#allocation18 + $0xf0] sm:$0xff] }
 0x462   :  { %3623 = vmatpush.msra.mxu0 %v6716_v17  ;;  %3640 = vmatpush.msra.mxu1 %v7997_v8  ;;  %v8000_v17 = vld [vmem:[#allocation164_spill] sm:$0xff]  ;;  %v4541_v8 = vld [vmem:[#allocation18 + $0xf8] sm:$0xff] }
 0x463   :  { %3663 = vmatpush.msra.mxu2 %v6724_v38  ;;  %3680 = vmatpush.msra.mxu3 %v7998_v57  ;;  %v4507_v38 = vld [vmem:[#allocation18 + $0x2a8] sm:$0xff]  ;;  %v4542_v57 = vld [vmem:[#allocation18 + $0x450] sm:$0xff] }
 0x464   :  { %3624 = vmatmul.f32.vlgmr.msra.gmra.mxu0 %v7004_v11  ;;  %3664 = vmatmul.f32.vlgmr.msra.gmra.mxu2 %v7004_v11 }
 0x465   :  { %3641 = vmatpush.msra.mxu1 %v6706_v42  ;;  %3681 = vmatpush.msra.mxu3 %v7999_v6  ;;  %v4508_v42 = vld [vmem:[#allocation18 + $0x270] sm:$0xff]  ;;  %v4543_v6 = vld [vmem:[#allocation18 + $0x458] sm:$0xff] }
 0x466   :  { %3788 = vmatpush.msrb.mxu0 %v4504_v22  ;;  %3828 = vmatpush.msrb.mxu2 %v4505_v30  ;;  %v4544_v22 = vld [vmem:[#allocation18 + $0xc0] sm:$0xff]  ;;  %v4545_v30 = vld [vmem:[#allocation18 + $0xc8] sm:$0xff] }
 0x467   :  { %3642 = vmatpush.msra.mxu1 %v6718_v1  ;;  %3682 = vmatpush.msra.mxu3 %v8000_v17  ;;  %v4511_v1 = vld [vmem:[#allocation18 + $0x5d8] sm:$0xff]  ;;  %v4546_v17 = vld [vmem:[#allocation18 + $0x420] sm:$0xff] }
 0x468   :  { %3789 = vmatpush.msrb.mxu0 %v4506_v21  ;;  %3829 = vmatpush.msrb.mxu2 %v4507_v38  ;;  %v4547_v21 = vld [vmem:[#allocation18 + $0x428] sm:$0xff]  ;;  %v4548_v38 = vld [vmem:[#allocation18 + $0x90] sm:$0xff] }
 0x469   :  { %3643 = vmatpush.msra.mxu1 %v6732_v14  ;;  %3683 = vmatpush.msra.mxu3 %v6734_v0  ;;  %v4515_v14 = vld [vmem:[#allocation18 + $0x5a8] sm:$0xff]  ;;  %v4516_v0 = vld [vmem:[#allocation18 + $0x210] sm:$0xff] }
 0x46a   :  { %3644 = vmatmul.f32.vlgmr.msra.gmra.mxu1 %v7013_v23  ;;  %3684 = vmatmul.f32.vlgmr.msra.gmra.mxu3 %v7013_v23 }
 0x46b   :  { %3790 = vmatpush.msrb.mxu0 %v4508_v42  ;;  %3830 = vmatpush.msrb.mxu2 %v4509_v39  ;;  %v4549_v42 = vld [vmem:[#allocation18 + $0x98] sm:$0xff]  ;;  %v4550_v39 = vld [vmem:[#allocation18 + $0x3f0] sm:$0xff] }
 0x46c   :  { %3808 = vmatpush.msrb.mxu1 %v4510_v35  ;;  %3848 = vmatpush.msrb.mxu3 %v4511_v1  ;;  %v4551_v35 = vld [vmem:[#allocation18 + $0x3f8] sm:$0xff]  ;;  %v4552_v1 = vld [vmem:[#allocation18 + $0x60] sm:$0xff] }
 0x46d   :  { %3791 = vmatpush.msrb.mxu0 %v4512_v49  ;;  %3831 = vmatpush.msrb.mxu2 %v4513_v58  ;;  %v4553_v49 = vld [vmem:[#allocation18 + $0x68] sm:$0xff]  ;;  %v4554_v58 = vld [vmem:[#allocation18 + $0x3c0] sm:$0xff] }
 0x46e   :  { %3809 = vmatpush.msrb.mxu1 %v4514_v59  ;;  %3849 = vmatpush.msrb.mxu3 %v4515_v14  ;;  %v4555_v59 = vld [vmem:[#allocation18 + $0x3c8] sm:$0xff]  ;;  %v4556_v14 = vld [vmem:[#allocation18 + $0x30] sm:$0xff] }
 0x46f   :  { %3792 = vmatpush.msrb.mxu0 %v4516_v0  ;;  %3832 = vmatpush.msrb.mxu2 %v4517_v5  ;;  %v4557_v0 = vld [vmem:[#allocation18 + $0x38] sm:$0xff]  ;;  %v4558_v5 = vld [vmem:[#allocation18 + $0x390] sm:$0xff] }
 0x470   :  { %3810 = vmatpush.msrb.mxu1 %v4518_v20  ;;  %3850 = vmatpush.msrb.mxu3 %v4519_v61  ;;  %v4559_v20 = vld [vmem:[#allocation18 + $0x398] sm:$0xff]  ;;  %v4560_v61 = vld [vmem:[#allocation18] sm:$0xff] }
 0x471   :  { %3793 = vmatpush.msrb.mxu0 %v4520_v52  ;;  %3833 = vmatpush.msrb.mxu2 %v4521_v13  ;;  %v4561_v52 = vld [vmem:[#allocation18 + $0x8] sm:$0xff]  ;;  %v4562_v13 = vld [vmem:[#allocation18 + $0x2e0] sm:$0xff] }
 0x472   :  { %3811 = vmatpush.msrb.mxu1 %v4522_v54  ;;  %3851 = vmatpush.msrb.mxu3 %v4523_v10  ;;  %v4563_v54 = vld [vmem:[#allocation18 + $0x2e8] sm:$0xff]  ;;  %v4564_v10 = vld [vmem:[#allocation18 + $0x360] sm:$0xff] }
 0x473   :  { %3794 = vmatpush.msrb.mxu0 %v4524_v3  ;;  %3834 = vmatpush.msrb.mxu2 %v4525_v32  ;;  %v4565_v3 = vld [vmem:[#allocation18 + $0x368] sm:$0xff]  ;;  %v4566_v32 = vld [vmem:[#allocation18 + $0x2b0] sm:$0xff] }
 0x474   :  { %3812 = vmatpush.msrb.mxu1 %v4526_v60  ;;  %3852 = vmatpush.msrb.mxu3 %v4527_v2  ;;  %v4567_v60 = vld [vmem:[#allocation18 + $0x2b8] sm:$0xff]  ;;  %v4568_v2 = vld [vmem:[#allocation18 + $0x330] sm:$0xff] }
 0x475   :  { %3795 = vmatpush.msrb.mxu0 %v4528_v28  ;;  %3835 = vmatpush.msrb.mxu2 %v4529_v50  ;;  %v4569_v28 = vld [vmem:[#allocation18 + $0x338] sm:$0xff]  ;;  %v4570_v50 = vld [vmem:[#allocation18 + $0x280] sm:$0xff] }
 0x476   :  { %3813 = vmatpush.msrb.mxu1 %v4530_v19  ;;  %3853 = vmatpush.msrb.mxu3 %v4531_v15  ;;  %v4571_v19 = vld [vmem:[#allocation18 + $0x288] sm:$0xff]  ;;  %v4572_v15 = vld [vmem:[#allocation18 + $0x300] sm:$0xff] }
 0x477   :  { %3796 = vmatpush.msrb.mxu0 %v4532_v47  ;;  %3836 = vmatpush.msrb.mxu2 %v4533_v36  ;;  %v4573_v47 = vld [vmem:[#allocation18 + $0x308] sm:$0xff]  ;;  %v4574_v36 = vld [vmem:[#allocation18 + $0x250] sm:$0xff] }
 0x478   :  { %3814 = vmatpush.msrb.mxu1 %v4534_v7  ;;  %3854 = vmatpush.msrb.mxu3 %v4535_v16  ;;  %v4575_v7 = vld [vmem:[#allocation18 + $0x5e0] sm:$0xff]  ;;  %v4576_v16 = vld [vmem:[#allocation18 + $0x258] sm:$0xff] }
 0x479   :  { %3797 = vmatpush.msrb.mxu0 %v4536_v44  ;;  %3837 = vmatpush.msrb.mxu2 %v4537_v45  ;;  %v4577_v44 = vld [vmem:[#allocation18 + $0x5e8] sm:$0xff]  ;;  %v4578_v45 = vld [vmem:[#allocation18 + $0x220] sm:$0xff] }
 0x47a   :  { %3815 = vmatpush.msrb.mxu1 %v4538_v43  ;;  %3855 = vmatpush.msrb.mxu3 %v4539_v26  ;;  %v4579_v43 = vld [vmem:[#allocation18 + $0x5b0] sm:$0xff]  ;;  %v4580_v26 = vld [vmem:[#allocation18 + $0x228] sm:$0xff] }
 0x47b   :  { %3798 = vmatpush.msrb.mxu0 %v4540_v18  ;;  %3838 = vmatpush.msrb.mxu2 %v4541_v8  ;;  %v4581_v18 = vld [vmem:[#allocation18 + $0x5b8] sm:$0xff]  ;;  %v4582_v8 = vld [vmem:[#allocation18 + $0x1f0] sm:$0xff] }
 0x47c   :  { %3816 = vmatpush.msrb.mxu1 %v4542_v57  ;;  %3856 = vmatpush.msrb.mxu3 %v4543_v6  ;;  %v4583_v57 = vld [vmem:[#allocation18 + $0x580] sm:$0xff]  ;;  %v4584_v6 = vld [vmem:[#allocation18 + $0x1f8] sm:$0xff] }
 0x47d   :  { %3799 = vmatpush.msrb.mxu0 %v4544_v22  ;;  %3839 = vmatpush.msrb.mxu2 %v4545_v30  ;;  %v4585_v22 = vld [vmem:[#allocation18 + $0x588] sm:$0xff]  ;;  %v4586_v30 = vld [vmem:[#allocation18 + $0x1c0] sm:$0xff] }
 0x47e   :  { %3817 = vmatpush.msrb.mxu1 %v4546_v17  ;;  %3857 = vmatpush.msrb.mxu3 %v4547_v21  ;;  %v4587_v17 = vld [vmem:[#allocation18 + $0x550] sm:$0xff]  ;;  %v4588_v21 = vld [vmem:[#allocation18 + $0x1c8] sm:$0xff] }
 0x47f   :  { %3800 = vmatpush.msrb.mxu0 %v4548_v38  ;;  %3840 = vmatpush.msrb.mxu2 %v4549_v42  ;;  %v4589_v38 = vld [vmem:[#allocation18 + $0x558] sm:$0xff]  ;;  %v4590_v42 = vld [vmem:[#allocation18 + $0x190] sm:$0xff] }
 0x480   :  { %3818 = vmatpush.msrb.mxu1 %v4550_v39  ;;  %3858 = vmatpush.msrb.mxu3 %v4551_v35  ;;  %v4591_v39 = vld [vmem:[#allocation18 + $0x520] sm:$0xff]  ;;  %v4592_v35 = vld [vmem:[#allocation18 + $0x198] sm:$0xff] }
 0x481   :  { %3801 = vmatpush.msrb.mxu0 %v4552_v1  ;;  %3841 = vmatpush.msrb.mxu2 %v4553_v49  ;;  %v4593_v1 = vld [vmem:[#allocation18 + $0x528] sm:$0xff]  ;;  %v4594_v49 = vld [vmem:[#allocation18 + $0x160] sm:$0xff] }
 0x482   :  { %3819 = vmatpush.msrb.mxu1 %v4554_v58  ;;  %3859 = vmatpush.msrb.mxu3 %v4555_v59  ;;  %v4595_v58 = vld [vmem:[#allocation18 + $0x4f0] sm:$0xff]  ;;  %v4596_v59 = vld [vmem:[#allocation18 + $0x168] sm:$0xff] }
 0x483   :  { %3802 = vmatpush.msrb.mxu0 %v4556_v14  ;;  %3842 = vmatpush.msrb.mxu2 %v4557_v0  ;;  %v4597_v14 = vld [vmem:[#allocation18 + $0x4f8] sm:$0xff]  ;;  %v4598_v0 = vld [vmem:[#allocation18 + $0x130] sm:$0xff] }
 0x484   :  { %3820 = vmatpush.msrb.mxu1 %v4558_v5  ;;  %3860 = vmatpush.msrb.mxu3 %v4559_v20  ;;  %v4599_v5 = vld [vmem:[#allocation18 + $0x4c0] sm:$0xff]  ;;  %v4600_v20 = vld [vmem:[#allocation18 + $0x138] sm:$0xff] }
 0x485   :  { %3803 = vmatpush.msrb.mxu0 %v4560_v61  ;;  %3843 = vmatpush.msrb.mxu2 %v4561_v52  ;;  %v4601_v61 = vld [vmem:[#allocation18 + $0x4c8] sm:$0xff]  ;;  %v4602_v52 = vld [vmem:[#allocation18 + $0x100] sm:$0xff] }
 0x486   :  { %3821 = vmatpush.msrb.mxu1 %v4564_v10  ;;  %3861 = vmatpush.msrb.mxu3 %v4565_v3  ;;  %v4605_v10 = vld [vmem:[#allocation18 + $0x498] sm:$0xff]  ;;  %v4606_v3 = vld [vmem:[#allocation18 + $0xd0] sm:$0xff] }
 0x487   :  { %3868 = vmatpush.msra.mxu0 %v4562_v13  ;;  %3908 = vmatpush.msra.mxu2 %v4563_v54  ;;  %v4603_v13 = vld [vmem:[#allocation18 + $0x490] sm:$0xff]  ;;  %v4604_v54 = vld [vmem:[#allocation18 + $0x108] sm:$0xff] }
 0x488   :  { %3822 = vmatpush.msrb.mxu1 %v4568_v2  ;;  %3862 = vmatpush.msrb.mxu3 %v4569_v28  ;;  %v4609_v2 = vld [vmem:[#allocation18 + $0x468] sm:$0xff]  ;;  %v4610_v28 = vld [vmem:[#allocation18 + $0xa0] sm:$0xff] }
 0x489   :  { %3869 = vmatpush.msra.mxu0 %v4566_v32  ;;  %3909 = vmatpush.msra.mxu2 %v4567_v60  ;;  %v4607_v32 = vld [vmem:[#allocation18 + $0x460] sm:$0xff]  ;;  %v4608_v60 = vld [vmem:[#allocation18 + $0xd8] sm:$0xff] }
 0x48a   :  { %3823 = vmatpush.msrb.mxu1 %v4572_v15  ;;  %3863 = vmatpush.msrb.mxu3 %v4573_v47  ;;  %v4613_v15 = vld [vmem:[#allocation18 + $0x438] sm:$0xff]  ;;  %v4614_v47 = vld [vmem:[#allocation18 + $0x70] sm:$0xff] }
 0x48b   :  { %3870 = vmatpush.msra.mxu0 %v4570_v50  ;;  %3910 = vmatpush.msra.mxu2 %v4571_v19  ;;  %v4611_v50 = vld [vmem:[#allocation18 + $0x430] sm:$0xff]  ;;  %v4612_v19 = vld [vmem:[#allocation18 + $0xa8] sm:$0xff] }
 0x48c   :  { %3888 = vmatpush.msra.mxu1 %v4575_v7  ;;  %3928 = vmatpush.msra.mxu3 %v4577_v44  ;;  %v4616_v7 = vld [vmem:[#allocation18 + $0x78] sm:$0xff]  ;;  %v4618_v44 = vld [vmem:[#allocation18 + $0x40] sm:$0xff] }
 0x48d   :  { %3871 = vmatpush.msra.mxu0 %v4574_v36  ;;  %3911 = vmatpush.msra.mxu2 %v4576_v16  ;;  %v4615_v36 = vld [vmem:[#allocation18 + $0x400] sm:$0xff]  ;;  %v4617_v16 = vld [vmem:[#allocation18 + $0x408] sm:$0xff] }
 0x48e   :  { %3889 = vmatpush.msra.mxu1 %v4579_v43  ;;  %3929 = vmatpush.msra.mxu3 %v4581_v18  ;;  %v4620_v43 = vld [vmem:[#allocation18 + $0x48] sm:$0xff]  ;;  %v4622_v18 = vld [vmem:[#allocation18 + $0x10] sm:$0xff] }
 0x48f   :  { %3872 = vmatpush.msra.mxu0 %v4578_v45  ;;  %3912 = vmatpush.msra.mxu2 %v4580_v26  ;;  %v4619_v45 = vld [vmem:[#allocation18 + $0x3d0] sm:$0xff]  ;;  %v4621_v26 = vld [vmem:[#allocation18 + $0x3d8] sm:$0xff] }
 0x490   :  { %3890 = vmatpush.msra.mxu1 %v4583_v57  ;;  %3930 = vmatpush.msra.mxu3 %v4585_v22  ;;  %v4624_v57 = vld [vmem:[#allocation18 + $0x18] sm:$0xff]  ;;  %v4626_v22 = vld [vmem:[#allocation18 + $0x370] sm:$0xff] }
 0x491   :  { %3873 = vmatpush.msra.mxu0 %v4582_v8  ;;  %3913 = vmatpush.msra.mxu2 %v4584_v6  ;;  %v4623_v8 = vld [vmem:[#allocation18 + $0x3a0] sm:$0xff]  ;;  %v4625_v6 = vld [vmem:[#allocation18 + $0x3a8] sm:$0xff] }
 0x492   :  { %3891 = vmatpush.msra.mxu1 %v4587_v17  ;;  %3931 = vmatpush.msra.mxu3 %v4589_v38  ;;  %v4628_v17 = vld [vmem:[#allocation18 + $0x340] sm:$0xff]  ;;  %v4630_v38 = vld [vmem:[#allocation18 + $0x310] sm:$0xff] }
 0x493   :  { %3874 = vmatpush.msra.mxu0 %v4586_v30  ;;  %3914 = vmatpush.msra.mxu2 %v4588_v21  ;;  %v4627_v30 = vld [vmem:[#allocation18 + $0x378] sm:$0xff]  ;;  %v4629_v21 = vld [vmem:[#allocation18 + $0x348] sm:$0xff] }
 0x494   :  { %3892 = vmatpush.msra.mxu1 %v4591_v39  ;;  %3932 = vmatpush.msra.mxu3 %v4593_v1 }
 0x495   :  { %3875 = vmatpush.msra.mxu0 %v4590_v42  ;;  %3915 = vmatpush.msra.mxu2 %v4592_v35  ;;  %v4631_v42 = vld [vmem:[#allocation18 + $0x318] sm:$0xff]  ;;  %v8001_v35 = vld [vmem:[#allocation163_spill] sm:$0xff] }
 0x496   :  { %3893 = vmatpush.msra.mxu1 %v4595_v58  ;;  %3933 = vmatpush.msra.mxu3 %v4597_v14  ;;  %v2583_v1 = vadd.f32 %v8001_v35, %v6123_v46 }
 0x497   :  { %3876 = vmatpush.msra.mxu0 %v4594_v49  ;;  %3916 = vmatpush.msra.mxu2 %v4596_v59 }
 0x498   :  { %3894 = vmatpush.msra.mxu1 %v4599_v5  ;;  %3934 = vmatpush.msra.mxu3 %v4601_v61  ;;  %v2609_v59 = vadd.f32 %v6742_v27, %v2583_v1 }
 0x499   :  { %3877 = vmatpush.msra.mxu0 %v4598_v0  ;;  %3917 = vmatpush.msra.mxu2 %v4600_v20  ;;  %v2635_v20 = vadd.f32 %v6744_v51, %v6149_v12 }
 0x49a   :  { %3895 = vmatpush.msra.mxu1 %v4603_v13  ;;  %3935 = vmatpush.msra.mxu3 %v4605_v10 }
 0x49b   :  { %3878 = vmatpush.msra.mxu0 %v4602_v52  ;;  %3918 = vmatpush.msra.mxu2 %v4604_v54  ;;  %v2661_v10 = vadd.f32 %v6758_v41, %v2635_v20 }
 0x49c   :  { %3896 = vmatpush.msra.mxu1 %v4607_v32  ;;  %3936 = vmatpush.msra.mxu3 %v4609_v2 }
 0x49d   :  { %3879 = vmatpush.msra.mxu0 %v4606_v3  ;;  %3919 = vmatpush.msra.mxu2 %v4608_v60 }
 0x49e   :  { %3897 = vmatpush.msra.mxu1 %v4611_v50  ;;  %3937 = vmatpush.msra.mxu3 %v4613_v15 }
 0x49f   :  { %3880 = vmatpush.msra.mxu0 %v4610_v28  ;;  %3920 = vmatpush.msra.mxu2 %v4612_v19 }
 0x4a0   :  { %3898 = vmatpush.msra.mxu1 %v4615_v36  ;;  %3938 = vmatpush.msra.mxu3 %v4617_v16 }
 0x4a1   :  { %3881 = vmatpush.msra.mxu0 %v4614_v47  ;;  %3921 = vmatpush.msra.mxu2 %v4616_v7 }
 0x4a2   :  { %3899 = vmatpush.msra.mxu1 %v4619_v45  ;;  %3939 = vmatpush.msra.mxu3 %v4621_v26 }
 0x4a3   :  { %3882 = vmatpush.msra.mxu0 %v4618_v44  ;;  %3922 = vmatpush.msra.mxu2 %v4620_v43 }
 0x4a4   :  { %3900 = vmatpush.msra.mxu1 %v4623_v8  ;;  %3940 = vmatpush.msra.mxu3 %v4625_v6 }
 0x4a5   :  { %3883 = vmatpush.msra.mxu0 %v4622_v18  ;;  %3923 = vmatpush.msra.mxu2 %v4624_v57 }
 0x4a6   :  { %3901 = vmatpush.msra.mxu1 %v4626_v22  ;;  %3941 = vmatpush.msra.mxu3 %v4627_v30 }
 0x4a8   :  { %3902 = vmatpush.msra.mxu1 %v4628_v17  ;;  %3942 = vmatpush.msra.mxu3 %v4629_v21 }
 0x4aa   :  { %3903 = vmatpush.msra.mxu1 %v4630_v38  ;;  %3943 = vmatpush.msra.mxu3 %v4631_v42 }
 0x4be   :  { %v3465_v39 = vpop.f32.mrf.mxu0 }
 0x4bf   :  { %v3466_v49 = vadd.f32 %v3465_v39, %v6938_v25 }
 0x4c4   :  { %v3485_v58 = vpop.f32.mrf.mxu1  ;;  %v3505_v0 = vpop.f32.mrf.mxu2 }
 0x4c5   :  { %v3486_v14 = vadd.f32 %v3485_v58, %v3466_v49  ;;  %v3506_v52 = vadd.f32 %v3505_v0, %v6944_v31 }
 0x4c7   :  { %v3688_v5 = vadd.f32 %v3486_v14, %v2609_v59  ;;  %v3545_v13 = vpop.f32.mrf.mxu0 }
 0x4c8   :  { %v3546_v3 = vadd.f32 %v3545_v13, %v6950_v24 }
 0x4c9   :  { %v4327_v61 = vmul.f32 -1.442695, %v3688_v5 }
 0x4ca   :  { %v3525_v54 = vpop.f32.mrf.mxu3 }
 0x4cb   :  { %4430 = vpow2.f32 %v4327_v61  ;;  %v3526_v46 = vadd.f32 %v3525_v54, %v3506_v52 }
 0x4cd   :  { %v3689_v32 = vadd.f32 %v3526_v46, %v2661_v10  ;;  %v3585_v28 = vpop.f32.mrf.mxu2 }
 0x4ce   :  { %v3565_v60 = vpop.f32.mrf.mxu1  ;;  %v3586_v15 = vadd.f32 %v3585_v28, %v6956_v62 }
 0x4cf   :  { %v4328_v27 = vmul.f32 -1.442695, %v3689_v32  ;;  %v3566_v2 = vadd.f32 %v3565_v60, %v3546_v3 }
 0x4d1   :  { %v4431_v50 = vpop.eup %4430  ;;  %4432 = vpow2.f32 %v4328_v27  ;;  %v3728_v12 = vadd.f32 %v3566_v2, %v6819_v29 }
 0x4d2   :  { %v3696_v51 = vadd.f32 1.0, %v4431_v50 }
 0x4d3   :  { %v4329_v19 = vmul.f32 -1.442695, %v3728_v12 }
 0x4d4   :  { %4434 = vrcp.f32 %v3696_v51  ;;  %v3605_v47 = vpop.f32.mrf.mxu3  ;;  %v3709_v30 = vand.u32 2147483648, %v3696_v51  ;;  %vm3703_vm1 = vweird.f32 %v3696_v51  ;;  %v3707_v21 = vand.u32 2147483647, %v3696_v51 }
 0x4d5   :  { %4436 = vpow2.f32 %v4329_v19  ;;  %v3606_v41 = vadd.f32 %v3605_v47, %v3586_v15 }
 0x4d6   :  { %v3710_v49 = vor.u32 1.1754944e-38, %v3709_v30  ;;  %vm3708_vm3 = vcmp.eq.f32.partialorder %v3707_v21, 8.507059e+37 }
 0x4d7   :  { %v4433_v36 = vpop.eup %4432  ;;  %v3729_v7 = vadd.f32 %v3606_v41, %v6835_v55 }
 0x4d8   :  { %v3697_v16 = vadd.f32 1.0, %v4433_v36 }
 0x4d9   :  { %v4330_v44 = vmul.f32 -1.442695, %v3729_v7 }
 0x4da   :  { %v4435_v45 = vpop.eup %4434  ;;  %4438 = vrcp.f32 %v3697_v16  ;;  %v3724_v61 = vand.u32 2147483648, %v3697_v16  ;;  %vm3718_vm5 = vweird.f32 %v3697_v16  ;;  %v3722_v13 = vand.u32 2147483647, %v3697_v16 }
 0x4db   :  { %v4437_v43 = vpop.eup %4436  ;;  %4440 = vpow2.f32 %v4330_v44  ;;  %v3699_v26 = vmul.f32 %v4435_v45, %v3696_v51  ;;  %vm3704_vm0 = vweird.f32 %v4435_v45 }
 0x4dc   :  { %v7097_v18 = vadd.f32 1.0, %v4437_v43  ;;  %vm3705_vm2 = vmor %vm3703_vm1, %vm3704_vm0  ;;  %v3725_v27 = vor.u32 1.1754944e-38, %v3724_v61  ;;  %vm3723_vm7 = vcmp.eq.f32.partialorder %v3722_v13, 8.507059e+37  ;;  %v4643_v61 = vld [vmem:[#allocation18 + $0x5c0] sm:$0xff]  ;;  %v4645_v13 = vld [vmem:[#allocation18 + $0x5c8] sm:$0xff] }
 0x4dd   :  { %v3700_v29 = vsub.f32 1.0, %v3699_v26 }
 0x4de   :  { %4442 = vrcp.f32 %v7097_v18  ;;  %v3749_v47 = vand.u32 2147483648, %v7097_v18  ;;  %vm3743_vm9 = vweird.f32 %v7097_v18  ;;  %v3747_v7 = vand.u32 2147483647, %v7097_v18 }
 0x4df   :  { %v3701_v8 = vmul.f32 %v4435_v45, %v3700_v29 }
 0x4e0   :  { %v4439_v57 = vpop.eup %4438  ;;  %vm3748_vm12 = vcmp.eq.f32.partialorder %v3747_v7, 8.507059e+37  ;;  %v4663_v7 = vld [vmem:[#allocation18 + $0x4d0] sm:$0xff] }
 0x4e1   :  { %v4441_v6 = vpop.eup %4440  ;;  %v3702_v22 = vadd.f32 %v4435_v45, %v3701_v8  ;;  %v3714_v17 = vmul.f32 %v4439_v57, %v3697_v16  ;;  %v3625_v38 = vpop.f32.mrf.mxu0  ;;  %vm3719_vm4 = vweird.f32 %v4439_v57 }
 0x4e2   :  { %v7100_v55 = vadd.f32 1.0, %v4441_v6  ;;  %v3626_v59 = vadd.f32 %v3625_v38, %v6972_v34  ;;  %vm3720_vm6 = vmor %vm3718_vm5, %vm3719_vm4  ;;  %v4632_v38 = vld [vmem:[#allocation18 + $0x2f0] sm:$0xff] }
 0x4e3   :  { %v3715_v42 = vsub.f32 1.0, %v3714_v17  ;;  %v3706_v35 = vsel %vm3705_vm2, %v4435_v45, %v3702_v22  ;;  %v3750_v45 = vor.u32 1.1754944e-38, %v3749_v47  ;;  %v4660_v47 = vld [vmem:[#allocation18 + $0x178] sm:$0xff] }
 0x4e4   :  { %v4443_v39 = vpop.eup %4442  ;;  %4444 = vrcp.f32 %v7100_v55  ;;  %v3711_v5 = vsel %vm3708_vm3, %v3710_v49, %v3706_v35  ;;  %v3764_v29 = vand.u32 2147483648, %v7100_v55  ;;  %vm3758_vm13 = vweird.f32 %v7100_v55  ;;  %v4635_v35 = vld [vmem:[#allocation18 + $0x2c8] sm:$0xff]  ;;  %v4636_v49 = vld [vmem:[#allocation18 + $0x290] sm:$0xff] }
 0x4e5   :  { %v3739_v1 = vmul.f32 %v4443_v39, %v7097_v18  ;;  %v3716_v58 = vmul.f32 %v4439_v57, %v3715_v42  ;;  %vm3744_vm8 = vweird.f32 %v4443_v39  ;;  %v3762_v18 = vand.u32 2147483647, %v7100_v55  ;;  %v4633_v42 = vld [vmem:[#allocation18 + $0x2f8] sm:$0xff] }
 0x4e6   :  { %vm3745_vm10 = vmor %vm3743_vm9, %vm3744_vm8  ;;  %v3765_v30 = vor.u32 1.1754944e-38, %v3764_v29  ;;  %v4670_v29 = vld [vmem:[#allocation18 + $0xe0] sm:$0xff] }
 0x4e7   :  { %v3740_v14 = vsub.f32 1.0, %v3739_v1  ;;  %v3645_v0 = vpop.f32.mrf.mxu1  ;;  %v3717_v20 = vadd.f32 %v4439_v57, %v3716_v58  ;;  %v3665_v54 = vpop.f32.mrf.mxu2  ;;  %vm3763_vm15 = vcmp.eq.f32.partialorder %v3762_v18, 8.507059e+37  ;;  %v4637_v58 = vld [vmem:[#allocation18 + $0x298] sm:$0xff] }
 0x4e8   :  { %v3646_v52 = vadd.f32 %v3645_v0, %v3626_v59  ;;  %v3666_v28 = vadd.f32 %v3665_v54, %v6982_v33  ;;  %v4638_v59 = vld [vmem:[#allocation18 + $0x260] sm:$0xff]  ;;  %v4640_v0 = vld [vmem:[#allocation18 + $0x268] sm:$0xff]  ;;  %v4673_v18 = vld [vmem:[#allocation18 + $0x478] sm:$0xff] }
 0x4e9   :  { %v3721_v3 = vsel %vm3720_vm6, %v4439_v57, %v3717_v20  ;;  %v3741_v32 = vmul.f32 %v4443_v39, %v3740_v14  ;;  %v4639_v14 = vld [vmem:[#allocation18 + $0x5f0] sm:$0xff]  ;;  %v4646_v54 = vld [vmem:[#allocation18 + $0x200] sm:$0xff] }
 0x4ea   :  { %v4445_v10 = vpop.eup %4444  ;;  %v3768_v46 = vmul.f32 %v3711_v5, %v3646_v52  ;;  %v3726_v51 = vsel %vm3723_vm7, %v3725_v27, %v3721_v3  ;;  %v4641_v5 = vld [vmem:[#allocation18 + $0x5f8] sm:$0xff]  ;;  %v4642_v20 = vld [vmem:[#allocation18 + $0x230] sm:$0xff] }
 0x4eb   :  { %v3754_v60 = vmul.f32 %v4445_v10, %v7100_v55  ;;  %v3742_v15 = vadd.f32 %v4443_v39, %v3741_v32  ;;  %vm3759_vm11 = vweird.f32 %v4445_v10  ;;  %v4634_v55 = vld [vmem:[#allocation18 + $0x2c0] sm:$0xff]  ;;  %v4644_v52 = vld [vmem:[#allocation18 + $0x238] sm:$0xff]  ;;  %v4650_v32 = vld [vmem:[#allocation18 + $0x1d0] sm:$0xff] }
 0x4ec   :  { %v3770_v2 = vadd.f32 %v3768_v46, %v6911_v48  ;;  %vm3760_vm14 = vmor %vm3758_vm13, %vm3759_vm11  ;;  %v4648_v46 = vld [vmem:[#allocation18 + $0x208] sm:$0xff]  ;;  %v4649_v3 = vld [vmem:[#allocation18 + $0x598] sm:$0xff] }
 0x4ed   :  { %v3755_v50 = vsub.f32 1.0, %v3754_v60  ;;  %v3685_v12 = vpop.f32.mrf.mxu3  ;;  %v3746_v16 = vsel %vm3745_vm10, %v4443_v39, %v3742_v15  ;;  %v4651_v60 = vld [vmem:[#allocation18 + $0x560] sm:$0xff]  ;;  %v4652_v27 = vld [vmem:[#allocation18 + $0x1d8] sm:$0xff] }
 0x4ee   :  { %4446 = vtanh.f32 %v3770_v2  ;;  %v3686_v19 = vadd.f32 %v3685_v12, %v3666_v28  ;;  %v3751_v8 = vsel %vm3748_vm12, %v3750_v45, %v3746_v16  ;;  %v4653_v2 = vld [vmem:[#allocation18 + $0x568] sm:$0xff]  ;;  %v4654_v28 = vld [vmem:[#allocation18 + $0x1a0] sm:$0xff]  ;;  %v4665_v16 = vld [vmem:[#allocation18 + $0x4d8] sm:$0xff] }
 0x4ef   :  { %v3756_v36 = vmul.f32 %v4445_v10, %v3755_v50  ;;  %v4655_v50 = vld [vmem:[#allocation18 + $0x530] sm:$0xff]  ;;  %v4656_v12 = vld [vmem:[#allocation18 + $0x1a8] sm:$0xff]  ;;  %v4659_v15 = vld [vmem:[#allocation18 + $0x500] sm:$0xff] }
 0x4f0   :  { %v3769_v41 = vmul.f32 %v3726_v51, %v3686_v19  ;;  %v4657_v51 = vld [vmem:[#allocation18 + $0x538] sm:$0xff]  ;;  %v4658_v19 = vld [vmem:[#allocation18 + $0x170] sm:$0xff]  ;;  %v4667_v45 = vld [vmem:[#allocation18 + $0x4a0] sm:$0xff] }
 0x4f1   :  { %v3757_v26 = vadd.f32 %v4445_v10, %v3756_v36  ;;  %v4662_v36 = vld [vmem:[#allocation18 + $0x140] sm:$0xff] }
 0x4f2   :  { %v3771_v48 = vadd.f32 %v3769_v41, %v6926_v4  ;;  %v4661_v41 = vld [vmem:[#allocation18 + $0x508] sm:$0xff] }
 0x4f3   :  { %v3761_v4 = vsel %vm3760_vm14, %v4445_v10, %v3757_v26  ;;  %v4647_v10 = vld [vmem:[#allocation18 + $0x590] sm:$0xff]  ;;  %v4669_v26 = vld [vmem:[#allocation18 + $0x4a8] sm:$0xff] }
 0x4f4   :  { %v4447_v44 = vpop.eup %4446  ;;  %4448 = vtanh.f32 %v3771_v48  ;;  %v3766_v21 = vsel %vm3763_vm15, %v3765_v30, %v3761_v4  ;;  %v4664_v48 = vld [vmem:[#allocation18 + $0x148] sm:$0xff]  ;;  %v4674_v4 = vld [vmem:[#allocation18 + $0xb0] sm:$0xff]  ;;  %v4676_v30 = vld [vmem:[#allocation18 + $0xb8] sm:$0xff] }
 0x4f5   :  { %v3774_v43 = vsub.f32 %v7004_v11, %v4447_v44 }
 0x4f7   :  { %v3776_v57 = vmul.f32 %v3774_v43, %v3751_v8  ;;  %v4668_v43 = vld [vmem:[#allocation18 + $0x118] sm:$0xff]  ;;  %v4671_v8 = vld [vmem:[#allocation18 + $0x470] sm:$0xff] }
 0x4f9   :  { %v7116_v6 = vadd.f32 %v4447_v44, %v3776_v57  ;;  %v4666_v44 = vld [vmem:[#allocation18 + $0x110] sm:$0xff]  ;;  %v4672_v57 = vld [vmem:[#allocation18 + $0xe8] sm:$0xff] }
 0x4fa   :  { %v4449_v22 = vpop.eup %4448 }
 0x4fb   :  { %v3775_v17 = vsub.f32 %v7013_v23, %v4449_v22  ;;  %3804 = vmatmul.f32.vlgmr.msrb.gmra.mxu0 %v7116_v6  ;;  %3844 = vmatmul.f32.vlgmr.msrb.gmra.mxu2 %v7116_v6 }
 0x4fc   :  { %3948 = vmatpush.msrb.mxu0 %v4632_v38  ;;  %3988 = vmatpush.msrb.mxu2 %v4633_v42  ;;  %v4679_v38 = vld [vmem:[#allocation18 + $0x410] sm:$0xff]  ;;  %v4680_v42 = vld [vmem:[#allocation18 + $0x88] sm:$0xff] }
 0x4fd   :  { %v3777_v39 = vmul.f32 %v3775_v17, %v3766_v21  ;;  %v4677_v17 = vld [vmem:[#allocation18 + $0x448] sm:$0xff]  ;;  %v4678_v21 = vld [vmem:[#allocation18 + $0x80] sm:$0xff] }
 0x4fe   :  { %3949 = vmatpush.msrb.mxu0 %v4634_v55  ;;  %3989 = vmatpush.msrb.mxu2 %v4635_v35  ;;  %v4682_v55 = vld [vmem:[#allocation18 + $0x50] sm:$0xff]  ;;  %v4683_v35 = vld [vmem:[#allocation18 + $0x3e0] sm:$0xff] }
 0x4ff   :  { %v7121_v1 = vadd.f32 %v4449_v22, %v3777_v39  ;;  %v4675_v22 = vld [vmem:[#allocation18 + $0x440] sm:$0xff]  ;;  %v4681_v39 = vld [vmem:[#allocation18 + $0x418] sm:$0xff] }
 0x500   :  { %3950 = vmatpush.msrb.mxu0 %v4636_v49  ;;  %3990 = vmatpush.msrb.mxu2 %v4637_v58  ;;  %v4684_v49 = vld [vmem:[#allocation18 + $0x58] sm:$0xff]  ;;  %v4685_v58 = vld [vmem:[#allocation18 + $0x3e8] sm:$0xff] }
 0x501   :  { %3824 = vmatmul.f32.vlgmr.msrb.gmra.mxu1 %v7121_v1  ;;  %3864 = vmatmul.f32.vlgmr.msrb.gmra.mxu3 %v7121_v1 }
 0x502   :  { %3951 = vmatpush.msrb.mxu0 %v4638_v59  ;;  %3968 = vmatpush.msrb.mxu1 %v4639_v14  ;;  %v4686_v59 = vld [vmem:[#allocation18 + $0x20] sm:$0xff]  ;;  %v4687_v14 = vld [vmem:[#allocation18 + $0x3b0] sm:$0xff] }
 0x503   :  { %3991 = vmatpush.msrb.mxu2 %v4640_v0  ;;  %4008 = vmatpush.msrb.mxu3 %v4641_v5  ;;  %v4688_v0 = vld [vmem:[#allocation18 + $0x28] sm:$0xff]  ;;  %v4689_v5 = vld [vmem:[#allocation18 + $0x3b8] sm:$0xff] }
 0x504   :  { %3884 = vmatmul.f32.vlgmr.msra.gmra.mxu0 %v7116_v6  ;;  %3924 = vmatmul.f32.vlgmr.msra.gmra.mxu2 %v7116_v6 }
 0x505   :  { %3952 = vmatpush.msrb.mxu0 %v4642_v20  ;;  %3969 = vmatpush.msrb.mxu1 %v4643_v61  ;;  %v4690_v20 = vld [vmem:[#allocation18 + $0x380] sm:$0xff]  ;;  %v4691_v61 = vld [vmem:[#allocation18 + $0x388] sm:$0xff] }
 0x506   :  { %3992 = vmatpush.msrb.mxu2 %v4644_v52  ;;  %4009 = vmatpush.msrb.mxu3 %v4645_v13  ;;  %v4692_v52 = vld [vmem:[#allocation18 + $0x350] sm:$0xff]  ;;  %v4693_v13 = vld [vmem:[#allocation18 + $0x358] sm:$0xff] }
 0x507   :  { %3953 = vmatpush.msrb.mxu0 %v4646_v54  ;;  %3970 = vmatpush.msrb.mxu1 %v4647_v10  ;;  %v4694_v54 = vld [vmem:[#allocation18 + $0x320] sm:$0xff]  ;;  %v4695_v10 = vld [vmem:[#allocation18 + $0x328] sm:$0xff] }
 0x508   :  { %3993 = vmatpush.msrb.mxu2 %v4648_v46  ;;  %4010 = vmatpush.msrb.mxu3 %v4649_v3  ;;  %v4161_v46 = vld [vmem:[#allocation21 + $0xf0] sm:$0xff]  ;;  %v4162_v3 = vld [vmem:[#allocation21 + $0xf8] sm:$0xff] }
 0x509   :  { %3954 = vmatpush.msrb.mxu0 %v4650_v32  ;;  %3971 = vmatpush.msrb.mxu1 %v4651_v60  ;;  %v4159_v32 = vld [vmem:[#allocation21 + $0xe0] sm:$0xff]  ;;  %v4160_v60 = vld [vmem:[#allocation21 + $0xe8] sm:$0xff] }
 0x50a   :  { %3994 = vmatpush.msrb.mxu2 %v4652_v27  ;;  %4011 = vmatpush.msrb.mxu3 %v4653_v2  ;;  %v4157_v2 = vld [vmem:[#allocation21 + $0xd0] sm:$0xff] }
 0x50b   :  { %3904 = vmatmul.f32.vlgmr.msra.gmra.mxu1 %v7121_v1  ;;  %3944 = vmatmul.f32.vlgmr.msra.gmra.mxu3 %v7121_v1 }
 0x50c   :  { %3955 = vmatpush.msrb.mxu0 %v4654_v28  ;;  %3972 = vmatpush.msrb.mxu1 %v4655_v50  ;;  %v4158_v28 = vld [vmem:[#allocation21 + $0xd8] sm:$0xff] }
 0x50d   :  { %3995 = vmatpush.msrb.mxu2 %v4656_v12  ;;  %4012 = vmatpush.msrb.mxu3 %v4657_v51  ;;  %v4155_v12 = vld [vmem:[#allocation21 + $0xc0] sm:$0xff]  ;;  %v4193_v51 = vld [vmem:[#allocation21 + $0x1f0] sm:$0xff] }
 0x50e   :  { %3956 = vmatpush.msrb.mxu0 %v4658_v19  ;;  %3973 = vmatpush.msrb.mxu1 %v4659_v15  ;;  %v4156_v19 = vld [vmem:[#allocation21 + $0xc8] sm:$0xff] }
 0x50f   :  { %3996 = vmatpush.msrb.mxu2 %v4660_v47  ;;  %4013 = vmatpush.msrb.mxu3 %v4661_v41  ;;  %v4194_v47 = vld [vmem:[#allocation21 + $0x1f8] sm:$0xff] }
 0x510   :  { %3957 = vmatpush.msrb.mxu0 %v4662_v36  ;;  %3974 = vmatpush.msrb.mxu1 %v4663_v7  ;;  %v4153_v36 = vld [vmem:[#allocation21 + $0xb0] sm:$0xff]  ;;  %v4191_v7 = vld [vmem:[#allocation21 + $0x1e0] sm:$0xff] }
 0x511   :  { %3997 = vmatpush.msrb.mxu2 %v4664_v48  ;;  %4014 = vmatpush.msrb.mxu3 %v4665_v16  ;;  %v4154_v48 = vld [vmem:[#allocation21 + $0xb8] sm:$0xff] }
 0x512   :  { %3958 = vmatpush.msrb.mxu0 %v4666_v44  ;;  %3975 = vmatpush.msrb.mxu1 %v4667_v45  ;;  %v4192_v44 = vld [vmem:[#allocation21 + $0x1e8] sm:$0xff] }
 0x513   :  { %3998 = vmatpush.msrb.mxu2 %v4668_v43  ;;  %4015 = vmatpush.msrb.mxu3 %v4669_v26  ;;  %v4189_v43 = vld [vmem:[#allocation21 + $0x1d0] sm:$0xff]  ;;  %v4152_v26 = vld [vmem:[#allocation21 + $0xa8] sm:$0xff] }
 0x514   :  { %3959 = vmatpush.msrb.mxu0 %v4670_v29  ;;  %3976 = vmatpush.msrb.mxu1 %v4671_v8  ;;  %v4190_v29 = vld [vmem:[#allocation21 + $0x1d8] sm:$0xff] }
 0x515   :  { %3999 = vmatpush.msrb.mxu2 %v4672_v57  ;;  %4016 = vmatpush.msrb.mxu3 %v4673_v18  ;;  %v4149_v18 = vld [vmem:[#allocation21 + $0x90] sm:$0xff] }
 0x516   :  { %3960 = vmatpush.msrb.mxu0 %v4674_v4  ;;  %3977 = vmatpush.msrb.mxu1 %v4675_v22  ;;  %v4187_v4 = vld [vmem:[#allocation21 + $0x1c0] sm:$0xff]  ;;  %v4150_v22 = vld [vmem:[#allocation21 + $0x98] sm:$0xff] }
 0x517   :  { %4000 = vmatpush.msrb.mxu2 %v4676_v30  ;;  %4017 = vmatpush.msrb.mxu3 %v4677_v17 }
 0x518   :  { %3961 = vmatpush.msrb.mxu0 %v4678_v21  ;;  %3978 = vmatpush.msrb.mxu1 %v4679_v38  ;;  %v4147_v38 = vld [vmem:[#allocation21 + $0x80] sm:$0xff] }
 0x519   :  { %4001 = vmatpush.msrb.mxu2 %v4680_v42  ;;  %4018 = vmatpush.msrb.mxu3 %v4681_v39  ;;  %v4185_v42 = vld [vmem:[#allocation21 + $0x1b0] sm:$0xff]  ;;  %v4148_v39 = vld [vmem:[#allocation21 + $0x88] sm:$0xff] }
 0x51a   :  { %3962 = vmatpush.msrb.mxu0 %v4682_v55  ;;  %3979 = vmatpush.msrb.mxu1 %v4683_v35 }
 0x51b   :  { %4002 = vmatpush.msrb.mxu2 %v4684_v49  ;;  %4019 = vmatpush.msrb.mxu3 %v4685_v58  ;;  %v4145_v49 = vld [vmem:[#allocation21 + $0x70] sm:$0xff]  ;;  %v4183_v58 = vld [vmem:[#allocation21 + $0x1a0] sm:$0xff] }
 0x51c   :  { %3963 = vmatpush.msrb.mxu0 %v4686_v59  ;;  %3980 = vmatpush.msrb.mxu1 %v4687_v14  ;;  %v4146_v59 = vld [vmem:[#allocation21 + $0x78] sm:$0xff] }
 0x51d   :  { %4003 = vmatpush.msrb.mxu2 %v4688_v0  ;;  %4020 = vmatpush.msrb.mxu3 %v4689_v5  ;;  %v4184_v0 = vld [vmem:[#allocation21 + $0x1a8] sm:$0xff] }
 0x51e   :  { %3964 = vmatmul.f32.vlgmr.msrb.gmra.mxu0 %v7116_v6  ;;  %4004 = vmatmul.f32.vlgmr.msrb.gmra.mxu2 %v7116_v6 }
 0x51f   :  { %3981 = vmatpush.msrb.mxu1 %v4690_v20  ;;  %4021 = vmatpush.msrb.mxu3 %v4691_v61  ;;  %v4143_v61 = vld [vmem:[#allocation21 + $0x60] sm:$0xff] }
 0x520   :  { %4201 = vmatpush.msra.mxu0 %v4161_v46  ;;  %4241 = vmatpush.msra.mxu2 %v4162_v3  ;;  %v4141_v46 = vld [vmem:[#allocation21 + $0x50] sm:$0xff]  ;;  %v4179_v3 = vld [vmem:[#allocation21 + $0x180] sm:$0xff] }
 0x521   :  { %3982 = vmatpush.msrb.mxu1 %v4692_v52  ;;  %4022 = vmatpush.msrb.mxu3 %v4693_v13  ;;  %v4181_v52 = vld [vmem:[#allocation21 + $0x190] sm:$0xff]  ;;  %v4144_v13 = vld [vmem:[#allocation21 + $0x68] sm:$0xff] }
 0x522   :  { %4202 = vmatpush.msra.mxu0 %v4159_v32  ;;  %4242 = vmatpush.msra.mxu2 %v4160_v60  ;;  %v4142_v32 = vld [vmem:[#allocation21 + $0x58] sm:$0xff] }
 0x523   :  { %3983 = vmatpush.msrb.mxu1 %v4694_v54  ;;  %4023 = vmatpush.msrb.mxu3 %v4695_v10 }
 0x524   :  { %3984 = vmatmul.f32.vlgmr.msrb.gmra.mxu1 %v7121_v1  ;;  %4024 = vmatmul.f32.vlgmr.msrb.gmra.mxu3 %v7121_v1 }
 0x525   :  { %4203 = vmatpush.msra.mxu0 %v4157_v2  ;;  %4243 = vmatpush.msra.mxu2 %v4158_v28 }
 0x526   :  { %4221 = vmatpush.msra.mxu1 %v4193_v51  ;;  %4261 = vmatpush.msra.mxu3 %v4194_v47  ;;  %v4140_v51 = vld [vmem:[#allocation21 + $0x48] sm:$0xff]  ;;  %v4137_v47 = vld [vmem:[#allocation21 + $0x30] sm:$0xff] }
 0x527   :  { %4204 = vmatpush.msra.mxu0 %v4155_v12  ;;  %4244 = vmatpush.msra.mxu2 %v4156_v19  ;;  %v4177_v12 = vld [vmem:[#allocation21 + $0x170] sm:$0xff]  ;;  %v4178_v19 = vld [vmem:[#allocation21 + $0x178] sm:$0xff] }
 0x528   :  { %4222 = vmatpush.msra.mxu1 %v4191_v7  ;;  %4262 = vmatpush.msra.mxu3 %v4192_v44  ;;  %v4173_v44 = vld [vmem:[#allocation21 + $0x150] sm:$0xff] }
 0x529   :  { %4205 = vmatpush.msra.mxu0 %v4153_v36  ;;  %4245 = vmatpush.msra.mxu2 %v4154_v48  ;;  %v4138_v36 = vld [vmem:[#allocation21 + $0x38] sm:$0xff] }
 0x52a   :  { %4223 = vmatpush.msra.mxu1 %v4189_v43  ;;  %4263 = vmatpush.msra.mxu3 %v4190_v29  ;;  %v4174_v43 = vld [vmem:[#allocation21 + $0x158] sm:$0xff]  ;;  %v4133_v29 = vld [vmem:[#allocation21 + $0x10] sm:$0xff] }
 0x52b   :  { %4246 = vmatpush.msra.mxu2 %v4152_v26 }
 0x52c   :  { %4224 = vmatpush.msra.mxu1 %v4187_v4 }
 0x52d   :  { %4247 = vmatpush.msra.mxu2 %v4150_v22 }
 0x52e   :  { %4225 = vmatpush.msra.mxu1 %v4185_v42 }
 0x52f   :  { %4248 = vmatpush.msra.mxu2 %v4148_v39  ;;  %v4167_v39 = vld [vmem:[#allocation21 + $0x120] sm:$0xff] }
 0x530   :  { %4226 = vmatpush.msra.mxu1 %v4183_v58  ;;  %v4163_v58 = vld [vmem:[#allocation21 + $0x100] sm:$0xff] }
 0x531   :  { %4249 = vmatpush.msra.mxu2 %v4146_v59 }
 0x532   :  { %4227 = vmatpush.msra.mxu1 %v4181_v52 }
 0x533   :  { %4250 = vmatpush.msra.mxu2 %v4144_v13 }
 0x534   :  { %4228 = vmatpush.msra.mxu1 %v4179_v3 }
 0x535   :  { %4251 = vmatpush.msra.mxu2 %v4142_v32 }
 0x536   :  { %4229 = vmatpush.msra.mxu1 %v4177_v12 }
 0x537   :  { %4252 = vmatpush.msra.mxu2 %v4140_v51 }
 0x539   :  { %4253 = vmatpush.msra.mxu2 %v4138_v36 }
 0x578   :  { %v3805_v27 = vpop.f32.mrf.mxu0 }
 0x579   :  { %v3806_v50 = vadd.f32 %v3805_v27, %v6938_v25  ;;  %v4151_v25 = vld [vmem:[#allocation21 + $0xa0] sm:$0xff]  ;;  %v4180_v27 = vld [vmem:[#allocation21 + $0x188] sm:$0xff] }
 0x57a   :  { %4206 = vmatpush.msra.mxu0 %v4151_v25 }
 0x57c   :  { %4207 = vmatpush.msra.mxu0 %v4149_v18 }
 0x57e   :  { %v3825_v15 = vpop.f32.mrf.mxu1  ;;  %v3845_v16 = vpop.f32.mrf.mxu2  ;;  %4208 = vmatpush.msra.mxu0 %v4147_v38  ;;  %v4170_v38 = vld [vmem:[#allocation21 + $0x138] sm:$0xff] }
 0x57f   :  { %v3826_v41 = vadd.f32 %v3825_v15, %v3806_v50  ;;  %v3846_v57 = vadd.f32 %v3845_v16, %v6944_v31  ;;  %v4186_v31 = vld [vmem:[#allocation21 + $0x1b8] sm:$0xff]  ;;  %v4139_v50 = vld [vmem:[#allocation21 + $0x40] sm:$0xff] }
 0x580   :  { %4209 = vmatpush.msra.mxu0 %v4145_v49  ;;  %v4135_v16 = vld [vmem:[#allocation21 + $0x20] sm:$0xff]  ;;  %v4166_v49 = vld [vmem:[#allocation21 + $0x118] sm:$0xff] }
 0x581   :  { %v4028_v45 = vadd.f32 %v3826_v41, %v6767_v63  ;;  %v3885_v30 = vpop.f32.mrf.mxu0  ;;  %v4188_v63 = vld [vmem:[#allocation21 + $0x1c8] sm:$0xff]  ;;  %v4175_v41 = vld [vmem:[#allocation21 + $0x160] sm:$0xff] }
 0x582   :  { %4264 = vmatpush.msra.mxu3 %v4188_v63  ;;  %v3886_v55 = vadd.f32 %v3885_v30, %v6950_v24  ;;  %4210 = vmatpush.msra.mxu0 %v4143_v61  ;;  %v4131_v30 = vld [vmem:[#allocation21] sm:$0xff]  ;;  %v4132_v63 = vld [vmem:[#allocation21 + $0x8] sm:$0xff] }
 0x583   :  { %v4331_v8 = vmul.f32 -1.442695, %v4028_v45  ;;  %4230 = vmatpush.msra.mxu1 %v4175_v41  ;;  %v4136_v45 = vld [vmem:[#allocation21 + $0x28] sm:$0xff] }
 0x584   :  { %v3865_v17 = vpop.f32.mrf.mxu3  ;;  %4265 = vmatpush.msra.mxu3 %v4186_v31  ;;  %4211 = vmatpush.msra.mxu0 %v4141_v46  ;;  %v4168_v31 = vld [vmem:[#allocation21 + $0x128] sm:$0xff] }
 0x585   :  { %4450 = vpow2.f32 %v4331_v8  ;;  %v3866_v21 = vadd.f32 %v3865_v17, %v3846_v57  ;;  %4231 = vmatpush.msra.mxu1 %v4173_v44  ;;  %4254 = vmatpush.msra.mxu2 %v4136_v45  ;;  %v4171_v8 = vld [vmem:[#allocation21 + $0x140] sm:$0xff]  ;;  %v4134_v57 = vld [vmem:[#allocation21 + $0x18] sm:$0xff]  ;;  %v4169_v17 = vld [vmem:[#allocation21 + $0x130] sm:$0xff] }
 0x586   :  { %4266 = vmatpush.msra.mxu3 %v4184_v0  ;;  %4212 = vmatpush.msra.mxu0 %v4139_v50 }
 0x587   :  { %v4029_v35 = vadd.f32 %v3866_v21, %v6784_v9  ;;  %v3925_v54 = vpop.f32.mrf.mxu2  ;;  %v4182_v9 = vld [vmem:[#allocation21 + $0x198] sm:$0xff]  ;;  %4232 = vmatpush.msra.mxu1 %v4171_v8  ;;  %4255 = vmatpush.msra.mxu2 %v4134_v57 }
 0x588   :  { %v3905_v14 = vpop.f32.mrf.mxu1  ;;  %4267 = vmatpush.msra.mxu3 %v4182_v9  ;;  %v3926_v28 = vadd.f32 %v3925_v54, %v6956_v62  ;;  %4213 = vmatpush.msra.mxu0 %v4137_v47  ;;  %v4176_v62 = vld [vmem:[#allocation21 + $0x168] sm:$0xff] }
 0x589   :  { %v4332_v5 = vmul.f32 -1.442695, %v4029_v35  ;;  %v3906_v20 = vadd.f32 %v3905_v14, %v3886_v55  ;;  %4233 = vmatpush.msra.mxu1 %v4169_v17  ;;  %4256 = vmatpush.msra.mxu2 %v4132_v63  ;;  %v4165_v35 = vld [vmem:[#allocation21 + $0x110] sm:$0xff]  ;;  %v4164_v14 = vld [vmem:[#allocation21 + $0x108] sm:$0xff] }
 0x58a   :  { %4268 = vmatpush.msra.mxu3 %v4180_v27  ;;  %4214 = vmatpush.msra.mxu0 %v4135_v16 }
 0x58b   :  { %v4451_v24 = vpop.eup %4450  ;;  %4452 = vpow2.f32 %v4332_v5  ;;  %v4068_v10 = vadd.f32 %v3906_v20, %v6846_v53  ;;  %4234 = vmatpush.msra.mxu1 %v4167_v39 }
 0x58c   :  { %v7139_v60 = vadd.f32 1.0, %v4451_v24  ;;  %4269 = vmatpush.msra.mxu3 %v4178_v19  ;;  %4215 = vmatpush.msra.mxu0 %v4133_v29 }
 0x58d   :  { %v4333_v2 = vmul.f32 -1.442695, %v4068_v10  ;;  %4235 = vmatpush.msra.mxu1 %v4165_v35 }
 0x58e   :  { %4454 = vrcp.f32 %v7139_v60  ;;  %v3945_v53 = vpop.f32.mrf.mxu3  ;;  %4270 = vmatpush.msra.mxu3 %v4176_v62  ;;  %4216 = vmatpush.msra.mxu0 %v4131_v30  ;;  %v4049_v20 = vand.u32 2147483648, %v7139_v60  ;;  %vm4043_vm1 = vweird.f32 %v7139_v60  ;;  %v4047_v13 = vand.u32 2147483647, %v7139_v60 }
 0x58f   :  { %4456 = vpow2.f32 %v4333_v2  ;;  %v3946_v15 = vadd.f32 %v3945_v53, %v3926_v28  ;;  %4236 = vmatpush.msra.mxu1 %v4163_v58 }
 0x590   :  { %4271 = vmatpush.msra.mxu3 %v4174_v43  ;;  %v4050_v3 = vor.u32 1.1754944e-38, %v4049_v20  ;;  %vm4048_vm3 = vcmp.eq.f32.partialorder %v4047_v13, 8.507059e+37 }
 0x591   :  { %v4453_v7 = vpop.eup %4452  ;;  %v4069_v48 = vadd.f32 %v3946_v15, %v6862_v40  ;;  %v4172_v40 = vld [vmem:[#allocation21 + $0x148] sm:$0xff] }
 0x592   :  { %v7144_v25 = vadd.f32 1.0, %v4453_v7  ;;  %4272 = vmatpush.msra.mxu3 %v4172_v40 }
 0x593   :  { %v4334_v26 = vmul.f32 -1.442695, %v4069_v48 }
 0x594   :  { %v4455_v18 = vpop.eup %4454  ;;  %4458 = vrcp.f32 %v7144_v25  ;;  %4273 = vmatpush.msra.mxu3 %v4170_v38  ;;  %v4064_v12 = vand.u32 2147483648, %v7144_v25  ;;  %vm4058_vm5 = vweird.f32 %v7144_v25  ;;  %v4062_v53 = vand.u32 2147483647, %v7144_v25 }
 0x595   :  { %v4457_v4 = vpop.eup %4456  ;;  %4460 = vpow2.f32 %v4334_v26  ;;  %v4039_v22 = vmul.f32 %v4455_v18, %v7139_v60  ;;  %vm4044_vm0 = vweird.f32 %v4455_v18 }
 0x596   :  { %v7148_v21 = vadd.f32 1.0, %v4457_v4  ;;  %4274 = vmatpush.msra.mxu3 %v4168_v31  ;;  %vm4045_vm2 = vmor %vm4043_vm1, %vm4044_vm0  ;;  %v4065_v62 = vor.u32 1.1754944e-38, %v4064_v12  ;;  %vm4063_vm7 = vcmp.eq.f32.partialorder %v4062_v53, 8.507059e+37  ;;  %vm4300_vm0 = vcmask 7168  }
 0x597   :  { %v4040_v42 = vsub.f32 1.0, %v4039_v22 }
 0x598   :  { %4462 = vrcp.f32 %v7148_v21  ;;  %4275 = vmatpush.msra.mxu3 %v4166_v49  ;;  %v4089_v26 = vand.u32 2147483648, %v7148_v21  ;;  %vm4083_vm9 = vweird.f32 %v7148_v21  ;;  %v4087_v57 = vand.u32 2147483647, %v7148_v21 }
 0x599   :  { %v4041_v55 = vmul.f32 %v4455_v18, %v4040_v42  ;;  %v3780_v42 = vadd.f32 %v7116_v6, %v7004_v11  ;;  %v4195_v11 = vld [vmem:[%s7198_s10] sm:$0x3] }
 0x59a   :  { %v4459_v59 = vpop.eup %4458  ;;  %4276 = vmatpush.msra.mxu3 %v4164_v14  ;;  %v4090_v40 = vor.u32 1.1754944e-38, %v4089_v26  ;;  %vm4088_vm12 = vcmp.eq.f32.partialorder %v4087_v57, 8.507059e+37  ;;  %v3781_v14 = vadd.f32 %v7121_v1, %v7013_v23 }
 0x59b   :  { %v4461_v0 = vpop.eup %4460  ;;  %v4042_v5 = vadd.f32 %v4455_v18, %v4041_v55  ;;  %v4054_v61 = vmul.f32 %v4459_v59, %v7144_v25  ;;  %v3965_v54 = vpop.f32.mrf.mxu0  ;;  %vm4059_vm4 = vweird.f32 %v4459_v59 }
 0x59c   :  { %v7153_v52 = vadd.f32 1.0, %v4461_v0  ;;  %v3966_v27 = vadd.f32 %v3965_v54, %v6972_v34  ;;  %vm4060_vm6 = vmor %vm4058_vm5, %vm4059_vm4 }
 0x59d   :  { %v4055_v9 = vsub.f32 1.0, %v4054_v61  ;;  %v4046_v10 = vsel %vm4045_vm2, %v4455_v18, %v4042_v5 }
 0x59e   :  { %v4463_v24 = vpop.eup %4462  ;;  %4464 = vrcp.f32 %v7153_v52  ;;  %v4051_v60 = vsel %vm4048_vm3, %v4050_v3, %v4046_v10  ;;  %v4104_v30 = vand.u32 2147483648, %v7153_v52  ;;  %vm4098_vm13 = vweird.f32 %v7153_v52 }
 0x59f   :  { %v4079_v46 = vmul.f32 %v4463_v24, %v7148_v21  ;;  %v4056_v32 = vmul.f32 %v4459_v59, %v4055_v9  ;;  %vm4084_vm8 = vweird.f32 %v4463_v24  ;;  %v4102_v21 = vand.u32 2147483647, %v7153_v52  ;;  %v4283_v9 = vld [vmem:[%s7199_s11] sm:$0x3] }
 0x5a0   :  { %vm4085_vm10 = vmor %vm4083_vm9, %vm4084_vm8  ;;  %v4105_v31 = vor.u32 1.1754944e-38, %v4104_v30  ;;  %v4286_v3 = vperm.slane %v4283_v9, 1 }
 0x5a1   :  { %v4080_v2 = vsub.f32 1.0, %v4079_v46  ;;  %v3985_v28 = vpop.f32.mrf.mxu1  ;;  %v4057_v50 = vadd.f32 %v4459_v59, %v4056_v32  ;;  %v4005_v19 = vpop.f32.mrf.mxu2  ;;  %vm4103_vm15 = vcmp.eq.f32.partialorder %v4102_v21, 8.507059e+37  ;;  %v4285_v46 = vperm.slane %v4283_v9, 0 }
 0x5a2   :  { %v3986_v51 = vadd.f32 %v3985_v28, %v3966_v27  ;;  %v4006_v48 = vadd.f32 %v4005_v19, %v6982_v33 }
 0x5a3   :  { %v4061_v41 = vsel %vm4060_vm6, %v4459_v59, %v4057_v50  ;;  %v4081_v36 = vmul.f32 %v4463_v24, %v4080_v2 }
 0x5a4   :  { %v4465_v15 = vpop.eup %4464  ;;  %v4108_v47 = vmul.f32 %v4051_v60, %v3986_v51  ;;  %v4066_v45 = vsel %vm4063_vm7, %v4065_v62, %v4061_v41  ;;  %v4349_v60 = vld [vmem:[#allocation7] ss:$0 sm:$0xff] }
 0x5a5   :  { %v4094_v34 = vmul.f32 %v4465_v15, %v7153_v52  ;;  %v4082_v25 = vadd.f32 %v4463_v24, %v4081_v36  ;;  %vm4099_vm11 = vweird.f32 %v4465_v15  ;;  %v4198_v52 = vperm.slane %v4195_v11, 1 }
 0x5a6   :  { %v4110_v7 = vadd.f32 %v4108_v47, %v6933_v56  ;;  %vm4100_vm14 = vmor %vm4098_vm13, %vm4099_vm11 }
 0x5a7   :  { %v4095_v16 = vsub.f32 1.0, %v4094_v34  ;;  %v4025_v44 = vpop.f32.mrf.mxu3  ;;  %v4086_v33 = vsel %vm4085_vm10, %v4463_v24, %v4082_v25 }
 0x5a8   :  { %4466 = vtanh.f32 %v4110_v7  ;;  %v4026_v43 = vadd.f32 %v4025_v44, %v4006_v48  ;;  %v4091_v17 = vsel %vm4088_vm12, %v4090_v40, %v4086_v33 }
 0x5a9   :  { %v4096_v8 = vmul.f32 %v4465_v15, %v4095_v16 }
 0x5aa   :  { %v4109_v29 = vmul.f32 %v4066_v45, %v4026_v43 }
 0x5ab   :  { %v4097_v22 = vadd.f32 %v4465_v15, %v4096_v8 }
 0x5ac   :  { %v4111_v56 = vadd.f32 %v4109_v29, %v6940_v37 }
 0x5ad   :  { %v4101_v37 = vsel %vm4100_vm14, %v4465_v15, %v4097_v22 }
 0x5ae   :  { %v4467_v18 = vpop.eup %4466  ;;  %4468 = vtanh.f32 %v4111_v56  ;;  %v4106_v49 = vsel %vm4103_vm15, %v4105_v31, %v4101_v37 }
 0x5af   :  { %v4114_v4 = vsub.f32 %v7116_v6, %v4467_v18  ;;  %v4197_v6 = vperm.slane %v4195_v11, 0 }
 0x5b1   :  { %v4116_v63 = vmul.f32 %v4114_v4, %v4091_v17 }
 0x5b3   :  { %v4118_v38 = vadd.f32 %v4467_v18, %v4116_v63 }
 0x5b4   :  { %v4469_v39 = vpop.eup %4468 }
 0x5b5   :  { %v4115_v55 = vsub.f32 %v7121_v1, %v4469_v39  ;;  %v4120_v35 = vadd.f32 %v4118_v38, %v3780_v42 }
 0x5b7   :  { %v4117_v58 = vmul.f32 %v4115_v55, %v4106_v49  ;;  %4217 = vmatmul.f32.vlgmr.msra.gmra.mxu0 %v4120_v35  ;;  %4257 = vmatmul.f32.vlgmr.msra.gmra.mxu2 %v4120_v35 }
 0x5b9   :  { %v4119_v59 = vadd.f32 %v4469_v39, %v4117_v58 }
 0x5bb   :  { %v4121_v0 = vadd.f32 %v4119_v59, %v3781_v14 }
 0x5bd   :  { %4237 = vmatmul.f32.vlgmr.msra.gmra.mxu1 %v4121_v0  ;;  %4277 = vmatmul.f32.vlgmr.msra.gmra.mxu3 %v4121_v0 }
 0x634   :  { %v4218_v5 = vpop.f32.mrf.mxu0 }
 0x635   :  { %v4219_v61 = vadd.f32 %v4218_v5, %v4197_v6 }
 0x63a   :  { %v4238_v20 = vpop.f32.mrf.mxu1  ;;  %v4258_v13 = vpop.f32.mrf.mxu2 }
 0x63b   :  { %v4239_v54 = vadd.f32 %v4238_v20, %v4219_v61  ;;  %v4259_v24 = vadd.f32 %v4258_v13, %v4198_v52 }
 0x63d   :  { %v4281_v1 = vmax.f32 %v4239_v54, 0.0 }
 0x63f   :  { %v4289_v27 = vmul.f32 %v4285_v46, %v4281_v1 }
 0x640   :  { %v4278_v23 = vpop.f32.mrf.mxu3 }
 0x641   :  { %v4279_v10 = vadd.f32 %v4278_v23, %v4259_v24 }
 0x643   :  { %v4282_v32 = vmax.f32 %v4279_v10, 0.0 }
 0x645   :  { %v4290_v2 = vmul.f32 %v4286_v3, %v4282_v32 }
 0x647   :  { %v4291_v28 = vadd.f32 %v4290_v2, %v4289_v27 }
 0x649   :  { %4292 = vadd.xlane.f32.xlu0 %v4291_v28 }
 0x6bc   :  { %v4293_v50 = vpop.xlane.xlu0 %4292 }
 0x6bd   :  { %v4298_v12 = vadd.f32 %v4349_v60, %v4293_v50 }
 0x6bf   :  { %v4299_v51 = vmax.f32 %v4298_v12, 0.0 }
 0x6c1   :  { %4301 = vst.msk [vmem:[%s7201_s13] sm:$0xff] %vm4300_vm0, %v4299_v51 }
 0x6c2   :  { %4306 = vsyncpa [#allocation9], 1 }
 0x6c3   :  { %4307 = vsyncpa [#allocation11], 1 }
 0x6c4   :  { %4308 = vsyncpa [#allocation14], 1 }
 0x6c5   :  { %4309 = vsyncpa [#allocation17], 1 }
 0x6c6   :  { %4310 = vsyncpa [#allocation20], 1 }

</bundles_post_ra>
